<compile_context>
chip_gen: v7x
topology: tpu7x:2x2x1
jax: 0.10.0
libtpu: 0.0.40
codegen_flags: <defaults>
</compile_context>

<pallas_src>
import functools

import jax
import jax.numpy as jnp
from jax.experimental import pallas as pl
from jax.experimental.pallas import tpu as pltpu

H_DIM = 16


# ---------------------------------------------------------------------------
# Pallas kernels
# ---------------------------------------------------------------------------

def _conv_gemm_kernel(w_ref, p_ref, b_ref, o_ref, *, relu):
    """bf16 (N, K) @ (K, M) GEMM, fp32 accumulate, +bias (+ReLU)."""
    acc = jnp.dot(w_ref[...], p_ref[...], preferred_element_type=jnp.float32)
    acc = acc + b_ref[...]                     # bias (N, 1) broadcasts, fp32
    if relu:
        acc = jnp.maximum(acc, 0.0)
    o_ref[...] = acc.astype(o_ref.dtype)


def conv_gemm(w, b, patches, *, relu, out_dtype=jnp.bfloat16):
    n = w.shape[0]
    m = patches.shape[1]
    return pl.pallas_call(
        functools.partial(_conv_gemm_kernel, relu=relu),
        out_shape=jax.ShapeDtypeStruct((n, m), out_dtype),
        compiler_params=pltpu.CompilerParams(
            vmem_limit_bytes=32 * 1024 * 1024),
    )(w, patches, b)


def _middle_kernel(p4_ref, w4_ref, b4_ref,
                   w1_ref, b1_ref, w2_ref, b2_ref,
                   wmu_ref, bmu_ref, wlv_ref, blv_ref,
                   eps_ref,
                   d1_ref, db1_ref, d2_ref, db2_ref, d3_ref, db3_ref,
                   d_out_ref, mu_ref, lv_ref, *, batch):
    """Fused: ec4 conv-GEMM -> NCHW flatten -> enc Linears -> mu/logvar ->
    reparameterize -> dec Linears.  One launch; nothing leaves VMEM."""
    # ec4: (32, 512)bf16 @ (512, B*16)bf16 -> fp32, +bias, ReLU
    a4 = jnp.dot(w4_ref[...], p4_ref[...], preferred_element_type=jnp.float32)
    a4 = jnp.maximum(a4 + b4_ref[...], 0.0)            # (32, B*16)

    # flatten to (B, 512) in PyTorch view(-1, 512) order: h[b, c*16+q] = a4[c, b*16+q]
    rows = []
    for b in range(batch):
        pieces = [a4[c:c + 1, b * 16:(b + 1) * 16] for c in range(32)]
        rows.append(jnp.concatenate(pieces, axis=1))   # (1, 512)
    h = jnp.concatenate(rows, axis=0)                  # (B, 512) fp32

    def lin(x, w, bias, act):
        y = jnp.dot(x.astype(jnp.bfloat16), w[...],
                    preferred_element_type=jnp.float32) + bias[...]
        return jnp.maximum(y, 0.0) if act else y

    h = lin(h, w1_ref, b1_ref, True)                   # (B, 256)
    h = lin(h, w2_ref, b2_ref, True)                   # (B, 256)
    mu = lin(h, wmu_ref, bmu_ref, False)               # (B, h_dim)
    lv = lin(h, wlv_ref, blv_ref, False)               # (B, h_dim)
    mu_ref[...] = mu
    lv_ref[...] = lv

    z = mu + jnp.exp(0.5 * lv) * eps_ref[...]          # reparameterize (fp32)

    d = lin(z, d1_ref, db1_ref, True)                  # (B, 256)
    d = lin(d, d2_ref, db2_ref, True)                  # (B, 256)
    d = lin(d, d3_ref, db3_ref, True)                  # (B, 512)
    d_out_ref[...] = d.astype(d_out_ref.dtype)


def middle(p4, p, eps, batch, h_dim):
    out_shapes = (jax.ShapeDtypeStruct((batch, 512), jnp.bfloat16),
                  jax.ShapeDtypeStruct((batch, h_dim), jnp.float32),
                  jax.ShapeDtypeStruct((batch, h_dim), jnp.float32))
    return pl.pallas_call(
        functools.partial(_middle_kernel, batch=batch),
        out_shape=out_shapes,
        compiler_params=pltpu.CompilerParams(
            vmem_limit_bytes=32 * 1024 * 1024),
    )(p4, p["ec4_w"], p["ec4_b"],
      p["el1_w"], p["el1_b"], p["el2_w"], p["el2_b"],
      p["el3_wmu"], p["el3_bmu"], p["el3_wlv"], p["el3_blv"],
      eps,
      p["dl1_w"], p["dl1_b"], p["dl2_w"], p["dl2_b"], p["dl3_w"], p["dl3_b"])


# ---------------------------------------------------------------------------
# Conv glue (cheap bf16 XLA indexing between the Pallas GEMMs)
# ---------------------------------------------------------------------------

def _im2col_t(x, kh, kw, stride, pad):
    """x: (C, B, H, W) -> transposed patches (C*kh*kw, B*OH*OW); K order (c,i,j)."""
    C, B, H, W = x.shape
    xp = jnp.pad(x, ((0, 0), (0, 0), (pad, pad), (pad, pad)))
    OH = (H + 2 * pad - kh) // stride + 1
    OW = (W + 2 * pad - kw) // stride + 1
    taps = []
    for i in range(kh):
        for j in range(kw):
            taps.append(xp[:, :, i:i + OH * stride:stride,
                           j:j + OW * stride:stride])
    patches = jnp.stack(taps, axis=1)              # (C, kh*kw, B, OH, OW)
    return patches.reshape(C * kh * kw, B * OH * OW), OH, OW


def conv2d_cbhw(x, w, b, *, stride, pad, relu, kh=4, kw=4,
                out_dtype=jnp.bfloat16):
    """PyTorch-semantics Conv2d on CBHW bf16 activations via one Pallas GEMM."""
    C_out = w.shape[0]
    B = x.shape[1]
    patches, OH, OW = _im2col_t(x, kh, kw, stride, pad)
    out = conv_gemm(w, b, patches, relu=relu, out_dtype=out_dtype)
    return out.reshape(C_out, B, OH, OW)


def conv_transpose2d_phase(x, w_full, b_full, *, relu=True):
    """ConvTranspose2d(k=4, s=2, p=1) via sub-pixel (phase) decomposition:
    one GEMM over the stride-1 k=3 im2col of the UN-dilated input produces all
    four output phases (channel-stacked), then a cheap XLA interleave."""
    Cin, B, h, w = x.shape
    Cout = w_full.shape[0] // 4
    patches, _, _ = _im2col_t(x, 3, 3, 1, 1)       # (Cin*9, B*h*w)
    y = conv_gemm(w_full, b_full, patches, relu=relu)   # (4*Cout, B*h*w)
    y = y.reshape(2, 2, Cout, B, h, w)             # (rho, kap, co, b, y, x)
    y = jnp.transpose(y, (2, 3, 4, 0, 5, 1))       # (co, b, y, rho, x, kap)
    return y.reshape(Cout, B, 2 * h, 2 * w)


# ---------------------------------------------------------------------------
# Parameters (PyTorch layout -> packed once at init, bf16 GEMM operands)
# ---------------------------------------------------------------------------

def _pack_convT_phase(wt, bias):
    """wt: ConvTranspose2d weight (Cin, Cout, 4, 4); returns the stacked
    per-phase stride-1 3x3 weight (4*Cout, Cin*9) bf16 and bias (4*Cout,1) f32."""
    Cin, Cout = wt.shape[0], wt.shape[1]
    # maps[rho][tap_offset th (input y + th - 1)] = original kernel index
    maps = ({0: 3, 1: 1}, {1: 2, 2: 0})
    w4 = jnp.zeros((2, 2, Cout, Cin, 3, 3), jnp.float32)
    for rho in (0, 1):
        for th, ih in maps[rho].items():
            for kap in (0, 1):
                for tw, iw in maps[kap].items():
                    w4 = w4.at[rho, kap, :, :, th, tw].set(wt[:, :, ih, iw].T)
    w_full = w4.reshape(4 * Cout, Cin * 9).astype(jnp.bfloat16)
    b_full = jnp.tile(bias, 4).reshape(4 * Cout, 1)     # fp32
    return w_full, b_full


def pack_params(raw, h_dim):
    bf = jnp.bfloat16
    p = {}
    # Encoder convs: (Cout, Cin, 4, 4) -> (Cout, Cin*16) bf16; bias (Cout,1) f32.
    for i in range(1, 5):
        wt = raw[f"ec{i}_w"]
        p[f"ec{i}_w"] = wt.reshape(wt.shape[0], -1).astype(bf)
        p[f"ec{i}_b"] = raw[f"ec{i}_b"].reshape(-1, 1)
    # dc1-dc3: stride-2 ConvTranspose -> phase-packed stride-1 GEMM weights.
    for i in range(1, 4):
        p[f"dc{i}_w"], p[f"dc{i}_b"] = _pack_convT_phase(raw[f"dc{i}_w"],
                                                         raw[f"dc{i}_b"])
    # dc4: stride-1 ConvTranspose -> equivalent conv (flip spatial, swap io).
    wt = jnp.flip(raw["dc4_w"], axis=(2, 3)).transpose(1, 0, 2, 3)
    p["dc4_w"] = wt.reshape(wt.shape[0], -1).astype(bf)     # (1, 512)
    p["dc4_b"] = raw["dc4_b"].reshape(-1, 1)
    # Linear layers: (in, out) bf16; bias (1, out) f32.
    for name in ("el1", "el2", "dl1", "dl2", "dl3"):
        p[f"{name}_w"] = raw[f"{name}_w"].astype(bf)
        p[f"{name}_b"] = raw[f"{name}_b"].reshape(1, -1)
    # Split the (256, 2*h_dim) head into mu / logvar halves at init.
    p["el3_wmu"] = raw["el3_w"][:, :h_dim].astype(bf)
    p["el3_wlv"] = raw["el3_w"][:, h_dim:].astype(bf)
    p["el3_bmu"] = raw["el3_b"][:h_dim].reshape(1, h_dim)
    p["el3_blv"] = raw["el3_b"][h_dim:].reshape(1, h_dim)
    return p


def init_params(key, h_dim):
    keys = jax.random.split(key, 32)
    it = iter(keys)

    def w(shape, scale=0.05):
        return (scale * jax.random.normal(next(it), shape)).astype(jnp.float32)

    raw = {}
    raw["ec1_w"], raw["ec1_b"] = w((32, 1, 4, 4)), w((32,), 0.01)
    raw["ec2_w"], raw["ec2_b"] = w((32, 32, 4, 4)), w((32,), 0.01)
    raw["ec3_w"], raw["ec3_b"] = w((32, 32, 4, 4)), w((32,), 0.01)
    raw["ec4_w"], raw["ec4_b"] = w((32, 32, 4, 4)), w((32,), 0.01)
    raw["el1_w"], raw["el1_b"] = w((512, 256)), w((256,), 0.01)
    raw["el2_w"], raw["el2_b"] = w((256, 256)), w((256,), 0.01)
    raw["el3_w"], raw["el3_b"] = w((256, 2 * h_dim)), w((2 * h_dim,), 0.01)
    raw["dl1_w"], raw["dl1_b"] = w((h_dim, 256)), w((256,), 0.01)
    raw["dl2_w"], raw["dl2_b"] = w((256, 256)), w((256,), 0.01)
    raw["dl3_w"], raw["dl3_b"] = w((256, 512)), w((512,), 0.01)
    raw["dc1_w"], raw["dc1_b"] = w((32, 32, 4, 4)), w((32,), 0.01)
    raw["dc2_w"], raw["dc2_b"] = w((32, 32, 4, 4)), w((32,), 0.01)
    raw["dc3_w"], raw["dc3_b"] = w((32, 32, 4, 4)), w((32,), 0.01)
    raw["dc4_w"], raw["dc4_b"] = w((32, 1, 4, 4)), w((1,), 0.01)
    return pack_params(raw, h_dim)


# ---------------------------------------------------------------------------
# VAEFC forward
# ---------------------------------------------------------------------------

def vaefc_forward(params, x, eps, h_dim=H_DIM):
    B = x.shape[0]
    x_shape = x.shape

    # --- encoder convs (CBHW bf16, one Pallas GEMM each) ---
    h = jnp.transpose(x, (1, 0, 2, 3)).astype(jnp.bfloat16)   # (1, B, 29, 29)
    h = conv2d_cbhw(h, params["ec1_w"], params["ec1_b"], stride=1, pad=3, relu=True)
    h = conv2d_cbhw(h, params["ec2_w"], params["ec2_b"], stride=2, pad=1, relu=True)
    h = conv2d_cbhw(h, params["ec3_w"], params["ec3_b"], stride=2, pad=1, relu=True)

    # --- fused middle kernel: ec4 GEMM + flatten + enc/dec Linears + reparam ---
    p4, _, _ = _im2col_t(h, 4, 4, 2, 1)                        # (512, B*16)
    d512, mu, logvar = middle(p4, params, eps, B, h_dim)       # (B,512) bf16

    # --- decoder convs ---
    d = jnp.transpose(d512.reshape(B, 32, 4, 4), (1, 0, 2, 3))  # (32, B, 4, 4)
    d = conv_transpose2d_phase(d, params["dc1_w"], params["dc1_b"], relu=True)
    d = conv_transpose2d_phase(d, params["dc2_w"], params["dc2_b"], relu=True)
    d = conv_transpose2d_phase(d, params["dc3_w"], params["dc3_b"], relu=True)
    d = conv2d_cbhw(d, params["dc4_w"], params["dc4_b"], stride=1, pad=0,
                    relu=False, out_dtype=jnp.float32)           # (1, B, 29, 29)
    recon = jnp.transpose(d, (1, 0, 2, 3)).reshape(x_shape)
    return recon, mu, logvar


if __name__ == "__main__":
    key = jax.random.PRNGKey(0)
    k_param, k_x, k_eps = jax.random.split(key, 3)

    B = 2
    x = jax.random.uniform(k_x, (B, 1, 29, 29), jnp.float32)   # NCHW input
    params = init_params(k_param, H_DIM)
    eps = jax.random.normal(k_eps, (B, H_DIM), jnp.float32)    # reparam noise

    fwd = jax.jit(functools.partial(vaefc_forward, h_dim=H_DIM))
    recon, mu, logvar = fwd(params, x, eps)
    jax.block_until_ready((recon, mu, logvar))

    assert recon.shape == x.shape
    assert mu.shape == (B, H_DIM) and logvar.shape == (B, H_DIM)
    assert bool(jnp.all(jnp.isfinite(recon)))
    assert bool(jnp.all(jnp.isfinite(mu))) and bool(jnp.all(jnp.isfinite(logvar)))
    print("KERNEL_OK")
</pallas_src>

<mosaic_0001>
module attributes {stable_mosaic.version = 11 : i64} {
  func.func @_conv_gemm_kernel(%arg0: memref<32x16xbf16, #tpu.memory_space<vmem>>, %arg1: memref<16x2048xbf16, #tpu.memory_space<vmem>>, %arg2: memref<32x1xf32, #tpu.memory_space<vmem>>, %arg3: memref<32x2048xbf16, #tpu.memory_space<vmem>>) attributes {dimension_semantics = [], scalar_prefetch = 0 : i64, scratch_operands = 0 : i64, tpu.core_type = #tpu.core_type<tc>} {
    %c0 = arith.constant 0 : index
    %c0_0 = arith.constant 0 : index
    %0 = vector.load %arg0[%c0, %c0_0] : memref<32x16xbf16, #tpu.memory_space<vmem>>, vector<32x16xbf16>
    %c0_1 = arith.constant 0 : index
    %c0_2 = arith.constant 0 : index
    %1 = vector.load %arg1[%c0_1, %c0_2] : memref<16x2048xbf16, #tpu.memory_space<vmem>>, vector<16x2048xbf16>
    %cst = arith.constant dense<0.000000e+00> : vector<32x2048xf32>
    %2 = tpu.matmul %0, %1, %cst {dimension_numbers = #tpu.dot_dimension_numbers<[1], [0], [0], [1], [0, 0, 1, 1], [], []>} : vector<32x16xbf16>, vector<16x2048xbf16>, vector<32x2048xf32> -> vector<32x2048xf32>
    %c0_3 = arith.constant 0 : index
    %c0_4 = arith.constant 0 : index
    %3 = vector.load %arg2[%c0_3, %c0_4] : memref<32x1xf32, #tpu.memory_space<vmem>>, vector<32x1xf32>
    %4 = vector.broadcast %3 : vector<32x1xf32> to vector<32x2048xf32>
    %5 = arith.addf %2, %4 : vector<32x2048xf32>
    %cst_5 = arith.constant 0.000000e+00 : f32
    %6 = vector.broadcast %cst_5 : f32 to vector<32x2048xf32>
    %7 = arith.maximumf %5, %6 : vector<32x2048xf32>
    %8 = arith.truncf %7 : vector<32x2048xf32> to vector<32x2048xbf16>
    %c0_6 = arith.constant 0 : index
    %c0_7 = arith.constant 0 : index
    %9 = vector.load %arg3[%c0_6, %c0_7] : memref<32x2048xbf16, #tpu.memory_space<vmem>>, vector<32x2048xbf16>
    tpu.vector_store %arg3[%c0_6, %c0_7], %8 {strides = array<i32>} : memref<32x2048xbf16, #tpu.memory_space<vmem>>, vector<32x2048xbf16>,
    return
  }
}

module attributes {stable_mosaic.version = 11 : i64} {
  func.func @_conv_gemm_kernel(%arg0: memref<32x512xbf16, #tpu.memory_space<vmem>>, %arg1: memref<512x512xbf16, #tpu.memory_space<vmem>>, %arg2: memref<32x1xf32, #tpu.memory_space<vmem>>, %arg3: memref<32x512xbf16, #tpu.memory_space<vmem>>) attributes {dimension_semantics = [], scalar_prefetch = 0 : i64, scratch_operands = 0 : i64, tpu.core_type = #tpu.core_type<tc>} {
    %c0 = arith.constant 0 : index
    %c0_0 = arith.constant 0 : index
    %0 = vector.load %arg0[%c0, %c0_0] : memref<32x512xbf16, #tpu.memory_space<vmem>>, vector<32x512xbf16>
    %c0_1 = arith.constant 0 : index
    %c0_2 = arith.constant 0 : index
    %1 = vector.load %arg1[%c0_1, %c0_2] : memref<512x512xbf16, #tpu.memory_space<vmem>>, vector<512x512xbf16>
    %cst = arith.constant dense<0.000000e+00> : vector<32x512xf32>
    %2 = tpu.matmul %0, %1, %cst {dimension_numbers = #tpu.dot_dimension_numbers<[1], [0], [0], [1], [0, 0, 1, 1], [], []>} : vector<32x512xbf16>, vector<512x512xbf16>, vector<32x512xf32> -> vector<32x512xf32>
    %c0_3 = arith.constant 0 : index
    %c0_4 = arith.constant 0 : index
    %3 = vector.load %arg2[%c0_3, %c0_4] : memref<32x1xf32, #tpu.memory_space<vmem>>, vector<32x1xf32>
    %4 = vector.broadcast %3 : vector<32x1xf32> to vector<32x512xf32>
    %5 = arith.addf %2, %4 : vector<32x512xf32>
    %cst_5 = arith.constant 0.000000e+00 : f32
    %6 = vector.broadcast %cst_5 : f32 to vector<32x512xf32>
    %7 = arith.maximumf %5, %6 : vector<32x512xf32>
    %8 = arith.truncf %7 : vector<32x512xf32> to vector<32x512xbf16>
    %c0_6 = arith.constant 0 : index
    %c0_7 = arith.constant 0 : index
    %9 = vector.load %arg3[%c0_6, %c0_7] : memref<32x512xbf16, #tpu.memory_space<vmem>>, vector<32x512xbf16>
    tpu.vector_store %arg3[%c0_6, %c0_7], %8 {strides = array<i32>} : memref<32x512xbf16, #tpu.memory_space<vmem>>, vector<32x512xbf16>,
    return
  }
}

module attributes {stable_mosaic.version = 11 : i64} {
  func.func @_conv_gemm_kernel(%arg0: memref<32x512xbf16, #tpu.memory_space<vmem>>, %arg1: memref<512x128xbf16, #tpu.memory_space<vmem>>, %arg2: memref<32x1xf32, #tpu.memory_space<vmem>>, %arg3: memref<32x128xbf16, #tpu.memory_space<vmem>>) attributes {dimension_semantics = [], scalar_prefetch = 0 : i64, scratch_operands = 0 : i64, tpu.core_type = #tpu.core_type<tc>} {
    %c0 = arith.constant 0 : index
    %c0_0 = arith.constant 0 : index
    %0 = vector.load %arg0[%c0, %c0_0] : memref<32x512xbf16, #tpu.memory_space<vmem>>, vector<32x512xbf16>
    %c0_1 = arith.constant 0 : index
    %c0_2 = arith.constant 0 : index
    %1 = vector.load %arg1[%c0_1, %c0_2] : memref<512x128xbf16, #tpu.memory_space<vmem>>, vector<512x128xbf16>
    %cst = arith.constant dense<0.000000e+00> : vector<32x128xf32>
    %2 = tpu.matmul %0, %1, %cst {dimension_numbers = #tpu.dot_dimension_numbers<[1], [0], [0], [1], [0, 0, 1, 1], [], []>} : vector<32x512xbf16>, vector<512x128xbf16>, vector<32x128xf32> -> vector<32x128xf32>
    %c0_3 = arith.constant 0 : index
    %c0_4 = arith.constant 0 : index
    %3 = vector.load %arg2[%c0_3, %c0_4] : memref<32x1xf32, #tpu.memory_space<vmem>>, vector<32x1xf32>
    %4 = vector.broadcast %3 : vector<32x1xf32> to vector<32x128xf32>
    %5 = arith.addf %2, %4 : vector<32x128xf32>
    %cst_5 = arith.constant 0.000000e+00 : f32
    %6 = vector.broadcast %cst_5 : f32 to vector<32x128xf32>
    %7 = arith.maximumf %5, %6 : vector<32x128xf32>
    %8 = arith.truncf %7 : vector<32x128xf32> to vector<32x128xbf16>
    %c0_6 = arith.constant 0 : index
    %c0_7 = arith.constant 0 : index
    %9 = vector.load %arg3[%c0_6, %c0_7] : memref<32x128xbf16, #tpu.memory_space<vmem>>, vector<32x128xbf16>
    tpu.vector_store %arg3[%c0_6, %c0_7], %8 {strides = array<i32>} : memref<32x128xbf16, #tpu.memory_space<vmem>>, vector<32x128xbf16>,
    return
  }
}

module attributes {stable_mosaic.version = 11 : i64} {
  func.func @_middle_kernel(%arg0: memref<512x32xbf16, #tpu.memory_space<vmem>>, %arg1: memref<32x512xbf16, #tpu.memory_space<vmem>>, %arg2: memref<32x1xf32, #tpu.memory_space<vmem>>, %arg3: memref<512x256xbf16, #tpu.memory_space<vmem>>, %arg4: memref<1x256xf32, #tpu.memory_space<vmem>>, %arg5: memref<256x256xbf16, #tpu.memory_space<vmem>>, %arg6: memref<1x256xf32, #tpu.memory_space<vmem>>, %arg7: memref<256x16xbf16, #tpu.memory_space<vmem>>, %arg8: memref<1x16xf32, #tpu.memory_space<vmem>>, %arg9: memref<256x16xbf16, #tpu.memory_space<vmem>>, %arg10: memref<1x16xf32, #tpu.memory_space<vmem>>, %arg11: memref<2x16xf32, #tpu.memory_space<vmem>>, %arg12: memref<16x256xbf16, #tpu.memory_space<vmem>>, %arg13: memref<1x256xf32, #tpu.memory_space<vmem>>, %arg14: memref<256x256xbf16, #tpu.memory_space<vmem>>, %arg15: memref<1x256xf32, #tpu.memory_space<vmem>>, %arg16: memref<256x512xbf16, #tpu.memory_space<vmem>>, %arg17: memref<1x512xf32, #tpu.memory_space<vmem>>, %arg18: memref<2x512xbf16, #tpu.memory_space<vmem>>, %arg19: memref<2x16xf32, #tpu.memory_space<vmem>>, %arg20: memref<2x16xf32, #tpu.memory_space<vmem>>) attributes {dimension_semantics = [], scalar_prefetch = 0 : i64, scratch_operands = 0 : i64, tpu.core_type = #tpu.core_type<tc>} {
    %c0 = arith.constant 0 : index
    %c0_0 = arith.constant 0 : index
    %0 = vector.load %arg1[%c0, %c0_0] : memref<32x512xbf16, #tpu.memory_space<vmem>>, vector<32x512xbf16>
    %c0_1 = arith.constant 0 : index
    %c0_2 = arith.constant 0 : index
    %1 = vector.load %arg0[%c0_1, %c0_2] : memref<512x32xbf16, #tpu.memory_space<vmem>>, vector<512x32xbf16>
    %cst = arith.constant dense<0.000000e+00> : vector<32x32xf32>
    %2 = tpu.matmul %0, %1, %cst {dimension_numbers = #tpu.dot_dimension_numbers<[1], [0], [0], [1], [0, 0, 1, 1], [], []>} : vector<32x512xbf16>, vector<512x32xbf16>, vector<32x32xf32> -> vector<32x32xf32>
    %c0_3 = arith.constant 0 : index
    %c0_4 = arith.constant 0 : index
    %3 = vector.load %arg2[%c0_3, %c0_4] : memref<32x1xf32, #tpu.memory_space<vmem>>, vector<32x1xf32>
    %4 = vector.broadcast %3 : vector<32x1xf32> to vector<32x32xf32>
    %5 = arith.addf %2, %4 : vector<32x32xf32>
    %cst_5 = arith.constant 0.000000e+00 : f32
    %6 = vector.broadcast %cst_5 : f32 to vector<32x32xf32>
    %7 = arith.maximumf %5, %6 : vector<32x32xf32>
    %8 = vector.extract_strided_slice %7 {offsets = [0, 0], sizes = [1, 16], strides = [1, 1]} : vector<32x32xf32> to vector<1x16xf32>
    %9 = vector.extract_strided_slice %7 {offsets = [1, 0], sizes = [1, 16], strides = [1, 1]} : vector<32x32xf32> to vector<1x16xf32>
    %10 = vector.extract_strided_slice %7 {offsets = [2, 0], sizes = [1, 16], strides = [1, 1]} : vector<32x32xf32> to vector<1x16xf32>
    %11 = vector.extract_strided_slice %7 {offsets = [3, 0], sizes = [1, 16], strides = [1, 1]} : vector<32x32xf32> to vector<1x16xf32>
    %12 = vector.extract_strided_slice %7 {offsets = [4, 0], sizes = [1, 16], strides = [1, 1]} : vector<32x32xf32> to vector<1x16xf32>
    %13 = vector.extract_strided_slice %7 {offsets = [5, 0], sizes = [1, 16], strides = [1, 1]} : vector<32x32xf32> to vector<1x16xf32>
    %14 = vector.extract_strided_slice %7 {offsets = [6, 0], sizes = [1, 16], strides = [1, 1]} : vector<32x32xf32> to vector<1x16xf32>
    %15 = vector.extract_strided_slice %7 {offsets = [7, 0], sizes = [1, 16], strides = [1, 1]} : vector<32x32xf32> to vector<1x16xf32>
    %16 = vector.extract_strided_slice %7 {offsets = [8, 0], sizes = [1, 16], strides = [1, 1]} : vector<32x32xf32> to vector<1x16xf32>
    %17 = vector.extract_strided_slice %7 {offsets = [9, 0], sizes = [1, 16], strides = [1, 1]} : vector<32x32xf32> to vector<1x16xf32>
    %18 = vector.extract_strided_slice %7 {offsets = [10, 0], sizes = [1, 16], strides = [1, 1]} : vector<32x32xf32> to vector<1x16xf32>
    %19 = vector.extract_strided_slice %7 {offsets = [11, 0], sizes = [1, 16], strides = [1, 1]} : vector<32x32xf32> to vector<1x16xf32>
    %20 = vector.extract_strided_slice %7 {offsets = [12, 0], sizes = [1, 16], strides = [1, 1]} : vector<32x32xf32> to vector<1x16xf32>
    %21 = vector.extract_strided_slice %7 {offsets = [13, 0], sizes = [1, 16], strides = [1, 1]} : vector<32x32xf32> to vector<1x16xf32>
    %22 = vector.extract_strided_slice %7 {offsets = [14, 0], sizes = [1, 16], strides = [1, 1]} : vector<32x32xf32> to vector<1x16xf32>
    %23 = vector.extract_strided_slice %7 {offsets = [15, 0], sizes = [1, 16], strides = [1, 1]} : vector<32x32xf32> to vector<1x16xf32>
    %24 = vector.extract_strided_slice %7 {offsets = [16, 0], sizes = [1, 16], strides = [1, 1]} : vector<32x32xf32> to vector<1x16xf32>
    %25 = vector.extract_strided_slice %7 {offsets = [17, 0], sizes = [1, 16], strides = [1, 1]} : vector<32x32xf32> to vector<1x16xf32>
    %26 = vector.extract_strided_slice %7 {offsets = [18, 0], sizes = [1, 16], strides = [1, 1]} : vector<32x32xf32> to vector<1x16xf32>
    %27 = vector.extract_strided_slice %7 {offsets = [19, 0], sizes = [1, 16], strides = [1, 1]} : vector<32x32xf32> to vector<1x16xf32>
    %28 = vector.extract_strided_slice %7 {offsets = [20, 0], sizes = [1, 16], strides = [1, 1]} : vector<32x32xf32> to vector<1x16xf32>
    %29 = vector.extract_strided_slice %7 {offsets = [21, 0], sizes = [1, 16], strides = [1, 1]} : vector<32x32xf32> to vector<1x16xf32>
    %30 = vector.extract_strided_slice %7 {offsets = [22, 0], sizes = [1, 16], strides = [1, 1]} : vector<32x32xf32> to vector<1x16xf32>
    %31 = vector.extract_strided_slice %7 {offsets = [23, 0], sizes = [1, 16], strides = [1, 1]} : vector<32x32xf32> to vector<1x16xf32>
    %32 = vector.extract_strided_slice %7 {offsets = [24, 0], sizes = [1, 16], strides = [1, 1]} : vector<32x32xf32> to vector<1x16xf32>
    %33 = vector.extract_strided_slice %7 {offsets = [25, 0], sizes = [1, 16], strides = [1, 1]} : vector<32x32xf32> to vector<1x16xf32>
    %34 = vector.extract_strided_slice %7 {offsets = [26, 0], sizes = [1, 16], strides = [1, 1]} : vector<32x32xf32> to vector<1x16xf32>
    %35 = vector.extract_strided_slice %7 {offsets = [27, 0], sizes = [1, 16], strides = [1, 1]} : vector<32x32xf32> to vector<1x16xf32>
    %36 = vector.extract_strided_slice %7 {offsets = [28, 0], sizes = [1, 16], strides = [1, 1]} : vector<32x32xf32> to vector<1x16xf32>
    %37 = vector.extract_strided_slice %7 {offsets = [29, 0], sizes = [1, 16], strides = [1, 1]} : vector<32x32xf32> to vector<1x16xf32>
    %38 = vector.extract_strided_slice %7 {offsets = [30, 0], sizes = [1, 16], strides = [1, 1]} : vector<32x32xf32> to vector<1x16xf32>
    %39 = vector.extract_strided_slice %7 {offsets = [31, 0], sizes = [1, 16], strides = [1, 1]} : vector<32x32xf32> to vector<1x16xf32>
    %40 = tpu.concatenate %8, %9, %10, %11, %12, %13, %14, %15, %16, %17, %18, %19, %20, %21, %22, %23 in 1 : vector<1x16xf32>, vector<1x16xf32>, vector<1x16xf32>, vector<1x16xf32>, vector<1x16xf32>, vector<1x16xf32>, vector<1x16xf32>, vector<1x16xf32>, vector<1x16xf32>, vector<1x16xf32>, vector<1x16xf32>, vector<1x16xf32>, vector<1x16xf32>, vector<1x16xf32>, vector<1x16xf32>, vector<1x16xf32> -> vector<1x256xf32>
    %41 = tpu.concatenate %24, %25, %26, %27, %28, %29, %30, %31, %32, %33, %34, %35, %36, %37, %38, %39 in 1 : vector<1x16xf32>, vector<1x16xf32>, vector<1x16xf32>, vector<1x16xf32>, vector<1x16xf32>, vector<1x16xf32>, vector<1x16xf32>, vector<1x16xf32>, vector<1x16xf32>, vector<1x16xf32>, vector<1x16xf32>, vector<1x16xf32>, vector<1x16xf32>, vector<1x16xf32>, vector<1x16xf32>, vector<1x16xf32> -> vector<1x256xf32>
    %42 = tpu.concatenate %40, %41 in 1 : vector<1x256xf32>, vector<1x256xf32> -> vector<1x512xf32>
    %43 = vector.extract_strided_slice %7 {offsets = [0, 16], sizes = [1, 16], strides = [1, 1]} : vector<32x32xf32> to vector<1x16xf32>
    %44 = vector.extract_strided_slice %7 {offsets = [1, 16], sizes = [1, 16], strides = [1, 1]} : vector<32x32xf32> to vector<1x16xf32>
    %45 = vector.extract_strided_slice %7 {offsets = [2, 16], sizes = [1, 16], strides = [1, 1]} : vector<32x32xf32> to vector<1x16xf32>
    %46 = vector.extract_strided_slice %7 {offsets = [3, 16], sizes = [1, 16], strides = [1, 1]} : vector<32x32xf32> to vector<1x16xf32>
    %47 = vector.extract_strided_slice %7 {offsets = [4, 16], sizes = [1, 16], strides = [1, 1]} : vector<32x32xf32> to vector<1x16xf32>
    %48 = vector.extract_strided_slice %7 {offsets = [5, 16], sizes = [1, 16], strides = [1, 1]} : vector<32x32xf32> to vector<1x16xf32>
    %49 = vector.extract_strided_slice %7 {offsets = [6, 16], sizes = [1, 16], strides = [1, 1]} : vector<32x32xf32> to vector<1x16xf32>
    %50 = vector.extract_strided_slice %7 {offsets = [7, 16], sizes = [1, 16], strides = [1, 1]} : vector<32x32xf32> to vector<1x16xf32>
    %51 = vector.extract_strided_slice %7 {offsets = [8, 16], sizes = [1, 16], strides = [1, 1]} : vector<32x32xf32> to vector<1x16xf32>
    %52 = vector.extract_strided_slice %7 {offsets = [9, 16], sizes = [1, 16], strides = [1, 1]} : vector<32x32xf32> to vector<1x16xf32>
    %53 = vector.extract_strided_slice %7 {offsets = [10, 16], sizes = [1, 16], strides = [1, 1]} : vector<32x32xf32> to vector<1x16xf32>
    %54 = vector.extract_strided_slice %7 {offsets = [11, 16], sizes = [1, 16], strides = [1, 1]} : vector<32x32xf32> to vector<1x16xf32>
    %55 = vector.extract_strided_slice %7 {offsets = [12, 16], sizes = [1, 16], strides = [1, 1]} : vector<32x32xf32> to vector<1x16xf32>
    %56 = vector.extract_strided_slice %7 {offsets = [13, 16], sizes = [1, 16], strides = [1, 1]} : vector<32x32xf32> to vector<1x16xf32>
    %57 = vector.extract_strided_slice %7 {offsets = [14, 16], sizes = [1, 16], strides = [1, 1]} : vector<32x32xf32> to vector<1x16xf32>
    %58 = vector.extract_strided_slice %7 {offsets = [15, 16], sizes = [1, 16], strides = [1, 1]} : vector<32x32xf32> to vector<1x16xf32>
    %59 = vector.extract_strided_slice %7 {offsets = [16, 16], sizes = [1, 16], strides = [1, 1]} : vector<32x32xf32> to vector<1x16xf32>
    %60 = vector.extract_strided_slice %7 {offsets = [17, 16], sizes = [1, 16], strides = [1, 1]} : vector<32x32xf32> to vector<1x16xf32>
    %61 = vector.extract_strided_slice %7 {offsets = [18, 16], sizes = [1, 16], strides = [1, 1]} : vector<32x32xf32> to vector<1x16xf32>
    %62 = vector.extract_strided_slice %7 {offsets = [19, 16], sizes = [1, 16], strides = [1, 1]} : vector<32x32xf32> to vector<1x16xf32>
    %63 = vector.extract_strided_slice %7 {offsets = [20, 16], sizes = [1, 16], strides = [1, 1]} : vector<32x32xf32> to vector<1x16xf32>
    %64 = vector.extract_strided_slice %7 {offsets = [21, 16], sizes = [1, 16], strides = [1, 1]} : vector<32x32xf32> to vector<1x16xf32>
    %65 = vector.extract_strided_slice %7 {offsets = [22, 16], sizes = [1, 16], strides = [1, 1]} : vector<32x32xf32> to vector<1x16xf32>
    %66 = vector.extract_strided_slice %7 {offsets = [23, 16], sizes = [1, 16], strides = [1, 1]} : vector<32x32xf32> to vector<1x16xf32>
    %67 = vector.extract_strided_slice %7 {offsets = [24, 16], sizes = [1, 16], strides = [1, 1]} : vector<32x32xf32> to vector<1x16xf32>
    %68 = vector.extract_strided_slice %7 {offsets = [25, 16], sizes = [1, 16], strides = [1, 1]} : vector<32x32xf32> to vector<1x16xf32>
    %69 = vector.extract_strided_slice %7 {offsets = [26, 16], sizes = [1, 16], strides = [1, 1]} : vector<32x32xf32> to vector<1x16xf32>
    %70 = vector.extract_strided_slice %7 {offsets = [27, 16], sizes = [1, 16], strides = [1, 1]} : vector<32x32xf32> to vector<1x16xf32>
    %71 = vector.extract_strided_slice %7 {offsets = [28, 16], sizes = [1, 16], strides = [1, 1]} : vector<32x32xf32> to vector<1x16xf32>
    %72 = vector.extract_strided_slice %7 {offsets = [29, 16], sizes = [1, 16], strides = [1, 1]} : vector<32x32xf32> to vector<1x16xf32>
    %73 = vector.extract_strided_slice %7 {offsets = [30, 16], sizes = [1, 16], strides = [1, 1]} : vector<32x32xf32> to vector<1x16xf32>
    %74 = vector.extract_strided_slice %7 {offsets = [31, 16], sizes = [1, 16], strides = [1, 1]} : vector<32x32xf32> to vector<1x16xf32>
    %75 = tpu.concatenate %43, %44, %45, %46, %47, %48, %49, %50, %51, %52, %53, %54, %55, %56, %57, %58 in 1 : vector<1x16xf32>, vector<1x16xf32>, vector<1x16xf32>, vector<1x16xf32>, vector<1x16xf32>, vector<1x16xf32>, vector<1x16xf32>, vector<1x16xf32>, vector<1x16xf32>, vector<1x16xf32>, vector<1x16xf32>, vector<1x16xf32>, vector<1x16xf32>, vector<1x16xf32>, vector<1x16xf32>, vector<1x16xf32> -> vector<1x256xf32>
    %76 = tpu.concatenate %59, %60, %61, %62, %63, %64, %65, %66, %67, %68, %69, %70, %71, %72, %73, %74 in 1 : vector<1x16xf32>, vector<1x16xf32>, vector<1x16xf32>, vector<1x16xf32>, vector<1x16xf32>, vector<1x16xf32>, vector<1x16xf32>, vector<1x16xf32>, vector<1x16xf32>, vector<1x16xf32>, vector<1x16xf32>, vector<1x16xf32>, vector<1x16xf32>, vector<1x16xf32>, vector<1x16xf32>, vector<1x16xf32> -> vector<1x256xf32>
    %77 = tpu.concatenate %75, %76 in 1 : vector<1x256xf32>, vector<1x256xf32> -> vector<1x512xf32>
    %78 = tpu.concatenate %42, %77 in 0 : vector<1x512xf32>, vector<1x512xf32> -> vector<2x512xf32>
    %79 = arith.truncf %78 : vector<2x512xf32> to vector<2x512xbf16>
    %c0_6 = arith.constant 0 : index
    %c0_7 = arith.constant 0 : index
    %80 = vector.load %arg3[%c0_6, %c0_7] : memref<512x256xbf16, #tpu.memory_space<vmem>>, vector<512x256xbf16>
    %cst_8 = arith.constant dense<0.000000e+00> : vector<2x256xf32>
    %81 = tpu.matmul %79, %80, %cst_8 {dimension_numbers = #tpu.dot_dimension_numbers<[1], [0], [0], [1], [0, 0, 1, 1], [], []>} : vector<2x512xbf16>, vector<512x256xbf16>, vector<2x256xf32> -> vector<2x256xf32>
    %c0_9 = arith.constant 0 : index
    %c0_10 = arith.constant 0 : index
    %82 = vector.load %arg4[%c0_9, %c0_10] : memref<1x256xf32, #tpu.memory_space<vmem>>, vector<1x256xf32>
    %83 = vector.broadcast %82 : vector<1x256xf32> to vector<2x256xf32>
    %84 = arith.addf %81, %83 : vector<2x256xf32>
    %cst_11 = arith.constant 0.000000e+00 : f32
    %85 = vector.broadcast %cst_11 : f32 to vector<2x256xf32>
    %86 = arith.maximumf %84, %85 : vector<2x256xf32>
    %87 = arith.truncf %86 : vector<2x256xf32> to vector<2x256xbf16>
    %c0_12 = arith.constant 0 : index
    %c0_13 = arith.constant 0 : index
    %88 = vector.load %arg5[%c0_12, %c0_13] : memref<256x256xbf16, #tpu.memory_space<vmem>>, vector<256x256xbf16>
    %cst_14 = arith.constant dense<0.000000e+00> : vector<2x256xf32>
    %89 = tpu.matmul %87, %88, %cst_14 {dimension_numbers = #tpu.dot_dimension_numbers<[1], [0], [0], [1], [0, 0, 1, 1], [], []>} : vector<2x256xbf16>, vector<256x256xbf16>, vector<2x256xf32> -> vector<2x256xf32>
    %c0_15 = arith.constant 0 : index
    %c0_16 = arith.constant 0 : index
    %90 = vector.load %arg6[%c0_15, %c0_16] : memref<1x256xf32, #tpu.memory_space<vmem>>, vector<1x256xf32>
    %91 = vector.broadcast %90 : vector<1x256xf32> to vector<2x256xf32>
    %92 = arith.addf %89, %91 : vector<2x256xf32>
    %cst_17 = arith.constant 0.000000e+00 : f32
    %93 = vector.broadcast %cst_17 : f32 to vector<2x256xf32>
    %94 = arith.maximumf %92, %93 : vector<2x256xf32>
    %95 = arith.truncf %94 : vector<2x256xf32> to vector<2x256xbf16>
    %c0_18 = arith.constant 0 : index
    %c0_19 = arith.constant 0 : index
    %96 = vector.load %arg7[%c0_18, %c0_19] : memref<256x16xbf16, #tpu.memory_space<vmem>>, vector<256x16xbf16>
    %cst_20 = arith.constant dense<0.000000e+00> : vector<2x16xf32>
    %97 = tpu.matmul %95, %96, %cst_20 {dimension_numbers = #tpu.dot_dimension_numbers<[1], [0], [0], [1], [0, 0, 1, 1], [], []>} : vector<2x256xbf16>, vector<256x16xbf16>, vector<2x16xf32> -> vector<2x16xf32>
    %c0_21 = arith.constant 0 : index
    %c0_22 = arith.constant 0 : index
    %98 = vector.load %arg8[%c0_21, %c0_22] : memref<1x16xf32, #tpu.memory_space<vmem>>, vector<1x16xf32>
    %99 = vector.broadcast %98 : vector<1x16xf32> to vector<2x16xf32>
    %100 = arith.addf %97, %99 : vector<2x16xf32>
    %101 = arith.truncf %94 : vector<2x256xf32> to vector<2x256xbf16>
    %c0_23 = arith.constant 0 : index
    %c0_24 = arith.constant 0 : index
    %102 = vector.load %arg9[%c0_23, %c0_24] : memref<256x16xbf16, #tpu.memory_space<vmem>>, vector<256x16xbf16>
    %cst_25 = arith.constant dense<0.000000e+00> : vector<2x16xf32>
    %103 = tpu.matmul %101, %102, %cst_25 {dimension_numbers = #tpu.dot_dimension_numbers<[1], [0], [0], [1], [0, 0, 1, 1], [], []>} : vector<2x256xbf16>, vector<256x16xbf16>, vector<2x16xf32> -> vector<2x16xf32>
    %c0_26 = arith.constant 0 : index
    %c0_27 = arith.constant 0 : index
    %104 = vector.load %arg10[%c0_26, %c0_27] : memref<1x16xf32, #tpu.memory_space<vmem>>, vector<1x16xf32>
    %105 = vector.broadcast %104 : vector<1x16xf32> to vector<2x16xf32>
    %106 = arith.addf %103, %105 : vector<2x16xf32>
    %c0_28 = arith.constant 0 : index
    %c0_29 = arith.constant 0 : index
    %107 = vector.load %arg19[%c0_28, %c0_29] : memref<2x16xf32, #tpu.memory_space<vmem>>, vector<2x16xf32>
    tpu.vector_store %arg19[%c0_28, %c0_29], %100 {strides = array<i32>} : memref<2x16xf32, #tpu.memory_space<vmem>>, vector<2x16xf32>,
    %c0_30 = arith.constant 0 : index
    %c0_31 = arith.constant 0 : index
    %108 = vector.load %arg20[%c0_30, %c0_31] : memref<2x16xf32, #tpu.memory_space<vmem>>, vector<2x16xf32>
    tpu.vector_store %arg20[%c0_30, %c0_31], %106 {strides = array<i32>} : memref<2x16xf32, #tpu.memory_space<vmem>>, vector<2x16xf32>,
    %cst_32 = arith.constant 5.000000e-01 : f32
    %109 = vector.broadcast %cst_32 : f32 to vector<2x16xf32>
    %110 = arith.mulf %109, %106 : vector<2x16xf32>
    %111 = math.exp %110 : vector<2x16xf32>
    %c0_33 = arith.constant 0 : index
    %c0_34 = arith.constant 0 : index
    %112 = vector.load %arg11[%c0_33, %c0_34] : memref<2x16xf32, #tpu.memory_space<vmem>>, vector<2x16xf32>
    %113 = arith.mulf %111, %112 : vector<2x16xf32>
    %114 = arith.addf %100, %113 : vector<2x16xf32>
    %115 = arith.truncf %114 : vector<2x16xf32> to vector<2x16xbf16>
    %c0_35 = arith.constant 0 : index
    %c0_36 = arith.constant 0 : index
    %116 = vector.load %arg12[%c0_35, %c0_36] : memref<16x256xbf16, #tpu.memory_space<vmem>>, vector<16x256xbf16>
    %cst_37 = arith.constant dense<0.000000e+00> : vector<2x256xf32>
    %117 = tpu.matmul %115, %116, %cst_37 {dimension_numbers = #tpu.dot_dimension_numbers<[1], [0], [0], [1], [0, 0, 1, 1], [], []>} : vector<2x16xbf16>, vector<16x256xbf16>, vector<2x256xf32> -> vector<2x256xf32>
    %c0_38 = arith.constant 0 : index
    %c0_39 = arith.constant 0 : index
    %118 = vector.load %arg13[%c0_38, %c0_39] : memref<1x256xf32, #tpu.memory_space<vmem>>, vector<1x256xf32>
    %119 = vector.broadcast %118 : vector<1x256xf32> to vector<2x256xf32>
    %120 = arith.addf %117, %119 : vector<2x256xf32>
    %cst_40 = arith.constant 0.000000e+00 : f32
    %121 = vector.broadcast %cst_40 : f32 to vector<2x256xf32>
    %122 = arith.maximumf %120, %121 : vector<2x256xf32>
    %123 = arith.truncf %122 : vector<2x256xf32> to vector<2x256xbf16>
    %c0_41 = arith.constant 0 : index
    %c0_42 = arith.constant 0 : index
    %124 = vector.load %arg14[%c0_41, %c0_42] : memref<256x256xbf16, #tpu.memory_space<vmem>>, vector<256x256xbf16>
    %cst_43 = arith.constant dense<0.000000e+00> : vector<2x256xf32>
    %125 = tpu.matmul %123, %124, %cst_43 {dimension_numbers = #tpu.dot_dimension_numbers<[1], [0], [0], [1], [0, 0, 1, 1], [], []>} : vector<2x256xbf16>, vector<256x256xbf16>, vector<2x256xf32> -> vector<2x256xf32>
    %c0_44 = arith.constant 0 : index
    %c0_45 = arith.constant 0 : index
    %126 = vector.load %arg15[%c0_44, %c0_45] : memref<1x256xf32, #tpu.memory_space<vmem>>, vector<1x256xf32>
    %127 = vector.broadcast %126 : vector<1x256xf32> to vector<2x256xf32>
    %128 = arith.addf %125, %127 : vector<2x256xf32>
    %cst_46 = arith.constant 0.000000e+00 : f32
    %129 = vector.broadcast %cst_46 : f32 to vector<2x256xf32>
    %130 = arith.maximumf %128, %129 : vector<2x256xf32>
    %131 = arith.truncf %130 : vector<2x256xf32> to vector<2x256xbf16>
    %c0_47 = arith.constant 0 : index
    %c0_48 = arith.constant 0 : index
    %132 = vector.load %arg16[%c0_47, %c0_48] : memref<256x512xbf16, #tpu.memory_space<vmem>>, vector<256x512xbf16>
    %cst_49 = arith.constant dense<0.000000e+00> : vector<2x512xf32>
    %133 = tpu.matmul %131, %132, %cst_49 {dimension_numbers = #tpu.dot_dimension_numbers<[1], [0], [0], [1], [0, 0, 1, 1], [], []>} : vector<2x256xbf16>, vector<256x512xbf16>, vector<2x512xf32> -> vector<2x512xf32>
    %c0_50 = arith.constant 0 : index
    %c0_51 = arith.constant 0 : index
    %134 = vector.load %arg17[%c0_50, %c0_51] : memref<1x512xf32, #tpu.memory_space<vmem>>, vector<1x512xf32>
    %135 = vector.broadcast %134 : vector<1x512xf32> to vector<2x512xf32>
    %136 = arith.addf %133, %135 : vector<2x512xf32>
    %cst_52 = arith.constant 0.000000e+00 : f32
    %137 = vector.broadcast %cst_52 : f32 to vector<2x512xf32>
    %138 = arith.maximumf %136, %137 : vector<2x512xf32>
    %139 = arith.truncf %138 : vector<2x512xf32> to vector<2x512xbf16>
    %c0_53 = arith.constant 0 : index
    %c0_54 = arith.constant 0 : index
    %140 = vector.load %arg18[%c0_53, %c0_54] : memref<2x512xbf16, #tpu.memory_space<vmem>>, vector<2x512xbf16>
    tpu.vector_store %arg18[%c0_53, %c0_54], %139 {strides = array<i32>} : memref<2x512xbf16, #tpu.memory_space<vmem>>, vector<2x512xbf16>,
    return
  }
}

module attributes {stable_mosaic.version = 11 : i64} {
  func.func @_conv_gemm_kernel(%arg0: memref<128x288xbf16, #tpu.memory_space<vmem>>, %arg1: memref<288x32xbf16, #tpu.memory_space<vmem>>, %arg2: memref<128x1xf32, #tpu.memory_space<vmem>>, %arg3: memref<128x32xbf16, #tpu.memory_space<vmem>>) attributes {dimension_semantics = [], scalar_prefetch = 0 : i64, scratch_operands = 0 : i64, tpu.core_type = #tpu.core_type<tc>} {
    %c0 = arith.constant 0 : index
    %c0_0 = arith.constant 0 : index
    %0 = vector.load %arg0[%c0, %c0_0] : memref<128x288xbf16, #tpu.memory_space<vmem>>, vector<128x288xbf16>
    %c0_1 = arith.constant 0 : index
    %c0_2 = arith.constant 0 : index
    %1 = vector.load %arg1[%c0_1, %c0_2] : memref<288x32xbf16, #tpu.memory_space<vmem>>, vector<288x32xbf16>
    %cst = arith.constant dense<0.000000e+00> : vector<128x32xf32>
    %2 = tpu.matmul %0, %1, %cst {dimension_numbers = #tpu.dot_dimension_numbers<[1], [0], [0], [1], [0, 0, 1, 1], [], []>} : vector<128x288xbf16>, vector<288x32xbf16>, vector<128x32xf32> -> vector<128x32xf32>
    %c0_3 = arith.constant 0 : index
    %c0_4 = arith.constant 0 : index
    %3 = vector.load %arg2[%c0_3, %c0_4] : memref<128x1xf32, #tpu.memory_space<vmem>>, vector<128x1xf32>
    %4 = vector.broadcast %3 : vector<128x1xf32> to vector<128x32xf32>
    %5 = arith.addf %2, %4 : vector<128x32xf32>
    %cst_5 = arith.constant 0.000000e+00 : f32
    %6 = vector.broadcast %cst_5 : f32 to vector<128x32xf32>
    %7 = arith.maximumf %5, %6 : vector<128x32xf32>
    %8 = arith.truncf %7 : vector<128x32xf32> to vector<128x32xbf16>
    %c0_6 = arith.constant 0 : index
    %c0_7 = arith.constant 0 : index
    %9 = vector.load %arg3[%c0_6, %c0_7] : memref<128x32xbf16, #tpu.memory_space<vmem>>, vector<128x32xbf16>
    tpu.vector_store %arg3[%c0_6, %c0_7], %8 {strides = array<i32>} : memref<128x32xbf16, #tpu.memory_space<vmem>>, vector<128x32xbf16>,
    return
  }
}

module attributes {stable_mosaic.version = 11 : i64} {
  func.func @_conv_gemm_kernel(%arg0: memref<128x288xbf16, #tpu.memory_space<vmem>>, %arg1: memref<288x128xbf16, #tpu.memory_space<vmem>>, %arg2: memref<128x1xf32, #tpu.memory_space<vmem>>, %arg3: memref<128x128xbf16, #tpu.memory_space<vmem>>) attributes {dimension_semantics = [], scalar_prefetch = 0 : i64, scratch_operands = 0 : i64, tpu.core_type = #tpu.core_type<tc>} {
    %c0 = arith.constant 0 : index
    %c0_0 = arith.constant 0 : index
    %0 = vector.load %arg0[%c0, %c0_0] : memref<128x288xbf16, #tpu.memory_space<vmem>>, vector<128x288xbf16>
    %c0_1 = arith.constant 0 : index
    %c0_2 = arith.constant 0 : index
    %1 = vector.load %arg1[%c0_1, %c0_2] : memref<288x128xbf16, #tpu.memory_space<vmem>>, vector<288x128xbf16>
    %cst = arith.constant dense<0.000000e+00> : vector<128x128xf32>
    %2 = tpu.matmul %0, %1, %cst {dimension_numbers = #tpu.dot_dimension_numbers<[1], [0], [0], [1], [0, 0, 1, 1], [], []>} : vector<128x288xbf16>, vector<288x128xbf16>, vector<128x128xf32> -> vector<128x128xf32>
    %c0_3 = arith.constant 0 : index
    %c0_4 = arith.constant 0 : index
    %3 = vector.load %arg2[%c0_3, %c0_4] : memref<128x1xf32, #tpu.memory_space<vmem>>, vector<128x1xf32>
    %4 = vector.broadcast %3 : vector<128x1xf32> to vector<128x128xf32>
    %5 = arith.addf %2, %4 : vector<128x128xf32>
    %cst_5 = arith.constant 0.000000e+00 : f32
    %6 = vector.broadcast %cst_5 : f32 to vector<128x128xf32>
    %7 = arith.maximumf %5, %6 : vector<128x128xf32>
    %8 = arith.truncf %7 : vector<128x128xf32> to vector<128x128xbf16>
    %c0_6 = arith.constant 0 : index
    %c0_7 = arith.constant 0 : index
    %9 = vector.load %arg3[%c0_6, %c0_7] : memref<128x128xbf16, #tpu.memory_space<vmem>>, vector<128x128xbf16>
    tpu.vector_store %arg3[%c0_6, %c0_7], %8 {strides = array<i32>} : memref<128x128xbf16, #tpu.memory_space<vmem>>, vector<128x128xbf16>,
    return
  }
}

module attributes {stable_mosaic.version = 11 : i64} {
  func.func @_conv_gemm_kernel(%arg0: memref<128x288xbf16, #tpu.memory_space<vmem>>, %arg1: memref<288x512xbf16, #tpu.memory_space<vmem>>, %arg2: memref<128x1xf32, #tpu.memory_space<vmem>>, %arg3: memref<128x512xbf16, #tpu.memory_space<vmem>>) attributes {dimension_semantics = [], scalar_prefetch = 0 : i64, scratch_operands = 0 : i64, tpu.core_type = #tpu.core_type<tc>} {
    %c0 = arith.constant 0 : index
    %c0_0 = arith.constant 0 : index
    %0 = vector.load %arg0[%c0, %c0_0] : memref<128x288xbf16, #tpu.memory_space<vmem>>, vector<128x288xbf16>
    %c0_1 = arith.constant 0 : index
    %c0_2 = arith.constant 0 : index
    %1 = vector.load %arg1[%c0_1, %c0_2] : memref<288x512xbf16, #tpu.memory_space<vmem>>, vector<288x512xbf16>
    %cst = arith.constant dense<0.000000e+00> : vector<128x512xf32>
    %2 = tpu.matmul %0, %1, %cst {dimension_numbers = #tpu.dot_dimension_numbers<[1], [0], [0], [1], [0, 0, 1, 1], [], []>} : vector<128x288xbf16>, vector<288x512xbf16>, vector<128x512xf32> -> vector<128x512xf32>
    %c0_3 = arith.constant 0 : index
    %c0_4 = arith.constant 0 : index
    %3 = vector.load %arg2[%c0_3, %c0_4] : memref<128x1xf32, #tpu.memory_space<vmem>>, vector<128x1xf32>
    %4 = vector.broadcast %3 : vector<128x1xf32> to vector<128x512xf32>
    %5 = arith.addf %2, %4 : vector<128x512xf32>
    %cst_5 = arith.constant 0.000000e+00 : f32
    %6 = vector.broadcast %cst_5 : f32 to vector<128x512xf32>
    %7 = arith.maximumf %5, %6 : vector<128x512xf32>
    %8 = arith.truncf %7 : vector<128x512xf32> to vector<128x512xbf16>
    %c0_6 = arith.constant 0 : index
    %c0_7 = arith.constant 0 : index
    %9 = vector.load %arg3[%c0_6, %c0_7] : memref<128x512xbf16, #tpu.memory_space<vmem>>, vector<128x512xbf16>
    tpu.vector_store %arg3[%c0_6, %c0_7], %8 {strides = array<i32>} : memref<128x512xbf16, #tpu.memory_space<vmem>>, vector<128x512xbf16>,
    return
  }
}

module attributes {stable_mosaic.version = 11 : i64} {
  func.func @_conv_gemm_kernel(%arg0: memref<1x512xbf16, #tpu.memory_space<vmem>>, %arg1: memref<512x1682xbf16, #tpu.memory_space<vmem>>, %arg2: memref<1x1xf32, #tpu.memory_space<vmem>>, %arg3: memref<1x1682xf32, #tpu.memory_space<vmem>>) attributes {dimension_semantics = [], scalar_prefetch = 0 : i64, scratch_operands = 0 : i64, tpu.core_type = #tpu.core_type<tc>} {
    %c0 = arith.constant 0 : index
    %c0_0 = arith.constant 0 : index
    %0 = vector.load %arg0[%c0, %c0_0] : memref<1x512xbf16, #tpu.memory_space<vmem>>, vector<1x512xbf16>
    %c0_1 = arith.constant 0 : index
    %c0_2 = arith.constant 0 : index
    %1 = vector.load %arg1[%c0_1, %c0_2] : memref<512x1682xbf16, #tpu.memory_space<vmem>>, vector<512x1682xbf16>
    %cst = arith.constant dense<0.000000e+00> : vector<1x1682xf32>
    %2 = tpu.matmul %0, %1, %cst {dimension_numbers = #tpu.dot_dimension_numbers<[1], [0], [0], [1], [0, 0, 1, 1], [], []>} : vector<1x512xbf16>, vector<512x1682xbf16>, vector<1x1682xf32> -> vector<1x1682xf32>
    %c0_3 = arith.constant 0 : index
    %c0_4 = arith.constant 0 : index
    %3 = vector.load %arg2[%c0_3, %c0_4] : memref<1x1xf32, #tpu.memory_space<vmem>>, vector<1x1xf32>
    %4 = vector.broadcast %3 : vector<1x1xf32> to vector<1x1682xf32>
    %5 = arith.addf %2, %4 : vector<1x1682xf32>
    %c0_5 = arith.constant 0 : index
    %c0_6 = arith.constant 0 : index
    %6 = vector.load %arg3[%c0_5, %c0_6] : memref<1x1682xf32, #tpu.memory_space<vmem>>, vector<1x1682xf32>
    tpu.vector_store %arg3[%c0_5, %c0_6], %5 {strides = array<i32>} : memref<1x1682xf32, #tpu.memory_space<vmem>>, vector<1x1682xf32>,
    return
  }
}

</mosaic_0001>

<bundles_post_ra>
// kernel: vaefc_forward.8
= control target key start
LH: loop header
LB: loop body
LE: loop exit
PB: predicated region body
PF: predicated region fallthrough
CT: control target
= control target key end

     0   :  { %v975_v3 = vmov 0   ;;  %vm149_vm0 = vcmask 130048   ;;  %s1274_s1 = inlined_call_operand.vmem [shape: bf16[16,2048], index: 1, kind: input, shape index: {}]   ;;  %s1275_s0 = inlined_call_operand.vmem [shape: bf16[32,16], index: 0, kind: input, shape index: {}]   ;;  %s1276_s2 = inlined_call_operand.vmem [shape: f32[32,1], index: 2, kind: input, shape index: {}]   ;;  %s1277_s3 = inlined_call_operand.vmem [shape: bf16[32,2048], index: 3, kind: output, shape index: {}]  }
   0x1   :  { %v19_v0 = vld [vmem:[%s1274_s1] sm:$0xff]  ;;  %v20_v2 = vld [vmem:[%s1274_s1 + $0x8] sm:$0xff]  ;;  %188 = vmatprep.mubr.bf16.mxu0 %v975_v3  ;;  %241 = vmatprep.mubr.bf16.mxu1 %v975_v3  ;;  %v21_v10 = vld [vmem:[%s1274_s1 + $0x10] sm:$0xff] }
   0x2   :  { %v27_v1 = vld [vmem:[%s1274_s1 + $0x40] sm:$0xff]  ;;  %v28_v5 = vld [vmem:[%s1274_s1 + $0x48] sm:$0xff]  ;;  %971 = vset.pattern.permute.xlu0 %v975_v3  ;;  %972 = vset.pattern.permute.xlu1 %v975_v3  ;;  %v29_v11 = vld [vmem:[%s1274_s1 + $0x50] sm:$0xff] }
   0x3   :  { %v875_v4 = vcombine.high %v19_v0, %v27_v1  ;;  %v874_v6 = vcombine.low %v19_v0, %v27_v1  ;;  %v877_v7 = vcombine.high %v20_v2, %v28_v5  ;;  %v876_v8 = vcombine.low %v20_v2, %v28_v5  ;;  %v1015_v9 = vld [vmem:[%s1275_s0] sm:$0xff]   ;;  %v22_v13 = vld [vmem:[%s1274_s1 + $0x18] sm:$0xff]  ;;  %v24_v20 = vld [vmem:[%s1274_s1 + $0x28] sm:$0xff] }
   0x4   :  { %v879_v12 = vcombine.high %v21_v10, %v29_v11  ;;  %v30_v14 = vld [vmem:[%s1274_s1 + $0x58] sm:$0xff]  ;;  %v878_v15 = vcombine.low %v21_v10, %v29_v11  ;;  %v23_v17 = vld [vmem:[%s1274_s1 + $0x20] sm:$0xff]  ;;  %v32_v21 = vld [vmem:[%s1274_s1 + $0x68] sm:$0xff] }
   0x5   :  { %156 = vmatprep.subr.bf16.mxu0 %v875_v4  ;;  %209 = vmatprep.subr.bf16.mxu1 %v877_v7  ;;  %v881_v16 = vcombine.high %v22_v13, %v30_v14  ;;  %v880_v18 = vcombine.low %v22_v13, %v30_v14  ;;  %v31_v19 = vld [vmem:[%s1274_s1 + $0x60] sm:$0xff]  ;;  %v885_v23 = vcombine.high %v24_v20, %v32_v21  ;;  %v37_v25 = vld [vmem:[%s1276_s2 + $0x10] sm:$0xff]  ;;  %v974_v26 = vld [vmem:[%s1275_s0 + $0x8] sm:$0xff]  }
   0x6   :  { %157 = vmatpush1.bf16.msra.mxu0 %v874_v6  ;;  %210 = vmatpush1.bf16.msra.mxu1 %v876_v8  ;;  %v883_v22 = vcombine.high %v23_v17, %v31_v19  ;;  %v35_v24 = vld [vmem:[%s1276_s2] sm:$0xff]  ;;  %v36_v27 = vld [vmem:[%s1276_s2 + $0x8] sm:$0xff]  ;;  %v38_v28 = vld [vmem:[%s1276_s2 + $0x18] sm:$0xff]  ;;  %v882_v31 = vcombine.low %v23_v17, %v31_v19  ;;  %v884_v34 = vcombine.low %v24_v20, %v32_v21 }
   0x7   :  { %262 = vmatprep.subr.bf16.mxu0 %v879_v12  ;;  %315 = vmatprep.subr.bf16.mxu1 %v881_v16  ;;  %v25_v29 = vld [vmem:[%s1274_s1 + $0x30] sm:$0xff]  ;;  %v26_v32 = vld [vmem:[%s1274_s1 + $0x38] sm:$0xff] }
   0x8   :  { %41 = vperm.xlu0 %971, %v35_v24   ;;  %51 = vperm.xlu1 %972, %v37_v25   ;;  %v33_v30 = vld [vmem:[%s1274_s1 + $0x70] sm:$0xff]  ;;  %v34_v33 = vld [vmem:[%s1274_s1 + $0x78] sm:$0xff] }
   0x9   :  { %890 = vmatmul.mubr.msk.bf16.vlgmr.msra.gmra.mrb[0].mxu0 %vm149_vm0, %v1015_v9  ;;  %892 = vmatmul.mubr.msk.bf16.vlgmr.msra.gmra.mrb[0].mxu1 %vm149_vm0, %v1015_v9  ;;  %v887_v35 = vcombine.high %v25_v29, %v33_v30  ;;  %v889_v36 = vcombine.high %v26_v32, %v34_v33  ;;  %v886_v37 = vcombine.low %v25_v29, %v33_v30 }
   0xa   :  { %263 = vmatpush1.bf16.msra.mxu0 %v878_v15  ;;  %316 = vmatpush1.bf16.msra.mxu1 %v880_v18  ;;  %v888_v38 = vcombine.low %v26_v32, %v34_v33 }
   0xb   :  { %198 = vmatprep.mubr.bf16.mxu0 %v975_v3  ;;  %251 = vmatprep.mubr.bf16.mxu1 %v975_v3 }
   0xc   :  { %368 = vmatprep.subr.bf16.mxu0 %v883_v22  ;;  %421 = vmatprep.subr.bf16.mxu1 %v885_v23 }
   0xd   :  { %46 = vperm.xlu0 %971, %v36_v27   ;;  %56 = vperm.xlu1 %972, %v38_v28  }
  0x11   :  { %891 = vmatmul.mubr.msk.bf16.gmra.mrb[4].mxu0 %vm149_vm0, %v974_v26  ;;  %893 = vmatmul.mubr.msk.bf16.gmra.mrb[4].mxu1 %vm149_vm0, %v974_v26 }
  0x12   :  { %294 = vmatprep.mubr.bf16.mxu0 %v975_v3  ;;  %347 = vmatprep.mubr.bf16.mxu1 %v975_v3 }
  0x19   :  { %894 = vmatmul.mubr.msk.bf16.vlgmr.msra.gmra.mrb[8].mxu0 %vm149_vm0, %v1015_v9  ;;  %896 = vmatmul.mubr.msk.bf16.vlgmr.msra.gmra.mrb[8].mxu1 %vm149_vm0, %v1015_v9 }
  0x1a   :  { %369 = vmatpush1.bf16.msra.mxu0 %v882_v31  ;;  %422 = vmatpush1.bf16.msra.mxu1 %v884_v34 }
  0x1b   :  { %304 = vmatprep.mubr.bf16.mxu0 %v975_v3  ;;  %357 = vmatprep.mubr.bf16.mxu1 %v975_v3 }
  0x1c   :  { %474 = vmatprep.subr.bf16.mxu0 %v887_v35  ;;  %527 = vmatprep.subr.bf16.mxu1 %v889_v36 }
  0x21   :  { %895 = vmatmul.mubr.msk.bf16.gmra.mrb[12].mxu0 %vm149_vm0, %v974_v26  ;;  %897 = vmatmul.mubr.msk.bf16.gmra.mrb[12].mxu1 %vm149_vm0, %v974_v26 }
  0x22   :  { %400 = vmatprep.mubr.bf16.mxu0 %v975_v3  ;;  %453 = vmatprep.mubr.bf16.mxu1 %v975_v3 }
  0x29   :  { %898 = vmatmul.mubr.msk.bf16.vlgmr.msra.gmra.mrb[16].mxu0 %vm149_vm0, %v1015_v9  ;;  %900 = vmatmul.mubr.msk.bf16.vlgmr.msra.gmra.mrb[16].mxu1 %vm149_vm0, %v1015_v9 }
  0x2a   :  { %475 = vmatpush1.bf16.msra.mxu0 %v886_v37  ;;  %528 = vmatpush1.bf16.msra.mxu1 %v888_v38 }
  0x2b   :  { %410 = vmatprep.mubr.bf16.mxu0 %v975_v3  ;;  %463 = vmatprep.mubr.bf16.mxu1 %v975_v3 }
  0x31   :  { %899 = vmatmul.mubr.msk.bf16.gmra.mrb[20].mxu0 %vm149_vm0, %v974_v26  ;;  %901 = vmatmul.mubr.msk.bf16.gmra.mrb[20].mxu1 %vm149_vm0, %v974_v26 }
  0x32   :  { %506 = vmatprep.mubr.bf16.mxu0 %v975_v3  ;;  %559 = vmatprep.mubr.bf16.mxu1 %v975_v3 }
  0x39   :  { %902 = vmatmul.mubr.msk.bf16.vlgmr.msra.gmra.mrb[24].mxu0 %vm149_vm0, %v1015_v9  ;;  %904 = vmatmul.mubr.msk.bf16.vlgmr.msra.gmra.mrb[24].mxu1 %vm149_vm0, %v1015_v9 }
  0x3a   :  { %516 = vmatprep.mubr.bf16.mxu0 %v975_v3  ;;  %569 = vmatprep.mubr.bf16.mxu1 %v975_v3 }
  0x41   :  { %903 = vmatmul.mubr.msk.bf16.gmra.mrb[28].mxu0 %vm149_vm0, %v974_v26  ;;  %905 = vmatmul.mubr.msk.bf16.gmra.mrb[28].mxu1 %vm149_vm0, %v974_v26 }
  0x87   :  { %v1106_v39 = vpop.permute.xlu0 %41  ;;  %v1108_v40 = vpop.permute.xlu1 %51 }
  0x8c   :  { %v1110_v42 = vpop.permute.xlu0 %46  ;;  %v1123_v6 = vpop.permute.xlu1 %56 }
  0xdc   :  { %v190_v41 = vpop.f32.mrb[0].mxu0  ;;  %v243_v44 = vpop.f32.mrb[0].mxu1 }
  0xdd   :  { %v191_v43 = vadd.f32 %v190_v41, %v1106_v39  ;;  %v192_v45 = vpop.f32.mrb[1].mxu0  ;;  %v244_v46 = vadd.f32 %v243_v44, %v1106_v39  ;;  %v245_v48 = vpop.f32.mrb[1].mxu1 }
  0xde   :  { %v193_v47 = vadd.f32 %v192_v45, %v1106_v39  ;;  %v194_v49 = vpop.f32.mrb[2].mxu0  ;;  %v246_v51 = vadd.f32 %v245_v48, %v1106_v39  ;;  %v247_v53 = vpop.f32.mrb[2].mxu1 }
  0xdf   :  { %v580_v50 = vmax.f32 %v191_v43, 0.0  ;;  %v195_v52 = vadd.f32 %v194_v49, %v1110_v42  ;;  %v196_v54 = vpop.f32.mrb[3].mxu0  ;;  %v582_v55 = vmax.f32 %v244_v46, 0.0  ;;  %v248_v57 = vadd.f32 %v247_v53, %v1110_v42  ;;  %v249_v59 = vpop.f32.mrb[3].mxu1 }
  0xe0   :  { %v581_v56 = vmax.f32 %v193_v47, 0.0  ;;  %v197_v58 = vadd.f32 %v196_v54, %v1110_v42  ;;  %v583_v60 = vmax.f32 %v246_v51, 0.0  ;;  %v250_v62 = vadd.f32 %v249_v59, %v1110_v42 }
  0xe1   :  { %v596_v61 = vmax.f32 %v195_v52, 0.0  ;;  %v598_v0 = vmax.f32 %v248_v57, 0.0 }
  0xe2   :  { %v938_v63 = vpack.c.bf16 %v581_v56, %v580_v50  ;;  %v597_v1 = vmax.f32 %v197_v58, 0.0  ;;  %v939_v2 = vpack.c.bf16 %v583_v60, %v582_v55  ;;  %v599_v3 = vmax.f32 %v250_v62, 0.0 }
  0xe4   :  { %836 = vst [vmem:[%s1277_s3] sm:$0xff] %v938_v63  ;;  %v946_v4 = vpack.c.bf16 %v597_v1, %v596_v61  ;;  %v200_v5 = vpop.f32.mrb[4].mxu0  ;;  %837 = vst [vmem:[%s1277_s3 + $0x8] sm:$0xff] %v939_v2  ;;  %v947_v7 = vpack.c.bf16 %v599_v3, %v598_v0  ;;  %v253_v9 = vpop.f32.mrb[4].mxu1 }
  0xe5   :  { %v201_v8 = vadd.f32 %v200_v5, %v1108_v40  ;;  %v202_v10 = vpop.f32.mrb[5].mxu0  ;;  %v254_v11 = vadd.f32 %v253_v9, %v1108_v40  ;;  %v255_v13 = vpop.f32.mrb[5].mxu1 }
  0xe6   :  { %844 = vst [vmem:[%s1277_s3 + $0x40] sm:$0xff] %v946_v4  ;;  %v203_v12 = vadd.f32 %v202_v10, %v1108_v40  ;;  %v204_v14 = vpop.f32.mrb[6].mxu0  ;;  %845 = vst [vmem:[%s1277_s3 + $0x48] sm:$0xff] %v947_v7  ;;  %v256_v16 = vadd.f32 %v255_v13, %v1108_v40  ;;  %v257_v18 = vpop.f32.mrb[6].mxu1 }
  0xe7   :  { %v612_v15 = vmax.f32 %v201_v8, 0.0  ;;  %v205_v17 = vadd.f32 %v204_v14, %v1123_v6  ;;  %v206_v19 = vpop.f32.mrb[7].mxu0  ;;  %v614_v20 = vmax.f32 %v254_v11, 0.0  ;;  %v258_v22 = vadd.f32 %v257_v18, %v1123_v6  ;;  %v259_v24 = vpop.f32.mrb[7].mxu1 }
  0xe8   :  { %v613_v21 = vmax.f32 %v203_v12, 0.0  ;;  %v207_v23 = vadd.f32 %v206_v19, %v1123_v6  ;;  %v615_v25 = vmax.f32 %v256_v16, 0.0  ;;  %v260_v27 = vadd.f32 %v259_v24, %v1123_v6 }
  0xe9   :  { %v628_v26 = vmax.f32 %v205_v17, 0.0  ;;  %v630_v29 = vmax.f32 %v258_v22, 0.0 }
  0xea   :  { %v954_v28 = vpack.c.bf16 %v613_v21, %v612_v15  ;;  %v629_v30 = vmax.f32 %v207_v23, 0.0  ;;  %v955_v31 = vpack.c.bf16 %v615_v25, %v614_v20  ;;  %v631_v32 = vmax.f32 %v260_v27, 0.0 }
  0xec   :  { %852 = vst [vmem:[%s1277_s3 + $0x80] sm:$0xff] %v954_v28  ;;  %v962_v33 = vpack.c.bf16 %v629_v30, %v628_v26  ;;  %v296_v34 = vpop.f32.mrb[8].mxu0  ;;  %853 = vst [vmem:[%s1277_s3 + $0x88] sm:$0xff] %v955_v31  ;;  %v963_v35 = vpack.c.bf16 %v631_v32, %v630_v29  ;;  %v349_v37 = vpop.f32.mrb[8].mxu1 }
  0xed   :  { %v297_v36 = vadd.f32 %v296_v34, %v1106_v39  ;;  %v298_v38 = vpop.f32.mrb[9].mxu0  ;;  %v350_v41 = vadd.f32 %v349_v37, %v1106_v39  ;;  %v351_v44 = vpop.f32.mrb[9].mxu1 }
  0xee   :  { %860 = vst [vmem:[%s1277_s3 + $0xc0] sm:$0xff] %v962_v33  ;;  %v299_v43 = vadd.f32 %v298_v38, %v1106_v39  ;;  %v300_v45 = vpop.f32.mrb[10].mxu0  ;;  %861 = vst [vmem:[%s1277_s3 + $0xc8] sm:$0xff] %v963_v35  ;;  %v352_v47 = vadd.f32 %v351_v44, %v1106_v39  ;;  %v353_v49 = vpop.f32.mrb[10].mxu1 }
  0xef   :  { %v584_v46 = vmax.f32 %v297_v36, 0.0  ;;  %v301_v48 = vadd.f32 %v300_v45, %v1110_v42  ;;  %v302_v50 = vpop.f32.mrb[11].mxu0  ;;  %v586_v51 = vmax.f32 %v350_v41, 0.0  ;;  %v354_v53 = vadd.f32 %v353_v49, %v1110_v42  ;;  %v355_v55 = vpop.f32.mrb[11].mxu1 }
  0xf0   :  { %v585_v52 = vmax.f32 %v299_v43, 0.0  ;;  %v303_v54 = vadd.f32 %v302_v50, %v1110_v42  ;;  %v587_v56 = vmax.f32 %v352_v47, 0.0  ;;  %v356_v58 = vadd.f32 %v355_v55, %v1110_v42 }
  0xf1   :  { %v600_v57 = vmax.f32 %v301_v48, 0.0  ;;  %v602_v60 = vmax.f32 %v354_v53, 0.0 }
  0xf2   :  { %v940_v59 = vpack.c.bf16 %v585_v52, %v584_v46  ;;  %v601_v61 = vmax.f32 %v303_v54, 0.0  ;;  %v941_v62 = vpack.c.bf16 %v587_v56, %v586_v51  ;;  %v603_v63 = vmax.f32 %v356_v58, 0.0 }
  0xf4   :  { %838 = vst [vmem:[%s1277_s3 + $0x10] sm:$0xff] %v940_v59  ;;  %v948_v0 = vpack.c.bf16 %v601_v61, %v600_v57  ;;  %v306_v1 = vpop.f32.mrb[12].mxu0  ;;  %839 = vst [vmem:[%s1277_s3 + $0x18] sm:$0xff] %v941_v62  ;;  %v949_v2 = vpack.c.bf16 %v603_v63, %v602_v60  ;;  %v359_v4 = vpop.f32.mrb[12].mxu1 }
  0xf5   :  { %v307_v3 = vadd.f32 %v306_v1, %v1108_v40  ;;  %v308_v5 = vpop.f32.mrb[13].mxu0  ;;  %v360_v7 = vadd.f32 %v359_v4, %v1108_v40  ;;  %v361_v9 = vpop.f32.mrb[13].mxu1 }
  0xf6   :  { %846 = vst [vmem:[%s1277_s3 + $0x50] sm:$0xff] %v948_v0  ;;  %v309_v8 = vadd.f32 %v308_v5, %v1108_v40  ;;  %v310_v10 = vpop.f32.mrb[14].mxu0  ;;  %847 = vst [vmem:[%s1277_s3 + $0x58] sm:$0xff] %v949_v2  ;;  %v362_v12 = vadd.f32 %v361_v9, %v1108_v40  ;;  %v363_v14 = vpop.f32.mrb[14].mxu1 }
  0xf7   :  { %v616_v11 = vmax.f32 %v307_v3, 0.0  ;;  %v311_v13 = vadd.f32 %v310_v10, %v1123_v6  ;;  %v312_v15 = vpop.f32.mrb[15].mxu0  ;;  %v618_v16 = vmax.f32 %v360_v7, 0.0  ;;  %v364_v18 = vadd.f32 %v363_v14, %v1123_v6  ;;  %v365_v20 = vpop.f32.mrb[15].mxu1 }
  0xf8   :  { %v617_v17 = vmax.f32 %v309_v8, 0.0  ;;  %v313_v19 = vadd.f32 %v312_v15, %v1123_v6  ;;  %v619_v21 = vmax.f32 %v362_v12, 0.0  ;;  %v366_v23 = vadd.f32 %v365_v20, %v1123_v6 }
  0xf9   :  { %v632_v22 = vmax.f32 %v311_v13, 0.0  ;;  %v634_v25 = vmax.f32 %v364_v18, 0.0 }
  0xfa   :  { %v956_v24 = vpack.c.bf16 %v617_v17, %v616_v11  ;;  %v633_v26 = vmax.f32 %v313_v19, 0.0  ;;  %v957_v27 = vpack.c.bf16 %v619_v21, %v618_v16  ;;  %v635_v28 = vmax.f32 %v366_v23, 0.0 }
  0xfc   :  { %854 = vst [vmem:[%s1277_s3 + $0x90] sm:$0xff] %v956_v24  ;;  %v964_v29 = vpack.c.bf16 %v633_v26, %v632_v22  ;;  %v402_v30 = vpop.f32.mrb[16].mxu0  ;;  %855 = vst [vmem:[%s1277_s3 + $0x98] sm:$0xff] %v957_v27  ;;  %v965_v31 = vpack.c.bf16 %v635_v28, %v634_v25  ;;  %v455_v33 = vpop.f32.mrb[16].mxu1 }
  0xfd   :  { %v403_v32 = vadd.f32 %v402_v30, %v1106_v39  ;;  %v404_v34 = vpop.f32.mrb[17].mxu0  ;;  %v456_v35 = vadd.f32 %v455_v33, %v1106_v39  ;;  %v457_v37 = vpop.f32.mrb[17].mxu1 }
  0xfe   :  { %862 = vst [vmem:[%s1277_s3 + $0xd0] sm:$0xff] %v964_v29  ;;  %v405_v36 = vadd.f32 %v404_v34, %v1106_v39  ;;  %v406_v38 = vpop.f32.mrb[18].mxu0  ;;  %863 = vst [vmem:[%s1277_s3 + $0xd8] sm:$0xff] %v965_v31  ;;  %v458_v43 = vadd.f32 %v457_v37, %v1106_v39  ;;  %v459_v45 = vpop.f32.mrb[18].mxu1 }
  0xff   :  { %v588_v41 = vmax.f32 %v403_v32, 0.0  ;;  %v407_v44 = vadd.f32 %v406_v38, %v1110_v42  ;;  %v408_v46 = vpop.f32.mrb[19].mxu0  ;;  %v590_v47 = vmax.f32 %v456_v35, 0.0  ;;  %v460_v49 = vadd.f32 %v459_v45, %v1110_v42  ;;  %v461_v51 = vpop.f32.mrb[19].mxu1 }
 0x100   :  { %v589_v48 = vmax.f32 %v405_v36, 0.0  ;;  %v409_v50 = vadd.f32 %v408_v46, %v1110_v42  ;;  %v591_v52 = vmax.f32 %v458_v43, 0.0  ;;  %v462_v54 = vadd.f32 %v461_v51, %v1110_v42 }
 0x101   :  { %v604_v53 = vmax.f32 %v407_v44, 0.0  ;;  %v606_v56 = vmax.f32 %v460_v49, 0.0 }
 0x102   :  { %v942_v55 = vpack.c.bf16 %v589_v48, %v588_v41  ;;  %v605_v57 = vmax.f32 %v409_v50, 0.0  ;;  %v943_v58 = vpack.c.bf16 %v591_v52, %v590_v47  ;;  %v607_v59 = vmax.f32 %v462_v54, 0.0 }
 0x104   :  { %840 = vst [vmem:[%s1277_s3 + $0x20] sm:$0xff] %v942_v55  ;;  %v950_v60 = vpack.c.bf16 %v605_v57, %v604_v53  ;;  %v412_v61 = vpop.f32.mrb[20].mxu0  ;;  %841 = vst [vmem:[%s1277_s3 + $0x28] sm:$0xff] %v943_v58  ;;  %v951_v62 = vpack.c.bf16 %v607_v59, %v606_v56  ;;  %v465_v0 = vpop.f32.mrb[20].mxu1 }
 0x105   :  { %v413_v63 = vadd.f32 %v412_v61, %v1108_v40  ;;  %v414_v1 = vpop.f32.mrb[21].mxu0  ;;  %v466_v2 = vadd.f32 %v465_v0, %v1108_v40  ;;  %v467_v4 = vpop.f32.mrb[21].mxu1 }
 0x106   :  { %848 = vst [vmem:[%s1277_s3 + $0x60] sm:$0xff] %v950_v60  ;;  %v415_v3 = vadd.f32 %v414_v1, %v1108_v40  ;;  %v416_v5 = vpop.f32.mrb[22].mxu0  ;;  %849 = vst [vmem:[%s1277_s3 + $0x68] sm:$0xff] %v951_v62  ;;  %v468_v8 = vadd.f32 %v467_v4, %v1108_v40  ;;  %v469_v10 = vpop.f32.mrb[22].mxu1 }
 0x107   :  { %v620_v7 = vmax.f32 %v413_v63, 0.0  ;;  %v417_v9 = vadd.f32 %v416_v5, %v1123_v6  ;;  %v418_v11 = vpop.f32.mrb[23].mxu0  ;;  %v622_v12 = vmax.f32 %v466_v2, 0.0  ;;  %v470_v14 = vadd.f32 %v469_v10, %v1123_v6  ;;  %v471_v16 = vpop.f32.mrb[23].mxu1 }
 0x108   :  { %v621_v13 = vmax.f32 %v415_v3, 0.0  ;;  %v419_v15 = vadd.f32 %v418_v11, %v1123_v6  ;;  %v623_v17 = vmax.f32 %v468_v8, 0.0  ;;  %v472_v19 = vadd.f32 %v471_v16, %v1123_v6 }
 0x109   :  { %v636_v18 = vmax.f32 %v417_v9, 0.0  ;;  %v638_v21 = vmax.f32 %v470_v14, 0.0 }
 0x10a   :  { %v958_v20 = vpack.c.bf16 %v621_v13, %v620_v7  ;;  %v637_v22 = vmax.f32 %v419_v15, 0.0  ;;  %v959_v23 = vpack.c.bf16 %v623_v17, %v622_v12  ;;  %v639_v24 = vmax.f32 %v472_v19, 0.0 }
 0x10c   :  { %856 = vst [vmem:[%s1277_s3 + $0xa0] sm:$0xff] %v958_v20  ;;  %v966_v25 = vpack.c.bf16 %v637_v22, %v636_v18  ;;  %v508_v26 = vpop.f32.mrb[24].mxu0  ;;  %857 = vst [vmem:[%s1277_s3 + $0xa8] sm:$0xff] %v959_v23  ;;  %v967_v27 = vpack.c.bf16 %v639_v24, %v638_v21  ;;  %v561_v29 = vpop.f32.mrb[24].mxu1 }
 0x10d   :  { %v509_v28 = vadd.f32 %v508_v26, %v1106_v39  ;;  %v510_v30 = vpop.f32.mrb[25].mxu0  ;;  %v562_v31 = vadd.f32 %v561_v29, %v1106_v39  ;;  %v563_v33 = vpop.f32.mrb[25].mxu1 }
 0x10e   :  { %864 = vst [vmem:[%s1277_s3 + $0xe0] sm:$0xff] %v966_v25  ;;  %v511_v32 = vadd.f32 %v510_v30, %v1106_v39  ;;  %v512_v34 = vpop.f32.mrb[26].mxu0  ;;  %865 = vst [vmem:[%s1277_s3 + $0xe8] sm:$0xff] %v967_v27  ;;  %v564_v36 = vadd.f32 %v563_v33, %v1106_v39  ;;  %v565_v38 = vpop.f32.mrb[26].mxu1 }
 0x10f   :  { %v592_v35 = vmax.f32 %v509_v28, 0.0  ;;  %v513_v37 = vadd.f32 %v512_v34, %v1110_v42  ;;  %v514_v41 = vpop.f32.mrb[27].mxu0  ;;  %v594_v43 = vmax.f32 %v562_v31, 0.0  ;;  %v566_v45 = vadd.f32 %v565_v38, %v1110_v42  ;;  %v567_v47 = vpop.f32.mrb[27].mxu1 }
 0x110   :  { %v593_v44 = vmax.f32 %v511_v32, 0.0  ;;  %v515_v46 = vadd.f32 %v514_v41, %v1110_v42  ;;  %v595_v48 = vmax.f32 %v564_v36, 0.0  ;;  %v568_v50 = vadd.f32 %v567_v47, %v1110_v42 }
 0x111   :  { %v608_v49 = vmax.f32 %v513_v37, 0.0  ;;  %v610_v52 = vmax.f32 %v566_v45, 0.0 }
 0x112   :  { %v944_v51 = vpack.c.bf16 %v593_v44, %v592_v35  ;;  %v609_v53 = vmax.f32 %v515_v46, 0.0  ;;  %v945_v54 = vpack.c.bf16 %v595_v48, %v594_v43  ;;  %v611_v39 = vmax.f32 %v568_v50, 0.0 }
 0x114   :  { %842 = vst [vmem:[%s1277_s3 + $0x30] sm:$0xff] %v944_v51  ;;  %v952_v55 = vpack.c.bf16 %v609_v53, %v608_v49  ;;  %v518_v56 = vpop.f32.mrb[28].mxu0  ;;  %843 = vst [vmem:[%s1277_s3 + $0x38] sm:$0xff] %v945_v54  ;;  %v953_v57 = vpack.c.bf16 %v611_v39, %v610_v52  ;;  %v571_v59 = vpop.f32.mrb[28].mxu1 }
 0x115   :  { %v519_v58 = vadd.f32 %v518_v56, %v1108_v40  ;;  %v520_v42 = vpop.f32.mrb[29].mxu0  ;;  %v572_v60 = vadd.f32 %v571_v59, %v1108_v40  ;;  %v573_v62 = vpop.f32.mrb[29].mxu1 }
 0x116   :  { %850 = vst [vmem:[%s1277_s3 + $0x70] sm:$0xff] %v952_v55  ;;  %v521_v61 = vadd.f32 %v520_v42, %v1108_v40  ;;  %v522_v63 = vpop.f32.mrb[30].mxu0  ;;  %851 = vst [vmem:[%s1277_s3 + $0x78] sm:$0xff] %v953_v57  ;;  %v574_v1 = vadd.f32 %v573_v62, %v1108_v40  ;;  %v575_v3 = vpop.f32.mrb[30].mxu1 }
 0x117   :  { %v624_v0 = vmax.f32 %v519_v58, 0.0  ;;  %v523_v2 = vadd.f32 %v522_v63, %v1123_v6  ;;  %v524_v4 = vpop.f32.mrb[31].mxu0  ;;  %v626_v5 = vmax.f32 %v572_v60, 0.0  ;;  %v576_v8 = vadd.f32 %v575_v3, %v1123_v6  ;;  %v577_v10 = vpop.f32.mrb[31].mxu1 }
 0x118   :  { %v625_v7 = vmax.f32 %v521_v61, 0.0  ;;  %v525_v9 = vadd.f32 %v524_v4, %v1123_v6  ;;  %v627_v11 = vmax.f32 %v574_v1, 0.0  ;;  %v578_v13 = vadd.f32 %v577_v10, %v1123_v6 }
 0x119   :  { %v640_v12 = vmax.f32 %v523_v2, 0.0  ;;  %v642_v15 = vmax.f32 %v576_v8, 0.0 }
 0x11a   :  { %v960_v14 = vpack.c.bf16 %v625_v7, %v624_v0  ;;  %v641_v16 = vmax.f32 %v525_v9, 0.0  ;;  %v961_v17 = vpack.c.bf16 %v627_v11, %v626_v5  ;;  %v643_v40 = vmax.f32 %v578_v13, 0.0 }
 0x11c   :  { %858 = vst [vmem:[%s1277_s3 + $0xb0] sm:$0xff] %v960_v14  ;;  %v968_v18 = vpack.c.bf16 %v641_v16, %v640_v12  ;;  %859 = vst [vmem:[%s1277_s3 + $0xb8] sm:$0xff] %v961_v17  ;;  %v969_v19 = vpack.c.bf16 %v643_v40, %v642_v15 }
 0x11e   :  { %866 = vst [vmem:[%s1277_s3 + $0xf0] sm:$0xff] %v968_v18  ;;  %867 = vst [vmem:[%s1277_s3 + $0xf8] sm:$0xff] %v969_v19 }

// kernel: vaefc_forward.9
= control target key start
LH: loop header
LB: loop body
LE: loop exit
PB: predicated region body
PF: predicated region fallthrough
CT: control target
= control target key end

     0   :  { %v1533_v18 = vmov 0   ;;  %s1998_s1 = inlined_call_operand.vmem [shape: bf16[512,512], index: 1, kind: input, shape index: {}]   ;;  %s1999_s0 = inlined_call_operand.vmem [shape: bf16[32,512], index: 0, kind: input, shape index: {}]   ;;  %s2000_s2 = inlined_call_operand.vmem [shape: f32[32,1], index: 2, kind: input, shape index: {}]   ;;  %s2001_s3 = inlined_call_operand.vmem [shape: bf16[32,512], index: 3, kind: output, shape index: {}]  }
   0x1   :  { %v1329_v0 = vld [vmem:[%s1998_s1 + $0x4] ss:$16 sps:$4 sm:$0xff]   ;;  %v1331_v1 = vld [vmem:[%s1998_s1 + $0xc] ss:$16 sps:$4 sm:$0xff]   ;;  %v1333_v2 = vld [vmem:[%s1998_s1] ss:$16 sps:$4 sm:$0xff]   ;;  %1327 = vset.pattern.permute.xlu0 %v1533_v18  ;;  %1328 = vset.pattern.permute.xlu1 %v1533_v18 }
   0x2   :  { %854 = vmatprep.subr.bf16.mxu0 %v1329_v0  ;;  %v1334_v3 = vld [vmem:[%s1998_s1 + $0x8] ss:$16 sps:$4 sm:$0xff]   ;;  %960 = vmatprep.subr.bf16.mxu1 %v1331_v1  ;;  %v1335_v4 = vld [vmem:[%s1998_s1 + $0x24] ss:$16 sps:$4 sm:$0xff]   ;;  %v1337_v5 = vld [vmem:[%s1998_s1 + $0x2c] ss:$16 sps:$4 sm:$0xff]  }
   0x3   :  { %855 = vmatpush1.bf16.msra.mxu0 %v1333_v2  ;;  %961 = vmatpush1.bf16.msra.mxu1 %v1334_v3  ;;  %v1339_v6 = vld [vmem:[%s1998_s1 + $0x20] ss:$16 sps:$4 sm:$0xff]   ;;  %v1340_v7 = vld [vmem:[%s1998_s1 + $0x28] ss:$16 sps:$4 sm:$0xff]   ;;  %v1341_v8 = vld [vmem:[%s1998_s1 + $0x44] ss:$16 sps:$4 sm:$0xff]  }
   0x4   :  { %856 = vmatprep.subr.bf16.mxu0 %v1335_v4  ;;  %962 = vmatprep.subr.bf16.mxu1 %v1337_v5  ;;  %v1343_v9 = vld [vmem:[%s1998_s1 + $0x4c] ss:$16 sps:$4 sm:$0xff]   ;;  %v1345_v10 = vld [vmem:[%s1998_s1 + $0x40] ss:$16 sps:$4 sm:$0xff]   ;;  %v1346_v11 = vld [vmem:[%s1998_s1 + $0x48] ss:$16 sps:$4 sm:$0xff]  }
   0x5   :  { %v1347_v12 = vld [vmem:[%s1998_s1 + $0x64] ss:$16 sps:$4 sm:$0xff]   ;;  %v1349_v13 = vld [vmem:[%s1998_s1 + $0x6c] ss:$16 sps:$4 sm:$0xff]   ;;  %v1351_v14 = vld [vmem:[%s1998_s1 + $0x60] ss:$16 sps:$4 sm:$0xff]  }
   0x6   :  { %v1352_v15 = vld [vmem:[%s1998_s1 + $0x68] ss:$16 sps:$4 sm:$0xff]   ;;  %v1353_v16 = vld [vmem:[%s1998_s1 + $0x84] ss:$16 sps:$4 sm:$0xff]   ;;  %v1355_v17 = vld [vmem:[%s1998_s1 + $0x8c] ss:$16 sps:$4 sm:$0xff]  }
   0x7   :  { %857 = vmatpush1.bf16.msra.mxu0 %v1339_v6  ;;  %963 = vmatpush1.bf16.msra.mxu1 %v1340_v7  ;;  %v1357_v19 = vld [vmem:[%s1998_s1 + $0x80] ss:$16 sps:$4 sm:$0xff]   ;;  %v1358_v20 = vld [vmem:[%s1998_s1 + $0x88] ss:$16 sps:$4 sm:$0xff]   ;;  %v1359_v21 = vld [vmem:[%s1998_s1 + $0xa4] ss:$16 sps:$4 sm:$0xff]  }
   0x8   :  { %858 = vmatprep.subr.bf16.mxu0 %v1341_v8  ;;  %964 = vmatprep.subr.bf16.mxu1 %v1343_v9  ;;  %v1361_v22 = vld [vmem:[%s1998_s1 + $0xac] ss:$16 sps:$4 sm:$0xff]   ;;  %v1363_v23 = vld [vmem:[%s1998_s1 + $0xa0] ss:$16 sps:$4 sm:$0xff]   ;;  %v1364_v24 = vld [vmem:[%s1998_s1 + $0xa8] ss:$16 sps:$4 sm:$0xff]  }
   0x9   :  { %v1365_v25 = vld [vmem:[%s1998_s1 + $0xc4] ss:$16 sps:$4 sm:$0xff]   ;;  %v1367_v26 = vld [vmem:[%s1998_s1 + $0xcc] ss:$16 sps:$4 sm:$0xff]   ;;  %v1369_v27 = vld [vmem:[%s1998_s1 + $0xc0] ss:$16 sps:$4 sm:$0xff]  }
   0xa   :  { %v1370_v28 = vld [vmem:[%s1998_s1 + $0xc8] ss:$16 sps:$4 sm:$0xff]   ;;  %v1371_v29 = vld [vmem:[%s1998_s1 + $0xe4] ss:$16 sps:$4 sm:$0xff]   ;;  %v1373_v30 = vld [vmem:[%s1998_s1 + $0xec] ss:$16 sps:$4 sm:$0xff]  }
   0xb   :  { %859 = vmatpush1.bf16.msra.mxu0 %v1345_v10  ;;  %965 = vmatpush1.bf16.msra.mxu1 %v1346_v11  ;;  %v1375_v31 = vld [vmem:[%s1998_s1 + $0xe0] ss:$16 sps:$4 sm:$0xff]   ;;  %v1376_v32 = vld [vmem:[%s1998_s1 + $0xe8] ss:$16 sps:$4 sm:$0xff]   ;;  %v1377_v33 = vld [vmem:[%s1998_s1 + $0x104] ss:$16 sps:$4 sm:$0xff]  }
   0xc   :  { %860 = vmatprep.subr.bf16.mxu0 %v1347_v12  ;;  %966 = vmatprep.subr.bf16.mxu1 %v1349_v13  ;;  %v1379_v34 = vld [vmem:[%s1998_s1 + $0x10c] ss:$16 sps:$4 sm:$0xff]   ;;  %v1381_v35 = vld [vmem:[%s1998_s1 + $0x100] ss:$16 sps:$4 sm:$0xff]   ;;  %v1382_v36 = vld [vmem:[%s1998_s1 + $0x108] ss:$16 sps:$4 sm:$0xff]  }
   0xd   :  { %v1383_v37 = vld [vmem:[%s1998_s1 + $0x124] ss:$16 sps:$4 sm:$0xff]   ;;  %v1385_v38 = vld [vmem:[%s1998_s1 + $0x12c] ss:$16 sps:$4 sm:$0xff]   ;;  %v1387_v39 = vld [vmem:[%s1998_s1 + $0x120] ss:$16 sps:$4 sm:$0xff]  }
   0xe   :  { %v1388_v40 = vld [vmem:[%s1998_s1 + $0x128] ss:$16 sps:$4 sm:$0xff]   ;;  %v1389_v41 = vld [vmem:[%s1998_s1 + $0x144] ss:$16 sps:$4 sm:$0xff]   ;;  %v1391_v42 = vld [vmem:[%s1998_s1 + $0x14c] ss:$16 sps:$4 sm:$0xff]  }
   0xf   :  { %861 = vmatpush1.bf16.msra.mxu0 %v1351_v14  ;;  %967 = vmatpush1.bf16.msra.mxu1 %v1352_v15  ;;  %v1393_v43 = vld [vmem:[%s1998_s1 + $0x140] ss:$16 sps:$4 sm:$0xff]   ;;  %v1394_v44 = vld [vmem:[%s1998_s1 + $0x148] ss:$16 sps:$4 sm:$0xff]   ;;  %v1395_v45 = vld [vmem:[%s1998_s1 + $0x164] ss:$16 sps:$4 sm:$0xff]  }
  0x10   :  { %862 = vmatprep.subr.bf16.mxu0 %v1353_v16  ;;  %968 = vmatprep.subr.bf16.mxu1 %v1355_v17  ;;  %v1397_v46 = vld [vmem:[%s1998_s1 + $0x16c] ss:$16 sps:$4 sm:$0xff]   ;;  %v1399_v47 = vld [vmem:[%s1998_s1 + $0x160] ss:$16 sps:$4 sm:$0xff]   ;;  %v1400_v48 = vld [vmem:[%s1998_s1 + $0x168] ss:$16 sps:$4 sm:$0xff]  }
  0x11   :  { %v1427_v49 = vld [vmem:[%s1999_s0 + $0x4] ss:$16 sps:$4 sm:$0xff]   ;;  %v1403_v51 = vld [vmem:[%s1998_s1 + $0x18c] ss:$16 sps:$4 sm:$0xff]   ;;  %v1405_v52 = vld [vmem:[%s1998_s1 + $0x180] ss:$16 sps:$4 sm:$0xff]  }
  0x12   :  { %v1401_v50 = vld [vmem:[%s1998_s1 + $0x184] ss:$16 sps:$4 sm:$0xff]   ;;  %886 = vmatprep.mubr.bf16.mxu0 %v1427_v49  ;;  %992 = vmatprep.mubr.bf16.mxu1 %v1427_v49  ;;  %v1406_v53 = vld [vmem:[%s1998_s1 + $0x188] ss:$16 sps:$4 sm:$0xff]   ;;  %v1409_v55 = vld [vmem:[%s1998_s1 + $0x1ac] ss:$16 sps:$4 sm:$0xff]  }
  0x13   :  { %863 = vmatpush1.bf16.msra.mxu0 %v1357_v19  ;;  %969 = vmatpush1.bf16.msra.mxu1 %v1358_v20  ;;  %v1407_v54 = vld [vmem:[%s1998_s1 + $0x1a4] ss:$16 sps:$4 sm:$0xff]   ;;  %v1411_v56 = vld [vmem:[%s1998_s1 + $0x1a0] ss:$16 sps:$4 sm:$0xff]   ;;  %v1412_v57 = vld [vmem:[%s1998_s1 + $0x1a8] ss:$16 sps:$4 sm:$0xff]  }
  0x14   :  { %864 = vmatprep.subr.bf16.mxu0 %v1359_v21  ;;  %970 = vmatprep.subr.bf16.mxu1 %v1361_v22  ;;  %v1413_v58 = vld [vmem:[%s1998_s1 + $0x1c4] ss:$16 sps:$4 sm:$0xff]   ;;  %v1415_v59 = vld [vmem:[%s1998_s1 + $0x1cc] ss:$16 sps:$4 sm:$0xff]   ;;  %v1417_v60 = vld [vmem:[%s1998_s1 + $0x1c0] ss:$16 sps:$4 sm:$0xff]  }
  0x15   :  { %v1418_v61 = vld [vmem:[%s1998_s1 + $0x1c8] ss:$16 sps:$4 sm:$0xff]   ;;  %v1419_v62 = vld [vmem:[%s1998_s1 + $0x1e4] ss:$16 sps:$4 sm:$0xff]   ;;  %v1421_v63 = vld [vmem:[%s1998_s1 + $0x1ec] ss:$16 sps:$4 sm:$0xff]  }
  0x16   :  { %v1423_v0 = vld [vmem:[%s1998_s1 + $0x1e0] ss:$16 sps:$4 sm:$0xff]   ;;  %v1424_v1 = vld [vmem:[%s1998_s1 + $0x1e8] ss:$16 sps:$4 sm:$0xff]   ;;  %v1430_v2 = vld [vmem:[%s1998_s1 + $0x204] ss:$16 sps:$4 sm:$0xff]  }
  0x17   :  { %865 = vmatpush1.bf16.msra.mxu0 %v1363_v23  ;;  %971 = vmatpush1.bf16.msra.mxu1 %v1364_v24  ;;  %v1433_v3 = vld [vmem:[%s1998_s1 + $0x20c] ss:$16 sps:$4 sm:$0xff]   ;;  %v1425_v4 = vld [vmem:[%s1999_s0] ss:$16 sps:$4 sm:$0xff]   ;;  %v1431_v6 = vld [vmem:[%s1998_s1 + $0x208] ss:$16 sps:$4 sm:$0xff]  }
  0x18   :  { %866 = vmatprep.subr.bf16.mxu0 %v1365_v25  ;;  %972 = vmatprep.subr.bf16.mxu1 %v1367_v26  ;;  %v1428_v5 = vld [vmem:[%s1998_s1 + $0x200] ss:$16 sps:$4 sm:$0xff]   ;;  %v1436_v7 = vld [vmem:[%s1998_s1 + $0x224] ss:$16 sps:$4 sm:$0xff]   ;;  %v1439_v8 = vld [vmem:[%s1998_s1 + $0x22c] ss:$16 sps:$4 sm:$0xff]  }
  0x19   :  { %v1434_v9 = vld [vmem:[%s1998_s1 + $0x220] ss:$16 sps:$4 sm:$0xff]   ;;  %v1437_v10 = vld [vmem:[%s1998_s1 + $0x228] ss:$16 sps:$4 sm:$0xff]   ;;  %v1442_v11 = vld [vmem:[%s1998_s1 + $0x244] ss:$16 sps:$4 sm:$0xff]  }
  0x1a   :  { %v1445_v12 = vld [vmem:[%s1998_s1 + $0x24c] ss:$16 sps:$4 sm:$0xff]   ;;  %v1440_v13 = vld [vmem:[%s1998_s1 + $0x240] ss:$16 sps:$4 sm:$0xff]   ;;  %v1443_v14 = vld [vmem:[%s1998_s1 + $0x248] ss:$16 sps:$4 sm:$0xff]  }
  0x1b   :  { %867 = vmatpush1.bf16.msra.mxu0 %v1369_v27  ;;  %973 = vmatpush1.bf16.msra.mxu1 %v1370_v28  ;;  %v1448_v15 = vld [vmem:[%s1998_s1 + $0x264] ss:$16 sps:$4 sm:$0xff]   ;;  %v1451_v16 = vld [vmem:[%s1998_s1 + $0x26c] ss:$16 sps:$4 sm:$0xff]   ;;  %v1446_v17 = vld [vmem:[%s1998_s1 + $0x260] ss:$16 sps:$4 sm:$0xff]  }
  0x1c   :  { %868 = vmatprep.subr.bf16.mxu0 %v1371_v29  ;;  %974 = vmatprep.subr.bf16.mxu1 %v1373_v30  ;;  %v1449_v18 = vld [vmem:[%s1998_s1 + $0x268] ss:$16 sps:$4 sm:$0xff]   ;;  %v1454_v19 = vld [vmem:[%s1998_s1 + $0x284] ss:$16 sps:$4 sm:$0xff]   ;;  %v1457_v20 = vld [vmem:[%s1998_s1 + $0x28c] ss:$16 sps:$4 sm:$0xff]  }
  0x1d   :  { %v1452_v21 = vld [vmem:[%s1998_s1 + $0x280] ss:$16 sps:$4 sm:$0xff]   ;;  %v1455_v22 = vld [vmem:[%s1998_s1 + $0x288] ss:$16 sps:$4 sm:$0xff]   ;;  %v1460_v23 = vld [vmem:[%s1998_s1 + $0x2a4] ss:$16 sps:$4 sm:$0xff]  }
  0x1e   :  { %v1463_v24 = vld [vmem:[%s1998_s1 + $0x2ac] ss:$16 sps:$4 sm:$0xff]   ;;  %v1458_v25 = vld [vmem:[%s1998_s1 + $0x2a0] ss:$16 sps:$4 sm:$0xff]   ;;  %v1512_v26 = vld [vmem:[%s1999_s0 + $0x24] ss:$16 sps:$4 sm:$0xff]  }
  0x1f   :  { %869 = vmatpush1.bf16.msra.mxu0 %v1375_v31  ;;  %975 = vmatpush1.bf16.msra.mxu1 %v1376_v32  ;;  %v1461_v27 = vld [vmem:[%s1998_s1 + $0x2a8] ss:$16 sps:$4 sm:$0xff]   ;;  %v1514_v28 = vld [vmem:[%s1999_s0 + $0x20] ss:$16 sps:$4 sm:$0xff]   ;;  %v1466_v29 = vld [vmem:[%s1998_s1 + $0x2c4] ss:$16 sps:$4 sm:$0xff]  }
  0x20   :  { %870 = vmatprep.subr.bf16.mxu0 %v1377_v33  ;;  %976 = vmatprep.subr.bf16.mxu1 %v1379_v34  ;;  %v1469_v30 = vld [vmem:[%s1998_s1 + $0x2cc] ss:$16 sps:$4 sm:$0xff]   ;;  %v1464_v31 = vld [vmem:[%s1998_s1 + $0x2c0] ss:$16 sps:$4 sm:$0xff]   ;;  %v1467_v32 = vld [vmem:[%s1998_s1 + $0x2c8] ss:$16 sps:$4 sm:$0xff]  }
  0x21   :  { %v1472_v33 = vld [vmem:[%s1998_s1 + $0x2e4] ss:$16 sps:$4 sm:$0xff]   ;;  %v1475_v34 = vld [vmem:[%s1998_s1 + $0x2ec] ss:$16 sps:$4 sm:$0xff]   ;;  %v1485_v49 = vld [vmem:[%s1998_s1 + $0x328] ss:$16 sps:$4 sm:$0xff]  }
  0x23   :  { %871 = vmatpush1.bf16.msra.mxu0 %v1381_v35  ;;  %977 = vmatpush1.bf16.msra.mxu1 %v1382_v36  ;;  %v1529_v35 = vld [vmem:[%s1999_s0 + $0xc] ss:$16 sps:$4 sm:$0xff]   ;;  %v150_v36 = vld [vmem:[%s2000_s2] sm:$0xff] }
  0x24   :  { %872 = vmatprep.subr.bf16.mxu0 %v1383_v37  ;;  %978 = vmatprep.subr.bf16.mxu1 %v1385_v38  ;;  %v152_v37 = vld [vmem:[%s2000_s2 + $0x10] sm:$0xff] }
  0x25   :  { %v1470_v38 = vld [vmem:[%s1998_s1 + $0x2e0] ss:$16 sps:$4 sm:$0xff]   ;;  %156 = vperm.xlu0 %1327, %v150_v36   ;;  %166 = vperm.xlu1 %1328, %v152_v37  }
  0x27   :  { %873 = vmatpush1.bf16.msra.mxu0 %v1387_v39  ;;  %979 = vmatpush1.bf16.msra.mxu1 %v1388_v40  ;;  %v1473_v39 = vld [vmem:[%s1998_s1 + $0x2e8] ss:$16 sps:$4 sm:$0xff]   ;;  %v1478_v40 = vld [vmem:[%s1998_s1 + $0x304] ss:$16 sps:$4 sm:$0xff]  }
  0x28   :  { %874 = vmatprep.subr.bf16.mxu0 %v1389_v41  ;;  %980 = vmatprep.subr.bf16.mxu1 %v1391_v42  ;;  %v1481_v41 = vld [vmem:[%s1998_s1 + $0x30c] ss:$16 sps:$4 sm:$0xff]  }
  0x29   :  { %v151_v42 = vld [vmem:[%s2000_s2 + $0x8] sm:$0xff] }
  0x2a   :  { %161 = vperm.xlu0 %1327, %v151_v42  }
  0x2b   :  { %875 = vmatpush1.bf16.msra.mxu0 %v1393_v43  ;;  %981 = vmatpush1.bf16.msra.mxu1 %v1394_v44  ;;  %v153_v43 = vld [vmem:[%s2000_s2 + $0x18] sm:$0xff]  ;;  %v1476_v44 = vld [vmem:[%s1998_s1 + $0x300] ss:$16 sps:$4 sm:$0xff]  }
  0x2c   :  { %876 = vmatprep.subr.bf16.mxu0 %v1395_v45  ;;  %982 = vmatprep.subr.bf16.mxu1 %v1397_v46  ;;  %v1479_v45 = vld [vmem:[%s1998_s1 + $0x308] ss:$16 sps:$4 sm:$0xff]   ;;  %v1484_v46 = vld [vmem:[%s1998_s1 + $0x324] ss:$16 sps:$4 sm:$0xff]  }
  0x2d   :  { %171 = vperm.xlu1 %1328, %v153_v43  }
  0x2f   :  { %877 = vmatpush1.bf16.msra.mxu0 %v1399_v47  ;;  %983 = vmatpush1.bf16.msra.mxu1 %v1400_v48  ;;  %v1487_v47 = vld [vmem:[%s1998_s1 + $0x32c] ss:$16 sps:$4 sm:$0xff]   ;;  %v1482_v48 = vld [vmem:[%s1998_s1 + $0x320] ss:$16 sps:$4 sm:$0xff]  }
  0x30   :  { %878 = vmatprep.subr.bf16.mxu0 %v1401_v50  ;;  %984 = vmatprep.subr.bf16.mxu1 %v1403_v51  ;;  %v1490_v50 = vld [vmem:[%s1998_s1 + $0x344] ss:$16 sps:$4 sm:$0xff]   ;;  %v1493_v51 = vld [vmem:[%s1998_s1 + $0x34c] ss:$16 sps:$4 sm:$0xff]  }
  0x33   :  { %879 = vmatpush1.bf16.msra.mxu0 %v1405_v52  ;;  %985 = vmatpush1.bf16.msra.mxu1 %v1406_v53  ;;  %v1488_v52 = vld [vmem:[%s1998_s1 + $0x340] ss:$16 sps:$4 sm:$0xff]   ;;  %v1491_v53 = vld [vmem:[%s1998_s1 + $0x348] ss:$16 sps:$4 sm:$0xff]  }
  0x34   :  { %880 = vmatprep.subr.bf16.mxu0 %v1407_v54  ;;  %986 = vmatprep.subr.bf16.mxu1 %v1409_v55  ;;  %v1496_v54 = vld [vmem:[%s1998_s1 + $0x364] ss:$16 sps:$4 sm:$0xff]   ;;  %v1499_v55 = vld [vmem:[%s1998_s1 + $0x36c] ss:$16 sps:$4 sm:$0xff]  }
  0x37   :  { %881 = vmatpush1.bf16.msra.mxu0 %v1411_v56  ;;  %987 = vmatpush1.bf16.msra.mxu1 %v1412_v57  ;;  %v1494_v56 = vld [vmem:[%s1998_s1 + $0x360] ss:$16 sps:$4 sm:$0xff]   ;;  %v1497_v57 = vld [vmem:[%s1998_s1 + $0x368] ss:$16 sps:$4 sm:$0xff]  }
  0x38   :  { %882 = vmatprep.subr.bf16.mxu0 %v1413_v58  ;;  %988 = vmatprep.subr.bf16.mxu1 %v1415_v59  ;;  %v1502_v58 = vld [vmem:[%s1998_s1 + $0x384] ss:$16 sps:$4 sm:$0xff]   ;;  %v1505_v59 = vld [vmem:[%s1998_s1 + $0x38c] ss:$16 sps:$4 sm:$0xff]  }
  0x3b   :  { %883 = vmatpush1.bf16.msra.mxu0 %v1417_v60  ;;  %989 = vmatpush1.bf16.msra.mxu1 %v1418_v61  ;;  %v1500_v60 = vld [vmem:[%s1998_s1 + $0x380] ss:$16 sps:$4 sm:$0xff]   ;;  %v1503_v61 = vld [vmem:[%s1998_s1 + $0x388] ss:$16 sps:$4 sm:$0xff]  }
  0x3c   :  { %884 = vmatprep.subr.bf16.mxu0 %v1419_v62  ;;  %990 = vmatprep.subr.bf16.mxu1 %v1421_v63  ;;  %v1508_v62 = vld [vmem:[%s1998_s1 + $0x3a4] ss:$16 sps:$4 sm:$0xff]   ;;  %v1511_v63 = vld [vmem:[%s1998_s1 + $0x3ac] ss:$16 sps:$4 sm:$0xff]  }
  0x3f   :  { %885 = vmatpush1.bf16.msra.mxu0 %v1423_v0  ;;  %991 = vmatpush1.bf16.msra.mxu1 %v1424_v1  ;;  %v1506_v0 = vld [vmem:[%s1998_s1 + $0x3a0] ss:$16 sps:$4 sm:$0xff]   ;;  %v1509_v1 = vld [vmem:[%s1998_s1 + $0x3a8] ss:$16 sps:$4 sm:$0xff]  }
  0x40   :  { %907 = vmatprep.subr.bf16.mxu0 %v1430_v2  ;;  %1013 = vmatprep.subr.bf16.mxu1 %v1433_v3  ;;  %v1517_v2 = vld [vmem:[%s1998_s1 + $0x3c4] ss:$16 sps:$4 sm:$0xff]   ;;  %v1520_v3 = vld [vmem:[%s1998_s1 + $0x3cc] ss:$16 sps:$4 sm:$0xff]  }
  0x42   :  { %887 = vmatmul.mubr.bf16.vlgmr.msra.gmra.mrb[0].mxu0 %v1425_v4  ;;  %993 = vmatmul.mubr.bf16.vlgmr.msra.gmra.mrb[0].mxu1 %v1425_v4  ;;  %v1515_v4 = vld [vmem:[%s1998_s1 + $0x3c0] ss:$16 sps:$4 sm:$0xff]  }
  0x43   :  { %908 = vmatpush1.bf16.msra.mxu0 %v1428_v5  ;;  %1014 = vmatpush1.bf16.msra.mxu1 %v1431_v6  ;;  %v1518_v5 = vld [vmem:[%s1998_s1 + $0x3c8] ss:$16 sps:$4 sm:$0xff]   ;;  %v1523_v6 = vld [vmem:[%s1998_s1 + $0x3e4] ss:$16 sps:$4 sm:$0xff]  }
  0x44   :  { %909 = vmatprep.subr.bf16.mxu0 %v1436_v7  ;;  %1015 = vmatprep.subr.bf16.mxu1 %v1439_v8  ;;  %v1526_v7 = vld [vmem:[%s1998_s1 + $0x3ec] ss:$16 sps:$4 sm:$0xff]   ;;  %v1521_v8 = vld [vmem:[%s1998_s1 + $0x3e0] ss:$16 sps:$4 sm:$0xff]  }
  0x45   :  { %896 = vmatprep.mubr.bf16.mxu0 %v1512_v26  ;;  %1002 = vmatprep.mubr.bf16.mxu1 %v1512_v26 }
  0x47   :  { %910 = vmatpush1.bf16.msra.mxu0 %v1434_v9  ;;  %1016 = vmatpush1.bf16.msra.mxu1 %v1437_v10  ;;  %v1524_v9 = vld [vmem:[%s1998_s1 + $0x3e8] ss:$16 sps:$4 sm:$0xff]  }
  0x48   :  { %911 = vmatprep.subr.bf16.mxu0 %v1442_v11  ;;  %1017 = vmatprep.subr.bf16.mxu1 %v1445_v12  ;;  %v1527_v10 = vld [vmem:[%s1999_s0 + $0x8] ss:$16 sps:$4 sm:$0xff]   ;;  %v1530_v11 = vld [vmem:[%s1999_s0 + $0x2c] ss:$16 sps:$4 sm:$0xff]  }
  0x49   :  { %v1532_v12 = vld [vmem:[%s1999_s0 + $0x28] ss:$16 sps:$4 sm:$0xff]  }
  0x4a   :  { %897 = vmatmul.mubr.bf16.gmra.mrb[4].mxu0 %v1514_v28  ;;  %1003 = vmatmul.mubr.bf16.gmra.mrb[4].mxu1 %v1514_v28 }
  0x4b   :  { %912 = vmatpush1.bf16.msra.mxu0 %v1440_v13  ;;  %1018 = vmatpush1.bf16.msra.mxu1 %v1443_v14 }
  0x4c   :  { %913 = vmatprep.subr.bf16.mxu0 %v1448_v15  ;;  %1019 = vmatprep.subr.bf16.mxu1 %v1451_v16 }
  0x4d   :  { %939 = vmatprep.mubr.bf16.mxu0 %v1529_v35  ;;  %1045 = vmatprep.mubr.bf16.mxu1 %v1529_v35 }
  0x4f   :  { %914 = vmatpush1.bf16.msra.mxu0 %v1446_v17  ;;  %1020 = vmatpush1.bf16.msra.mxu1 %v1449_v18 }
  0x50   :  { %915 = vmatprep.subr.bf16.mxu0 %v1454_v19  ;;  %1021 = vmatprep.subr.bf16.mxu1 %v1457_v20 }
  0x53   :  { %916 = vmatpush1.bf16.msra.mxu0 %v1452_v21  ;;  %1022 = vmatpush1.bf16.msra.mxu1 %v1455_v22 }
  0x54   :  { %917 = vmatprep.subr.bf16.mxu0 %v1460_v23  ;;  %1023 = vmatprep.subr.bf16.mxu1 %v1463_v24 }
  0x57   :  { %918 = vmatpush1.bf16.msra.mxu0 %v1458_v25  ;;  %1024 = vmatpush1.bf16.msra.mxu1 %v1461_v27 }
  0x58   :  { %919 = vmatprep.subr.bf16.mxu0 %v1466_v29  ;;  %1025 = vmatprep.subr.bf16.mxu1 %v1469_v30 }
  0x5b   :  { %920 = vmatpush1.bf16.msra.mxu0 %v1464_v31  ;;  %1026 = vmatpush1.bf16.msra.mxu1 %v1467_v32 }
  0x5c   :  { %921 = vmatprep.subr.bf16.mxu0 %v1472_v33  ;;  %1027 = vmatprep.subr.bf16.mxu1 %v1475_v34 }
  0x5f   :  { %922 = vmatpush1.bf16.msra.mxu0 %v1470_v38  ;;  %1028 = vmatpush1.bf16.msra.mxu1 %v1473_v39 }
  0x60   :  { %923 = vmatprep.subr.bf16.mxu0 %v1478_v40  ;;  %1029 = vmatprep.subr.bf16.mxu1 %v1481_v41 }
  0x63   :  { %924 = vmatpush1.bf16.msra.mxu0 %v1476_v44  ;;  %1030 = vmatpush1.bf16.msra.mxu1 %v1479_v45 }
  0x64   :  { %925 = vmatprep.subr.bf16.mxu0 %v1484_v46  ;;  %1031 = vmatprep.subr.bf16.mxu1 %v1487_v47 }
  0x67   :  { %926 = vmatpush1.bf16.msra.mxu0 %v1482_v48  ;;  %1032 = vmatpush1.bf16.msra.mxu1 %v1485_v49 }
  0x68   :  { %927 = vmatprep.subr.bf16.mxu0 %v1490_v50  ;;  %1033 = vmatprep.subr.bf16.mxu1 %v1493_v51 }
  0x6b   :  { %928 = vmatpush1.bf16.msra.mxu0 %v1488_v52  ;;  %1034 = vmatpush1.bf16.msra.mxu1 %v1491_v53 }
  0x6c   :  { %929 = vmatprep.subr.bf16.mxu0 %v1496_v54  ;;  %1035 = vmatprep.subr.bf16.mxu1 %v1499_v55 }
  0x6f   :  { %930 = vmatpush1.bf16.msra.mxu0 %v1494_v56  ;;  %1036 = vmatpush1.bf16.msra.mxu1 %v1497_v57 }
  0x70   :  { %931 = vmatprep.subr.bf16.mxu0 %v1502_v58  ;;  %1037 = vmatprep.subr.bf16.mxu1 %v1505_v59 }
  0x73   :  { %932 = vmatpush1.bf16.msra.mxu0 %v1500_v60  ;;  %1038 = vmatpush1.bf16.msra.mxu1 %v1503_v61 }
  0x74   :  { %933 = vmatprep.subr.bf16.mxu0 %v1508_v62  ;;  %1039 = vmatprep.subr.bf16.mxu1 %v1511_v63 }
  0x77   :  { %934 = vmatpush1.bf16.msra.mxu0 %v1506_v0  ;;  %1040 = vmatpush1.bf16.msra.mxu1 %v1509_v1 }
  0x78   :  { %935 = vmatprep.subr.bf16.mxu0 %v1517_v2  ;;  %1041 = vmatprep.subr.bf16.mxu1 %v1520_v3 }
  0x7b   :  { %936 = vmatpush1.bf16.msra.mxu0 %v1515_v4  ;;  %1042 = vmatpush1.bf16.msra.mxu1 %v1518_v5 }
  0x7c   :  { %937 = vmatprep.subr.bf16.mxu0 %v1523_v6  ;;  %1043 = vmatprep.subr.bf16.mxu1 %v1526_v7 }
  0x7f   :  { %938 = vmatpush1.bf16.msra.mxu0 %v1521_v8  ;;  %1044 = vmatpush1.bf16.msra.mxu1 %v1524_v9 }
  0x82   :  { %940 = vmatmul.mubr.bf16.vlgmr.msra.gmra.mrb[0].mxu0 %v1527_v10  ;;  %1046 = vmatmul.mubr.bf16.vlgmr.msra.gmra.mrb[0].mxu1 %v1527_v10 }
  0x83   :  { %949 = vmatprep.mubr.bf16.mxu0 %v1530_v11  ;;  %1055 = vmatprep.mubr.bf16.mxu1 %v1530_v11 }
  0x8a   :  { %950 = vmatmul.mubr.bf16.gmra.mrb[4].mxu0 %v1532_v12  ;;  %1056 = vmatmul.mubr.bf16.gmra.mrb[4].mxu1 %v1532_v12 }
  0xa4   :  { %v157_v13 = vpop.permute.xlu0 %156  ;;  %v167_v15 = vpop.permute.xlu1 %166 }
  0xa9   :  { %v162_v14 = vpop.permute.xlu0 %161 }
  0xac   :  { %v172_v42 = vpop.permute.xlu1 %171 }
 0x155   :  { %v941_v16 = vpop.f32.mrb[0].mxu0  ;;  %v1047_v17 = vpop.f32.mrb[0].mxu1 }
 0x156   :  { %v1294_v18 = vadd.f32 %v941_v16, %v157_v13  ;;  %v1302_v19 = vadd.f32 %v1047_v17, %v157_v13  ;;  %v943_v20 = vpop.f32.mrb[1].mxu0  ;;  %v1049_v21 = vpop.f32.mrb[1].mxu1 }
 0x157   :  { %v1295_v22 = vadd.f32 %v943_v20, %v157_v13  ;;  %v1303_v23 = vadd.f32 %v1049_v21, %v157_v13  ;;  %v945_v24 = vpop.f32.mrb[2].mxu0  ;;  %v1051_v25 = vpop.f32.mrb[2].mxu1 }
 0x158   :  { %v1066_v26 = vmax.f32 %v1294_v18, 0.0  ;;  %v1068_v27 = vmax.f32 %v1302_v19, 0.0  ;;  %v1296_v28 = vadd.f32 %v945_v24, %v162_v14  ;;  %v1304_v29 = vadd.f32 %v1051_v25, %v162_v14  ;;  %v947_v30 = vpop.f32.mrb[3].mxu0  ;;  %v1053_v31 = vpop.f32.mrb[3].mxu1 }
 0x159   :  { %v1067_v32 = vmax.f32 %v1295_v22, 0.0  ;;  %v1069_v33 = vmax.f32 %v1303_v23, 0.0  ;;  %v1297_v34 = vadd.f32 %v947_v30, %v162_v14  ;;  %v1305_v35 = vadd.f32 %v1053_v31, %v162_v14 }
 0x15a   :  { %v1070_v36 = vmax.f32 %v1296_v28, 0.0  ;;  %v1072_v37 = vmax.f32 %v1304_v29, 0.0 }
 0x15b   :  { %v1286_v38 = vpack.c.bf16 %v1067_v32, %v1066_v26  ;;  %v1287_v39 = vpack.c.bf16 %v1069_v33, %v1068_v27  ;;  %v1071_v40 = vmax.f32 %v1297_v34, 0.0  ;;  %v1073_v41 = vmax.f32 %v1305_v35, 0.0 }
 0x15d   :  { %1130 = vst [vmem:[%s2001_s3] sm:$0xff] %v1286_v38  ;;  %1131 = vst [vmem:[%s2001_s3 + $0x8] sm:$0xff] %v1287_v39  ;;  %v1288_v43 = vpack.c.bf16 %v1071_v40, %v1070_v36  ;;  %v1289_v44 = vpack.c.bf16 %v1073_v41, %v1072_v37  ;;  %v951_v45 = vpop.f32.mrb[4].mxu0  ;;  %v1057_v46 = vpop.f32.mrb[4].mxu1 }
 0x15e   :  { %v1298_v47 = vadd.f32 %v951_v45, %v167_v15  ;;  %v1306_v48 = vadd.f32 %v1057_v46, %v167_v15  ;;  %v953_v49 = vpop.f32.mrb[5].mxu0  ;;  %v1059_v50 = vpop.f32.mrb[5].mxu1 }
 0x15f   :  { %1132 = vst [vmem:[%s2001_s3 + $0x10] sm:$0xff] %v1288_v43  ;;  %1133 = vst [vmem:[%s2001_s3 + $0x18] sm:$0xff] %v1289_v44  ;;  %v1299_v51 = vadd.f32 %v953_v49, %v167_v15  ;;  %v1307_v52 = vadd.f32 %v1059_v50, %v167_v15  ;;  %v955_v53 = vpop.f32.mrb[6].mxu0  ;;  %v1061_v54 = vpop.f32.mrb[6].mxu1 }
 0x160   :  { %v1074_v55 = vmax.f32 %v1298_v47, 0.0  ;;  %v1076_v56 = vmax.f32 %v1306_v48, 0.0  ;;  %v1300_v57 = vadd.f32 %v955_v53, %v172_v42  ;;  %v1308_v58 = vadd.f32 %v1061_v54, %v172_v42  ;;  %v957_v59 = vpop.f32.mrb[7].mxu0  ;;  %v1063_v60 = vpop.f32.mrb[7].mxu1 }
 0x161   :  { %v1075_v61 = vmax.f32 %v1299_v51, 0.0  ;;  %v1077_v62 = vmax.f32 %v1307_v52, 0.0  ;;  %v1301_v63 = vadd.f32 %v957_v59, %v172_v42  ;;  %v1309_v0 = vadd.f32 %v1063_v60, %v172_v42 }
 0x162   :  { %v1078_v1 = vmax.f32 %v1300_v57, 0.0  ;;  %v1080_v2 = vmax.f32 %v1308_v58, 0.0 }
 0x163   :  { %v1290_v3 = vpack.c.bf16 %v1075_v61, %v1074_v55  ;;  %v1291_v4 = vpack.c.bf16 %v1077_v62, %v1076_v56  ;;  %v1079_v5 = vmax.f32 %v1301_v63, 0.0  ;;  %v1081_v6 = vmax.f32 %v1309_v0, 0.0 }
 0x165   :  { %1134 = vst [vmem:[%s2001_s3 + $0x20] sm:$0xff] %v1290_v3  ;;  %1135 = vst [vmem:[%s2001_s3 + $0x28] sm:$0xff] %v1291_v4  ;;  %v1292_v7 = vpack.c.bf16 %v1079_v5, %v1078_v1  ;;  %v1293_v8 = vpack.c.bf16 %v1081_v6, %v1080_v2 }
 0x167   :  { %1136 = vst [vmem:[%s2001_s3 + $0x30] sm:$0xff] %v1292_v7  ;;  %1137 = vst [vmem:[%s2001_s3 + $0x38] sm:$0xff] %v1293_v8 }

// kernel: vaefc_forward.10
= control target key start
LH: loop header
LB: loop body
LE: loop exit
PB: predicated region body
PF: predicated region fallthrough
CT: control target
= control target key end

     0   :  { %v631_v1 = vmov 0   ;;  %s790_s1 = inlined_call_operand.vmem [shape: bf16[512,128], index: 1, kind: input, shape index: {}]   ;;  %s791_s0 = inlined_call_operand.vmem [shape: bf16[32,512], index: 0, kind: input, shape index: {}]   ;;  %s792_s2 = inlined_call_operand.vmem [shape: f32[32,1], index: 2, kind: input, shape index: {}]   ;;  %s793_s3 = inlined_call_operand.vmem [shape: bf16[32,128], index: 3, kind: output, shape index: {}]  }
   0x1   :  { %v587_v0 = vld [vmem:[%s790_s1 + $0x40] sm:$0xff]   ;;  %585 = vset.pattern.permute.xlu0 %v631_v1  ;;  %586 = vset.pattern.permute.xlu1 %v631_v1  ;;  %v591_v5 = vld [vmem:[%s790_s1 + $0x48] sm:$0xff]   ;;  %v595_v9 = vld [vmem:[%s790_s1 + $0x50] sm:$0xff]  }
   0x2   :  { %v588_v2 = vld [vmem:[%s790_s1 + $0xc0] sm:$0xff]   ;;  %528 = vmatprep.subr.bf16.mxu0 %v587_v0  ;;  %v592_v6 = vld [vmem:[%s790_s1 + $0xc8] sm:$0xff]   ;;  %v596_v10 = vld [vmem:[%s790_s1 + $0xd0] sm:$0xff]  }
   0x3   :  { %v589_v3 = vld [vmem:[%s790_s1] sm:$0xff]   ;;  %556 = vmatprep.subr.bf16.mxu1 %v588_v2  ;;  %v593_v7 = vld [vmem:[%s790_s1 + $0x8] sm:$0xff]   ;;  %v597_v11 = vld [vmem:[%s790_s1 + $0x10] sm:$0xff]  }
   0x4   :  { %v590_v4 = vld [vmem:[%s790_s1 + $0x80] sm:$0xff]   ;;  %529 = vmatpush3.bf16.msra.mxu0 %v589_v3  ;;  %v594_v8 = vld [vmem:[%s790_s1 + $0x88] sm:$0xff]   ;;  %v598_v12 = vld [vmem:[%s790_s1 + $0x90] sm:$0xff]  }
   0x5   :  { %557 = vmatpush3.bf16.msra.mxu1 %v590_v4  ;;  %530 = vmatprep.subr.bf16.mxu0 %v591_v5  ;;  %v599_v13 = vld [vmem:[%s790_s1 + $0x58] sm:$0xff]   ;;  %v603_v17 = vld [vmem:[%s790_s1 + $0x60] sm:$0xff]   ;;  %v607_v21 = vld [vmem:[%s790_s1 + $0x68] sm:$0xff]  }
   0x6   :  { %558 = vmatprep.subr.bf16.mxu1 %v592_v6  ;;  %v600_v14 = vld [vmem:[%s790_s1 + $0xd8] sm:$0xff]   ;;  %v604_v18 = vld [vmem:[%s790_s1 + $0xe0] sm:$0xff]   ;;  %v608_v22 = vld [vmem:[%s790_s1 + $0xe8] sm:$0xff]  }
   0x7   :  { %v601_v15 = vld [vmem:[%s790_s1 + $0x18] sm:$0xff]   ;;  %v605_v19 = vld [vmem:[%s790_s1 + $0x20] sm:$0xff]   ;;  %v609_v23 = vld [vmem:[%s790_s1 + $0x28] sm:$0xff]  }
   0x8   :  { %531 = vmatpush3.bf16.msra.mxu0 %v593_v7  ;;  %v602_v16 = vld [vmem:[%s790_s1 + $0x98] sm:$0xff]   ;;  %v606_v20 = vld [vmem:[%s790_s1 + $0xa0] sm:$0xff]   ;;  %v610_v24 = vld [vmem:[%s790_s1 + $0xa8] sm:$0xff]  }
   0x9   :  { %559 = vmatpush3.bf16.msra.mxu1 %v594_v8  ;;  %532 = vmatprep.subr.bf16.mxu0 %v595_v9  ;;  %v611_v25 = vld [vmem:[%s790_s1 + $0x70] sm:$0xff]   ;;  %v615_v29 = vld [vmem:[%s790_s1 + $0x78] sm:$0xff]   ;;  %v87_v39 = vld [vmem:[%s792_s2] sm:$0xff] }
   0xa   :  { %560 = vmatprep.subr.bf16.mxu1 %v596_v10  ;;  %v612_v26 = vld [vmem:[%s790_s1 + $0xf0] sm:$0xff]   ;;  %v616_v30 = vld [vmem:[%s790_s1 + $0xf8] sm:$0xff]   ;;  %93 = vperm.xlu0 %585, %v87_v39   ;;  %v88_v41 = vld [vmem:[%s792_s2 + $0x8] sm:$0xff] }
   0xb   :  { %v613_v27 = vld [vmem:[%s790_s1 + $0x30] sm:$0xff]   ;;  %v617_v31 = vld [vmem:[%s790_s1 + $0x38] sm:$0xff]  }
   0xc   :  { %533 = vmatpush3.bf16.msra.mxu0 %v597_v11  ;;  %v614_v28 = vld [vmem:[%s790_s1 + $0xb0] sm:$0xff]   ;;  %v618_v32 = vld [vmem:[%s790_s1 + $0xb8] sm:$0xff]  }
   0xd   :  { %561 = vmatpush3.bf16.msra.mxu1 %v598_v12  ;;  %534 = vmatprep.subr.bf16.mxu0 %v599_v13  ;;  %v619_v33 = vld [vmem:[%s791_s0] ss:$16 sps:$4 sm:$0xff]   ;;  %v621_v34 = vld [vmem:[%s791_s0 + $0x4] ss:$16 sps:$4 sm:$0xff]   ;;  %v622_v35 = vld [vmem:[%s791_s0 + $0x8] ss:$16 sps:$4 sm:$0xff]  }
   0xe   :  { %562 = vmatprep.subr.bf16.mxu1 %v600_v14  ;;  %v624_v36 = vld [vmem:[%s791_s0 + $0xc] ss:$16 sps:$4 sm:$0xff]   ;;  %375 = vmatprep.mubr.bf16.mxu0 %v621_v34  ;;  %v625_v37 = vld [vmem:[%s791_s0 + $0x24] ss:$16 sps:$4 sm:$0xff]   ;;  %v629_v42 = vld [vmem:[%s791_s0 + $0x20] ss:$16 sps:$4 sm:$0xff]  }
   0xf   :  { %424 = vmatprep.mubr.bf16.mxu1 %v624_v36  ;;  %v627_v38 = vld [vmem:[%s791_s0 + $0x2c] ss:$16 sps:$4 sm:$0xff]   ;;  %v89_v40 = vld [vmem:[%s792_s2 + $0x10] sm:$0xff]  ;;  %v630_v44 = vld [vmem:[%s791_s0 + $0x28] ss:$16 sps:$4 sm:$0xff]   ;;  %98 = vperm.xlu0 %585, %v88_v41  }
  0x10   :  { %535 = vmatpush3.bf16.msra.mxu0 %v601_v15  ;;  %103 = vperm.xlu1 %586, %v89_v40   ;;  %v90_v43 = vld [vmem:[%s792_s2 + $0x18] sm:$0xff] }
  0x11   :  { %563 = vmatpush3.bf16.msra.mxu1 %v602_v16  ;;  %536 = vmatprep.subr.bf16.mxu0 %v603_v17 }
  0x12   :  { %564 = vmatprep.subr.bf16.mxu1 %v604_v18 }
  0x14   :  { %537 = vmatpush3.bf16.msra.mxu0 %v605_v19  ;;  %108 = vperm.xlu1 %586, %v90_v43  }
  0x15   :  { %565 = vmatpush3.bf16.msra.mxu1 %v606_v20  ;;  %538 = vmatprep.subr.bf16.mxu0 %v607_v21 }
  0x16   :  { %566 = vmatprep.subr.bf16.mxu1 %v608_v22 }
  0x18   :  { %539 = vmatpush3.bf16.msra.mxu0 %v609_v23 }
  0x19   :  { %567 = vmatpush3.bf16.msra.mxu1 %v610_v24  ;;  %540 = vmatprep.subr.bf16.mxu0 %v611_v25 }
  0x1a   :  { %568 = vmatprep.subr.bf16.mxu1 %v612_v26 }
  0x1c   :  { %541 = vmatpush3.bf16.msra.mxu0 %v613_v27 }
  0x1d   :  { %569 = vmatpush3.bf16.msra.mxu1 %v614_v28  ;;  %542 = vmatprep.subr.bf16.mxu0 %v615_v29 }
  0x1e   :  { %570 = vmatprep.subr.bf16.mxu1 %v616_v30 }
  0x20   :  { %543 = vmatpush3.bf16.msra.mxu0 %v617_v31 }
  0x21   :  { %571 = vmatpush3.bf16.msra.mxu1 %v618_v32 }
  0x23   :  { %376 = vmatmul.mubr.bf16.vlgmr.msra.gmra.mrb[0].mxu0 %v619_v33 }
  0x24   :  { %425 = vmatmul.mubr.bf16.vlgmr.msra.gmra.mrb[0].mxu1 %v622_v35  ;;  %383 = vmatprep.mubr.bf16.mxu0 %v625_v37 }
  0x25   :  { %432 = vmatprep.mubr.bf16.mxu1 %v627_v38 }
  0x2b   :  { %384 = vmatmul.mubr.bf16.gmra.mrb[4].mxu0 %v629_v42 }
  0x2c   :  { %433 = vmatmul.mubr.bf16.gmra.mrb[4].mxu1 %v630_v44 }
  0x89   :  { %v94_v45 = vpop.permute.xlu0 %93 }
  0x8e   :  { %v99_v47 = vpop.permute.xlu0 %98 }
  0x8f   :  { %v104_v62 = vpop.permute.xlu1 %103 }
  0x93   :  { %v109_v15 = vpop.permute.xlu1 %108 }
  0xf6   :  { %v544_v46 = vpop.f32.mrb[0].mxu0 }
  0xf7   :  { %v572_v48 = vpop.f32.mrb[0].mxu1  ;;  %v545_v49 = vpop.f32.mrb[1].mxu0 }
  0xf8   :  { %v546_v50 = vadd.f32 %v545_v49, %v544_v46  ;;  %v573_v51 = vpop.f32.mrb[1].mxu1  ;;  %v547_v52 = vpop.f32.mrb[2].mxu0 }
  0xf9   :  { %v574_v53 = vadd.f32 %v573_v51, %v572_v48  ;;  %v575_v54 = vpop.f32.mrb[2].mxu1  ;;  %v548_v55 = vpop.f32.mrb[3].mxu0 }
  0xfa   :  { %v378_v56 = vadd.f32 %v546_v50, %v94_v45  ;;  %v549_v57 = vadd.f32 %v548_v55, %v547_v52  ;;  %v576_v58 = vpop.f32.mrb[3].mxu1 }
  0xfb   :  { %v577_v59 = vadd.f32 %v576_v58, %v575_v54 }
  0xfc   :  { %v427_v60 = vadd.f32 %v574_v53, %v378_v56  ;;  %v381_v61 = vadd.f32 %v549_v57, %v99_v47 }
  0xfe   :  { %v430_v63 = vadd.f32 %v577_v59, %v381_v61  ;;  %v550_v0 = vpop.f32.mrb[4].mxu0  ;;  %v441_v3 = vmax.f32 %v427_v60, 0.0 }
  0xff   :  { %v578_v1 = vpop.f32.mrb[4].mxu1  ;;  %v551_v2 = vpop.f32.mrb[5].mxu0 }
 0x100   :  { %v442_v4 = vmax.f32 %v430_v63, 0.0  ;;  %v552_v5 = vadd.f32 %v551_v2, %v550_v0  ;;  %v579_v6 = vpop.f32.mrb[5].mxu1  ;;  %v553_v7 = vpop.f32.mrb[6].mxu0 }
 0x101   :  { %v580_v8 = vadd.f32 %v579_v6, %v578_v1  ;;  %v581_v9 = vpop.f32.mrb[6].mxu1  ;;  %v554_v10 = vpop.f32.mrb[7].mxu0 }
 0x102   :  { %v520_v11 = vpack.c.bf16 %v442_v4, %v441_v3  ;;  %v386_v12 = vadd.f32 %v552_v5, %v104_v62  ;;  %v555_v13 = vadd.f32 %v554_v10, %v553_v7  ;;  %v582_v14 = vpop.f32.mrb[7].mxu1 }
 0x103   :  { %v583_v16 = vadd.f32 %v582_v14, %v581_v9 }
 0x104   :  { %521 = vst [vmem:[%s793_s3] sm:$0xff] %v520_v11   ;;  %v435_v17 = vadd.f32 %v580_v8, %v386_v12  ;;  %v389_v18 = vadd.f32 %v555_v13, %v109_v15 }
 0x106   :  { %v438_v19 = vadd.f32 %v583_v16, %v389_v18  ;;  %v443_v20 = vmax.f32 %v435_v17, 0.0 }
 0x108   :  { %v444_v21 = vmax.f32 %v438_v19, 0.0 }
 0x10a   :  { %v525_v22 = vpack.c.bf16 %v444_v21, %v443_v20 }
 0x10c   :  { %527 = vst [vmem:[%s793_s3 + $0x8] sm:$0xff] %v525_v22  }

// kernel: vaefc_forward.11
= control target key start
LH: loop header
LB: loop body
LE: loop exit
PB: predicated region body
PF: predicated region fallthrough
CT: control target
= control target key end

     0   :  { %s4854_s0 = inlined_call_operand.vmem [shape: bf16[512,32], index: 0, kind: input, shape index: {}]   ;;  %s4855_s1 = inlined_call_operand.vmem [shape: bf16[32,512], index: 1, kind: input, shape index: {}]   ;;  %s4856_s2 = inlined_call_operand.vmem [shape: f32[32,1], index: 2, kind: input, shape index: {}]   ;;  %s4857_s3 = inlined_call_operand.vmem [shape: bf16[512,256], index: 3, kind: input, shape index: {}]   ;;  %s4858_s4 = inlined_call_operand.vmem [shape: f32[1,256], index: 4, kind: input, shape index: {}]   ;;  %s4859_s5 = inlined_call_operand.vmem [shape: bf16[256,256], index: 5, kind: input, shape index: {}]   ;;  %s4860_s6 = inlined_call_operand.vmem [shape: f32[1,256], index: 6, kind: input, shape index: {}]   ;;  %s4861_s7 = inlined_call_operand.vmem [shape: bf16[256,16], index: 7, kind: input, shape index: {}]   ;;  %s4862_s8 = inlined_call_operand.vmem [shape: f32[1,16], index: 8, kind: input, shape index: {}]   ;;  %s4863_s9 = inlined_call_operand.vmem [shape: bf16[256,16], index: 9, kind: input, shape index: {}]   ;;  %s4864_s10 = inlined_call_operand.vmem [shape: f32[1,16], index: 10, kind: input, shape index: {}]   ;;  %s4865_s11 = inlined_call_operand.vmem [shape: f32[2,16], index: 11, kind: input, shape index: {}]   ;;  %s4866_s12 = inlined_call_operand.vmem [shape: bf16[16,256], index: 12, kind: input, shape index: {}]   ;;  %s4867_s13 = inlined_call_operand.vmem [shape: f32[1,256], index: 13, kind: input, shape index: {}]   ;;  %s4868_s14 = inlined_call_operand.vmem [shape: bf16[256,256], index: 14, kind: input, shape index: {}]   ;;  %s4869_s15 = inlined_call_operand.vmem [shape: f32[1,256], index: 15, kind: input, shape index: {}]   ;;  %s4870_s16 = inlined_call_operand.vmem [shape: bf16[256,512], index: 16, kind: input, shape index: {}]   ;;  %s4871_s17 = inlined_call_operand.vmem [shape: f32[1,512], index: 17, kind: input, shape index: {}]   ;;  %s4872_s18 = inlined_call_operand.vmem [shape: bf16[2,512], index: 18, kind: output, shape index: {0}]   ;;  %s4873_s19 = inlined_call_operand.hbm [shape: f32[2,16], index: 19, kind: output, shape index: {1}]   ;;  %s4874_s20 = inlined_call_operand.hbm [shape: f32[2,16], index: 20, kind: output, shape index: {2}]  }
   0x1   :  { %4879 = sst [smem:[#allocation8_spill]] %s4854_s0 }
   0x2   :  { %4880 = sst [smem:[#allocation9_spill]] %s4855_s1 }
   0x3   :  { %4881 = sst [smem:[#allocation10_spill]] %s4856_s2 }
   0x4   :  { %4882 = sst [smem:[#allocation11_spill]] %s4857_s3 }
   0x5   :  { %4883 = sst [smem:[#allocation12_spill]] %s4858_s4 }
   0x6   :  { %26 = vsyncpa [#allocation3], 0  ;;  %s4884_s23 = sld [smem:[#allocation8_spill]]  ;;  %v3701_v2 = vmov 0   ;;  %s4885_s29 = sld [smem:[#allocation9_spill]] }
   0x7   :  { %3142 = vset.pattern.permute.xlu0 %v3701_v2  ;;  %3143 = vset.pattern.permute.xlu1 %v3701_v2  ;;  %s4886_s2 = sld [smem:[#allocation10_spill]] }
   0xc   :  { %v3284_v0 = vld [vmem:[%s4884_s23 + $0x40] sm:$0xff]   ;;  %v3286_v3 = vld [vmem:[%s4884_s23 + $0x48] sm:$0xff]   ;;  %v3288_v5 = vld [vmem:[%s4884_s23 + $0x50] sm:$0xff]  }
   0xd   :  { %v3285_v1 = vld [vmem:[%s4884_s23] sm:$0xff]   ;;  %3025 = vmatprep.subr.bf16.mxu0 %v3284_v0  ;;  %v3287_v4 = vld [vmem:[%s4884_s23 + $0x8] sm:$0xff]   ;;  %v3289_v6 = vld [vmem:[%s4884_s23 + $0x10] sm:$0xff]  }
   0xe   :  { %3026 = vmatpush3.bf16.msra.mxu0 %v3285_v1  ;;  %v3290_v7 = vld [vmem:[%s4884_s23 + $0x58] sm:$0xff]   ;;  %v3292_v9 = vld [vmem:[%s4884_s23 + $0x60] sm:$0xff]   ;;  %v3294_v11 = vld [vmem:[%s4884_s23 + $0x68] sm:$0xff]  }
   0xf   :  { %3027 = vmatprep.subr.bf16.mxu0 %v3286_v3  ;;  %v3291_v8 = vld [vmem:[%s4884_s23 + $0x18] sm:$0xff]   ;;  %v3293_v10 = vld [vmem:[%s4884_s23 + $0x20] sm:$0xff]   ;;  %v3295_v13 = vld [vmem:[%s4884_s23 + $0x28] sm:$0xff]  }
  0x10   :  { %v3302_v12 = vld [vmem:[%s4885_s29 + $0x4] ss:$16 sps:$4 sm:$0xff]   ;;  %v3298_v16 = vld [vmem:[%s4884_s23 + $0x78] sm:$0xff]   ;;  %v3300_v19 = vld [vmem:[%s4885_s29] ss:$16 sps:$4 sm:$0xff]  }
  0x11   :  { %425 = vmatprep.mubr.bf16.mxu0 %v3302_v12  ;;  %v3296_v14 = vld [vmem:[%s4884_s23 + $0x70] sm:$0xff]   ;;  %v3299_v17 = vld [vmem:[%s4884_s23 + $0x38] sm:$0xff]   ;;  %v3303_v18 = vld [vmem:[%s4884_s23 + $0xc0] sm:$0xff]  }
  0x12   :  { %3028 = vmatpush3.bf16.msra.mxu0 %v3287_v4  ;;  %v3297_v15 = vld [vmem:[%s4884_s23 + $0x30] sm:$0xff]   ;;  %v3304_v20 = vld [vmem:[%s4884_s23 + $0x80] sm:$0xff]   ;;  %v3305_v22 = vld [vmem:[%s4884_s23 + $0xc8] sm:$0xff]  }
  0x13   :  { %3029 = vmatprep.subr.bf16.mxu0 %v3288_v5  ;;  %v3313_v21 = vld [vmem:[%s4885_s29 + $0x24] ss:$16 sps:$4 sm:$0xff]   ;;  %v3306_v23 = vld [vmem:[%s4884_s23 + $0x88] sm:$0xff]   ;;  %v3316_v26 = vld [vmem:[%s4885_s29 + $0x20] ss:$16 sps:$4 sm:$0xff]  }
  0x14   :  { %v3307_v24 = vld [vmem:[%s4884_s23 + $0xd0] sm:$0xff]   ;;  %v3324_v27 = vld [vmem:[%s4885_s29 + $0xc] ss:$16 sps:$4 sm:$0xff]   ;;  %v137_v30 = vld [vmem:[%s4886_s2] sm:$0xff] }
  0x15   :  { %v3308_v25 = vld [vmem:[%s4884_s23 + $0x90] sm:$0xff]   ;;  %v138_v28 = vld [vmem:[%s4886_s2 + $0x8] sm:$0xff]  ;;  %v3309_v29 = vld [vmem:[%s4884_s23 + $0xd8] sm:$0xff]  }
  0x16   :  { %3030 = vmatpush3.bf16.msra.mxu0 %v3289_v6  ;;  %148 = vperm.xlu0 %3142, %v138_v28   ;;  %v140_v31 = vld [vmem:[%s4886_s2 + $0x18] sm:$0xff]  ;;  %v139_v32 = vld [vmem:[%s4886_s2 + $0x10] sm:$0xff]  ;;  %v3311_v34 = vld [vmem:[%s4884_s23 + $0xe0] sm:$0xff]  }
  0x17   :  { %3031 = vmatprep.subr.bf16.mxu0 %v3290_v7  ;;  %158 = vperm.xlu1 %3143, %v140_v31   ;;  %v3310_v33 = vld [vmem:[%s4884_s23 + $0x98] sm:$0xff]   ;;  %v3312_v35 = vld [vmem:[%s4884_s23 + $0xa0] sm:$0xff]   ;;  %v3315_v36 = vld [vmem:[%s4884_s23 + $0xe8] sm:$0xff]  }
  0x18   :  { %v3317_v37 = vld [vmem:[%s4884_s23 + $0xa8] sm:$0xff]   ;;  %v3318_v38 = vld [vmem:[%s4884_s23 + $0xf0] sm:$0xff]   ;;  %v3320_v40 = vld [vmem:[%s4884_s23 + $0xf8] sm:$0xff]  }
  0x19   :  { %v3319_v39 = vld [vmem:[%s4884_s23 + $0xb0] sm:$0xff]   ;;  %v3321_v41 = vld [vmem:[%s4884_s23 + $0xb8] sm:$0xff]  }
  0x1a   :  { %3032 = vmatpush3.bf16.msra.mxu0 %v3291_v8  ;;  %143 = vperm.xlu0 %3142, %v137_v30   ;;  %v3322_v42 = vld [vmem:[%s4885_s29 + $0x8] ss:$16 sps:$4 sm:$0xff]   ;;  %v3325_v43 = vld [vmem:[%s4885_s29 + $0x2c] ss:$16 sps:$4 sm:$0xff]  }
  0x1b   :  { %3033 = vmatprep.subr.bf16.mxu0 %v3292_v9  ;;  %153 = vperm.xlu1 %3143, %v139_v32   ;;  %v3327_v44 = vld [vmem:[%s4885_s29 + $0x28] ss:$16 sps:$4 sm:$0xff]  }
  0x1e   :  { %3034 = vmatpush3.bf16.msra.mxu0 %v3293_v10 }
  0x1f   :  { %3035 = vmatprep.subr.bf16.mxu0 %v3294_v11 }
  0x22   :  { %3036 = vmatpush3.bf16.msra.mxu0 %v3295_v13 }
  0x23   :  { %3037 = vmatprep.subr.bf16.mxu0 %v3296_v14 }
  0x26   :  { %3038 = vmatpush3.bf16.msra.mxu0 %v3297_v15 }
  0x27   :  { %3039 = vmatprep.subr.bf16.mxu0 %v3298_v16 }
  0x2a   :  { %3040 = vmatpush3.bf16.msra.mxu0 %v3299_v17 }
  0x2b   :  { %3053 = vmatprep.subr.bf16.mxu0 %v3303_v18 }
  0x2d   :  { %426 = vmatmul.mubr.bf16.vlgmr.msra.gmra.mrb[0].mxu0 %v3300_v19 }
  0x2e   :  { %3054 = vmatpush3.bf16.msra.mxu0 %v3304_v20  ;;  %433 = vmatprep.mubr.bf16.mxu0 %v3313_v21 }
  0x2f   :  { %3055 = vmatprep.subr.bf16.mxu0 %v3305_v22 }
  0x32   :  { %3056 = vmatpush3.bf16.msra.mxu0 %v3306_v23 }
  0x33   :  { %3057 = vmatprep.subr.bf16.mxu0 %v3307_v24 }
  0x35   :  { %434 = vmatmul.mubr.bf16.gmra.mrb[4].mxu0 %v3316_v26 }
  0x36   :  { %3058 = vmatpush3.bf16.msra.mxu0 %v3308_v25  ;;  %474 = vmatprep.mubr.bf16.mxu0 %v3324_v27 }
  0x37   :  { %3059 = vmatprep.subr.bf16.mxu0 %v3309_v29 }
  0x3a   :  { %3060 = vmatpush3.bf16.msra.mxu0 %v3310_v33 }
  0x3b   :  { %3061 = vmatprep.subr.bf16.mxu0 %v3311_v34 }
  0x3e   :  { %3062 = vmatpush3.bf16.msra.mxu0 %v3312_v35 }
  0x3f   :  { %3063 = vmatprep.subr.bf16.mxu0 %v3315_v36 }
  0x42   :  { %3064 = vmatpush3.bf16.msra.mxu0 %v3317_v37 }
  0x43   :  { %3065 = vmatprep.subr.bf16.mxu0 %v3318_v38 }
  0x46   :  { %3066 = vmatpush3.bf16.msra.mxu0 %v3319_v39 }
  0x47   :  { %3067 = vmatprep.subr.bf16.mxu0 %v3320_v40 }
  0x4a   :  { %3068 = vmatpush3.bf16.msra.mxu0 %v3321_v41 }
  0x4d   :  { %475 = vmatmul.mubr.bf16.vlgmr.msra.gmra.mrb[8].mxu0 %v3322_v42 }
  0x4e   :  { %482 = vmatprep.mubr.bf16.mxu0 %v3325_v43 }
  0x55   :  { %483 = vmatmul.mubr.bf16.gmra.mrb[12].mxu0 %v3327_v44 }
  0x56   :  { %27 = vsyncpa [#allocation5], 0  ;;  %s4887_s0 = sld [smem:[#allocation11_spill]]  ;;  %s3702_s21 = smov 112   ;;  %vm553_vm0 = vcmask 130048   ;;  %vm555_vm1 = vcmask 261120  }
  0x57   :  { %s3703_s24 = smov 16   ;;  %s3704_s26 = smov 32   ;;  %vm557_vm2 = vcmask 392192   ;;  %vm559_vm3 = vcmask 523264   ;;  %vm561_vm4 = vcmask 654336   ;;  %vm563_vm5 = vcmask 785408  }
  0x58   :  { %s3705_s30 = smov 48   ;;  %s3706_s25 = smov 64   ;;  %vm565_vm6 = vcmask 916480   ;;  %vm774_vm7 = vcmask 1040384   ;;  %vm1864_vm8 = vcmask 123904  }
  0x59   :  { %s3707_s23 = smov 80   ;;  %s3708_s2 = smov 96  }
  0x5c   :  { %v3328_v45 = vld [vmem:[%s4887_s0] ss:$8 sps:$4 sm:$0xff]   ;;  %v3330_v46 = vld [vmem:[%s4887_s0 + $0x4] ss:$8 sps:$4 sm:$0xff]   ;;  %v3333_v47 = vld [vmem:[%s4887_s0 + $0x14] ss:$8 sps:$4 sm:$0xff]  }
  0x5d   :  { %1179 = vmatprep.subr.bf16.mxu0 %v3330_v46  ;;  %v3331_v48 = vld [vmem:[%s4887_s0 + $0x10] ss:$8 sps:$4 sm:$0xff]   ;;  %v3336_v49 = vld [vmem:[%s4887_s0 + $0x24] ss:$8 sps:$4 sm:$0xff]   ;;  %v3334_v50 = vld [vmem:[%s4887_s0 + $0x20] ss:$8 sps:$4 sm:$0xff]  }
  0x5e   :  { %1180 = vmatpush1.bf16.msra.mxu0 %v3328_v45  ;;  %v3339_v51 = vld [vmem:[%s4887_s0 + $0x34] ss:$8 sps:$4 sm:$0xff]   ;;  %v3337_v52 = vld [vmem:[%s4887_s0 + $0x30] ss:$8 sps:$4 sm:$0xff]   ;;  %v3342_v53 = vld [vmem:[%s4887_s0 + $0x44] ss:$8 sps:$4 sm:$0xff]  }
  0x5f   :  { %1181 = vmatprep.subr.bf16.mxu0 %v3333_v47  ;;  %v3340_v54 = vld [vmem:[%s4887_s0 + $0x40] ss:$8 sps:$4 sm:$0xff]   ;;  %v3345_v55 = vld [vmem:[%s4887_s0 + $0x54] ss:$8 sps:$4 sm:$0xff]   ;;  %v3343_v56 = vld [vmem:[%s4887_s0 + $0x50] ss:$8 sps:$4 sm:$0xff]  }
  0x60   :  { %v3348_v57 = vld [vmem:[%s4887_s0 + $0x64] ss:$8 sps:$4 sm:$0xff]   ;;  %v3346_v58 = vld [vmem:[%s4887_s0 + $0x60] ss:$8 sps:$4 sm:$0xff]   ;;  %v3351_v59 = vld [vmem:[%s4887_s0 + $0x74] ss:$8 sps:$4 sm:$0xff]  }
  0x61   :  { %v3349_v60 = vld [vmem:[%s4887_s0 + $0x70] ss:$8 sps:$4 sm:$0xff]   ;;  %v3352_v15 = vld [vmem:[%s4887_s0 + $0x80] ss:$8 sps:$4 sm:$0xff]   ;;  %v3354_v16 = vld [vmem:[%s4887_s0 + $0x84] ss:$8 sps:$4 sm:$0xff]  }
  0x62   :  { %1182 = vmatpush1.bf16.msra.mxu0 %v3331_v48  ;;  %v3355_v24 = vld [vmem:[%s4887_s0 + $0x90] ss:$8 sps:$4 sm:$0xff]   ;;  %v3357_v25 = vld [vmem:[%s4887_s0 + $0x94] ss:$8 sps:$4 sm:$0xff]   ;;  %v3358_v40 = vld [vmem:[%s4887_s0 + $0xa0] ss:$8 sps:$4 sm:$0xff]  }
  0x63   :  { %1183 = vmatprep.subr.bf16.mxu0 %v3336_v49  ;;  %v3360_v43 = vld [vmem:[%s4887_s0 + $0xa4] ss:$8 sps:$4 sm:$0xff]   ;;  %v3363_v48 = vld [vmem:[%s4887_s0 + $0xb4] ss:$8 sps:$4 sm:$0xff]  }
  0x66   :  { %1184 = vmatpush1.bf16.msra.mxu0 %v3334_v50 }
  0x67   :  { %1185 = vmatprep.subr.bf16.mxu0 %v3339_v51 }
  0x6a   :  { %1186 = vmatpush1.bf16.msra.mxu0 %v3337_v52  ;;  %v3361_v52 = vld [vmem:[%s4887_s0 + $0xb0] ss:$8 sps:$4 sm:$0xff]  }
  0x6b   :  { %1187 = vmatprep.subr.bf16.mxu0 %v3342_v53 }
  0x6e   :  { %1188 = vmatpush1.bf16.msra.mxu0 %v3340_v54 }
  0x6f   :  { %1189 = vmatprep.subr.bf16.mxu0 %v3345_v55  ;;  %v3366_v55 = vld [vmem:[%s4887_s0 + $0xc4] ss:$8 sps:$4 sm:$0xff]  }
  0x72   :  { %1190 = vmatpush1.bf16.msra.mxu0 %v3343_v56 }
  0x73   :  { %1191 = vmatprep.subr.bf16.mxu0 %v3348_v57 }
  0x76   :  { %1192 = vmatpush1.bf16.msra.mxu0 %v3346_v58  ;;  %v3364_v58 = vld [vmem:[%s4887_s0 + $0xc0] ss:$8 sps:$4 sm:$0xff]  }
  0x77   :  { %1193 = vmatprep.subr.bf16.mxu0 %v3351_v59 }
  0x7a   :  { %1194 = vmatpush1.bf16.msra.mxu0 %v3349_v60 }
  0x7b   :  { %1195 = vmatprep.subr.bf16.mxu0 %v3354_v16  ;;  %v3378_v16 = vld [vmem:[%s4887_s0 + $0x104] ss:$8 sps:$4 sm:$0xff]  }
  0x7e   :  { %1196 = vmatpush1.bf16.msra.mxu0 %v3352_v15 }
  0x7f   :  { %1197 = vmatprep.subr.bf16.mxu0 %v3357_v25 }
  0x82   :  { %1198 = vmatpush1.bf16.msra.mxu0 %v3355_v24 }
  0x83   :  { %1199 = vmatprep.subr.bf16.mxu0 %v3360_v43 }
  0x86   :  { %1200 = vmatpush1.bf16.msra.mxu0 %v3358_v40 }
  0x87   :  { %1201 = vmatprep.subr.bf16.mxu0 %v3363_v48 }
  0x8a   :  { %1202 = vmatpush1.bf16.msra.mxu0 %v3361_v52  ;;  %v3424_v52 = vld [vmem:[%s4859_s5 + $0x4] ss:$8 sps:$4 sm:$0xff]  }
  0x8b   :  { %1203 = vmatprep.subr.bf16.mxu0 %v3366_v55  ;;  %1469 = vmatprep.subr.bf16.mxu1 %v3424_v52  ;;  %v3429_v55 = vld [vmem:[%s4859_s5 + $0x10] ss:$8 sps:$4 sm:$0xff]   ;;  %v3463_v52 = vld [vmem:[%s4859_s5 + $0xd4] ss:$8 sps:$4 sm:$0xff]  }
  0x8e   :  { %1204 = vmatpush1.bf16.msra.mxu0 %v3364_v58  ;;  %v3433_v58 = vld [vmem:[%s4859_s5 + $0x34] ss:$8 sps:$4 sm:$0xff]  }
  0x95   :  { %v149_v10 = vpop.permute.xlu0 %148 }
  0x96   :  { %v159_v12 = vpop.permute.xlu1 %158 }
  0x99   :  { %v144_v11 = vpop.permute.xlu0 %143 }
  0x9a   :  { %v154_v26 = vpop.permute.xlu1 %153 }
 0x100   :  { %v3041_v61 = vpop.f32.mrb[0].mxu0 }
 0x101   :  { %v3042_v62 = vpop.f32.mrb[1].mxu0 }
 0x102   :  { %v3043_v63 = vadd.f32 %v3042_v62, %v3041_v61  ;;  %v3044_v0 = vpop.f32.mrb[2].mxu0  ;;  %v3369_v61 = vld [vmem:[%s4887_s0 + $0xd4] ss:$8 sps:$4 sm:$0xff]  }
 0x103   :  { %v3045_v1 = vpop.f32.mrb[3].mxu0  ;;  %1205 = vmatprep.subr.bf16.mxu0 %v3369_v61  ;;  %v3438_v61 = vld [vmem:[%s4859_s5 + $0x40] ss:$8 sps:$4 sm:$0xff]  }
 0x104   :  { %v3046_v3 = vadd.f32 %v3045_v1, %v3044_v0  ;;  %v428_v17 = vadd.f32 %v3043_v63, %v144_v11  ;;  %v3367_v0 = vld [vmem:[%s4887_s0 + $0xd0] ss:$8 sps:$4 sm:$0xff]  }
 0x105   :  { %1206 = vmatpush1.bf16.msra.mxu0 %v3367_v0  ;;  %v3442_v0 = vld [vmem:[%s4859_s5 + $0x64] ss:$8 sps:$4 sm:$0xff]  }
 0x106   :  { %v431_v21 = vadd.f32 %v3046_v3, %v149_v10  ;;  %v3375_v10 = vld [vmem:[%s4887_s0 + $0xf4] ss:$8 sps:$4 sm:$0xff]  }
 0x108   :  { %v3047_v4 = vpop.f32.mrb[4].mxu0 }
 0x109   :  { %v3048_v5 = vpop.f32.mrb[5].mxu0 }
 0x10a   :  { %v3049_v6 = vadd.f32 %v3048_v5, %v3047_v4  ;;  %v3050_v7 = vpop.f32.mrb[6].mxu0 }
 0x10b   :  { %v3051_v8 = vpop.f32.mrb[7].mxu0 }
 0x10c   :  { %v3052_v9 = vadd.f32 %v3051_v8, %v3050_v7  ;;  %v436_v31 = vadd.f32 %v3049_v6, %v154_v26  ;;  %v3370_v6 = vld [vmem:[%s4887_s0 + $0xe0] ss:$8 sps:$4 sm:$0xff]   ;;  %v3372_v7 = vld [vmem:[%s4887_s0 + $0xe4] ss:$8 sps:$4 sm:$0xff]  }
 0x10d   :  { %1207 = vmatprep.subr.bf16.mxu0 %v3372_v7 }
 0x10e   :  { %v439_v41 = vadd.f32 %v3052_v9, %v159_v12  ;;  %1208 = vmatpush1.bf16.msra.mxu0 %v3370_v6 }
 0x10f   :  { %1209 = vmatprep.subr.bf16.mxu0 %v3375_v10 }
 0x120   :  { %v3069_v13 = vpop.f32.mrb[8].mxu0 }
 0x121   :  { %v3070_v14 = vpop.f32.mrb[9].mxu0 }
 0x122   :  { %v3071_v18 = vadd.f32 %v3070_v14, %v3069_v13  ;;  %v3072_v19 = vpop.f32.mrb[10].mxu0  ;;  %v3373_v13 = vld [vmem:[%s4887_s0 + $0xf0] ss:$8 sps:$4 sm:$0xff]  }
 0x123   :  { %v3073_v20 = vpop.f32.mrb[11].mxu0  ;;  %1210 = vmatpush1.bf16.msra.mxu0 %v3373_v13  ;;  %v3454_v13 = vld [vmem:[%s4859_s5 + $0xa4] ss:$8 sps:$4 sm:$0xff]  }
 0x124   :  { %v477_v22 = vadd.f32 %v3071_v18, %v428_v17  ;;  %v3074_v23 = vadd.f32 %v3073_v20, %v3072_v19  ;;  %1220 = vmatprep.subr.bf16.mxu0 %v3378_v16 }
 0x126   :  { %v4011_v27 = vmax.f32 %v477_v22, 0.0  ;;  %v480_v28 = vadd.f32 %v3074_v23, %v431_v21 }
 0x128   :  { %v4013_v29 = vmax.f32 %v480_v28, 0.0  ;;  %v3075_v30 = vpop.f32.mrb[12].mxu0  ;;  %v496_v33 = vrot.slane %v4011_v27, 1  ;;  %v500_v34 = vrot.slane %v4011_v27, 2  ;;  %v504_v51 = vrot.slane %v4011_v27, 3 }
 0x129   :  { %v3076_v32 = vpop.f32.mrb[13].mxu0  ;;  %v508_v57 = vrot.slane %v4011_v27, 4  ;;  %v512_v63 = vrot.slane %v4011_v27, 5  ;;  %v516_v5 = vrot.slane %v4011_v27, 6  ;;  %v520_v12 = vrot.slane %v4011_v27, 7 }
 0x12a   :  { %v3077_v35 = vadd.f32 %v3076_v32, %v3075_v30  ;;  %v3078_v36 = vpop.f32.mrb[14].mxu0  ;;  %v3144_v37 = vpack.i.bf16 %v4011_v27, %v4013_v29  ;;  %v525_v38 = vrot.slane %v4013_v29, 1  ;;  %v529_v39 = vrot.slane %v4013_v29, 2 }
 0x12b   :  { %v3079_v42 = vpop.f32.mrb[15].mxu0  ;;  %v533_v47 = vrot.slane %v4013_v29, 3  ;;  %v3149_v50 = vpack.i.bf16 %v496_v33, %v500_v34  ;;  %v537_v54 = vrot.slane %v4013_v29, 4  ;;  %v3154_v56 = vpack.i.bf16 %v500_v34, %v504_v51 }
 0x12c   :  { %v4027_v44 = vadd.f32 %v3077_v35, %v436_v31  ;;  %v3080_v45 = vadd.f32 %v3079_v42, %v3078_v36  ;;  %3145 = vrot.lane.b32.xlu0 %v3144_v37, %s3702_s21  ;;  %v3179_v46 = vpack.i.bf16 %v525_v38, %v529_v39  ;;  %v541_v60 = vrot.slane %v4013_v29, 5 }
 0x12d   :  { %v3184_v53 = vpack.i.bf16 %v529_v39, %v533_v47  ;;  %v3189_v59 = vpack.i.bf16 %v533_v47, %v537_v54  ;;  %v3159_v62 = vpack.i.bf16 %v504_v51, %v508_v57  ;;  %v545_v3 = vrot.slane %v4013_v29, 6 }
 0x12e   :  { %v488_v49 = vadd.f32 %v3080_v45, %v439_v41  ;;  %3180 = vrot.lane.b32.xlu1 %v3179_v46, %s3703_s24  ;;  %v3194_v1 = vpack.i.bf16 %v537_v54, %v541_v60  ;;  %v3164_v4 = vpack.i.bf16 %v508_v57, %v512_v63  ;;  %v549_v9 = vrot.slane %v4013_v29, 7  ;;  %v3427_v54 = vld [vmem:[%s4859_s5 + $0x14] ss:$8 sps:$4 sm:$0xff]   ;;  %v3432_v57 = vld [vmem:[%s4859_s5 + $0x20] ss:$8 sps:$4 sm:$0xff]  }
 0x12f   :  { %v3199_v8 = vpack.i.bf16 %v541_v60, %v545_v3  ;;  %v3169_v11 = vpack.i.bf16 %v512_v63, %v516_v5  ;;  %v4090_v17 = vmax.f32 %v4027_v44, 0.0  ;;  %v3174_v18 = vpack.i.bf16 %v516_v5, %v520_v12  ;;  %v3436_v60 = vld [vmem:[%s4859_s5 + $0x44] ss:$8 sps:$4 sm:$0xff]   ;;  %v3441_v63 = vld [vmem:[%s4859_s5 + $0x50] ss:$8 sps:$4 sm:$0xff]  }
 0x130   :  { %3150 = vrot.lane.b32.xlu0 %v3149_v50, %s3703_s24  ;;  %v4083_v14 = vmax.f32 %v488_v49, 0.0  ;;  %v3204_v15 = vpack.i.bf16 %v545_v3, %v549_v9  ;;  %v3209_v19 = vpack.i.bf16 %v520_v12, %v549_v9  ;;  %v3445_v3 = vld [vmem:[%s4859_s5 + $0x74] ss:$8 sps:$4 sm:$0xff]   ;;  %v3448_v5 = vld [vmem:[%s4859_s5 + $0x84] ss:$8 sps:$4 sm:$0xff]  }
 0x131   :  { %v575_v23 = vrot.slane %v4090_v17, 1  ;;  %v579_v24 = vrot.slane %v4090_v17, 2  ;;  %v583_v30 = vrot.slane %v4090_v17, 3  ;;  %v587_v35 = vrot.slane %v4090_v17, 4  ;;  %v3451_v9 = vld [vmem:[%s4859_s5 + $0x94] ss:$8 sps:$4 sm:$0xff]  }
 0x132   :  { %3185 = vrot.lane.b32.xlu1 %v3184_v53, %s3704_s26  ;;  %v604_v20 = vrot.slane %v4083_v14, 1  ;;  %v608_v21 = vrot.slane %v4083_v14, 2  ;;  %v3214_v22 = vpack.i.bf16 %v4090_v17, %v4083_v14  ;;  %v612_v26 = vrot.slane %v4083_v14, 3  ;;  %v3426_v53 = vld [vmem:[%s4859_s5] ss:$8 sps:$4 sm:$0xff]  }
 0x133   :  { %v3219_v28 = vpack.i.bf16 %v575_v23, %v579_v24  ;;  %v616_v32 = vrot.slane %v4083_v14, 4  ;;  %v3224_v34 = vpack.i.bf16 %v579_v24, %v583_v30  ;;  %v620_v37 = vrot.slane %v4083_v14, 5  ;;  %1470 = vmatpush1.bf16.msra.mxu1 %v3426_v53  ;;  %v3453_v12 = vld [vmem:[%s4859_s5 + $0x90] ss:$8 sps:$4 sm:$0xff]  }
 0x134   :  { %3155 = vrot.lane.b32.xlu0 %v3154_v56, %s3704_s26  ;;  %v3244_v25 = vpack.i.bf16 %v604_v20, %v608_v21  ;;  %v3249_v31 = vpack.i.bf16 %v608_v21, %v612_v26  ;;  %v3229_v39 = vpack.i.bf16 %v583_v30, %v587_v35  ;;  %v591_v40 = vrot.slane %v4090_v17, 5  ;;  %1471 = vmatprep.subr.bf16.mxu1 %v3427_v54  ;;  %v3430_v56 = vld [vmem:[%s4859_s5 + $0x24] ss:$8 sps:$4 sm:$0xff]   ;;  %v3457_v21 = vld [vmem:[%s4859_s5 + $0xb4] ss:$8 sps:$4 sm:$0xff]  }
 0x135   :  { %v3254_v36 = vpack.i.bf16 %v612_v26, %v616_v32  ;;  %v3259_v41 = vpack.i.bf16 %v616_v32, %v620_v37  ;;  %v624_v42 = vrot.slane %v4083_v14, 6  ;;  %v595_v44 = vrot.slane %v4090_v17, 6  ;;  %v3459_v32 = vld [vmem:[%s4859_s5 + $0xb0] ss:$8 sps:$4 sm:$0xff]  }
 0x136   :  { %3190 = vrot.lane.b32.xlu1 %v3189_v59, %s3705_s30  ;;  %v3234_v43 = vpack.i.bf16 %v587_v35, %v591_v40  ;;  %v628_v46 = vrot.slane %v4083_v14, 7  ;;  %v599_v48 = vrot.slane %v4090_v17, 7  ;;  %v3435_v59 = vld [vmem:[%s4859_s5 + $0x30] ss:$8 sps:$4 sm:$0xff]  }
 0x137   :  { %v3264_v45 = vpack.i.bf16 %v620_v37, %v624_v42  ;;  %v3239_v47 = vpack.i.bf16 %v591_v40, %v595_v44  ;;  %1472 = vmatpush1.bf16.msra.mxu1 %v3429_v55 }
 0x138   :  { %3160 = vrot.lane.b32.xlu0 %v3159_v62, %s3705_s30  ;;  %v3269_v49 = vpack.i.bf16 %v624_v42, %v628_v46  ;;  %v3274_v50 = vpack.i.bf16 %v595_v44, %v599_v48  ;;  %v3279_v51 = vpack.i.bf16 %v599_v48, %v628_v46  ;;  %1473 = vmatprep.subr.bf16.mxu1 %v3430_v56  ;;  %v3439_v62 = vld [vmem:[%s4859_s5 + $0x54] ss:$8 sps:$4 sm:$0xff]  }
 0x13a   :  { %3195 = vrot.lane.b32.xlu1 %v3194_v1, %s3706_s25  ;;  %v3444_v1 = vld [vmem:[%s4859_s5 + $0x60] ss:$8 sps:$4 sm:$0xff]  }
 0x13b   :  { %1474 = vmatpush1.bf16.msra.mxu1 %v3432_v57 }
 0x13c   :  { %3165 = vrot.lane.b32.xlu0 %v3164_v4, %s3706_s25  ;;  %1475 = vmatprep.subr.bf16.mxu1 %v3433_v58  ;;  %v3447_v4 = vld [vmem:[%s4859_s5 + $0x70] ss:$8 sps:$4 sm:$0xff]  }
 0x13e   :  { %3200 = vrot.lane.b32.xlu1 %v3199_v8, %s3707_s23  ;;  %v3450_v8 = vld [vmem:[%s4859_s5 + $0x80] ss:$8 sps:$4 sm:$0xff]  }
 0x13f   :  { %1476 = vmatpush1.bf16.msra.mxu1 %v3435_v59 }
 0x140   :  { %3170 = vrot.lane.b32.xlu0 %v3169_v11, %s3707_s23  ;;  %1477 = vmatprep.subr.bf16.mxu1 %v3436_v60 }
 0x142   :  { %3205 = vrot.lane.b32.xlu1 %v3204_v15, %s3708_s2 }
 0x143   :  { %1478 = vmatpush1.bf16.msra.mxu1 %v3438_v61 }
 0x144   :  { %3175 = vrot.lane.b32.xlu0 %v3174_v18, %s3708_s2  ;;  %1479 = vmatprep.subr.bf16.mxu1 %v3439_v62  ;;  %v3456_v18 = vld [vmem:[%s4859_s5 + $0xa0] ss:$8 sps:$4 sm:$0xff]  }
 0x146   :  { %3210 = vrot.lane.b32.xlu1 %v3209_v19, %s3702_s21 }
 0x147   :  { %1480 = vmatpush1.bf16.msra.mxu1 %v3441_v63 }
 0x148   :  { %3215 = vrot.lane.b32.xlu0 %v3214_v22, %s3702_s21  ;;  %1481 = vmatprep.subr.bf16.mxu1 %v3442_v0 }
 0x14a   :  { %3245 = vrot.lane.b32.xlu1 %v3244_v25, %s3703_s24 }
 0x14b   :  { %1482 = vmatpush1.bf16.msra.mxu1 %v3444_v1 }
 0x14c   :  { %3220 = vrot.lane.b32.xlu0 %v3219_v28, %s3703_s24  ;;  %1483 = vmatprep.subr.bf16.mxu1 %v3445_v3  ;;  %v3465_v3 = vld [vmem:[%s4859_s5 + $0xd0] ss:$8 sps:$4 sm:$0xff]  }
 0x14e   :  { %3250 = vrot.lane.b32.xlu1 %v3249_v31, %s3704_s26 }
 0x14f   :  { %1484 = vmatpush1.bf16.msra.mxu1 %v3447_v4 }
 0x150   :  { %3225 = vrot.lane.b32.xlu0 %v3224_v34, %s3704_s26  ;;  %1485 = vmatprep.subr.bf16.mxu1 %v3448_v5 }
 0x152   :  { %3255 = vrot.lane.b32.xlu1 %v3254_v36, %s3705_s30  ;;  %v3460_v36 = vld [vmem:[%s4859_s5 + $0xc4] ss:$8 sps:$4 sm:$0xff]  }
 0x153   :  { %1486 = vmatpush1.bf16.msra.mxu1 %v3450_v8 }
 0x154   :  { %3230 = vrot.lane.b32.xlu0 %v3229_v39, %s3705_s30  ;;  %1487 = vmatprep.subr.bf16.mxu1 %v3451_v9 }
 0x156   :  { %3260 = vrot.lane.b32.xlu1 %v3259_v41, %s3706_s25 }
 0x157   :  { %1488 = vmatpush1.bf16.msra.mxu1 %v3453_v12 }
 0x158   :  { %3235 = vrot.lane.b32.xlu0 %v3234_v43, %s3706_s25  ;;  %1489 = vmatprep.subr.bf16.mxu1 %v3454_v13  ;;  %s4888_s25 = sld [smem:[#allocation12_spill]] }
 0x15a   :  { %3265 = vrot.lane.b32.xlu1 %v3264_v45, %s3707_s23 }
 0x15b   :  { %1490 = vmatpush1.bf16.msra.mxu1 %v3456_v18 }
 0x15c   :  { %3240 = vrot.lane.b32.xlu0 %v3239_v47, %s3707_s23  ;;  %1491 = vmatprep.subr.bf16.mxu1 %v3457_v21 }
 0x15e   :  { %3270 = vrot.lane.b32.xlu1 %v3269_v49, %s3708_s2 }
 0x15f   :  { %1492 = vmatpush1.bf16.msra.mxu1 %v3459_v32 }
 0x160   :  { %3275 = vrot.lane.b32.xlu0 %v3274_v50, %s3708_s2  ;;  %1493 = vmatprep.subr.bf16.mxu1 %v3460_v36  ;;  %s3710_s2 = smov [#allocation4]  }
 0x161   :  { %s2739_s24 = sshll.u32 %s3710_s2, 4  ;;  %s2740_s24 = int_to_ptr.vmem [resolvable:$true] %s2739_s24 }
 0x162   :  { %3280 = vrot.lane.b32.xlu1 %v3279_v51, %s3702_s21 }
 0x19e   :  { %v3146_v6 = vpop.permute.xlu0 %3145 }
 0x19f   :  { %v3147_v19 = vunpack.i.l.bf16 %v3146_v6  ;;  %v3148_v22 = vunpack.i.h.bf16 %v3146_v6 }
 0x1a0   :  { %v3181_v7 = vpop.permute.xlu1 %3180 }
 0x1a1   :  { %v3183_v25 = vunpack.i.h.bf16 %v3181_v7  ;;  %v3182_v26 = vunpack.i.l.bf16 %v3181_v7  ;;  %v697_v34 = vsel %vm553_vm0, %v3147_v19, %v525_v38  ;;  %v690_v37 = vsel %vm553_vm0, %v3148_v22, %v496_v33  ;;  %v3462_v33 = vld [vmem:[%s4859_s5 + $0xc0] ss:$8 sps:$4 sm:$0xff]  }
 0x1a2   :  { %v3151_v10 = vpop.permute.xlu0 %3150  ;;  %1494 = vmatpush1.bf16.msra.mxu1 %v3462_v33 }
 0x1a3   :  { %v3153_v28 = vunpack.i.h.bf16 %v3151_v10  ;;  %v3152_v30 = vunpack.i.l.bf16 %v3151_v10  ;;  %v567_v41 = vsel %vm553_vm0, %v4013_v29, %v3183_v25  ;;  %v698_v44 = vsel %vm555_vm1, %v697_v34, %v3182_v26  ;;  %1495 = vmatprep.subr.bf16.mxu1 %v3463_v52  ;;  %v3384_v52 = vld [vmem:[%s4887_s0 + $0x124] ss:$8 sps:$4 sm:$0xff]  }
 0x1a4   :  { %v3186_v11 = vpop.permute.xlu1 %3185 }
 0x1a5   :  { %v3188_v35 = vunpack.i.h.bf16 %v3186_v11  ;;  %v3187_v39 = vunpack.i.l.bf16 %v3186_v11  ;;  %v554_v45 = vsel %vm553_vm0, %v4011_v27, %v3153_v28  ;;  %v691_v46 = vsel %vm555_vm1, %v690_v37, %v3152_v30 }
 0x1a6   :  { %v3156_v15 = vpop.permute.xlu0 %3155  ;;  %1496 = vmatpush1.bf16.msra.mxu1 %v3465_v3 }
 0x1a7   :  { %v3158_v38 = vunpack.i.h.bf16 %v3156_v15  ;;  %v3157_v42 = vunpack.i.l.bf16 %v3156_v15  ;;  %v568_v49 = vsel %vm555_vm1, %v567_v41, %v3188_v35  ;;  %v699_v27 = vsel %vm557_vm2, %v698_v44, %v3187_v39 }
 0x1a8   :  { %v3191_v16 = vpop.permute.xlu1 %3190 }
 0x1a9   :  { %v3193_v43 = vunpack.i.h.bf16 %v3191_v16  ;;  %v3192_v47 = vunpack.i.l.bf16 %v3191_v16  ;;  %v556_v57 = vsel %vm555_vm1, %v554_v45, %v3158_v38  ;;  %v692_v58 = vsel %vm557_vm2, %v691_v46, %v3157_v42  ;;  %v3381_v46 = vld [vmem:[%s4887_s0 + $0x114] ss:$8 sps:$4 sm:$0xff]  }
 0x1aa   :  { %v3161_v24 = vpop.permute.xlu0 %3160 }
 0x1ab   :  { %v3163_v29 = vunpack.i.h.bf16 %v3161_v24  ;;  %v3162_v50 = vunpack.i.l.bf16 %v3161_v24  ;;  %v569_v59 = vsel %vm557_vm2, %v568_v49, %v3193_v43  ;;  %v700_v61 = vsel %vm559_vm3, %v699_v27, %v3192_v47  ;;  %v3376_v43 = vld [vmem:[%s4887_s0 + $0x100] ss:$8 sps:$4 sm:$0xff]   ;;  %v3379_v49 = vld [vmem:[%s4887_s0 + $0x110] ss:$8 sps:$4 sm:$0xff]  }
 0x1ac   :  { %v3196_v31 = vpop.permute.xlu1 %3195 }
 0x1ad   :  { %v3197_v51 = vunpack.i.l.bf16 %v3196_v31  ;;  %v3198_v53 = vunpack.i.h.bf16 %v3196_v31  ;;  %v558_v4 = vsel %vm557_vm2, %v556_v57, %v3163_v29  ;;  %v693_v5 = vsel %vm559_vm3, %v692_v58, %v3162_v50  ;;  %v3382_v57 = vld [vmem:[%s4887_s0 + $0x120] ss:$8 sps:$4 sm:$0xff]  }
 0x1ae   :  { %v3166_v40 = vpop.permute.xlu0 %3165 }
 0x1af   :  { %v3168_v54 = vunpack.i.h.bf16 %v3166_v40  ;;  %v3167_v60 = vunpack.i.l.bf16 %v3166_v40  ;;  %v701_v6 = vsel %vm561_vm4, %v700_v61, %v3197_v51  ;;  %v570_v8 = vsel %vm559_vm3, %v569_v59, %v3198_v53  ;;  %v3387_v61 = vld [vmem:[%s4887_s0 + $0x134] ss:$8 sps:$4 sm:$0xff]  }
 0x1b0   :  { %v3201_v48 = vpop.permute.xlu1 %3200 }
 0x1b1   :  { %v3202_v55 = vunpack.i.l.bf16 %v3201_v48  ;;  %v3203_v62 = vunpack.i.h.bf16 %v3201_v48  ;;  %v560_v9 = vsel %vm559_vm3, %v558_v4, %v3168_v54  ;;  %v694_v13 = vsel %vm561_vm4, %v693_v5, %v3167_v60 }
 0x1b2   :  { %v3171_v56 = vpop.permute.xlu0 %3170 }
 0x1b3   :  { %v3173_v63 = vunpack.i.h.bf16 %v3171_v56  ;;  %v3172_v0 = vunpack.i.l.bf16 %v3171_v56  ;;  %v702_v10 = vsel %vm563_vm5, %v701_v6, %v3202_v55  ;;  %v571_v19 = vsel %vm561_vm4, %v570_v8, %v3203_v62 }
 0x1b4   :  { %v3206_v1 = vpop.permute.xlu1 %3205 }
 0x1b5   :  { %v3207_v7 = vunpack.i.l.bf16 %v3206_v1  ;;  %v3208_v11 = vunpack.i.h.bf16 %v3206_v1  ;;  %v562_v21 = vsel %vm561_vm4, %v560_v9, %v3173_v63  ;;  %v695_v22 = vsel %vm563_vm5, %v694_v13, %v3172_v0 }
 0x1b6   :  { %v3176_v12 = vpop.permute.xlu0 %3175 }
 0x1b7   :  { %v703_v15 = vsel %vm565_vm6, %v702_v10, %v3207_v7  ;;  %v3178_v16 = vunpack.i.h.bf16 %v3176_v12  ;;  %v3177_v18 = vunpack.i.l.bf16 %v3176_v12  ;;  %v572_v31 = vsel %vm563_vm5, %v571_v19, %v3208_v11  ;;  %v3390_v10 = vld [vmem:[%s4887_s0 + $0x144] ss:$8 sps:$4 sm:$0xff]  }
 0x1b8   :  { %v3211_v24 = vpop.permute.xlu1 %3210  ;;  %v767_v32 = vrot.slane %v703_v15, 7 }
 0x1b9   :  { %v564_v25 = vsel %vm563_vm5, %v562_v21, %v3178_v16  ;;  %v696_v26 = vsel %vm565_vm6, %v695_v22, %v3177_v18  ;;  %v3213_v28 = vunpack.i.h.bf16 %v3211_v24  ;;  %v3212_v30 = vunpack.i.l.bf16 %v3211_v24 }
 0x1ba   :  { %v766_v34 = vrot.slane %v696_v26, 7  ;;  %v3216_v35 = vpop.permute.xlu0 %3215 }
 0x1bb   :  { %v566_v36 = vsel %vm565_vm6, %v564_v25, %v3213_v28  ;;  %v573_v37 = vsel %vm565_vm6, %v572_v31, %v3212_v30  ;;  %v3218_v45 = vunpack.i.h.bf16 %v3216_v35  ;;  %v3388_v25 = vld [vmem:[%s4887_s0 + $0x140] ss:$8 sps:$4 sm:$0xff]  }
 0x1bc   :  { %v3246_v39 = vpop.permute.xlu1 %3245  ;;  %v776_v40 = vsel %vm774_vm7, %v573_v37, %v767_v32  ;;  %v775_v41 = vsel %vm774_vm7, %v566_v36, %v766_v34 }
 0x1bd   :  { %v780_v42 = vpack.c.bf16 %v776_v40, %v776_v40  ;;  %v779_v44 = vpack.c.bf16 %v775_v41, %v775_v41  ;;  %v748_v29 = vsel %vm553_vm0, %v3218_v45, %v575_v23  ;;  %v3217_v23 = vunpack.i.l.bf16 %v3216_v35  ;;  %v3391_v45 = vld [vmem:[%s4887_s0 + $0x150] ss:$8 sps:$4 sm:$0xff]  }
 0x1be   :  { %v3221_v38 = vpop.permute.xlu0 %3220  ;;  %v3248_v3 = vunpack.i.h.bf16 %v3246_v39  ;;  %v3247_v4 = vunpack.i.l.bf16 %v3246_v39 }
 0x1bf   :  { %v3222_v47 = vunpack.i.l.bf16 %v3221_v38  ;;  %1211 = vmatprep.mubr.bf16.mxu0 %v780_v42  ;;  %v3223_v50 = vunpack.i.h.bf16 %v3221_v38  ;;  %v755_v6 = vsel %vm553_vm0, %v3217_v23, %v604_v20 }
 0x1c0   :  { %v3251_v48 = vpop.permute.xlu1 %3250  ;;  %1212 = vmatmul.mubr.bf16.vlgmr.msra.gmra.mrb[16].mxu0 %v779_v44  ;;  %v639_v19 = vsel %vm553_vm0, %v4083_v14, %v3248_v3  ;;  %v756_v20 = vsel %vm555_vm1, %v755_v6, %v3247_v4  ;;  %v3393_v14 = vld [vmem:[%s4887_s0 + $0x154] ss:$8 sps:$4 sm:$0xff]   ;;  %v3403_v4 = vld [vmem:[%s4887_s0 + $0x190] ss:$8 sps:$4 sm:$0xff]  }
 0x1c1   :  { %1221 = vmatpush1.bf16.msra.mxu0 %v3376_v43  ;;  %v749_v27 = vsel %vm555_vm1, %v748_v29, %v3222_v47  ;;  %v632_v58 = vsel %vm553_vm0, %v4090_v17, %v3223_v50  ;;  %v3385_v17 = vld [vmem:[%s4887_s0 + $0x130] ss:$8 sps:$4 sm:$0xff]   ;;  %v3252_v7 = vunpack.i.l.bf16 %v3251_v48  ;;  %v3253_v11 = vunpack.i.h.bf16 %v3251_v48  ;;  %v3405_v3 = vld [vmem:[%s4887_s0 + $0x194] ss:$8 sps:$4 sm:$0xff]  }
 0x1c2   :  { %v3226_v33 = vpop.permute.xlu0 %3225  ;;  %1222 = vmatprep.subr.bf16.mxu0 %v3381_v46  ;;  %v3411_v6 = vld [vmem:[%s4887_s0 + $0x1b4] ss:$8 sps:$4 sm:$0xff]  }
 0x1c3   :  { %v3227_v51 = vunpack.i.l.bf16 %v3226_v33  ;;  %v3228_v53 = vunpack.i.h.bf16 %v3226_v33  ;;  %v757_v26 = vsel %vm557_vm2, %v756_v20, %v3252_v7  ;;  %v640_v32 = vsel %vm555_vm1, %v639_v19, %v3253_v11  ;;  %v3409_v7 = vld [vmem:[%s4887_s0 + $0x1b0] ss:$8 sps:$4 sm:$0xff]   ;;  %v3466_v19 = vld [vmem:[%s4859_s5 + $0xe4] ss:$8 sps:$4 sm:$0xff]   ;;  %v3468_v20 = vld [vmem:[%s4859_s5 + $0xe0] ss:$8 sps:$4 sm:$0xff]  }
 0x1c4   :  { %v3256_v54 = vpop.permute.xlu1 %3255  ;;  %v3415_v11 = vld [vmem:[%s4887_s0 + $0x1d0] ss:$8 sps:$4 sm:$0xff]   ;;  %1497 = vmatprep.subr.bf16.mxu1 %v3466_v19 }
 0x1c5   :  { %v750_v55 = vsel %vm557_vm2, %v749_v27, %v3227_v51  ;;  %1223 = vmatpush1.bf16.msra.mxu0 %v3379_v49  ;;  %v633_v62 = vsel %vm555_vm1, %v632_v58, %v3228_v53  ;;  %v3257_v12 = vunpack.i.l.bf16 %v3256_v54  ;;  %v3258_v21 = vunpack.i.h.bf16 %v3256_v54  ;;  %v3396_v49 = vld [vmem:[%s4887_s0 + $0x164] ss:$8 sps:$4 sm:$0xff]   ;;  %1498 = vmatpush1.bf16.msra.mxu1 %v3468_v20  ;;  %v3502_v19 = vld [vmem:[%s4863_s9 + $0x78] sm:$0xff]  }
 0x1c6   :  { %v3231_v56 = vpop.permute.xlu0 %3230  ;;  %1224 = vmatprep.subr.bf16.mxu0 %v3384_v52  ;;  %v3503_v20 = vld [vmem:[%s4863_s9 + $0x38] sm:$0xff]  }
 0x1c7   :  { %v3233_v59 = vunpack.i.h.bf16 %v3231_v56  ;;  %v3232_v60 = vunpack.i.l.bf16 %v3231_v56  ;;  %v758_v34 = vsel %vm559_vm3, %v757_v26, %v3257_v12  ;;  %v641_v38 = vsel %vm557_vm2, %v640_v32, %v3258_v21  ;;  %v3420_v12 = vld [vmem:[%s4887_s0 + $0x1e4] ss:$8 sps:$4 sm:$0xff]   ;;  %v3469_v21 = vld [vmem:[%s4859_s5 + $0xf4] ss:$8 sps:$4 sm:$0xff]  }
 0x1c8   :  { %v3261_v63 = vpop.permute.xlu1 %3260  ;;  %1499 = vmatprep.subr.bf16.mxu1 %v3469_v21  ;;  %v3504_v21 = vld [vmem:[%s4866_s12] ss:$8 sps:$4 sm:$0xff]  }
 0x1c9   :  { %v634_v0 = vsel %vm557_vm2, %v633_v62, %v3233_v59  ;;  %v751_v1 = vsel %vm559_vm3, %v750_v55, %v3232_v60  ;;  %1225 = vmatpush1.bf16.msra.mxu0 %v3382_v57  ;;  %v3262_v15 = vunpack.i.l.bf16 %v3261_v63  ;;  %v3263_v28 = vunpack.i.h.bf16 %v3261_v63  ;;  %v3394_v57 = vld [vmem:[%s4887_s0 + $0x160] ss:$8 sps:$4 sm:$0xff]   ;;  %v3399_v59 = vld [vmem:[%s4887_s0 + $0x174] ss:$8 sps:$4 sm:$0xff]   ;;  %v3397_v63 = vld [vmem:[%s4887_s0 + $0x170] ss:$8 sps:$4 sm:$0xff]  }
 0x1ca   :  { %v3236_v5 = vpop.permute.xlu0 %3235  ;;  %1226 = vmatprep.subr.bf16.mxu0 %v3387_v61 }
 0x1cb   :  { %v3238_v8 = vunpack.i.h.bf16 %v3236_v5  ;;  %v3237_v9 = vunpack.i.l.bf16 %v3236_v5  ;;  %v759_v37 = vsel %vm561_vm4, %v758_v34, %v3262_v15  ;;  %v642_v46 = vsel %vm559_vm3, %v641_v38, %v3263_v28  ;;  %v3408_v5 = vld [vmem:[%s4887_s0 + $0x1a4] ss:$8 sps:$4 sm:$0xff]   ;;  %v3423_v15 = vld [vmem:[%s4887_s0 + $0x1f4] ss:$8 sps:$4 sm:$0xff]   ;;  %v847_v28 = vld [vmem:[%s4888_s25] sm:$0x3] }
 0x1cc   :  { %v3266_v13 = vpop.permute.xlu1 %3265 }
 0x1cd   :  { %v635_v16 = vsel %vm559_vm3, %v634_v0, %v3238_v8  ;;  %v752_v18 = vsel %vm561_vm4, %v751_v1, %v3237_v9  ;;  %v3267_v22 = vunpack.i.l.bf16 %v3266_v13  ;;  %1227 = vmatpush1.bf16.msra.mxu0 %v3385_v17  ;;  %v3268_v35 = vunpack.i.h.bf16 %v3266_v13  ;;  %v3402_v0 = vld [vmem:[%s4887_s0 + $0x184] ss:$8 sps:$4 sm:$0xff]   ;;  %v3400_v1 = vld [vmem:[%s4887_s0 + $0x180] ss:$8 sps:$4 sm:$0xff]  }
 0x1ce   :  { %v3241_v24 = vpop.permute.xlu0 %3240  ;;  %1228 = vmatprep.subr.bf16.mxu0 %v3390_v10  ;;  %v3406_v17 = vld [vmem:[%s4887_s0 + $0x1a0] ss:$8 sps:$4 sm:$0xff]   ;;  %v3414_v8 = vld [vmem:[%s4887_s0 + $0x1c4] ss:$8 sps:$4 sm:$0xff]   ;;  %v3417_v10 = vld [vmem:[%s4887_s0 + $0x1d4] ss:$8 sps:$4 sm:$0xff]  }
 0x1cf   :  { %v3243_v30 = vunpack.i.h.bf16 %v3241_v24  ;;  %v3242_v31 = vunpack.i.l.bf16 %v3241_v24  ;;  %v760_v42 = vsel %vm563_vm5, %v759_v37, %v3267_v22  ;;  %v643_v29 = vsel %vm561_vm4, %v642_v46, %v3268_v35  ;;  %v3412_v9 = vld [vmem:[%s4887_s0 + $0x1c0] ss:$8 sps:$4 sm:$0xff]   ;;  %v3471_v22 = vld [vmem:[%s4859_s5 + $0xf0] ss:$8 sps:$4 sm:$0xff]  }
 0x1d0   :  { %v3271_v36 = vpop.permute.xlu1 %3270  ;;  %v3418_v13 = vld [vmem:[%s4887_s0 + $0x1e0] ss:$8 sps:$4 sm:$0xff]   ;;  %1500 = vmatpush1.bf16.msra.mxu1 %v3471_v22  ;;  %v849_v24 = vlaneseq  ;;  %v3476_v46 = vld [vmem:[%s4861_s7 + $0x50] sm:$0xff]   ;;  %v3506_v22 = vld [vmem:[%s4866_s12 + $0x4] ss:$8 sps:$4 sm:$0xff]  }
 0x1d1   :  { %v636_v39 = vsel %vm561_vm4, %v635_v16, %v3243_v30  ;;  %v753_v40 = vsel %vm563_vm5, %v752_v18, %v3242_v31  ;;  %v3272_v41 = vunpack.i.l.bf16 %v3271_v36  ;;  %v3273_v43 = vunpack.i.h.bf16 %v3271_v36  ;;  %1229 = vmatpush1.bf16.msra.mxu0 %v3388_v25  ;;  %v3421_v16 = vld [vmem:[%s4887_s0 + $0x1f0] ss:$8 sps:$4 sm:$0xff]  }
 0x1d2   :  { %v3276_v44 = vpop.permute.xlu0 %3275  ;;  %1230 = vmatprep.subr.bf16.mxu0 %v3393_v14  ;;  %v4394_v25 = vshrl.u32 %v849_v24, 7  ;;  %v3509_v24 = vld [vmem:[%s4868_s14 + $0x4] ss:$8 sps:$4 sm:$0xff]  }
 0x1d3   :  { %v761_v47 = vsel %vm565_vm6, %v760_v42, %v3272_v41  ;;  %v3278_v48 = vunpack.i.h.bf16 %v3276_v44  ;;  %v3277_v33 = vunpack.i.l.bf16 %v3276_v44  ;;  %v644_v54 = vsel %vm563_vm5, %v643_v29, %v3273_v43  ;;  %v3473_v42 = vld [vmem:[%s4861_s7] sm:$0xff]   ;;  %v3474_v44 = vld [vmem:[%s4861_s7 + $0x48] sm:$0xff]  }
 0x1d4   :  { %v3281_v50 = vpop.permute.xlu1 %3280  ;;  %v769_v55 = vrot.slane %v761_v47, 7  ;;  %v4397_v26 = vsub.s32 0, %v4394_v25  ;;  %v4403_v30 = vsub.s32 1, %v4394_v25  ;;  %v3477_v47 = vld [vmem:[%s4861_s7 + $0x10] sm:$0xff]   ;;  %v3481_v29 = vld [vmem:[%s4861_s7 + $0x20] sm:$0xff]  }
 0x1d5   :  { %v637_v51 = vsel %vm563_vm5, %v636_v39, %v3278_v48  ;;  %v754_v52 = vsel %vm565_vm6, %v753_v40, %v3277_v33  ;;  %v3283_v27 = vunpack.i.h.bf16 %v3281_v50  ;;  %v3282_v53 = vunpack.i.l.bf16 %v3281_v50  ;;  %1231 = vmatpush1.bf16.msra.mxu0 %v3391_v45  ;;  %v3475_v45 = vld [vmem:[%s4861_s7 + $0x8] sm:$0xff]   ;;  %v3478_v48 = vld [vmem:[%s4861_s7 + $0x58] sm:$0xff]  }
 0x1d6   :  { %v768_v56 = vrot.slane %v754_v52, 7  ;;  %1232 = vmatprep.subr.bf16.mxu0 %v3396_v49  ;;  %v852_v31 = vrot.slane %v847_v28, %v4397_v26  ;;  %v856_v14 = vrot.slane %v847_v28, %v4403_v30  ;;  %v3479_v33 = vld [vmem:[%s4861_s7 + $0x18] sm:$0xff]   ;;  %v3480_v49 = vld [vmem:[%s4861_s7 + $0x60] sm:$0xff]   ;;  %v3482_v50 = vld [vmem:[%s4861_s7 + $0x68] sm:$0xff]  }
 0x1d7   :  { %v638_v23 = vsel %vm565_vm6, %v637_v51, %v3283_v27  ;;  %v645_v58 = vsel %vm565_vm6, %v644_v54, %v3282_v53  ;;  %v3483_v51 = vld [vmem:[%s4861_s7 + $0x28] sm:$0xff]   ;;  %v3484_v52 = vld [vmem:[%s4861_s7 + $0x70] sm:$0xff]   ;;  %v3486_v53 = vld [vmem:[%s4861_s7 + $0x78] sm:$0xff]  }
 0x1d8   :  { %v777_v60 = vsel %vm774_vm7, %v638_v23, %v768_v56  ;;  %v778_v61 = vsel %vm774_vm7, %v645_v58, %v769_v55  ;;  %v3485_v27 = vld [vmem:[%s4861_s7 + $0x30] sm:$0xff]   ;;  %v3487_v54 = vld [vmem:[%s4861_s7 + $0x38] sm:$0xff]   ;;  %v3488_v55 = vld [vmem:[%s4863_s9 + $0x40] sm:$0xff]  }
 0x1d9   :  { %v782_v62 = vpack.c.bf16 %v778_v61, %v778_v61  ;;  %1233 = vmatpush1.bf16.msra.mxu0 %v3394_v57  ;;  %v781_v18 = vpack.c.bf16 %v777_v60, %v777_v60  ;;  %v1297_v56 = vld [vmem:[%s4860_s6] sm:$0x3]  ;;  %v3512_v28 = vld [vmem:[%s4868_s14 + $0x14] ss:$8 sps:$4 sm:$0xff]  }
 0x1da   :  { %1234 = vmatprep.subr.bf16.mxu0 %v3399_v59  ;;  %v1302_v57 = vrot.slane %v1297_v56, %v4397_v26  ;;  %v1306_v23 = vrot.slane %v1297_v56, %v4403_v30 }
 0x1db   :  { %1252 = vmatprep.mubr.bf16.mxu0 %v782_v62 }
 0x1dd   :  { %1235 = vmatpush1.bf16.msra.mxu0 %v3397_v63 }
 0x1de   :  { %1236 = vmatprep.subr.bf16.mxu0 %v3402_v0 }
 0x1e1   :  { %1237 = vmatpush1.bf16.msra.mxu0 %v3400_v1 }
 0x1e2   :  { %1238 = vmatprep.subr.bf16.mxu0 %v3405_v3 }
 0x1e5   :  { %1239 = vmatpush1.bf16.msra.mxu0 %v3403_v4  ;;  %v3489_v4 = vld [vmem:[%s4863_s9] sm:$0xff]  }
 0x1e6   :  { %1240 = vmatprep.subr.bf16.mxu0 %v3408_v5 }
 0x1e9   :  { %1241 = vmatpush1.bf16.msra.mxu0 %v3406_v17  ;;  %v3490_v17 = vld [vmem:[%s4863_s9 + $0x48] sm:$0xff]  }
 0x1ea   :  { %1242 = vmatprep.subr.bf16.mxu0 %v3411_v6  ;;  %v3491_v6 = vld [vmem:[%s4863_s9 + $0x8] sm:$0xff]  }
 0x1ed   :  { %1243 = vmatpush1.bf16.msra.mxu0 %v3409_v7  ;;  %v3492_v7 = vld [vmem:[%s4863_s9 + $0x50] sm:$0xff]  }
 0x1ee   :  { %1244 = vmatprep.subr.bf16.mxu0 %v3414_v8  ;;  %v3493_v8 = vld [vmem:[%s4863_s9 + $0x10] sm:$0xff]  }
 0x1f1   :  { %1245 = vmatpush1.bf16.msra.mxu0 %v3412_v9  ;;  %v3494_v9 = vld [vmem:[%s4863_s9 + $0x58] sm:$0xff]  }
 0x1f2   :  { %1246 = vmatprep.subr.bf16.mxu0 %v3417_v10  ;;  %v3495_v10 = vld [vmem:[%s4863_s9 + $0x18] sm:$0xff]  }
 0x1f5   :  { %1247 = vmatpush1.bf16.msra.mxu0 %v3415_v11  ;;  %v3496_v11 = vld [vmem:[%s4863_s9 + $0x60] sm:$0xff]  }
 0x1f6   :  { %1248 = vmatprep.subr.bf16.mxu0 %v3420_v12  ;;  %v3497_v12 = vld [vmem:[%s4863_s9 + $0x20] sm:$0xff]  }
 0x1f9   :  { %1249 = vmatpush1.bf16.msra.mxu0 %v3418_v13  ;;  %v3498_v13 = vld [vmem:[%s4863_s9 + $0x68] sm:$0xff]  }
 0x1fa   :  { %1250 = vmatprep.subr.bf16.mxu0 %v3423_v15  ;;  %v3499_v15 = vld [vmem:[%s4863_s9 + $0x28] sm:$0xff]  }
 0x1fd   :  { %1251 = vmatpush1.bf16.msra.mxu0 %v3421_v16  ;;  %v3500_v16 = vld [vmem:[%s4863_s9 + $0x70] sm:$0xff]  }
 0x1fe   :  { %1901 = vmatprep.subr.bf16.mxu0 %v3506_v22  ;;  %v3575_v22 = vld [vmem:[%s4870_s16 + $0x64] ss:$16 sps:$4 sm:$0xff]  }
 0x200   :  { %1253 = vmatmul.mubr.bf16.vlgmr.msra.gmra.mrb[16].mxu0 %v781_v18  ;;  %v3501_v18 = vld [vmem:[%s4863_s9 + $0x30] sm:$0xff]  }
 0x201   :  { %1933 = vmatprep.mubr.bf16.mxu0 %v3701_v2  ;;  %v3472_v2 = vld [vmem:[%s4861_s7 + $0x40] sm:$0xff]   ;;  %1902 = vmatpush1.bf16.msra.mxu0 %v3504_v21 }
 0x202   :  { %3081 = vmatprep.subr.bf16.mxu1 %v3472_v2  ;;  %v3507_v2 = vld [vmem:[%s4868_s14] ss:$8 sps:$4 sm:$0xff]  }
 0x203   :  { %v3567_v21 = vld [vmem:[%s4870_s16 + $0x40] ss:$16 sps:$4 sm:$0xff]  }
 0x2d3   :  { %v1254_v32 = vpop.f32.mrb[16].mxu0 }
 0x2d4   :  { %v3125_v34 = vadd.f32 %v1254_v32, %v852_v31  ;;  %v1256_v35 = vpop.f32.mrb[17].mxu0  ;;  %v3510_v31 = vld [vmem:[%s4868_s14 + $0x10] ss:$8 sps:$4 sm:$0xff]   ;;  %v3513_v32 = vld [vmem:[%s4868_s14 + $0x20] ss:$8 sps:$4 sm:$0xff]  }
 0x2d5   :  { %v3126_v36 = vadd.f32 %v1256_v35, %v856_v14  ;;  %v1258_v37 = vpop.f32.mrb[18].mxu0  ;;  %v3515_v14 = vld [vmem:[%s4868_s14 + $0x24] ss:$8 sps:$4 sm:$0xff]   ;;  %v3516_v35 = vld [vmem:[%s4868_s14 + $0x30] ss:$8 sps:$4 sm:$0xff]  }
 0x2d6   :  { %v1261_v39 = vmax.f32 %v3125_v34, 0.0  ;;  %v1259_v40 = vpop.f32.mrb[19].mxu0  ;;  %v3518_v34 = vld [vmem:[%s4868_s14 + $0x34] ss:$8 sps:$4 sm:$0xff]   ;;  %v3519_v37 = vld [vmem:[%s4868_s14 + $0x40] ss:$8 sps:$4 sm:$0xff]  }
 0x2d7   :  { %v1262_v41 = vmax.f32 %v3126_v36, 0.0  ;;  %v3521_v36 = vld [vmem:[%s4868_s14 + $0x44] ss:$8 sps:$4 sm:$0xff]   ;;  %v3522_v40 = vld [vmem:[%s4868_s14 + $0x50] ss:$8 sps:$4 sm:$0xff]  }
 0x2d8   :  { %v1263_v43 = vpack.c.bf16 %v1261_v39, %v1261_v39  ;;  %v3524_v39 = vld [vmem:[%s4868_s14 + $0x54] ss:$8 sps:$4 sm:$0xff]  }
 0x2d9   :  { %v1264_v38 = vpack.c.bf16 %v1262_v41, %v1262_v41  ;;  %v3527_v41 = vld [vmem:[%s4868_s14 + $0x64] ss:$8 sps:$4 sm:$0xff]  }
 0x2db   :  { %1501 = vmatprep.mubr.bf16.mxu1 %v1264_v38  ;;  %v3525_v38 = vld [vmem:[%s4868_s14 + $0x60] ss:$8 sps:$4 sm:$0xff]  }
 0x2dc   :  { %1502 = vmatmul.mubr.bf16.vlgmr.msra.gmra.mrb[0].mxu1 %v1263_v43  ;;  %v3528_v43 = vld [vmem:[%s4868_s14 + $0x70] ss:$8 sps:$4 sm:$0xff]  }
 0x2dd   :  { %3082 = vmatpush3.bf16.msra.mxu1 %v3473_v42  ;;  %v3530_v42 = vld [vmem:[%s4868_s14 + $0x74] ss:$8 sps:$4 sm:$0xff]  }
 0x2de   :  { %3083 = vmatprep.subr.bf16.mxu1 %v3474_v44  ;;  %v3533_v44 = vld [vmem:[%s4868_s14 + $0x84] ss:$8 sps:$4 sm:$0xff]  }
 0x2e1   :  { %3084 = vmatpush3.bf16.msra.mxu1 %v3475_v45  ;;  %v3531_v45 = vld [vmem:[%s4868_s14 + $0x80] ss:$8 sps:$4 sm:$0xff]  }
 0x2e2   :  { %3085 = vmatprep.subr.bf16.mxu1 %v3476_v46  ;;  %v3536_v46 = vld [vmem:[%s4868_s14 + $0x94] ss:$8 sps:$4 sm:$0xff]  }
 0x2e5   :  { %3086 = vmatpush3.bf16.msra.mxu1 %v3477_v47  ;;  %v3534_v47 = vld [vmem:[%s4868_s14 + $0x90] ss:$8 sps:$4 sm:$0xff]  }
 0x2e6   :  { %3087 = vmatprep.subr.bf16.mxu1 %v3478_v48  ;;  %v3539_v48 = vld [vmem:[%s4868_s14 + $0xa4] ss:$8 sps:$4 sm:$0xff]  }
 0x2e9   :  { %3088 = vmatpush3.bf16.msra.mxu1 %v3479_v33  ;;  %v3537_v33 = vld [vmem:[%s4868_s14 + $0xa0] ss:$8 sps:$4 sm:$0xff]  }
 0x2ea   :  { %3089 = vmatprep.subr.bf16.mxu1 %v3480_v49  ;;  %v3542_v49 = vld [vmem:[%s4868_s14 + $0xb4] ss:$8 sps:$4 sm:$0xff]  }
 0x2ed   :  { %3090 = vmatpush3.bf16.msra.mxu1 %v3481_v29  ;;  %v3540_v29 = vld [vmem:[%s4868_s14 + $0xb0] ss:$8 sps:$4 sm:$0xff]  }
 0x2ee   :  { %3091 = vmatprep.subr.bf16.mxu1 %v3482_v50  ;;  %v3545_v50 = vld [vmem:[%s4868_s14 + $0xc4] ss:$8 sps:$4 sm:$0xff]  }
 0x2f1   :  { %3092 = vmatpush3.bf16.msra.mxu1 %v3483_v51  ;;  %v3543_v51 = vld [vmem:[%s4868_s14 + $0xc0] ss:$8 sps:$4 sm:$0xff]  }
 0x2f2   :  { %3093 = vmatprep.subr.bf16.mxu1 %v3484_v52  ;;  %v3548_v52 = vld [vmem:[%s4868_s14 + $0xd4] ss:$8 sps:$4 sm:$0xff]  }
 0x2f5   :  { %3094 = vmatpush3.bf16.msra.mxu1 %v3485_v27  ;;  %v3546_v27 = vld [vmem:[%s4868_s14 + $0xd0] ss:$8 sps:$4 sm:$0xff]  }
 0x2f6   :  { %3095 = vmatprep.subr.bf16.mxu1 %v3486_v53 }
 0x2f9   :  { %3096 = vmatpush3.bf16.msra.mxu1 %v3487_v54  ;;  %v2889_v54 = vld [vmem:[%s4862_s8] ss:$0 sm:$0xff] }
 0x2fa   :  { %3103 = vmatprep.subr.bf16.mxu1 %v3488_v55 }
 0x3af   :  { %v1503_v58 = vpop.f32.mrb[0].mxu1 }
 0x3b0   :  { %v1504_v59 = vadd.f32 %v1503_v58, %v1302_v57  ;;  %v1505_v60 = vpop.f32.mrb[1].mxu1 }
 0x3b1   :  { %v1506_v61 = vadd.f32 %v1505_v60, %v1306_v23  ;;  %v1507_v62 = vpop.f32.mrb[2].mxu1  ;;  %v2906_v60 = vld [vmem:[%s4864_s10] ss:$0 sm:$0xff] }
 0x3b2   :  { %v1510_v63 = vmax.f32 %v1504_v59, 0.0  ;;  %v1508_v0 = vpop.f32.mrb[3].mxu1 }
 0x3b3   :  { %v1511_v1 = vmax.f32 %v1506_v61, 0.0 }
 0x3b4   :  { %v1512_v5 = vpack.c.bf16 %v1510_v63, %v1510_v63 }
 0x3b5   :  { %v1513_v3 = vpack.c.bf16 %v1511_v1, %v1511_v1 }
 0x3b7   :  { %1681 = vmatprep.mubr.bf16.mxu1 %v1513_v3 }
 0x3b8   :  { %1682 = vmatmul.mubr.bf16.vlgmr.msra.gmra.mrb[4].mxu1 %v1512_v5 }
 0x3b9   :  { %3104 = vmatpush3.bf16.msra.mxu1 %v3489_v4  ;;  %1856 = vmatprep.mubr.bf16.mxu1 %v1513_v3 }
 0x3ba   :  { %3105 = vmatprep.subr.bf16.mxu1 %v3490_v17 }
 0x3bd   :  { %3106 = vmatpush3.bf16.msra.mxu1 %v3491_v6 }
 0x3be   :  { %3107 = vmatprep.subr.bf16.mxu1 %v3492_v7 }
 0x3c1   :  { %3108 = vmatpush3.bf16.msra.mxu1 %v3493_v8 }
 0x3c2   :  { %3109 = vmatprep.subr.bf16.mxu1 %v3494_v9  ;;  %v3551_v9 = vld [vmem:[%s4868_s14 + $0xe4] ss:$8 sps:$4 sm:$0xff]  }
 0x3c5   :  { %3110 = vmatpush3.bf16.msra.mxu1 %v3495_v10  ;;  %v3549_v10 = vld [vmem:[%s4868_s14 + $0xe0] ss:$8 sps:$4 sm:$0xff]  }
 0x3c6   :  { %3111 = vmatprep.subr.bf16.mxu1 %v3496_v11  ;;  %v3552_v11 = vld [vmem:[%s4868_s14 + $0xf0] ss:$8 sps:$4 sm:$0xff]  }
 0x3c9   :  { %3112 = vmatpush3.bf16.msra.mxu1 %v3497_v12  ;;  %v3554_v12 = vld [vmem:[%s4868_s14 + $0xf4] ss:$8 sps:$4 sm:$0xff]  }
 0x3ca   :  { %3113 = vmatprep.subr.bf16.mxu1 %v3498_v13  ;;  %v3555_v13 = vld [vmem:[%s4870_s16] ss:$16 sps:$4 sm:$0xff]  }
 0x3cd   :  { %3114 = vmatpush3.bf16.msra.mxu1 %v3499_v15  ;;  %v3557_v15 = vld [vmem:[%s4870_s16 + $0x4] ss:$16 sps:$4 sm:$0xff]  }
 0x3ce   :  { %3115 = vmatprep.subr.bf16.mxu1 %v3500_v16  ;;  %v3560_v16 = vld [vmem:[%s4870_s16 + $0xc] ss:$16 sps:$4 sm:$0xff]   ;;  %2601 = vmatprep.subr.bf16.mxu0 %v3557_v15  ;;  %v3618_v15 = vld [vmem:[%s4870_s16 + $0x148] ss:$16 sps:$4 sm:$0xff]  }
 0x3d1   :  { %3116 = vmatpush3.bf16.msra.mxu1 %v3501_v18  ;;  %v3563_v18 = vld [vmem:[%s4870_s16 + $0x24] ss:$16 sps:$4 sm:$0xff]  }
 0x3d2   :  { %3117 = vmatprep.subr.bf16.mxu1 %v3502_v19  ;;  %v3561_v19 = vld [vmem:[%s4870_s16 + $0x20] ss:$16 sps:$4 sm:$0xff]  }
 0x3d5   :  { %3118 = vmatpush3.bf16.msra.mxu1 %v3503_v20  ;;  %v3569_v20 = vld [vmem:[%s4870_s16 + $0x44] ss:$16 sps:$4 sm:$0xff]  }
 0x3d6   :  { %2150 = vmatprep.subr.bf16.mxu1 %v3509_v24  ;;  %v3581_v24 = vld [vmem:[%s4870_s16 + $0x84] ss:$16 sps:$4 sm:$0xff]  }
 0x3d8   :  { %1857 = vmatmul.mubr.bf16.vlgmr.msra.gmra.mrb[8].mxu1 %v1512_v5  ;;  %v1870_v5 = vld [vmem:[%s4865_s11] sm:$0x3] }
 0x3d9   :  { %2151 = vmatpush1.bf16.msra.mxu1 %v3507_v2  ;;  %v3573_v2 = vld [vmem:[%s4870_s16 + $0x60] ss:$16 sps:$4 sm:$0xff]  }
 0x3da   :  { %2152 = vmatprep.subr.bf16.mxu1 %v3512_v28  ;;  %v3579_v28 = vld [vmem:[%s4870_s16 + $0x80] ss:$16 sps:$4 sm:$0xff]  }
 0x3dd   :  { %2153 = vmatpush1.bf16.msra.mxu1 %v3510_v31  ;;  %v3587_v31 = vld [vmem:[%s4870_s16 + $0xa4] ss:$16 sps:$4 sm:$0xff]  }
 0x3de   :  { %2154 = vmatprep.subr.bf16.mxu1 %v3515_v14  ;;  %v3585_v14 = vld [vmem:[%s4870_s16 + $0xa0] ss:$16 sps:$4 sm:$0xff]  }
 0x3e1   :  { %2155 = vmatpush1.bf16.msra.mxu1 %v3513_v32  ;;  %v3593_v32 = vld [vmem:[%s4870_s16 + $0xc4] ss:$16 sps:$4 sm:$0xff]  }
 0x3e2   :  { %2156 = vmatprep.subr.bf16.mxu1 %v3518_v34  ;;  %v3591_v34 = vld [vmem:[%s4870_s16 + $0xc0] ss:$16 sps:$4 sm:$0xff]  }
 0x3e5   :  { %2157 = vmatpush1.bf16.msra.mxu1 %v3516_v35  ;;  %v3599_v35 = vld [vmem:[%s4870_s16 + $0xe4] ss:$16 sps:$4 sm:$0xff]  }
 0x3e6   :  { %2158 = vmatprep.subr.bf16.mxu1 %v3521_v36  ;;  %v3597_v36 = vld [vmem:[%s4870_s16 + $0xe0] ss:$16 sps:$4 sm:$0xff]  }
 0x3e9   :  { %2159 = vmatpush1.bf16.msra.mxu1 %v3519_v37  ;;  %v3605_v37 = vld [vmem:[%s4870_s16 + $0x104] ss:$16 sps:$4 sm:$0xff]  }
 0x3ea   :  { %2160 = vmatprep.subr.bf16.mxu1 %v3524_v39  ;;  %v3603_v39 = vld [vmem:[%s4870_s16 + $0x100] ss:$16 sps:$4 sm:$0xff]  }
 0x3ed   :  { %2161 = vmatpush1.bf16.msra.mxu1 %v3522_v40  ;;  %v3611_v40 = vld [vmem:[%s4870_s16 + $0x124] ss:$16 sps:$4 sm:$0xff]  }
 0x3ee   :  { %2162 = vmatprep.subr.bf16.mxu1 %v3527_v41  ;;  %v3609_v41 = vld [vmem:[%s4870_s16 + $0x120] ss:$16 sps:$4 sm:$0xff]  }
 0x3f1   :  { %2163 = vmatpush1.bf16.msra.mxu1 %v3525_v38  ;;  %v3617_v38 = vld [vmem:[%s4870_s16 + $0x144] ss:$16 sps:$4 sm:$0xff]  }
 0x3f2   :  { %2164 = vmatprep.subr.bf16.mxu1 %v3530_v42  ;;  %v3615_v42 = vld [vmem:[%s4870_s16 + $0x140] ss:$16 sps:$4 sm:$0xff]  }
 0x3f5   :  { %2165 = vmatpush1.bf16.msra.mxu1 %v3528_v43  ;;  %v3623_v43 = vld [vmem:[%s4870_s16 + $0x164] ss:$16 sps:$4 sm:$0xff]  }
 0x3f6   :  { %2166 = vmatprep.subr.bf16.mxu1 %v3533_v44  ;;  %v3621_v44 = vld [vmem:[%s4870_s16 + $0x160] ss:$16 sps:$4 sm:$0xff]  }
 0x3f9   :  { %2167 = vmatpush1.bf16.msra.mxu1 %v3531_v45  ;;  %v3629_v45 = vld [vmem:[%s4870_s16 + $0x184] ss:$16 sps:$4 sm:$0xff]  }
 0x3fa   :  { %2168 = vmatprep.subr.bf16.mxu1 %v3536_v46  ;;  %v3627_v46 = vld [vmem:[%s4870_s16 + $0x180] ss:$16 sps:$4 sm:$0xff]  }
 0x3fd   :  { %2169 = vmatpush1.bf16.msra.mxu1 %v3534_v47  ;;  %v3635_v47 = vld [vmem:[%s4870_s16 + $0x1a4] ss:$16 sps:$4 sm:$0xff]  }
 0x3fe   :  { %2170 = vmatprep.subr.bf16.mxu1 %v3539_v48  ;;  %v3633_v48 = vld [vmem:[%s4870_s16 + $0x1a0] ss:$16 sps:$4 sm:$0xff]  }
 0x401   :  { %2171 = vmatpush1.bf16.msra.mxu1 %v3537_v33  ;;  %v1876_v33 = vld [vmem:[%s4867_s13] sm:$0x3] }
 0x402   :  { %2172 = vmatprep.subr.bf16.mxu1 %v3542_v49  ;;  %v1881_v49 = vrot.slane %v1876_v33, %v4397_v26 }
 0x405   :  { %2173 = vmatpush1.bf16.msra.mxu1 %v3540_v29  ;;  %v1885_v29 = vrot.slane %v1876_v33, %v4403_v30 }
 0x406   :  { %2174 = vmatprep.subr.bf16.mxu1 %v3545_v50 }
 0x409   :  { %2175 = vmatpush1.bf16.msra.mxu1 %v3543_v51 }
 0x40a   :  { %2176 = vmatprep.subr.bf16.mxu1 %v3548_v52 }
 0x40d   :  { %2177 = vmatpush1.bf16.msra.mxu1 %v3546_v27 }
 0x40e   :  { %2178 = vmatprep.subr.bf16.mxu1 %v3551_v9  ;;  %v3608_v9 = vld [vmem:[%s4870_s16 + $0x10c] ss:$16 sps:$4 sm:$0xff]  }
 0x411   :  { %2179 = vmatpush1.bf16.msra.mxu1 %v3549_v10  ;;  %v3606_v10 = vld [vmem:[%s4870_s16 + $0x108] ss:$16 sps:$4 sm:$0xff]  }
 0x412   :  { %2180 = vmatprep.subr.bf16.mxu1 %v3554_v12  ;;  %v3612_v12 = vld [vmem:[%s4870_s16 + $0x128] ss:$16 sps:$4 sm:$0xff]  }
 0x415   :  { %2181 = vmatpush1.bf16.msra.mxu1 %v3552_v11  ;;  %v3614_v11 = vld [vmem:[%s4870_s16 + $0x12c] ss:$16 sps:$4 sm:$0xff]  }
 0x416   :  { %2642 = vmatprep.subr.bf16.mxu1 %v3560_v16  ;;  %v3626_v16 = vld [vmem:[%s4870_s16 + $0x16c] ss:$16 sps:$4 sm:$0xff]  }
 0x48b   :  { %v3097_v53 = vpop.f32.mrb[4].mxu1 }
 0x48c   :  { %v3098_v55 = vpop.f32.mrb[5].mxu1 }
 0x48d   :  { %v3099_v56 = vadd.f32 %v3098_v55, %v3097_v53  ;;  %v3100_v57 = vpop.f32.mrb[6].mxu1 }
 0x48e   :  { %v3101_v23 = vpop.f32.mrb[7].mxu1 }
 0x48f   :  { %v1684_v58 = vadd.f32 %v3099_v56, %v2889_v54  ;;  %v3558_v23 = vld [vmem:[%s4870_s16 + $0x8] ss:$16 sps:$4 sm:$0xff]  }
 0x491   :  { %1865 = vst.msk [vmem:[#allocation2] sm:$0x3] %vm1864_vm8, %v1684_v58 }
 0x4ab   :  { %v3119_v59 = vpop.f32.mrb[8].mxu1 }
 0x4ac   :  { %v3120_v61 = vpop.f32.mrb[9].mxu1 }
 0x4ad   :  { %v3121_v62 = vadd.f32 %v3120_v61, %v3119_v59  ;;  %v3122_v63 = vpop.f32.mrb[10].mxu1  ;;  %v3566_v59 = vld [vmem:[%s4870_s16 + $0x2c] ss:$16 sps:$4 sm:$0xff]  }
 0x4ae   :  { %v3123_v0 = vpop.f32.mrb[11].mxu1  ;;  %v3572_v61 = vld [vmem:[%s4870_s16 + $0x4c] ss:$16 sps:$4 sm:$0xff]  }
 0x4af   :  { %v1859_v1 = vadd.f32 %v3121_v62, %v2906_v60  ;;  %v3564_v60 = vld [vmem:[%s4870_s16 + $0x28] ss:$16 sps:$4 sm:$0xff]   ;;  %v3578_v63 = vld [vmem:[%s4870_s16 + $0x6c] ss:$16 sps:$4 sm:$0xff]  }
 0x4b0   :  { %v3570_v62 = vld [vmem:[%s4870_s16 + $0x48] ss:$16 sps:$4 sm:$0xff]  }
 0x4b1   :  { %v1867_v3 = vmul.f32 0.5, %v1859_v1  ;;  %1866 = vst.msk [vmem:[#allocation4] sm:$0x3] %vm1864_vm8, %v1859_v1  ;;  %v3576_v0 = vld [vmem:[%s4870_s16 + $0x68] ss:$16 sps:$4 sm:$0xff]  }
 0x4b2   :  { %v3584_v1 = vld [vmem:[%s4870_s16 + $0x8c] ss:$16 sps:$4 sm:$0xff]  }
 0x4b3   :  { %v1868_v4 = vmul.f32 1.442695, %v1867_v3  ;;  %v3582_v3 = vld [vmem:[%s4870_s16 + $0x88] ss:$16 sps:$4 sm:$0xff]  }
 0x4b5   :  { %3651 = vpow2.f32 %v1868_v4  ;;  %v3590_v4 = vld [vmem:[%s4870_s16 + $0xac] ss:$16 sps:$4 sm:$0xff]  }
 0x4bf   :  { %v3652_v17 = vpop.eup %3651 }
 0x4c0   :  { %v1871_v6 = vmul.f32 %v3652_v17, %v1870_v5  ;;  %v3588_v5 = vld [vmem:[%s4870_s16 + $0xa8] ss:$16 sps:$4 sm:$0xff]   ;;  %v3596_v17 = vld [vmem:[%s4870_s16 + $0xcc] ss:$16 sps:$4 sm:$0xff]  }
 0x4c2   :  { %v1872_v7 = vadd.f32 %v1871_v6, %v1684_v58  ;;  %v3594_v6 = vld [vmem:[%s4870_s16 + $0xc8] ss:$16 sps:$4 sm:$0xff]  }
 0x4c4   :  { %v1873_v8 = vpack.c.bf16 %v1872_v7, %v1872_v7  ;;  %v3602_v7 = vld [vmem:[%s4870_s16 + $0xec] ss:$16 sps:$4 sm:$0xff]  }
 0x4c6   :  { %2925 = vmatmul.mubr.msk.bf16.vlgmr.msra.gmra.mrb[20].mxu0 %vm553_vm0, %v1873_v8  ;;  %v3600_v8 = vld [vmem:[%s4870_s16 + $0xe8] ss:$16 sps:$4 sm:$0xff]  }
 0x4c7   :  { %2602 = vmatpush1.bf16.msra.mxu0 %v3555_v13  ;;  %v3620_v13 = vld [vmem:[%s4870_s16 + $0x14c] ss:$16 sps:$4 sm:$0xff]  }
 0x4c8   :  { %2603 = vmatprep.subr.bf16.mxu0 %v3563_v18  ;;  %v3624_v18 = vld [vmem:[%s4870_s16 + $0x168] ss:$16 sps:$4 sm:$0xff]  }
 0x4cb   :  { %2604 = vmatpush1.bf16.msra.mxu0 %v3561_v19  ;;  %v3632_v19 = vld [vmem:[%s4870_s16 + $0x18c] ss:$16 sps:$4 sm:$0xff]  }
 0x4cc   :  { %2605 = vmatprep.subr.bf16.mxu0 %v3569_v20  ;;  %v3630_v20 = vld [vmem:[%s4870_s16 + $0x188] ss:$16 sps:$4 sm:$0xff]  }
 0x4cf   :  { %2606 = vmatpush1.bf16.msra.mxu0 %v3567_v21  ;;  %v3638_v21 = vld [vmem:[%s4870_s16 + $0x1ac] ss:$16 sps:$4 sm:$0xff]  }
 0x4d0   :  { %2607 = vmatprep.subr.bf16.mxu0 %v3575_v22  ;;  %v3636_v22 = vld [vmem:[%s4870_s16 + $0x1a8] ss:$16 sps:$4 sm:$0xff]  }
 0x4d3   :  { %2608 = vmatpush1.bf16.msra.mxu0 %v3573_v2  ;;  %v3641_v2 = vld [vmem:[%s4870_s16 + $0x1c4] ss:$16 sps:$4 sm:$0xff]  }
 0x4d4   :  { %2609 = vmatprep.subr.bf16.mxu0 %v3581_v24  ;;  %v3644_v24 = vld [vmem:[%s4870_s16 + $0x1cc] ss:$16 sps:$4 sm:$0xff]  }
 0x4d7   :  { %2610 = vmatpush1.bf16.msra.mxu0 %v3579_v28  ;;  %v3639_v28 = vld [vmem:[%s4870_s16 + $0x1c0] ss:$16 sps:$4 sm:$0xff]  }
 0x4d8   :  { %2611 = vmatprep.subr.bf16.mxu0 %v3587_v31  ;;  %v3642_v31 = vld [vmem:[%s4870_s16 + $0x1c8] ss:$16 sps:$4 sm:$0xff]  }
 0x4db   :  { %2612 = vmatpush1.bf16.msra.mxu0 %v3585_v14  ;;  %v3645_v14 = vld [vmem:[%s4870_s16 + $0x1e0] ss:$16 sps:$4 sm:$0xff]  }
 0x4dc   :  { %2613 = vmatprep.subr.bf16.mxu0 %v3593_v32  ;;  %v3647_v32 = vld [vmem:[%s4870_s16 + $0x1e4] ss:$16 sps:$4 sm:$0xff]  }
 0x4df   :  { %2614 = vmatpush1.bf16.msra.mxu0 %v3591_v34  ;;  %v3648_v34 = vld [vmem:[%s4870_s16 + $0x1e8] ss:$16 sps:$4 sm:$0xff]  }
 0x4e0   :  { %2615 = vmatprep.subr.bf16.mxu0 %v3599_v35  ;;  %v3650_v35 = vld [vmem:[%s4870_s16 + $0x1ec] ss:$16 sps:$4 sm:$0xff]   ;;  %s3709_s16 = smov [#allocation2]  }
 0x4e3   :  { %2616 = vmatpush1.bf16.msra.mxu0 %v3597_v36  ;;  %v1978_v36 = vld [vmem:[%s4869_s15] sm:$0x3]  ;;  %s2729_s15 = sshll.u32 %s3709_s16, 4  ;;  %s2730_s15 = int_to_ptr.vmem [resolvable:$true] %s2729_s15 }
 0x4e4   :  { %2617 = vmatprep.subr.bf16.mxu0 %v3605_v37  ;;  %v1983_v37 = vrot.slane %v1978_v36, %v4397_v26  ;;  %s3653_s26 = scalar_lea.vmem %s2730_s15, 32  ;;  %p3658_p1 = scmp.lt.s32.totalorder %s2730_s15, %s2730_s15 }
 0x4e5   :  { %p3654_p0 = scmp.ne.s32.totalorder %s2730_s15, %s3653_s26  ;;  %p3659_p2 = scmp.lt.s32.totalorder %s3653_s26, %s3653_s26 }
 0x4e7   :  { %2618 = vmatpush1.bf16.msra.mxu0 %v3603_v39  ;;  %v1987_v39 = vrot.slane %v1978_v36, %v4403_v30  ;;  %p3660_p3 = por %p3659_p2, %p3658_p1 }
 0x4e8   :  { %2619 = vmatprep.subr.bf16.mxu0 %v3611_v40 }
 0x4e9   :  { %p3661_p4 = pnand %p3660_p3, %p3654_p0 }
 0x4eb   :  { %2620 = vmatpush1.bf16.msra.mxu0 %v3609_v41 }
 0x4ec   :  { %2621 = vmatprep.subr.bf16.mxu0 %v3617_v38 }
 0x4ef   :  { %2622 = vmatpush1.bf16.msra.mxu0 %v3615_v42 }
 0x4f0   :  { %2623 = vmatprep.subr.bf16.mxu0 %v3623_v43 }
 0x4f3   :  { %2624 = vmatpush1.bf16.msra.mxu0 %v3621_v44 }
 0x4f4   :  { %2625 = vmatprep.subr.bf16.mxu0 %v3629_v45 }
 0x4f7   :  { %2626 = vmatpush1.bf16.msra.mxu0 %v3627_v46 }
 0x4f8   :  { %2627 = vmatprep.subr.bf16.mxu0 %v3635_v47 }
 0x4fb   :  { %2628 = vmatpush1.bf16.msra.mxu0 %v3633_v48 }
 0x4fc   :  { %2629 = vmatprep.subr.bf16.mxu0 %v3641_v2 }
 0x4ff   :  { %2630 = vmatpush1.bf16.msra.mxu0 %v3639_v28 }
 0x500   :  { %2631 = vmatprep.subr.bf16.mxu0 %v3647_v32 }
 0x503   :  { %2632 = vmatpush1.bf16.msra.mxu0 %v3645_v14 }
 0x599   :  { %v1935_v50 = vpop.f32.mrb[20].mxu0 }
 0x59a   :  { %v1936_v51 = vadd.f32 %v1935_v50, %v1881_v49  ;;  %v1937_v52 = vpop.f32.mrb[21].mxu0 }
 0x59b   :  { %v1938_v27 = vadd.f32 %v1937_v52, %v1885_v29  ;;  %v1939_v53 = vpop.f32.mrb[22].mxu0 }
 0x59c   :  { %v1942_v54 = vmax.f32 %v1936_v51, 0.0  ;;  %v1940_v55 = vpop.f32.mrb[23].mxu0 }
 0x59d   :  { %v1943_v56 = vmax.f32 %v1938_v27, 0.0 }
 0x59e   :  { %v1944_v58 = vpack.c.bf16 %v1942_v54, %v1942_v54 }
 0x59f   :  { %v1945_v57 = vpack.c.bf16 %v1943_v56, %v1943_v56 }
 0x5a1   :  { %2182 = vmatprep.mubr.bf16.mxu1 %v1945_v57 }
 0x5a2   :  { %2183 = vmatmul.mubr.bf16.vlgmr.msra.gmra.mrb[12].mxu1 %v1944_v58 }
 0x5a3   :  { %2643 = vmatpush1.bf16.msra.mxu1 %v3558_v23 }
 0x5a4   :  { %2644 = vmatprep.subr.bf16.mxu1 %v3566_v59 }
 0x5a7   :  { %2645 = vmatpush1.bf16.msra.mxu1 %v3564_v60 }
 0x5a8   :  { %2646 = vmatprep.subr.bf16.mxu1 %v3572_v61 }
 0x5ab   :  { %2647 = vmatpush1.bf16.msra.mxu1 %v3570_v62 }
 0x5ac   :  { %2648 = vmatprep.subr.bf16.mxu1 %v3578_v63 }
 0x5af   :  { %2649 = vmatpush1.bf16.msra.mxu1 %v3576_v0 }
 0x5b0   :  { %2650 = vmatprep.subr.bf16.mxu1 %v3584_v1 }
 0x5b3   :  { %2651 = vmatpush1.bf16.msra.mxu1 %v3582_v3 }
 0x5b4   :  { %2652 = vmatprep.subr.bf16.mxu1 %v3590_v4 }
 0x5b7   :  { %2653 = vmatpush1.bf16.msra.mxu1 %v3588_v5 }
 0x5b8   :  { %2654 = vmatprep.subr.bf16.mxu1 %v3596_v17 }
 0x5bb   :  { %2655 = vmatpush1.bf16.msra.mxu1 %v3594_v6 }
 0x5bc   :  { %2656 = vmatprep.subr.bf16.mxu1 %v3602_v7 }
 0x5bf   :  { %2657 = vmatpush1.bf16.msra.mxu1 %v3600_v8 }
 0x5c0   :  { %2658 = vmatprep.subr.bf16.mxu1 %v3608_v9 }
 0x5c3   :  { %2659 = vmatpush1.bf16.msra.mxu1 %v3606_v10 }
 0x5c4   :  { %2660 = vmatprep.subr.bf16.mxu1 %v3614_v11 }
 0x5c7   :  { %2661 = vmatpush1.bf16.msra.mxu1 %v3612_v12 }
 0x5c8   :  { %2662 = vmatprep.subr.bf16.mxu1 %v3620_v13 }
 0x5cb   :  { %2663 = vmatpush1.bf16.msra.mxu1 %v3618_v15 }
 0x5cc   :  { %2664 = vmatprep.subr.bf16.mxu1 %v3626_v16 }
 0x5cf   :  { %2665 = vmatpush1.bf16.msra.mxu1 %v3624_v18 }
 0x5d0   :  { %2666 = vmatprep.subr.bf16.mxu1 %v3632_v19 }
 0x5d3   :  { %2667 = vmatpush1.bf16.msra.mxu1 %v3630_v20 }
 0x5d4   :  { %2668 = vmatprep.subr.bf16.mxu1 %v3638_v21 }
 0x5d7   :  { %2669 = vmatpush1.bf16.msra.mxu1 %v3636_v22 }
 0x5d8   :  { %2670 = vmatprep.subr.bf16.mxu1 %v3644_v24 }
 0x5db   :  { %2671 = vmatpush1.bf16.msra.mxu1 %v3642_v31 }
 0x5dc   :  { %2672 = vmatprep.subr.bf16.mxu1 %v3650_v35 }
 0x5df   :  { %2673 = vmatpush1.bf16.msra.mxu1 %v3648_v34 }
 0x675   :  { %v2184_v40 = vpop.f32.mrb[12].mxu1 }
 0x676   :  { %v2185_v41 = vadd.f32 %v2184_v40, %v1983_v37  ;;  %v2186_v38 = vpop.f32.mrb[13].mxu1 }
 0x677   :  { %v2187_v42 = vadd.f32 %v2186_v38, %v1987_v39  ;;  %v2188_v43 = vpop.f32.mrb[14].mxu1 }
 0x678   :  { %v2191_v44 = vmax.f32 %v2185_v41, 0.0  ;;  %v2189_v45 = vpop.f32.mrb[15].mxu1 }
 0x679   :  { %v2192_v46 = vmax.f32 %v2187_v42, 0.0 }
 0x67a   :  { %v2193_v48 = vpack.c.bf16 %v2191_v44, %v2191_v44 }
 0x67b   :  { %v2194_v47 = vpack.c.bf16 %v2192_v46, %v2192_v46 }
 0x67d   :  { %2633 = vmatprep.mubr.bf16.mxu0 %v2194_v47  ;;  %2674 = vmatprep.mubr.bf16.mxu1 %v2194_v47 }
 0x67e   :  { %2634 = vmatmul.mubr.bf16.vlgmr.msra.gmra.mrb[24].mxu0 %v2193_v48  ;;  %2675 = vmatmul.mubr.bf16.vlgmr.msra.gmra.mrb[16].mxu1 %v2193_v48 }
 0x67f   :  { %3664 = shalt.err (!%p3661_p4)
}
 0x680   :  { %s3665_s8 = scalar_lea.hbm %s4873_s19, 32 }
 0x681   :  { %p3666_p5 = scmp.ne.s32.totalorder %s4873_s19, %s3665_s8  ;;  %p3669_p6 = scmp.lt.u32.totalorder %s3665_s8, %s4873_s19 }
 0x683   :  { %p3671_p7 = pnand %p3669_p6, %p3666_p5 }
 0x685   :  { %3674 = shalt.err (!%p3671_p7)
}
 0x686   :  { %2732 = dma.vmem_to_hbm [thread:$0]  %s2730_s15, 32, %s4873_s19, [#allocation3]  }
 0x687   :  { %s3675_s9 = scalar_lea.vmem %s2740_s24, 32  ;;  %p3680_p9 = scmp.lt.s32.totalorder %s2740_s24, %s2740_s24 }
 0x688   :  { %p3676_p8 = scmp.ne.s32.totalorder %s2740_s24, %s3675_s9  ;;  %p3681_p10 = scmp.lt.s32.totalorder %s3675_s9, %s3675_s9 }
 0x68a   :  { %p3682_p11 = por %p3681_p10, %p3680_p9 }
 0x68c   :  { %p3683_p12 = pnand %p3682_p11, %p3676_p8 }
 0x68e   :  { %3686 = shalt.err (!%p3683_p12)
}
 0x68f   :  { %s3687_s6 = scalar_lea.hbm %s4874_s20, 32 }
 0x690   :  { %p3688_p13 = scmp.ne.s32.totalorder %s4874_s20, %s3687_s6  ;;  %p3691_p0 = scmp.lt.u32.totalorder %s3687_s6, %s4874_s20 }
 0x692   :  { %p3693_p1 = pnand %p3691_p0, %p3688_p13 }
 0x694   :  { %3696 = shalt.err (!%p3693_p1)
}
 0x695   :  { %2742 = dma.vmem_to_hbm [thread:$0]  %s2740_s24, 32, %s4874_s20, [#allocation5]   ;;  %v2271_v33 = vsub.s32 2, %v4394_v25  ;;  %v2259_v49 = vld [vmem:[%s4871_s17] sm:$0xf]  ;;  %v2275_v29 = vsub.s32 3, %v4394_v25 }
 0x696   :  { %v3711_v50 = vmov 1966171168   ;;  %v2264_v52 = vrot.slane %v2259_v49, %v4397_v26  ;;  %v2268_v53 = vrot.slane %v2259_v49, %v4403_v30 }
 0x697   :  { %v2698_v51 = vunpack.c.l.s4 %v3711_v50  ;;  %v2272_v27 = vrot.slane %v2259_v49, %v2271_v33  ;;  %v2276_v54 = vrot.slane %v2259_v49, %v2275_v29 }
 0x699   :  { %v2699_v57 = vunpack.c.0.s8 %v2698_v51 }
 0x69b   :  { %v2702_v17 = vsub.s32 %v2699_v57, %v4394_v25 }
 0x751   :  { %v2635_v55 = vpop.f32.mrb[24].mxu0  ;;  %v2676_v56 = vpop.f32.mrb[16].mxu1 }
 0x752   :  { %v2636_v23 = vadd.f32 %v2635_v55, %v2264_v52  ;;  %v2677_v58 = vadd.f32 %v2676_v56, %v2272_v27  ;;  %v2637_v59 = vpop.f32.mrb[25].mxu0  ;;  %v2678_v60 = vpop.f32.mrb[17].mxu1 }
 0x753   :  { %v2638_v61 = vadd.f32 %v2637_v59, %v2268_v53  ;;  %v2679_v62 = vadd.f32 %v2678_v60, %v2276_v54  ;;  %v2639_v63 = vpop.f32.mrb[26].mxu0  ;;  %v2680_v0 = vpop.f32.mrb[18].mxu1 }
 0x754   :  { %v2683_v1 = vmax.f32 %v2636_v23, 0.0  ;;  %v2685_v3 = vmax.f32 %v2677_v58, 0.0  ;;  %v2640_v4 = vpop.f32.mrb[27].mxu0  ;;  %v2681_v5 = vpop.f32.mrb[19].mxu1 }
 0x755   :  { %v2684_v26 = vmax.f32 %v2638_v61, 0.0  ;;  %v2686_v30 = vmax.f32 %v2679_v62, 0.0 }
 0x757   :  { %v3022_v6 = vpack.c.bf16 %v2684_v26, %v2683_v1  ;;  %v3023_v7 = vpack.c.bf16 %v2686_v30, %v2685_v3 }
 0x759   :  { %v2703_v8 = vrot.slane %v3022_v6, %v2702_v17  ;;  %v2710_v9 = vrot.slane %v3023_v7, %v2702_v17 }
 0x75b   :  { %v2711_v10 = vcombine.low %v2703_v8, %v2710_v9 }
 0x75d   :  { %3024 = vst.sshfl [vmem:[%s4872_s18] sm:$0x55 pattern:$0x73625140] %v2711_v10 }
 0x75e   :  { %3697 = dma.done.wait [#allocation3], 32  }
 0x75f   :  { %3698 = vsyncadd [#allocation3], 4294967264 }
 0x760   :  { %3699 = dma.done.wait [#allocation5], 32  }
 0x761   :  { %3700 = vsyncadd [#allocation5], 4294967264 }
 0x762   :  { %2751 = vsyncpa [#allocation3], 1 }
 0x763   :  { %2752 = vsyncpa [#allocation5], 1 }

// kernel: vaefc_forward.12
= control target key start
LH: loop header
LB: loop body
LE: loop exit
PB: predicated region body
PF: predicated region fallthrough
CT: control target
= control target key end

     0   :  { %v972_v1 = vmov 0   ;;  %vm407_vm0 = vcmask 261120   ;;  %vm706_vm1 = vcmask 257024   ;;  %s1272_s1 = inlined_call_operand.vmem [shape: bf16[288,32], index: 1, kind: input, shape index: {}]   ;;  %s1273_s0 = inlined_call_operand.vmem [shape: bf16[128,288], index: 0, kind: input, shape index: {}]   ;;  %s1274_s2 = inlined_call_operand.vmem [shape: f32[128,1], index: 2, kind: input, shape index: {}]   ;;  %s1275_s3 = inlined_call_operand.vmem [shape: bf16[128,32], index: 3, kind: output, shape index: {}]  }
   0x1   :  { %v922_v0 = vld [vmem:[%s1272_s1 + $0x40] sm:$0xff]   ;;  %921 = vset.pattern.permute.xlu1 %v972_v1  ;;  %920 = vset.pattern.permute.xlu0 %v972_v1  ;;  %v924_v3 = vld [vmem:[%s1272_s1 + $0x48] sm:$0xff]   ;;  %v926_v5 = vld [vmem:[%s1272_s1 + $0x50] sm:$0xff]  }
   0x2   :  { %v923_v2 = vld [vmem:[%s1272_s1] sm:$0xff]   ;;  %809 = vmatprep.subr.bf16.mxu0 %v922_v0  ;;  %903 = vmatprep.subr.bf16.mxu1 %v922_v0  ;;  %v925_v4 = vld [vmem:[%s1272_s1 + $0x8] sm:$0xff]   ;;  %v927_v6 = vld [vmem:[%s1272_s1 + $0x10] sm:$0xff]  }
   0x3   :  { %810 = vmatpush3.bf16.msra.mxu0 %v923_v2  ;;  %911 = vmatpush3.bf16.msra.mxu1 %v923_v2  ;;  %v928_v7 = vld [vmem:[%s1272_s1 + $0x58] sm:$0xff]   ;;  %v930_v9 = vld [vmem:[%s1272_s1 + $0x60] sm:$0xff]   ;;  %v932_v11 = vld [vmem:[%s1272_s1 + $0x68] sm:$0xff]  }
   0x4   :  { %811 = vmatprep.subr.bf16.mxu0 %v924_v3  ;;  %904 = vmatprep.subr.bf16.mxu1 %v924_v3  ;;  %v929_v8 = vld [vmem:[%s1272_s1 + $0x18] sm:$0xff]   ;;  %v931_v10 = vld [vmem:[%s1272_s1 + $0x20] sm:$0xff]   ;;  %v933_v14 = vld [vmem:[%s1272_s1 + $0x28] sm:$0xff]  }
   0x5   :  { %v940_v12 = vld [vmem:[%s1273_s0 + $0x4] ss:$12 sps:$4 sm:$0xff]   ;;  %v943_v13 = vld [vmem:[%s1273_s0 + $0x94] ss:$12 sps:$4 sm:$0xff]   ;;  %v936_v17 = vld [vmem:[%s1272_s1 + $0x78] sm:$0xff]  }
   0x6   :  { %v934_v15 = vld [vmem:[%s1272_s1 + $0x70] sm:$0xff]   ;;  %464 = vmatprep.mubr.bf16.mxu0 %v940_v12  ;;  %512 = vmatprep.mubr.bf16.mxu1 %v943_v13  ;;  %v937_v18 = vld [vmem:[%s1272_s1 + $0x38] sm:$0xff]   ;;  %v938_v19 = vld [vmem:[%s1273_s0] ss:$12 sps:$4 sm:$0xff]  }
   0x7   :  { %812 = vmatpush3.bf16.msra.mxu0 %v925_v4  ;;  %912 = vmatpush3.bf16.msra.mxu1 %v925_v4  ;;  %v935_v16 = vld [vmem:[%s1272_s1 + $0x30] sm:$0xff]   ;;  %v944_v20 = vld [vmem:[%s1272_s1 + $0x80] sm:$0xff]   ;;  %v945_v22 = vld [vmem:[%s1273_s0 + $0x1c] ss:$12 sps:$4 sm:$0xff]  }
   0x8   :  { %813 = vmatprep.subr.bf16.mxu0 %v926_v5  ;;  %905 = vmatprep.subr.bf16.mxu1 %v926_v5  ;;  %v941_v21 = vld [vmem:[%s1273_s0 + $0x90] ss:$12 sps:$4 sm:$0xff]   ;;  %v947_v23 = vld [vmem:[%s1273_s0 + $0xac] ss:$12 sps:$4 sm:$0xff]   ;;  %v83_v26 = vld [vmem:[%s1274_s2] sm:$0xff] }
   0x9   :  { %v951_v24 = vld [vmem:[%s1272_s1 + $0x88] sm:$0xff]   ;;  %v85_v25 = vld [vmem:[%s1274_s2 + $0x10] sm:$0xff]  ;;  %v949_v27 = vld [vmem:[%s1273_s0 + $0x18] ss:$12 sps:$4 sm:$0xff]   ;;  %101 = vperm.xlu0 %920, %v83_v26  }
   0xa   :  { %111 = vperm.xlu1 %921, %v85_v25   ;;  %v950_v28 = vld [vmem:[%s1273_s0 + $0xa8] ss:$12 sps:$4 sm:$0xff]   ;;  %v86_v29 = vld [vmem:[%s1274_s2 + $0x18] sm:$0xff]  ;;  %v87_v34 = vld [vmem:[%s1274_s2 + $0x20] sm:$0xff] }
   0xb   :  { %814 = vmatpush3.bf16.msra.mxu0 %v927_v6  ;;  %913 = vmatpush3.bf16.msra.mxu1 %v927_v6  ;;  %v952_v30 = vld [vmem:[%s1273_s0 + $0x34] ss:$12 sps:$4 sm:$0xff]   ;;  %v84_v32 = vld [vmem:[%s1274_s2 + $0x8] sm:$0xff]  ;;  %v955_v35 = vld [vmem:[%s1273_s0 + $0x30] ss:$12 sps:$4 sm:$0xff]  }
   0xc   :  { %815 = vmatprep.subr.bf16.mxu0 %v928_v7  ;;  %906 = vmatprep.subr.bf16.mxu1 %v928_v7  ;;  %v954_v31 = vld [vmem:[%s1273_s0 + $0x8] ss:$12 sps:$4 sm:$0xff]   ;;  %v956_v36 = vld [vmem:[%s1273_s0 + $0x20] ss:$12 sps:$4 sm:$0xff]   ;;  %v90_v37 = vld [vmem:[%s1274_s2 + $0x38] sm:$0xff] }
   0xd   :  { %v88_v33 = vld [vmem:[%s1274_s2 + $0x28] sm:$0xff]  ;;  %106 = vperm.xlu0 %920, %v84_v32   ;;  %v959_v39 = vld [vmem:[%s1273_s0 + $0x38] ss:$12 sps:$4 sm:$0xff]   ;;  %v89_v40 = vld [vmem:[%s1274_s2 + $0x30] sm:$0xff] }
   0xe   :  { %116 = vperm.xlu1 %921, %v86_v29   ;;  %v957_v38 = vld [vmem:[%s1273_s0 + $0x4c] ss:$12 sps:$4 sm:$0xff]   ;;  %v91_v42 = vld [vmem:[%s1274_s2 + $0x40] sm:$0xff]  ;;  %v960_v43 = vld [vmem:[%s1273_s0 + $0x48] ss:$12 sps:$4 sm:$0xff]  }
   0xf   :  { %816 = vmatpush3.bf16.msra.mxu0 %v929_v8  ;;  %914 = vmatpush3.bf16.msra.mxu1 %v929_v8  ;;  %v92_v41 = vld [vmem:[%s1274_s2 + $0x48] sm:$0xff]  ;;  %v961_v44 = vld [vmem:[%s1273_s0 + $0x50] ss:$12 sps:$4 sm:$0xff]   ;;  %v95_v50 = vld [vmem:[%s1274_s2 + $0x60] sm:$0xff] }
  0x10   :  { %817 = vmatprep.subr.bf16.mxu0 %v930_v9  ;;  %907 = vmatprep.subr.bf16.mxu1 %v930_v9  ;;  %v94_v45 = vld [vmem:[%s1274_s2 + $0x58] sm:$0xff]  ;;  %v962_v46 = vld [vmem:[%s1273_s0 + $0x64] ss:$12 sps:$4 sm:$0xff]   ;;  %v964_v47 = vld [vmem:[%s1273_s0 + $0x68] ss:$12 sps:$4 sm:$0xff]  }
  0x11   :  { %121 = vperm.xlu0 %920, %v87_v34   ;;  %v93_v48 = vld [vmem:[%s1274_s2 + $0x50] sm:$0xff]  ;;  %v96_v49 = vld [vmem:[%s1274_s2 + $0x68] sm:$0xff]  ;;  %v98_v53 = vld [vmem:[%s1274_s2 + $0x78] sm:$0xff] }
  0x12   :  { %126 = vperm.xlu1 %921, %v88_v33   ;;  %v965_v51 = vld [vmem:[%s1273_s0 + $0x60] ss:$12 sps:$4 sm:$0xff]   ;;  %v967_v54 = vld [vmem:[%s1273_s0 + $0x7c] ss:$12 sps:$4 sm:$0xff]   ;;  %v969_v55 = vld [vmem:[%s1273_s0 + $0x98] ss:$12 sps:$4 sm:$0xff]  }
  0x13   :  { %818 = vmatpush3.bf16.msra.mxu0 %v931_v10  ;;  %915 = vmatpush3.bf16.msra.mxu1 %v931_v10  ;;  %v966_v52 = vld [vmem:[%s1273_s0 + $0x80] ss:$12 sps:$4 sm:$0xff]   ;;  %v97_v56 = vld [vmem:[%s1274_s2 + $0x70] sm:$0xff]  ;;  %v970_v57 = vld [vmem:[%s1273_s0 + $0x78] ss:$12 sps:$4 sm:$0xff]  }
  0x14   :  { %819 = vmatprep.subr.bf16.mxu0 %v932_v11  ;;  %908 = vmatprep.subr.bf16.mxu1 %v932_v11  ;;  %v971_v58 = vld [vmem:[%s1273_s0 + $0xb0] ss:$12 sps:$4 sm:$0xff]  }
  0x15   :  { %131 = vperm.xlu0 %920, %v89_v40  }
  0x16   :  { %136 = vperm.xlu1 %921, %v90_v37  }
  0x17   :  { %820 = vmatpush3.bf16.msra.mxu0 %v933_v14  ;;  %916 = vmatpush3.bf16.msra.mxu1 %v933_v14 }
  0x18   :  { %821 = vmatprep.subr.bf16.mxu0 %v934_v15  ;;  %909 = vmatprep.subr.bf16.mxu1 %v934_v15 }
  0x19   :  { %141 = vperm.xlu0 %920, %v91_v42  }
  0x1a   :  { %146 = vperm.xlu1 %921, %v92_v41  }
  0x1b   :  { %822 = vmatpush3.bf16.msra.mxu0 %v935_v16  ;;  %917 = vmatpush3.bf16.msra.mxu1 %v935_v16 }
  0x1c   :  { %823 = vmatprep.subr.bf16.mxu0 %v936_v17  ;;  %910 = vmatprep.subr.bf16.mxu1 %v936_v17 }
  0x1d   :  { %151 = vperm.xlu0 %920, %v93_v48  }
  0x1e   :  { %156 = vperm.xlu1 %921, %v94_v45  }
  0x1f   :  { %824 = vmatpush3.bf16.msra.mxu0 %v937_v18  ;;  %918 = vmatpush3.bf16.msra.mxu1 %v937_v18 }
  0x20   :  { %883 = vmatprep.subr.bf16.mxu1 %v944_v20 }
  0x21   :  { %161 = vperm.xlu0 %920, %v95_v50  }
  0x22   :  { %465 = vmatmul.mubr.bf16.vlgmr.msra.gmra.mrb[0].mxu0 %v938_v19  ;;  %513 = vmatmul.mubr.bf16.vlgmr.msra.gmra.mrb[0].mxu1 %v941_v21 }
  0x23   :  { %884 = vmatpush3.bf16.msra.mxu1 %v944_v20  ;;  %472 = vmatprep.mubr.bf16.mxu0 %v945_v22 }
  0x24   :  { %520 = vmatprep.mubr.bf16.mxu1 %v947_v23  ;;  %885 = vmatprep.subr.bf16.mxu1 %v951_v24 }
  0x25   :  { %166 = vperm.xlu1 %921, %v96_v49   ;;  %171 = vperm.xlu0 %920, %v97_v56  }
  0x27   :  { %886 = vmatpush3.bf16.msra.mxu1 %v951_v24 }
  0x29   :  { %176 = vperm.xlu1 %921, %v98_v53  }
  0x2a   :  { %473 = vmatmul.mubr.bf16.gmra.mrb[4].mxu0 %v949_v27  ;;  %521 = vmatmul.mubr.bf16.gmra.mrb[4].mxu1 %v950_v28 }
  0x2b   :  { %480 = vmatprep.mubr.bf16.mxu0 %v952_v30  ;;  %887 = vmatprep.mubr.msk.bf16.mxu1 %vm407_vm0, %v954_v31 }
  0x32   :  { %481 = vmatmul.mubr.bf16.gmra.mrb[8].mxu0 %v955_v35  ;;  %888 = vmatmul.mubr.msk.bf16.vlgmr.msra.gmra.mrb[8].mxu1 %vm407_vm0, %v956_v36 }
  0x33   :  { %488 = vmatprep.mubr.bf16.mxu0 %v957_v38  ;;  %891 = vmatprep.mubr.msk.bf16.mxu1 %vm407_vm0, %v959_v39 }
  0x3a   :  { %489 = vmatmul.mubr.bf16.gmra.mrb[12].mxu0 %v960_v43  ;;  %892 = vmatmul.mubr.msk.bf16.gmra.mrb[12].mxu1 %vm407_vm0, %v961_v44 }
  0x3b   :  { %496 = vmatprep.mubr.bf16.mxu0 %v962_v46  ;;  %895 = vmatprep.mubr.msk.bf16.mxu1 %vm407_vm0, %v964_v47 }
  0x42   :  { %497 = vmatmul.mubr.bf16.gmra.mrb[16].mxu0 %v965_v51  ;;  %896 = vmatmul.mubr.msk.bf16.gmra.mrb[16].mxu1 %vm407_vm0, %v966_v52 }
  0x43   :  { %504 = vmatprep.mubr.bf16.mxu0 %v967_v54  ;;  %899 = vmatprep.mubr.msk.bf16.mxu1 %vm407_vm0, %v969_v55 }
  0x4a   :  { %505 = vmatmul.mubr.bf16.gmra.mrb[20].mxu0 %v970_v57  ;;  %900 = vmatmul.mubr.msk.bf16.gmra.mrb[20].mxu1 %vm407_vm0, %v971_v58 }
  0x88   :  { %v102_v60 = vpop.permute.xlu0 %101 }
  0x89   :  { %v112_v59 = vpop.permute.xlu1 %111 }
  0x8c   :  { %v107_v62 = vpop.permute.xlu0 %106 }
  0x8d   :  { %v117_v61 = vpop.permute.xlu1 %116 }
  0x90   :  { %v1177_v0 = vpop.permute.xlu0 %121 }
  0x91   :  { %v1175_v63 = vpop.permute.xlu1 %126 }
  0x94   :  { %v132_v14 = vpop.permute.xlu0 %131 }
  0x95   :  { %v1183_v13 = vpop.permute.xlu1 %136 }
  0x98   :  { %v1191_v28 = vpop.permute.xlu0 %141 }
  0x99   :  { %v1189_v27 = vpop.permute.xlu1 %146 }
  0x9c   :  { %v1195_v54 = vpop.permute.xlu0 %151 }
  0x9d   :  { %v1193_v53 = vpop.permute.xlu1 %156 }
  0xf5   :  { %v825_v1 = vpop.f32.mrb[0].mxu0  ;;  %v861_v2 = vpop.f32.mrb[0].mxu1 }
  0xf6   :  { %v826_v3 = vpop.f32.mrb[1].mxu0  ;;  %v862_v4 = vpop.f32.mrb[1].mxu1 }
  0xf7   :  { %v827_v5 = vadd.f32 %v826_v3, %v825_v1  ;;  %v828_v6 = vpop.f32.mrb[2].mxu0  ;;  %v1179_v7 = vadd.f32 %v862_v4, %v861_v2  ;;  %v864_v8 = vpop.f32.mrb[2].mxu1 }
  0xf8   :  { %v829_v9 = vpop.f32.mrb[3].mxu0  ;;  %v865_v10 = vpop.f32.mrb[3].mxu1 }
  0xf9   :  { %v830_v11 = vadd.f32 %v829_v9, %v828_v6  ;;  %v1181_v12 = vadd.f32 %v865_v10, %v864_v8  ;;  %v467_v32 = vadd.f32 %v827_v5, %v102_v60 }
  0xfb   :  { %v470_v41 = vadd.f32 %v830_v11, %v107_v62 }
  0xfd   :  { %v831_v15 = vpop.f32.mrb[4].mxu0  ;;  %v867_v16 = vpop.f32.mrb[4].mxu1 }
  0xfe   :  { %v832_v17 = vpop.f32.mrb[5].mxu0  ;;  %v868_v18 = vpop.f32.mrb[5].mxu1 }
  0xff   :  { %v833_v19 = vadd.f32 %v832_v17, %v831_v15  ;;  %v834_v20 = vpop.f32.mrb[6].mxu0  ;;  %v1185_v21 = vadd.f32 %v868_v18, %v867_v16  ;;  %v870_v22 = vpop.f32.mrb[6].mxu1 }
 0x100   :  { %v835_v23 = vpop.f32.mrb[7].mxu0  ;;  %v871_v24 = vpop.f32.mrb[7].mxu1 }
 0x101   :  { %v836_v25 = vadd.f32 %v835_v23, %v834_v20  ;;  %v1187_v26 = vadd.f32 %v871_v24, %v870_v22  ;;  %v475_v29 = vadd.f32 %v833_v19, %v112_v59  ;;  %v167_v18 = vpop.permute.xlu1 %166  ;;  %v162_v19 = vpop.permute.xlu0 %161 }
 0x103   :  { %v478_v36 = vadd.f32 %v836_v25, %v117_v61 }
 0x105   :  { %v837_v30 = vpop.f32.mrb[8].mxu0  ;;  %v889_v31 = vpop.f32.mrb[8].mxu1 }
 0x106   :  { %v572_v33 = vadd.f32 %v889_v31, %v475_v29  ;;  %v838_v34 = vpop.f32.mrb[9].mxu0  ;;  %v563_v35 = vpop.f32.mrb[9].mxu1 }
 0x107   :  { %v839_v37 = vadd.f32 %v838_v34, %v837_v30  ;;  %v564_v38 = vadd.f32 %v563_v35, %v467_v32  ;;  %v840_v39 = vpop.f32.mrb[10].mxu0  ;;  %v890_v40 = vpop.f32.mrb[10].mxu1 }
 0x108   :  { %v628_v42 = vmax.f32 %v572_v33, 0.0  ;;  %v575_v43 = vadd.f32 %v890_v40, %v478_v36  ;;  %v841_v44 = vpop.f32.mrb[11].mxu0  ;;  %v566_v45 = vpop.f32.mrb[11].mxu1 }
 0x109   :  { %v626_v46 = vmax.f32 %v564_v38, 0.0  ;;  %v842_v47 = vadd.f32 %v841_v44, %v840_v39  ;;  %v567_v48 = vadd.f32 %v566_v45, %v470_v41  ;;  %v483_v59 = vadd.f32 %v839_v37, %v1177_v0  ;;  %v172_v35 = vpop.permute.xlu0 %171  ;;  %v177_v39 = vpop.permute.xlu1 %176 }
 0x10a   :  { %v795_v49 = vpack.c.bf16 %v628_v42, %v628_v42  ;;  %v629_v50 = vmax.f32 %v575_v43, 0.0  ;;  %v523_v42 = vadd.f32 %v1185_v21, %v172_v35  ;;  %v515_v43 = vadd.f32 %v1179_v7, %v162_v19 }
 0x10b   :  { %v793_v51 = vpack.c.bf16 %v626_v46, %v626_v46  ;;  %v627_v52 = vmax.f32 %v567_v48, 0.0  ;;  %v486_v4 = vadd.f32 %v842_v47, %v1175_v63 }
 0x10c   :  { %709 = vst.msk [vmem:[%s1275_s3 + $0x8] sm:$0xf] %vm706_vm1, %v795_v49  ;;  %v796_v55 = vpack.c.bf16 %v629_v50, %v629_v50 }
 0x10d   :  { %707 = vst.msk [vmem:[%s1275_s3] sm:$0xf] %vm706_vm1, %v793_v51  ;;  %v794_v56 = vpack.c.bf16 %v627_v52, %v627_v52  ;;  %v843_v57 = vpop.f32.mrb[12].mxu0  ;;  %v893_v58 = vpop.f32.mrb[12].mxu1 }
 0x10e   :  { %710 = vst.msk [vmem:[%s1275_s3 + $0xc] sm:$0xf] %vm706_vm1, %v796_v55  ;;  %v844_v60 = vpop.f32.mrb[13].mxu0  ;;  %v579_v61 = vpop.f32.mrb[13].mxu1 }
 0x10f   :  { %708 = vst.msk [vmem:[%s1275_s3 + $0x4] sm:$0xf] %vm706_vm1, %v794_v56  ;;  %v845_v62 = vadd.f32 %v844_v60, %v843_v57  ;;  %v580_v1 = vadd.f32 %v579_v61, %v483_v59  ;;  %v846_v2 = vpop.f32.mrb[14].mxu0  ;;  %v894_v3 = vpop.f32.mrb[14].mxu1 }
 0x110   :  { %v847_v5 = vpop.f32.mrb[15].mxu0  ;;  %v582_v0 = vpop.f32.mrb[15].mxu1 }
 0x111   :  { %v491_v6 = vadd.f32 %v845_v62, %v132_v14  ;;  %v630_v8 = vmax.f32 %v580_v1, 0.0  ;;  %v848_v9 = vadd.f32 %v847_v5, %v846_v2  ;;  %v583_v10 = vadd.f32 %v582_v0, %v486_v4 }
 0x113   :  { %v588_v11 = vadd.f32 %v893_v58, %v491_v6  ;;  %v797_v15 = vpack.c.bf16 %v630_v8, %v630_v8  ;;  %v494_v16 = vadd.f32 %v848_v9, %v1183_v13  ;;  %v631_v17 = vmax.f32 %v583_v10, 0.0 }
 0x115   :  { %v632_v20 = vmax.f32 %v588_v11, 0.0  ;;  %711 = vst.msk [vmem:[%s1275_s3 + $0x10] sm:$0xf] %vm706_vm1, %v797_v15  ;;  %v591_v63 = vadd.f32 %v894_v3, %v494_v16  ;;  %v798_v22 = vpack.c.bf16 %v631_v17, %v631_v17  ;;  %v849_v23 = vpop.f32.mrb[16].mxu0  ;;  %v897_v14 = vpop.f32.mrb[16].mxu1 }
 0x116   :  { %v850_v24 = vpop.f32.mrb[17].mxu0  ;;  %v595_v25 = vpop.f32.mrb[17].mxu1 }
 0x117   :  { %v799_v29 = vpack.c.bf16 %v632_v20, %v632_v20  ;;  %v633_v30 = vmax.f32 %v591_v63, 0.0  ;;  %712 = vst.msk [vmem:[%s1275_s3 + $0x14] sm:$0xf] %vm706_vm1, %v798_v22  ;;  %v851_v13 = vadd.f32 %v850_v24, %v849_v23  ;;  %v852_v31 = vpop.f32.mrb[18].mxu0  ;;  %v898_v32 = vpop.f32.mrb[18].mxu1 }
 0x118   :  { %v853_v33 = vpop.f32.mrb[19].mxu0  ;;  %v598_v34 = vpop.f32.mrb[19].mxu1 }
 0x119   :  { %713 = vst.msk [vmem:[%s1275_s3 + $0x18] sm:$0xf] %vm706_vm1, %v799_v29  ;;  %v800_v36 = vpack.c.bf16 %v633_v30, %v633_v30  ;;  %v499_v37 = vadd.f32 %v851_v13, %v1191_v28  ;;  %v854_v38 = vadd.f32 %v853_v33, %v852_v31  ;;  %v526_v28 = vadd.f32 %v1187_v26, %v177_v39 }
 0x11b   :  { %714 = vst.msk [vmem:[%s1275_s3 + $0x1c] sm:$0xf] %vm706_vm1, %v800_v36  ;;  %v596_v40 = vadd.f32 %v595_v25, %v499_v37  ;;  %v502_v41 = vadd.f32 %v854_v38, %v1189_v27  ;;  %v518_v27 = vadd.f32 %v1181_v12, %v167_v18 }
 0x11d   :  { %v634_v44 = vmax.f32 %v596_v40, 0.0  ;;  %v599_v45 = vadd.f32 %v598_v34, %v502_v41  ;;  %v855_v46 = vpop.f32.mrb[20].mxu0  ;;  %v901_v47 = vpop.f32.mrb[20].mxu1 }
 0x11e   :  { %v620_v48 = vadd.f32 %v901_v47, %v523_v42  ;;  %v856_v49 = vpop.f32.mrb[21].mxu0  ;;  %v611_v50 = vpop.f32.mrb[21].mxu1 }
 0x11f   :  { %v801_v51 = vpack.c.bf16 %v634_v44, %v634_v44  ;;  %v635_v52 = vmax.f32 %v599_v45, 0.0  ;;  %v857_v55 = vadd.f32 %v856_v49, %v855_v46  ;;  %v612_v56 = vadd.f32 %v611_v50, %v515_v43  ;;  %v858_v57 = vpop.f32.mrb[22].mxu0  ;;  %v902_v58 = vpop.f32.mrb[22].mxu1 }
 0x120   :  { %v640_v21 = vmax.f32 %v620_v48, 0.0  ;;  %v623_v59 = vadd.f32 %v902_v58, %v526_v28  ;;  %v859_v7 = vpop.f32.mrb[23].mxu0  ;;  %v614_v60 = vpop.f32.mrb[23].mxu1 }
 0x121   :  { %715 = vst.msk [vmem:[%s1275_s3 + $0x20] sm:$0xf] %vm706_vm1, %v801_v51  ;;  %v802_v26 = vpack.c.bf16 %v635_v52, %v635_v52  ;;  %v507_v61 = vadd.f32 %v857_v55, %v1195_v54  ;;  %v638_v62 = vmax.f32 %v612_v56, 0.0  ;;  %v860_v1 = vadd.f32 %v859_v7, %v858_v57 }
 0x122   :  { %v807_v2 = vpack.c.bf16 %v640_v21, %v640_v21  ;;  %v641_v3 = vmax.f32 %v623_v59, 0.0  ;;  %v615_v4 = vadd.f32 %v614_v60, %v518_v27 }
 0x123   :  { %716 = vst.msk [vmem:[%s1275_s3 + $0x24] sm:$0xf] %vm706_vm1, %v802_v26  ;;  %v604_v12 = vadd.f32 %v897_v14, %v507_v61  ;;  %v805_v5 = vpack.c.bf16 %v638_v62, %v638_v62  ;;  %v510_v0 = vadd.f32 %v860_v1, %v1193_v53 }
 0x124   :  { %721 = vst.msk [vmem:[%s1275_s3 + $0x38] sm:$0xf] %vm706_vm1, %v807_v2  ;;  %v808_v54 = vpack.c.bf16 %v641_v3, %v641_v3  ;;  %v639_v6 = vmax.f32 %v615_v4, 0.0 }
 0x125   :  { %v636_v8 = vmax.f32 %v604_v12, 0.0  ;;  %719 = vst.msk [vmem:[%s1275_s3 + $0x30] sm:$0xf] %vm706_vm1, %v805_v5  ;;  %v607_v9 = vadd.f32 %v898_v32, %v510_v0 }
 0x126   :  { %722 = vst.msk [vmem:[%s1275_s3 + $0x3c] sm:$0xf] %vm706_vm1, %v808_v54  ;;  %v806_v53 = vpack.c.bf16 %v639_v6, %v639_v6 }
 0x127   :  { %v803_v10 = vpack.c.bf16 %v636_v8, %v636_v8  ;;  %v637_v11 = vmax.f32 %v607_v9, 0.0 }
 0x128   :  { %720 = vst.msk [vmem:[%s1275_s3 + $0x34] sm:$0xf] %vm706_vm1, %v806_v53 }
 0x129   :  { %717 = vst.msk [vmem:[%s1275_s3 + $0x28] sm:$0xf] %vm706_vm1, %v803_v10  ;;  %v804_v15 = vpack.c.bf16 %v637_v11, %v637_v11 }
 0x12b   :  { %718 = vst.msk [vmem:[%s1275_s3 + $0x2c] sm:$0xf] %vm706_vm1, %v804_v15 }

// kernel: vaefc_forward.13
= control target key start
LH: loop header
LB: loop body
LE: loop exit
PB: predicated region body
PF: predicated region fallthrough
CT: control target
= control target key end

     0   :  { %v1018_v1 = vmov 0   ;;  %vm407_vm0 = vcmask 261120   ;;  %s1272_s1 = inlined_call_operand.vmem [shape: bf16[288,128], index: 1, kind: input, shape index: {}]   ;;  %s1273_s0 = inlined_call_operand.vmem [shape: bf16[128,288], index: 0, kind: input, shape index: {}]   ;;  %s1274_s2 = inlined_call_operand.vmem [shape: f32[128,1], index: 2, kind: input, shape index: {}]   ;;  %s1275_s3 = inlined_call_operand.vmem [shape: bf16[128,128], index: 3, kind: output, shape index: {}]  }
   0x1   :  { %v968_v0 = vld [vmem:[%s1272_s1 + $0x40] sm:$0xff]   ;;  %967 = vset.pattern.permute.xlu1 %v1018_v1  ;;  %966 = vset.pattern.permute.xlu0 %v1018_v1  ;;  %v970_v3 = vld [vmem:[%s1272_s1 + $0x48] sm:$0xff]   ;;  %v972_v5 = vld [vmem:[%s1272_s1 + $0x50] sm:$0xff]  }
   0x2   :  { %v969_v2 = vld [vmem:[%s1272_s1] sm:$0xff]   ;;  %855 = vmatprep.subr.bf16.mxu0 %v968_v0  ;;  %949 = vmatprep.subr.bf16.mxu1 %v968_v0  ;;  %v971_v4 = vld [vmem:[%s1272_s1 + $0x8] sm:$0xff]   ;;  %v973_v6 = vld [vmem:[%s1272_s1 + $0x10] sm:$0xff]  }
   0x3   :  { %856 = vmatpush3.bf16.msra.mxu0 %v969_v2  ;;  %957 = vmatpush3.bf16.msra.mxu1 %v969_v2  ;;  %v974_v7 = vld [vmem:[%s1272_s1 + $0x58] sm:$0xff]   ;;  %v976_v9 = vld [vmem:[%s1272_s1 + $0x60] sm:$0xff]   ;;  %v978_v11 = vld [vmem:[%s1272_s1 + $0x68] sm:$0xff]  }
   0x4   :  { %857 = vmatprep.subr.bf16.mxu0 %v970_v3  ;;  %950 = vmatprep.subr.bf16.mxu1 %v970_v3  ;;  %v975_v8 = vld [vmem:[%s1272_s1 + $0x18] sm:$0xff]   ;;  %v977_v10 = vld [vmem:[%s1272_s1 + $0x20] sm:$0xff]   ;;  %v979_v14 = vld [vmem:[%s1272_s1 + $0x28] sm:$0xff]  }
   0x5   :  { %v986_v12 = vld [vmem:[%s1273_s0 + $0x4] ss:$12 sps:$4 sm:$0xff]   ;;  %v989_v13 = vld [vmem:[%s1273_s0 + $0x94] ss:$12 sps:$4 sm:$0xff]   ;;  %v982_v17 = vld [vmem:[%s1272_s1 + $0x78] sm:$0xff]  }
   0x6   :  { %v980_v15 = vld [vmem:[%s1272_s1 + $0x70] sm:$0xff]   ;;  %464 = vmatprep.mubr.bf16.mxu0 %v986_v12  ;;  %512 = vmatprep.mubr.bf16.mxu1 %v989_v13  ;;  %v983_v18 = vld [vmem:[%s1272_s1 + $0x38] sm:$0xff]   ;;  %v984_v19 = vld [vmem:[%s1273_s0] ss:$12 sps:$4 sm:$0xff]  }
   0x7   :  { %858 = vmatpush3.bf16.msra.mxu0 %v971_v4  ;;  %958 = vmatpush3.bf16.msra.mxu1 %v971_v4  ;;  %v981_v16 = vld [vmem:[%s1272_s1 + $0x30] sm:$0xff]   ;;  %v990_v20 = vld [vmem:[%s1272_s1 + $0x80] sm:$0xff]   ;;  %v991_v22 = vld [vmem:[%s1273_s0 + $0x1c] ss:$12 sps:$4 sm:$0xff]  }
   0x8   :  { %859 = vmatprep.subr.bf16.mxu0 %v972_v5  ;;  %951 = vmatprep.subr.bf16.mxu1 %v972_v5  ;;  %v987_v21 = vld [vmem:[%s1273_s0 + $0x90] ss:$12 sps:$4 sm:$0xff]   ;;  %v993_v23 = vld [vmem:[%s1273_s0 + $0xac] ss:$12 sps:$4 sm:$0xff]   ;;  %v83_v26 = vld [vmem:[%s1274_s2] sm:$0xff] }
   0x9   :  { %v997_v24 = vld [vmem:[%s1272_s1 + $0x88] sm:$0xff]   ;;  %v85_v25 = vld [vmem:[%s1274_s2 + $0x10] sm:$0xff]  ;;  %v995_v27 = vld [vmem:[%s1273_s0 + $0x18] ss:$12 sps:$4 sm:$0xff]   ;;  %101 = vperm.xlu0 %966, %v83_v26  }
   0xa   :  { %111 = vperm.xlu1 %967, %v85_v25   ;;  %v996_v28 = vld [vmem:[%s1273_s0 + $0xa8] ss:$12 sps:$4 sm:$0xff]   ;;  %v86_v29 = vld [vmem:[%s1274_s2 + $0x18] sm:$0xff]  ;;  %v87_v34 = vld [vmem:[%s1274_s2 + $0x20] sm:$0xff] }
   0xb   :  { %860 = vmatpush3.bf16.msra.mxu0 %v973_v6  ;;  %959 = vmatpush3.bf16.msra.mxu1 %v973_v6  ;;  %v998_v30 = vld [vmem:[%s1273_s0 + $0x34] ss:$12 sps:$4 sm:$0xff]   ;;  %v84_v32 = vld [vmem:[%s1274_s2 + $0x8] sm:$0xff]  ;;  %v1001_v35 = vld [vmem:[%s1273_s0 + $0x30] ss:$12 sps:$4 sm:$0xff]  }
   0xc   :  { %861 = vmatprep.subr.bf16.mxu0 %v974_v7  ;;  %952 = vmatprep.subr.bf16.mxu1 %v974_v7  ;;  %v1000_v31 = vld [vmem:[%s1273_s0 + $0x8] ss:$12 sps:$4 sm:$0xff]   ;;  %v1002_v36 = vld [vmem:[%s1273_s0 + $0x20] ss:$12 sps:$4 sm:$0xff]   ;;  %v90_v37 = vld [vmem:[%s1274_s2 + $0x38] sm:$0xff] }
   0xd   :  { %v88_v33 = vld [vmem:[%s1274_s2 + $0x28] sm:$0xff]  ;;  %106 = vperm.xlu0 %966, %v84_v32   ;;  %v1005_v39 = vld [vmem:[%s1273_s0 + $0x38] ss:$12 sps:$4 sm:$0xff]   ;;  %v89_v40 = vld [vmem:[%s1274_s2 + $0x30] sm:$0xff] }
   0xe   :  { %116 = vperm.xlu1 %967, %v86_v29   ;;  %v1003_v38 = vld [vmem:[%s1273_s0 + $0x4c] ss:$12 sps:$4 sm:$0xff]   ;;  %v91_v42 = vld [vmem:[%s1274_s2 + $0x40] sm:$0xff]  ;;  %v1006_v43 = vld [vmem:[%s1273_s0 + $0x48] ss:$12 sps:$4 sm:$0xff]  }
   0xf   :  { %862 = vmatpush3.bf16.msra.mxu0 %v975_v8  ;;  %960 = vmatpush3.bf16.msra.mxu1 %v975_v8  ;;  %v92_v41 = vld [vmem:[%s1274_s2 + $0x48] sm:$0xff]  ;;  %v1007_v44 = vld [vmem:[%s1273_s0 + $0x50] ss:$12 sps:$4 sm:$0xff]   ;;  %v95_v50 = vld [vmem:[%s1274_s2 + $0x60] sm:$0xff] }
  0x10   :  { %863 = vmatprep.subr.bf16.mxu0 %v976_v9  ;;  %953 = vmatprep.subr.bf16.mxu1 %v976_v9  ;;  %v94_v45 = vld [vmem:[%s1274_s2 + $0x58] sm:$0xff]  ;;  %v1008_v46 = vld [vmem:[%s1273_s0 + $0x64] ss:$12 sps:$4 sm:$0xff]   ;;  %v1010_v47 = vld [vmem:[%s1273_s0 + $0x68] ss:$12 sps:$4 sm:$0xff]  }
  0x11   :  { %121 = vperm.xlu0 %966, %v87_v34   ;;  %v93_v48 = vld [vmem:[%s1274_s2 + $0x50] sm:$0xff]  ;;  %v96_v49 = vld [vmem:[%s1274_s2 + $0x68] sm:$0xff]  ;;  %v98_v53 = vld [vmem:[%s1274_s2 + $0x78] sm:$0xff] }
  0x12   :  { %126 = vperm.xlu1 %967, %v88_v33   ;;  %v1011_v51 = vld [vmem:[%s1273_s0 + $0x60] ss:$12 sps:$4 sm:$0xff]   ;;  %v1013_v54 = vld [vmem:[%s1273_s0 + $0x7c] ss:$12 sps:$4 sm:$0xff]   ;;  %v1015_v55 = vld [vmem:[%s1273_s0 + $0x98] ss:$12 sps:$4 sm:$0xff]  }
  0x13   :  { %864 = vmatpush3.bf16.msra.mxu0 %v977_v10  ;;  %961 = vmatpush3.bf16.msra.mxu1 %v977_v10  ;;  %v1012_v52 = vld [vmem:[%s1273_s0 + $0x80] ss:$12 sps:$4 sm:$0xff]   ;;  %v97_v56 = vld [vmem:[%s1274_s2 + $0x70] sm:$0xff]  ;;  %v1016_v57 = vld [vmem:[%s1273_s0 + $0x78] ss:$12 sps:$4 sm:$0xff]  }
  0x14   :  { %865 = vmatprep.subr.bf16.mxu0 %v978_v11  ;;  %954 = vmatprep.subr.bf16.mxu1 %v978_v11  ;;  %v1017_v58 = vld [vmem:[%s1273_s0 + $0xb0] ss:$12 sps:$4 sm:$0xff]  }
  0x15   :  { %131 = vperm.xlu0 %966, %v89_v40  }
  0x16   :  { %136 = vperm.xlu1 %967, %v90_v37  }
  0x17   :  { %866 = vmatpush3.bf16.msra.mxu0 %v979_v14  ;;  %962 = vmatpush3.bf16.msra.mxu1 %v979_v14 }
  0x18   :  { %867 = vmatprep.subr.bf16.mxu0 %v980_v15  ;;  %955 = vmatprep.subr.bf16.mxu1 %v980_v15 }
  0x19   :  { %141 = vperm.xlu0 %966, %v91_v42  }
  0x1a   :  { %146 = vperm.xlu1 %967, %v92_v41  }
  0x1b   :  { %868 = vmatpush3.bf16.msra.mxu0 %v981_v16  ;;  %963 = vmatpush3.bf16.msra.mxu1 %v981_v16 }
  0x1c   :  { %869 = vmatprep.subr.bf16.mxu0 %v982_v17  ;;  %956 = vmatprep.subr.bf16.mxu1 %v982_v17 }
  0x1d   :  { %151 = vperm.xlu0 %966, %v93_v48  }
  0x1e   :  { %156 = vperm.xlu1 %967, %v94_v45  }
  0x1f   :  { %870 = vmatpush3.bf16.msra.mxu0 %v983_v18  ;;  %964 = vmatpush3.bf16.msra.mxu1 %v983_v18 }
  0x20   :  { %929 = vmatprep.subr.bf16.mxu1 %v990_v20 }
  0x21   :  { %161 = vperm.xlu0 %966, %v95_v50  }
  0x22   :  { %465 = vmatmul.mubr.bf16.vlgmr.msra.gmra.mrb[0].mxu0 %v984_v19  ;;  %513 = vmatmul.mubr.bf16.vlgmr.msra.gmra.mrb[0].mxu1 %v987_v21 }
  0x23   :  { %930 = vmatpush3.bf16.msra.mxu1 %v990_v20  ;;  %472 = vmatprep.mubr.bf16.mxu0 %v991_v22 }
  0x24   :  { %520 = vmatprep.mubr.bf16.mxu1 %v993_v23  ;;  %931 = vmatprep.subr.bf16.mxu1 %v997_v24 }
  0x25   :  { %166 = vperm.xlu1 %967, %v96_v49   ;;  %171 = vperm.xlu0 %966, %v97_v56  }
  0x27   :  { %932 = vmatpush3.bf16.msra.mxu1 %v997_v24 }
  0x29   :  { %176 = vperm.xlu1 %967, %v98_v53  }
  0x2a   :  { %473 = vmatmul.mubr.bf16.gmra.mrb[4].mxu0 %v995_v27  ;;  %521 = vmatmul.mubr.bf16.gmra.mrb[4].mxu1 %v996_v28 }
  0x2b   :  { %480 = vmatprep.mubr.bf16.mxu0 %v998_v30  ;;  %933 = vmatprep.mubr.msk.bf16.mxu1 %vm407_vm0, %v1000_v31 }
  0x32   :  { %481 = vmatmul.mubr.bf16.gmra.mrb[8].mxu0 %v1001_v35  ;;  %934 = vmatmul.mubr.msk.bf16.vlgmr.msra.gmra.mrb[8].mxu1 %vm407_vm0, %v1002_v36 }
  0x33   :  { %488 = vmatprep.mubr.bf16.mxu0 %v1003_v38  ;;  %937 = vmatprep.mubr.msk.bf16.mxu1 %vm407_vm0, %v1005_v39 }
  0x3a   :  { %489 = vmatmul.mubr.bf16.gmra.mrb[12].mxu0 %v1006_v43  ;;  %938 = vmatmul.mubr.msk.bf16.gmra.mrb[12].mxu1 %vm407_vm0, %v1007_v44 }
  0x3b   :  { %496 = vmatprep.mubr.bf16.mxu0 %v1008_v46  ;;  %941 = vmatprep.mubr.msk.bf16.mxu1 %vm407_vm0, %v1010_v47 }
  0x42   :  { %497 = vmatmul.mubr.bf16.gmra.mrb[16].mxu0 %v1011_v51  ;;  %942 = vmatmul.mubr.msk.bf16.gmra.mrb[16].mxu1 %vm407_vm0, %v1012_v52 }
  0x43   :  { %504 = vmatprep.mubr.bf16.mxu0 %v1013_v54  ;;  %945 = vmatprep.mubr.msk.bf16.mxu1 %vm407_vm0, %v1015_v55 }
  0x4a   :  { %505 = vmatmul.mubr.bf16.gmra.mrb[20].mxu0 %v1016_v57  ;;  %946 = vmatmul.mubr.msk.bf16.gmra.mrb[20].mxu1 %vm407_vm0, %v1017_v58 }
  0x88   :  { %v102_v60 = vpop.permute.xlu0 %101 }
  0x89   :  { %v112_v59 = vpop.permute.xlu1 %111 }
  0x8c   :  { %v107_v62 = vpop.permute.xlu0 %106 }
  0x8d   :  { %v117_v61 = vpop.permute.xlu1 %116 }
  0x90   :  { %v122_v0 = vpop.permute.xlu0 %121 }
  0x91   :  { %v1221_v63 = vpop.permute.xlu1 %126 }
  0x94   :  { %v132_v14 = vpop.permute.xlu0 %131 }
  0x95   :  { %v137_v13 = vpop.permute.xlu1 %136 }
  0x98   :  { %v1233_v28 = vpop.permute.xlu0 %141 }
  0x99   :  { %v1231_v27 = vpop.permute.xlu1 %146 }
  0x9c   :  { %v1237_v52 = vpop.permute.xlu0 %151 }
  0x9d   :  { %v1235_v51 = vpop.permute.xlu1 %156 }
  0xf5   :  { %v871_v1 = vpop.f32.mrb[0].mxu0  ;;  %v907_v2 = vpop.f32.mrb[0].mxu1 }
  0xf6   :  { %v872_v3 = vpop.f32.mrb[1].mxu0  ;;  %v908_v4 = vpop.f32.mrb[1].mxu1 }
  0xf7   :  { %v873_v5 = vadd.f32 %v872_v3, %v871_v1  ;;  %v874_v6 = vpop.f32.mrb[2].mxu0  ;;  %v1223_v7 = vadd.f32 %v908_v4, %v907_v2  ;;  %v910_v8 = vpop.f32.mrb[2].mxu1 }
  0xf8   :  { %v875_v9 = vpop.f32.mrb[3].mxu0  ;;  %v911_v10 = vpop.f32.mrb[3].mxu1 }
  0xf9   :  { %v876_v11 = vadd.f32 %v875_v9, %v874_v6  ;;  %v1225_v12 = vadd.f32 %v911_v10, %v910_v8  ;;  %v467_v32 = vadd.f32 %v873_v5, %v102_v60 }
  0xfb   :  { %v470_v41 = vadd.f32 %v876_v11, %v107_v62 }
  0xfd   :  { %v877_v15 = vpop.f32.mrb[4].mxu0  ;;  %v913_v16 = vpop.f32.mrb[4].mxu1 }
  0xfe   :  { %v878_v17 = vpop.f32.mrb[5].mxu0  ;;  %v914_v18 = vpop.f32.mrb[5].mxu1 }
  0xff   :  { %v879_v19 = vadd.f32 %v878_v17, %v877_v15  ;;  %v880_v20 = vpop.f32.mrb[6].mxu0  ;;  %v1227_v21 = vadd.f32 %v914_v18, %v913_v16  ;;  %v916_v22 = vpop.f32.mrb[6].mxu1 }
 0x100   :  { %v881_v23 = vpop.f32.mrb[7].mxu0  ;;  %v917_v24 = vpop.f32.mrb[7].mxu1 }
 0x101   :  { %v882_v25 = vadd.f32 %v881_v23, %v880_v20  ;;  %v1229_v26 = vadd.f32 %v917_v24, %v916_v22  ;;  %v475_v29 = vadd.f32 %v879_v19, %v112_v59  ;;  %v167_v15 = vpop.permute.xlu1 %166  ;;  %v162_v16 = vpop.permute.xlu0 %161 }
 0x103   :  { %v478_v36 = vadd.f32 %v882_v25, %v117_v61 }
 0x105   :  { %v883_v30 = vpop.f32.mrb[8].mxu0  ;;  %v935_v31 = vpop.f32.mrb[8].mxu1 }
 0x106   :  { %v572_v33 = vadd.f32 %v935_v31, %v475_v29  ;;  %v884_v34 = vpop.f32.mrb[9].mxu0  ;;  %v563_v35 = vpop.f32.mrb[9].mxu1 }
 0x107   :  { %v885_v37 = vadd.f32 %v884_v34, %v883_v30  ;;  %v564_v38 = vadd.f32 %v563_v35, %v467_v32  ;;  %v886_v39 = vpop.f32.mrb[10].mxu0  ;;  %v936_v40 = vpop.f32.mrb[10].mxu1 }
 0x108   :  { %v575_v42 = vadd.f32 %v936_v40, %v478_v36  ;;  %v887_v43 = vpop.f32.mrb[11].mxu0  ;;  %v566_v44 = vpop.f32.mrb[11].mxu1  ;;  %v628_v47 = vmax.f32 %v572_v33, 0.0 }
 0x109   :  { %v888_v45 = vadd.f32 %v887_v43, %v886_v39  ;;  %v567_v46 = vadd.f32 %v566_v44, %v470_v41  ;;  %v626_v49 = vmax.f32 %v564_v38, 0.0  ;;  %v483_v57 = vadd.f32 %v885_v37, %v122_v0  ;;  %v172_v31 = vpop.permute.xlu0 %171  ;;  %v177_v35 = vpop.permute.xlu1 %176 }
 0x10a   :  { %v629_v48 = vmax.f32 %v575_v42, 0.0  ;;  %v523_v38 = vadd.f32 %v1227_v21, %v172_v31  ;;  %v515_v39 = vadd.f32 %v1223_v7, %v162_v16  ;;  %v526_v43 = vadd.f32 %v1229_v26, %v177_v35 }
 0x10b   :  { %v627_v50 = vmax.f32 %v567_v46, 0.0  ;;  %v486_v2 = vadd.f32 %v888_v45, %v1221_v63 }
 0x10c   :  { %v816_v53 = vpack.c.bf16 %v629_v48, %v628_v47 }
 0x10d   :  { %v811_v54 = vpack.c.bf16 %v627_v50, %v626_v49  ;;  %v889_v55 = vpop.f32.mrb[12].mxu0  ;;  %v939_v56 = vpop.f32.mrb[12].mxu1 }
 0x10e   :  { %848 = vst [vmem:[%s1275_s3 + $0x8] sm:$0xff] %v816_v53   ;;  %v890_v58 = vpop.f32.mrb[13].mxu0  ;;  %v579_v59 = vpop.f32.mrb[13].mxu1 }
 0x10f   :  { %812 = vst [vmem:[%s1275_s3] sm:$0xff] %v811_v54   ;;  %v891_v60 = vadd.f32 %v890_v58, %v889_v55  ;;  %v580_v61 = vadd.f32 %v579_v59, %v483_v57  ;;  %v892_v62 = vpop.f32.mrb[14].mxu0  ;;  %v940_v1 = vpop.f32.mrb[14].mxu1 }
 0x110   :  { %v893_v3 = vpop.f32.mrb[15].mxu0  ;;  %v582_v4 = vpop.f32.mrb[15].mxu1 }
 0x111   :  { %v491_v5 = vadd.f32 %v891_v60, %v132_v14  ;;  %v894_v0 = vadd.f32 %v893_v3, %v892_v62  ;;  %v583_v6 = vadd.f32 %v582_v4, %v486_v2  ;;  %v630_v9 = vmax.f32 %v580_v61, 0.0 }
 0x113   :  { %v588_v8 = vadd.f32 %v939_v56, %v491_v5  ;;  %v494_v10 = vadd.f32 %v894_v0, %v137_v13  ;;  %v631_v11 = vmax.f32 %v583_v6, 0.0 }
 0x115   :  { %v591_v17 = vadd.f32 %v940_v1, %v494_v10  ;;  %v821_v18 = vpack.c.bf16 %v631_v11, %v630_v9  ;;  %v895_v19 = vpop.f32.mrb[16].mxu0  ;;  %v943_v20 = vpop.f32.mrb[16].mxu1  ;;  %v632_v24 = vmax.f32 %v588_v8, 0.0 }
 0x116   :  { %v896_v22 = vpop.f32.mrb[17].mxu0  ;;  %v595_v23 = vpop.f32.mrb[17].mxu1 }
 0x117   :  { %v633_v25 = vmax.f32 %v591_v17, 0.0  ;;  %849 = vst [vmem:[%s1275_s3 + $0x10] sm:$0xff] %v821_v18   ;;  %v897_v63 = vadd.f32 %v896_v22, %v895_v19  ;;  %v898_v14 = vpop.f32.mrb[18].mxu0  ;;  %v944_v29 = vpop.f32.mrb[18].mxu1 }
 0x118   :  { %v899_v30 = vpop.f32.mrb[19].mxu0  ;;  %v598_v13 = vpop.f32.mrb[19].mxu1 }
 0x119   :  { %v826_v32 = vpack.c.bf16 %v633_v25, %v632_v24  ;;  %v499_v33 = vadd.f32 %v897_v63, %v1233_v28  ;;  %v900_v34 = vadd.f32 %v899_v30, %v898_v14 }
 0x11b   :  { %850 = vst [vmem:[%s1275_s3 + $0x18] sm:$0xff] %v826_v32   ;;  %v596_v36 = vadd.f32 %v595_v23, %v499_v33  ;;  %v502_v37 = vadd.f32 %v900_v34, %v1231_v27  ;;  %v518_v27 = vadd.f32 %v1225_v12, %v167_v15 }
 0x11d   :  { %v599_v40 = vadd.f32 %v598_v13, %v502_v37  ;;  %v901_v41 = vpop.f32.mrb[20].mxu0  ;;  %v947_v42 = vpop.f32.mrb[20].mxu1  ;;  %v634_v46 = vmax.f32 %v596_v36, 0.0 }
 0x11e   :  { %v620_v44 = vadd.f32 %v947_v42, %v523_v38  ;;  %v902_v28 = vpop.f32.mrb[21].mxu0  ;;  %v611_v45 = vpop.f32.mrb[21].mxu1 }
 0x11f   :  { %v635_v47 = vmax.f32 %v599_v40, 0.0  ;;  %v903_v48 = vadd.f32 %v902_v28, %v901_v41  ;;  %v612_v49 = vadd.f32 %v611_v45, %v515_v39  ;;  %v904_v50 = vpop.f32.mrb[22].mxu0  ;;  %v948_v53 = vpop.f32.mrb[22].mxu1 }
 0x120   :  { %v623_v54 = vadd.f32 %v948_v53, %v526_v43  ;;  %v905_v21 = vpop.f32.mrb[23].mxu0  ;;  %v614_v55 = vpop.f32.mrb[23].mxu1  ;;  %v640_v58 = vmax.f32 %v620_v44, 0.0 }
 0x121   :  { %v831_v7 = vpack.c.bf16 %v635_v47, %v634_v46  ;;  %v507_v56 = vadd.f32 %v903_v48, %v1237_v52  ;;  %v906_v57 = vadd.f32 %v905_v21, %v904_v50  ;;  %v615_v59 = vadd.f32 %v614_v55, %v518_v27 }
 0x122   :  { %v641_v26 = vmax.f32 %v623_v54, 0.0  ;;  %v638_v62 = vmax.f32 %v612_v49, 0.0 }
 0x123   :  { %851 = vst [vmem:[%s1275_s3 + $0x20] sm:$0xff] %v831_v7   ;;  %v604_v60 = vadd.f32 %v943_v20, %v507_v56  ;;  %v510_v61 = vadd.f32 %v906_v57, %v1235_v51  ;;  %v639_v12 = vmax.f32 %v615_v59, 0.0 }
 0x124   :  { %v846_v1 = vpack.c.bf16 %v641_v26, %v640_v58 }
 0x125   :  { %v607_v2 = vadd.f32 %v944_v29, %v510_v61  ;;  %v841_v52 = vpack.c.bf16 %v639_v12, %v638_v62  ;;  %v636_v3 = vmax.f32 %v604_v60, 0.0 }
 0x126   :  { %854 = vst [vmem:[%s1275_s3 + $0x38] sm:$0xff] %v846_v1  }
 0x127   :  { %v637_v4 = vmax.f32 %v607_v2, 0.0  ;;  %853 = vst [vmem:[%s1275_s3 + $0x30] sm:$0xff] %v841_v52  }
 0x129   :  { %v836_v5 = vpack.c.bf16 %v637_v4, %v636_v3 }
 0x12b   :  { %852 = vst [vmem:[%s1275_s3 + $0x28] sm:$0xff] %v836_v5  }

// kernel: vaefc_forward.14
= control target key start
LH: loop header
LB: loop body
LE: loop exit
PB: predicated region body
PF: predicated region fallthrough
CT: control target
= control target key end

     0   :  { %v1911_v1 = vmov 0   ;;  %vm695_vm0 = vcmask 261120   ;;  %s2398_s1 = inlined_call_operand.vmem [shape: bf16[288,512], index: 1, kind: input, shape index: {}]   ;;  %s2399_s0 = inlined_call_operand.vmem [shape: bf16[128,288], index: 0, kind: input, shape index: {}]   ;;  %s2400_s2 = inlined_call_operand.vmem [shape: f32[128,1], index: 2, kind: input, shape index: {}]   ;;  %s2401_s3 = inlined_call_operand.vmem [shape: bf16[128,512], index: 3, kind: output, shape index: {}]  }
   0x1   :  { %v1771_v0 = vld [vmem:[%s2398_s1 + $0x4] ss:$16 sps:$4 sm:$0xff]   ;;  %1769 = vset.pattern.permute.xlu0 %v1911_v1  ;;  %1770 = vset.pattern.permute.xlu1 %v1911_v1  ;;  %v1773_v2 = vld [vmem:[%s2398_s1 + $0xc] ss:$16 sps:$4 sm:$0xff]   ;;  %v1775_v3 = vld [vmem:[%s2398_s1] ss:$16 sps:$4 sm:$0xff]  }
   0x2   :  { %720 = vmatprep.subr.bf16.mxu0 %v1771_v0  ;;  %v1776_v4 = vld [vmem:[%s2398_s1 + $0x8] ss:$16 sps:$4 sm:$0xff]   ;;  %946 = vmatprep.subr.bf16.mxu1 %v1773_v2  ;;  %v1777_v5 = vld [vmem:[%s2398_s1 + $0x24] ss:$16 sps:$4 sm:$0xff]   ;;  %v1779_v6 = vld [vmem:[%s2398_s1 + $0x2c] ss:$16 sps:$4 sm:$0xff]  }
   0x3   :  { %721 = vmatpush1.bf16.msra.mxu0 %v1775_v3  ;;  %947 = vmatpush1.bf16.msra.mxu1 %v1776_v4  ;;  %v1781_v7 = vld [vmem:[%s2398_s1 + $0x20] ss:$16 sps:$4 sm:$0xff]   ;;  %v1782_v8 = vld [vmem:[%s2398_s1 + $0x28] ss:$16 sps:$4 sm:$0xff]   ;;  %v1783_v9 = vld [vmem:[%s2398_s1 + $0x44] ss:$16 sps:$4 sm:$0xff]  }
   0x4   :  { %722 = vmatprep.subr.bf16.mxu0 %v1777_v5  ;;  %948 = vmatprep.subr.bf16.mxu1 %v1779_v6  ;;  %v1785_v10 = vld [vmem:[%s2398_s1 + $0x4c] ss:$16 sps:$4 sm:$0xff]   ;;  %v1787_v11 = vld [vmem:[%s2398_s1 + $0x40] ss:$16 sps:$4 sm:$0xff]   ;;  %v1788_v12 = vld [vmem:[%s2398_s1 + $0x48] ss:$16 sps:$4 sm:$0xff]  }
   0x5   :  { %v1789_v13 = vld [vmem:[%s2398_s1 + $0x64] ss:$16 sps:$4 sm:$0xff]   ;;  %v1791_v14 = vld [vmem:[%s2398_s1 + $0x6c] ss:$16 sps:$4 sm:$0xff]   ;;  %v1793_v15 = vld [vmem:[%s2398_s1 + $0x60] ss:$16 sps:$4 sm:$0xff]  }
   0x6   :  { %v1794_v16 = vld [vmem:[%s2398_s1 + $0x68] ss:$16 sps:$4 sm:$0xff]   ;;  %v1795_v17 = vld [vmem:[%s2398_s1 + $0x84] ss:$16 sps:$4 sm:$0xff]   ;;  %v1797_v18 = vld [vmem:[%s2398_s1 + $0x8c] ss:$16 sps:$4 sm:$0xff]  }
   0x7   :  { %723 = vmatpush1.bf16.msra.mxu0 %v1781_v7  ;;  %949 = vmatpush1.bf16.msra.mxu1 %v1782_v8  ;;  %v1799_v19 = vld [vmem:[%s2398_s1 + $0x80] ss:$16 sps:$4 sm:$0xff]   ;;  %v1800_v20 = vld [vmem:[%s2398_s1 + $0x88] ss:$16 sps:$4 sm:$0xff]   ;;  %v1801_v21 = vld [vmem:[%s2398_s1 + $0xa4] ss:$16 sps:$4 sm:$0xff]  }
   0x8   :  { %724 = vmatprep.subr.bf16.mxu0 %v1783_v9  ;;  %950 = vmatprep.subr.bf16.mxu1 %v1785_v10  ;;  %v1803_v22 = vld [vmem:[%s2398_s1 + $0xac] ss:$16 sps:$4 sm:$0xff]   ;;  %v1805_v23 = vld [vmem:[%s2398_s1 + $0xa0] ss:$16 sps:$4 sm:$0xff]   ;;  %v1806_v24 = vld [vmem:[%s2398_s1 + $0xa8] ss:$16 sps:$4 sm:$0xff]  }
   0x9   :  { %v1807_v25 = vld [vmem:[%s2398_s1 + $0xc4] ss:$16 sps:$4 sm:$0xff]   ;;  %v1809_v26 = vld [vmem:[%s2398_s1 + $0xcc] ss:$16 sps:$4 sm:$0xff]   ;;  %v1811_v27 = vld [vmem:[%s2398_s1 + $0xc0] ss:$16 sps:$4 sm:$0xff]  }
   0xa   :  { %v1812_v28 = vld [vmem:[%s2398_s1 + $0xc8] ss:$16 sps:$4 sm:$0xff]   ;;  %v1813_v29 = vld [vmem:[%s2398_s1 + $0xe4] ss:$16 sps:$4 sm:$0xff]   ;;  %v1815_v30 = vld [vmem:[%s2398_s1 + $0xec] ss:$16 sps:$4 sm:$0xff]  }
   0xb   :  { %725 = vmatpush1.bf16.msra.mxu0 %v1787_v11  ;;  %951 = vmatpush1.bf16.msra.mxu1 %v1788_v12  ;;  %v1817_v31 = vld [vmem:[%s2398_s1 + $0xe0] ss:$16 sps:$4 sm:$0xff]   ;;  %v1818_v32 = vld [vmem:[%s2398_s1 + $0xe8] ss:$16 sps:$4 sm:$0xff]   ;;  %v1819_v33 = vld [vmem:[%s2398_s1 + $0x104] ss:$16 sps:$4 sm:$0xff]  }
   0xc   :  { %726 = vmatprep.subr.bf16.mxu0 %v1789_v13  ;;  %952 = vmatprep.subr.bf16.mxu1 %v1791_v14  ;;  %v1821_v34 = vld [vmem:[%s2398_s1 + $0x10c] ss:$16 sps:$4 sm:$0xff]   ;;  %v1823_v35 = vld [vmem:[%s2398_s1 + $0x100] ss:$16 sps:$4 sm:$0xff]   ;;  %v1824_v36 = vld [vmem:[%s2398_s1 + $0x108] ss:$16 sps:$4 sm:$0xff]  }
   0xd   :  { %v1825_v37 = vld [vmem:[%s2398_s1 + $0x124] ss:$16 sps:$4 sm:$0xff]   ;;  %v1827_v38 = vld [vmem:[%s2398_s1 + $0x12c] ss:$16 sps:$4 sm:$0xff]   ;;  %v1829_v39 = vld [vmem:[%s2398_s1 + $0x120] ss:$16 sps:$4 sm:$0xff]  }
   0xe   :  { %v1830_v40 = vld [vmem:[%s2398_s1 + $0x128] ss:$16 sps:$4 sm:$0xff]   ;;  %v1831_v41 = vld [vmem:[%s2398_s1 + $0x144] ss:$16 sps:$4 sm:$0xff]   ;;  %v1833_v42 = vld [vmem:[%s2398_s1 + $0x14c] ss:$16 sps:$4 sm:$0xff]  }
   0xf   :  { %727 = vmatpush1.bf16.msra.mxu0 %v1793_v15  ;;  %953 = vmatpush1.bf16.msra.mxu1 %v1794_v16  ;;  %v1835_v43 = vld [vmem:[%s2398_s1 + $0x140] ss:$16 sps:$4 sm:$0xff]   ;;  %v1836_v44 = vld [vmem:[%s2398_s1 + $0x148] ss:$16 sps:$4 sm:$0xff]   ;;  %v1837_v45 = vld [vmem:[%s2398_s1 + $0x164] ss:$16 sps:$4 sm:$0xff]  }
  0x10   :  { %728 = vmatprep.subr.bf16.mxu0 %v1795_v17  ;;  %954 = vmatprep.subr.bf16.mxu1 %v1797_v18  ;;  %v1839_v46 = vld [vmem:[%s2398_s1 + $0x16c] ss:$16 sps:$4 sm:$0xff]   ;;  %v1841_v47 = vld [vmem:[%s2398_s1 + $0x160] ss:$16 sps:$4 sm:$0xff]   ;;  %v1842_v48 = vld [vmem:[%s2398_s1 + $0x168] ss:$16 sps:$4 sm:$0xff]  }
  0x11   :  { %v1869_v49 = vld [vmem:[%s2399_s0 + $0x4] ss:$12 sps:$4 sm:$0xff]   ;;  %v1845_v51 = vld [vmem:[%s2398_s1 + $0x18c] ss:$16 sps:$4 sm:$0xff]   ;;  %v1848_v53 = vld [vmem:[%s2398_s1 + $0x188] ss:$16 sps:$4 sm:$0xff]  }
  0x12   :  { %v1843_v50 = vld [vmem:[%s2398_s1 + $0x184] ss:$16 sps:$4 sm:$0xff]   ;;  %752 = vmatprep.mubr.bf16.mxu0 %v1869_v49  ;;  %978 = vmatprep.mubr.bf16.mxu1 %v1869_v49  ;;  %v1847_v52 = vld [vmem:[%s2398_s1 + $0x180] ss:$16 sps:$4 sm:$0xff]   ;;  %v1851_v55 = vld [vmem:[%s2398_s1 + $0x1ac] ss:$16 sps:$4 sm:$0xff]  }
  0x13   :  { %729 = vmatpush1.bf16.msra.mxu0 %v1799_v19  ;;  %955 = vmatpush1.bf16.msra.mxu1 %v1800_v20  ;;  %v1849_v54 = vld [vmem:[%s2398_s1 + $0x1a4] ss:$16 sps:$4 sm:$0xff]   ;;  %v1853_v56 = vld [vmem:[%s2398_s1 + $0x1a0] ss:$16 sps:$4 sm:$0xff]   ;;  %v1854_v57 = vld [vmem:[%s2398_s1 + $0x1a8] ss:$16 sps:$4 sm:$0xff]  }
  0x14   :  { %730 = vmatprep.subr.bf16.mxu0 %v1801_v21  ;;  %956 = vmatprep.subr.bf16.mxu1 %v1803_v22  ;;  %v1855_v58 = vld [vmem:[%s2398_s1 + $0x1c4] ss:$16 sps:$4 sm:$0xff]   ;;  %v1857_v59 = vld [vmem:[%s2398_s1 + $0x1cc] ss:$16 sps:$4 sm:$0xff]   ;;  %v1859_v60 = vld [vmem:[%s2398_s1 + $0x1c0] ss:$16 sps:$4 sm:$0xff]  }
  0x15   :  { %v1860_v61 = vld [vmem:[%s2398_s1 + $0x1c8] ss:$16 sps:$4 sm:$0xff]   ;;  %v1861_v62 = vld [vmem:[%s2398_s1 + $0x1e4] ss:$16 sps:$4 sm:$0xff]   ;;  %v1863_v63 = vld [vmem:[%s2398_s1 + $0x1ec] ss:$16 sps:$4 sm:$0xff]  }
  0x16   :  { %v1865_v0 = vld [vmem:[%s2398_s1 + $0x1e0] ss:$16 sps:$4 sm:$0xff]   ;;  %v1866_v2 = vld [vmem:[%s2398_s1 + $0x1e8] ss:$16 sps:$4 sm:$0xff]   ;;  %v1872_v3 = vld [vmem:[%s2398_s1 + $0x204] ss:$16 sps:$4 sm:$0xff]  }
  0x17   :  { %731 = vmatpush1.bf16.msra.mxu0 %v1805_v23  ;;  %957 = vmatpush1.bf16.msra.mxu1 %v1806_v24  ;;  %v1875_v4 = vld [vmem:[%s2398_s1 + $0x20c] ss:$16 sps:$4 sm:$0xff]   ;;  %v1870_v6 = vld [vmem:[%s2398_s1 + $0x200] ss:$16 sps:$4 sm:$0xff]   ;;  %v1873_v7 = vld [vmem:[%s2398_s1 + $0x208] ss:$16 sps:$4 sm:$0xff]  }
  0x18   :  { %732 = vmatprep.subr.bf16.mxu0 %v1807_v25  ;;  %958 = vmatprep.subr.bf16.mxu1 %v1809_v26  ;;  %v1867_v5 = vld [vmem:[%s2399_s0] ss:$12 sps:$4 sm:$0xff]   ;;  %v1876_v8 = vld [vmem:[%s2399_s0 + $0x1c] ss:$12 sps:$4 sm:$0xff]   ;;  %v1890_v9 = vld [vmem:[%s2398_s1 + $0x224] ss:$16 sps:$4 sm:$0xff]  }
  0x19   :  { %v1893_v10 = vld [vmem:[%s2398_s1 + $0x22c] ss:$16 sps:$4 sm:$0xff]   ;;  %v1888_v11 = vld [vmem:[%s2398_s1 + $0x220] ss:$16 sps:$4 sm:$0xff]   ;;  %v1891_v12 = vld [vmem:[%s2398_s1 + $0x228] ss:$16 sps:$4 sm:$0xff]  }
  0x1a   :  { %v119_v13 = vld [vmem:[%s2400_s2] sm:$0xff]  ;;  %v121_v14 = vld [vmem:[%s2400_s2 + $0x10] sm:$0xff]  ;;  %v120_v17 = vld [vmem:[%s2400_s2 + $0x8] sm:$0xff] }
  0x1b   :  { %733 = vmatpush1.bf16.msra.mxu0 %v1811_v27  ;;  %959 = vmatpush1.bf16.msra.mxu1 %v1812_v28  ;;  %v1878_v15 = vld [vmem:[%s2399_s0 + $0x18] ss:$12 sps:$4 sm:$0xff]   ;;  %v1879_v16 = vld [vmem:[%s2399_s0 + $0x34] ss:$12 sps:$4 sm:$0xff]   ;;  %v124_v19 = vld [vmem:[%s2400_s2 + $0x28] sm:$0xff] }
  0x1c   :  { %734 = vmatprep.subr.bf16.mxu0 %v1813_v29  ;;  %960 = vmatprep.subr.bf16.mxu1 %v1815_v30  ;;  %v122_v18 = vld [vmem:[%s2400_s2 + $0x18] sm:$0xff]  ;;  %v123_v20 = vld [vmem:[%s2400_s2 + $0x20] sm:$0xff]  ;;  %v125_v24 = vld [vmem:[%s2400_s2 + $0x30] sm:$0xff] }
  0x1d   :  { %137 = vperm.xlu0 %1769, %v119_v13   ;;  %147 = vperm.xlu1 %1770, %v121_v14   ;;  %v1881_v21 = vld [vmem:[%s2399_s0 + $0x30] ss:$12 sps:$4 sm:$0xff]   ;;  %v1882_v22 = vld [vmem:[%s2399_s0 + $0x4c] ss:$12 sps:$4 sm:$0xff]   ;;  %v127_v26 = vld [vmem:[%s2400_s2 + $0x40] sm:$0xff] }
  0x1e   :  { %v126_v23 = vld [vmem:[%s2400_s2 + $0x38] sm:$0xff]  ;;  %v128_v25 = vld [vmem:[%s2400_s2 + $0x48] sm:$0xff]  ;;  %v1885_v28 = vld [vmem:[%s2399_s0 + $0x64] ss:$12 sps:$4 sm:$0xff]  }
  0x1f   :  { %735 = vmatpush1.bf16.msra.mxu0 %v1817_v31  ;;  %961 = vmatpush1.bf16.msra.mxu1 %v1818_v32  ;;  %v1884_v27 = vld [vmem:[%s2399_s0 + $0x48] ss:$12 sps:$4 sm:$0xff]   ;;  %v130_v29 = vld [vmem:[%s2400_s2 + $0x58] sm:$0xff]  ;;  %v131_v32 = vld [vmem:[%s2400_s2 + $0x60] sm:$0xff] }
  0x20   :  { %736 = vmatprep.subr.bf16.mxu0 %v1819_v33  ;;  %962 = vmatprep.subr.bf16.mxu1 %v1821_v34  ;;  %v129_v30 = vld [vmem:[%s2400_s2 + $0x50] sm:$0xff]  ;;  %v132_v31 = vld [vmem:[%s2400_s2 + $0x68] sm:$0xff] }
  0x21   :  { %142 = vperm.xlu0 %1769, %v120_v17   ;;  %152 = vperm.xlu1 %1770, %v122_v18   ;;  %v1887_v33 = vld [vmem:[%s2399_s0 + $0x60] ss:$12 sps:$4 sm:$0xff]   ;;  %v1894_v34 = vld [vmem:[%s2399_s0 + $0x7c] ss:$12 sps:$4 sm:$0xff]  }
  0x22   :  { %v1910_v49 = vld [vmem:[%s2399_s0 + $0xb0] ss:$12 sps:$4 sm:$0xff]  }
  0x23   :  { %737 = vmatpush1.bf16.msra.mxu0 %v1823_v35  ;;  %963 = vmatpush1.bf16.msra.mxu1 %v1824_v36  ;;  %v134_v35 = vld [vmem:[%s2400_s2 + $0x78] sm:$0xff]  ;;  %v133_v36 = vld [vmem:[%s2400_s2 + $0x70] sm:$0xff] }
  0x24   :  { %738 = vmatprep.subr.bf16.mxu0 %v1825_v37  ;;  %964 = vmatprep.subr.bf16.mxu1 %v1827_v38  ;;  %v1896_v37 = vld [vmem:[%s2399_s0 + $0x78] ss:$12 sps:$4 sm:$0xff]   ;;  %v1897_v38 = vld [vmem:[%s2399_s0 + $0x94] ss:$12 sps:$4 sm:$0xff]  }
  0x25   :  { %162 = vperm.xlu1 %1770, %v124_v19   ;;  %157 = vperm.xlu0 %1769, %v123_v20  }
  0x27   :  { %739 = vmatpush1.bf16.msra.mxu0 %v1829_v39  ;;  %965 = vmatpush1.bf16.msra.mxu1 %v1830_v40  ;;  %v1899_v39 = vld [vmem:[%s2399_s0 + $0x90] ss:$12 sps:$4 sm:$0xff]   ;;  %v1900_v40 = vld [vmem:[%s2399_s0 + $0xac] ss:$12 sps:$4 sm:$0xff]  }
  0x28   :  { %740 = vmatprep.subr.bf16.mxu0 %v1831_v41  ;;  %966 = vmatprep.subr.bf16.mxu1 %v1833_v42  ;;  %v1902_v41 = vld [vmem:[%s2399_s0 + $0xa8] ss:$12 sps:$4 sm:$0xff]  }
  0x29   :  { %172 = vperm.xlu1 %1770, %v126_v23   ;;  %167 = vperm.xlu0 %1769, %v125_v24   ;;  %v1903_v42 = vld [vmem:[%s2399_s0 + $0x8] ss:$12 sps:$4 sm:$0xff]  }
  0x2b   :  { %741 = vmatpush1.bf16.msra.mxu0 %v1835_v43  ;;  %967 = vmatpush1.bf16.msra.mxu1 %v1836_v44  ;;  %v1904_v43 = vld [vmem:[%s2399_s0 + $0x20] ss:$12 sps:$4 sm:$0xff]   ;;  %v1905_v44 = vld [vmem:[%s2399_s0 + $0x38] ss:$12 sps:$4 sm:$0xff]  }
  0x2c   :  { %742 = vmatprep.subr.bf16.mxu0 %v1837_v45  ;;  %968 = vmatprep.subr.bf16.mxu1 %v1839_v46  ;;  %v1906_v45 = vld [vmem:[%s2399_s0 + $0x50] ss:$12 sps:$4 sm:$0xff]   ;;  %v1907_v46 = vld [vmem:[%s2399_s0 + $0x68] ss:$12 sps:$4 sm:$0xff]  }
  0x2d   :  { %182 = vperm.xlu1 %1770, %v128_v25   ;;  %177 = vperm.xlu0 %1769, %v127_v26  }
  0x2f   :  { %743 = vmatpush1.bf16.msra.mxu0 %v1841_v47  ;;  %969 = vmatpush1.bf16.msra.mxu1 %v1842_v48  ;;  %v1908_v47 = vld [vmem:[%s2399_s0 + $0x80] ss:$12 sps:$4 sm:$0xff]   ;;  %v1909_v48 = vld [vmem:[%s2399_s0 + $0x98] ss:$12 sps:$4 sm:$0xff]  }
  0x30   :  { %744 = vmatprep.subr.bf16.mxu0 %v1843_v50  ;;  %970 = vmatprep.subr.bf16.mxu1 %v1845_v51 }
  0x31   :  { %192 = vperm.xlu1 %1770, %v130_v29   ;;  %187 = vperm.xlu0 %1769, %v129_v30  }
  0x33   :  { %745 = vmatpush1.bf16.msra.mxu0 %v1847_v52  ;;  %971 = vmatpush1.bf16.msra.mxu1 %v1848_v53 }
  0x34   :  { %746 = vmatprep.subr.bf16.mxu0 %v1849_v54  ;;  %972 = vmatprep.subr.bf16.mxu1 %v1851_v55 }
  0x35   :  { %202 = vperm.xlu1 %1770, %v132_v31   ;;  %197 = vperm.xlu0 %1769, %v131_v32  }
  0x37   :  { %747 = vmatpush1.bf16.msra.mxu0 %v1853_v56  ;;  %973 = vmatpush1.bf16.msra.mxu1 %v1854_v57 }
  0x38   :  { %748 = vmatprep.subr.bf16.mxu0 %v1855_v58  ;;  %974 = vmatprep.subr.bf16.mxu1 %v1857_v59 }
  0x39   :  { %212 = vperm.xlu1 %1770, %v134_v35   ;;  %207 = vperm.xlu0 %1769, %v133_v36  }
  0x3b   :  { %749 = vmatpush1.bf16.msra.mxu0 %v1859_v60  ;;  %975 = vmatpush1.bf16.msra.mxu1 %v1860_v61 }
  0x3c   :  { %750 = vmatprep.subr.bf16.mxu0 %v1861_v62  ;;  %976 = vmatprep.subr.bf16.mxu1 %v1863_v63 }
  0x3f   :  { %751 = vmatpush1.bf16.msra.mxu0 %v1865_v0  ;;  %977 = vmatpush1.bf16.msra.mxu1 %v1866_v2 }
  0x40   :  { %833 = vmatprep.subr.bf16.mxu0 %v1872_v3  ;;  %1059 = vmatprep.subr.bf16.mxu1 %v1875_v4 }
  0x42   :  { %753 = vmatmul.mubr.bf16.vlgmr.msra.gmra.mrb[0].mxu0 %v1867_v5  ;;  %979 = vmatmul.mubr.bf16.vlgmr.msra.gmra.mrb[0].mxu1 %v1867_v5 }
  0x43   :  { %834 = vmatpush1.bf16.msra.mxu0 %v1870_v6  ;;  %1060 = vmatpush1.bf16.msra.mxu1 %v1873_v7 }
  0x44   :  { %762 = vmatprep.mubr.bf16.mxu0 %v1876_v8  ;;  %988 = vmatprep.mubr.bf16.mxu1 %v1876_v8 }
  0x45   :  { %835 = vmatprep.subr.bf16.mxu0 %v1890_v9  ;;  %1061 = vmatprep.subr.bf16.mxu1 %v1893_v10 }
  0x47   :  { %836 = vmatpush1.bf16.msra.mxu0 %v1888_v11  ;;  %1062 = vmatpush1.bf16.msra.mxu1 %v1891_v12 }
  0x4a   :  { %763 = vmatmul.mubr.bf16.gmra.mrb[4].mxu0 %v1878_v15  ;;  %989 = vmatmul.mubr.bf16.gmra.mrb[4].mxu1 %v1878_v15 }
  0x4b   :  { %772 = vmatprep.mubr.bf16.mxu0 %v1879_v16  ;;  %998 = vmatprep.mubr.bf16.mxu1 %v1879_v16 }
  0x52   :  { %773 = vmatmul.mubr.bf16.gmra.mrb[8].mxu0 %v1881_v21  ;;  %999 = vmatmul.mubr.bf16.gmra.mrb[8].mxu1 %v1881_v21 }
  0x53   :  { %782 = vmatprep.mubr.bf16.mxu0 %v1882_v22  ;;  %1008 = vmatprep.mubr.bf16.mxu1 %v1882_v22 }
  0x5a   :  { %783 = vmatmul.mubr.bf16.gmra.mrb[12].mxu0 %v1884_v27  ;;  %1009 = vmatmul.mubr.bf16.gmra.mrb[12].mxu1 %v1884_v27 }
  0x5b   :  { %792 = vmatprep.mubr.bf16.mxu0 %v1885_v28  ;;  %1018 = vmatprep.mubr.bf16.mxu1 %v1885_v28 }
  0x62   :  { %793 = vmatmul.mubr.bf16.gmra.mrb[16].mxu0 %v1887_v33  ;;  %1019 = vmatmul.mubr.bf16.gmra.mrb[16].mxu1 %v1887_v33 }
  0x63   :  { %802 = vmatprep.mubr.bf16.mxu0 %v1894_v34  ;;  %1028 = vmatprep.mubr.bf16.mxu1 %v1894_v34 }
  0x6a   :  { %803 = vmatmul.mubr.bf16.gmra.mrb[20].mxu0 %v1896_v37  ;;  %1029 = vmatmul.mubr.bf16.gmra.mrb[20].mxu1 %v1896_v37 }
  0x6b   :  { %812 = vmatprep.mubr.bf16.mxu0 %v1897_v38  ;;  %1038 = vmatprep.mubr.bf16.mxu1 %v1897_v38 }
  0x72   :  { %813 = vmatmul.mubr.bf16.gmra.mrb[24].mxu0 %v1899_v39  ;;  %1039 = vmatmul.mubr.bf16.gmra.mrb[24].mxu1 %v1899_v39 }
  0x73   :  { %822 = vmatprep.mubr.bf16.mxu0 %v1900_v40  ;;  %1048 = vmatprep.mubr.bf16.mxu1 %v1900_v40 }
  0x7a   :  { %823 = vmatmul.mubr.bf16.gmra.mrb[28].mxu0 %v1902_v41  ;;  %1049 = vmatmul.mubr.bf16.gmra.mrb[28].mxu1 %v1902_v41 }
  0x7b   :  { %865 = vmatprep.mubr.bf16.mxu0 %v1911_v1  ;;  %1091 = vmatprep.mubr.bf16.mxu1 %v1911_v1 }
  0x82   :  { %1560 = vmatmul.mubr.msk.bf16.vlgmr.msra.gmra.mrb[0].mxu0 %vm695_vm0, %v1903_v42  ;;  %1568 = vmatmul.mubr.msk.bf16.vlgmr.msra.gmra.mrb[0].mxu1 %vm695_vm0, %v1903_v42 }
  0x83   :  { %875 = vmatprep.mubr.bf16.mxu0 %v1911_v1  ;;  %1101 = vmatprep.mubr.bf16.mxu1 %v1911_v1 }
  0x8a   :  { %1561 = vmatmul.mubr.msk.bf16.gmra.mrb[4].mxu0 %vm695_vm0, %v1904_v43  ;;  %1569 = vmatmul.mubr.msk.bf16.gmra.mrb[4].mxu1 %vm695_vm0, %v1904_v43 }
  0x8b   :  { %885 = vmatprep.mubr.bf16.mxu0 %v1911_v1  ;;  %1111 = vmatprep.mubr.bf16.mxu1 %v1911_v1 }
  0x92   :  { %1562 = vmatmul.mubr.msk.bf16.gmra.mrb[8].mxu0 %vm695_vm0, %v1905_v44  ;;  %1570 = vmatmul.mubr.msk.bf16.gmra.mrb[8].mxu1 %vm695_vm0, %v1905_v44 }
  0x93   :  { %895 = vmatprep.mubr.bf16.mxu0 %v1911_v1  ;;  %1121 = vmatprep.mubr.bf16.mxu1 %v1911_v1 }
  0x9a   :  { %1563 = vmatmul.mubr.msk.bf16.gmra.mrb[12].mxu0 %vm695_vm0, %v1906_v45  ;;  %1571 = vmatmul.mubr.msk.bf16.gmra.mrb[12].mxu1 %vm695_vm0, %v1906_v45 }
  0x9b   :  { %905 = vmatprep.mubr.bf16.mxu0 %v1911_v1  ;;  %1131 = vmatprep.mubr.bf16.mxu1 %v1911_v1 }
  0x9c   :  { %v138_v50 = vpop.permute.xlu0 %137  ;;  %v148_v52 = vpop.permute.xlu1 %147 }
  0xa0   :  { %v143_v51 = vpop.permute.xlu0 %142  ;;  %v153_v15 = vpop.permute.xlu1 %152 }
  0xa2   :  { %1564 = vmatmul.mubr.msk.bf16.gmra.mrb[16].mxu0 %vm695_vm0, %v1907_v46  ;;  %1572 = vmatmul.mubr.msk.bf16.gmra.mrb[16].mxu1 %vm695_vm0, %v1907_v46 }
  0xa3   :  { %915 = vmatprep.mubr.bf16.mxu0 %v1911_v1  ;;  %1141 = vmatprep.mubr.bf16.mxu1 %v1911_v1 }
  0xa4   :  { %v163_v44 = vpop.permute.xlu1 %162  ;;  %v158_v45 = vpop.permute.xlu0 %157 }
  0xaa   :  { %1565 = vmatmul.mubr.msk.bf16.gmra.mrb[20].mxu0 %vm695_vm0, %v1908_v47  ;;  %1573 = vmatmul.mubr.msk.bf16.gmra.mrb[20].mxu1 %vm695_vm0, %v1908_v47 }
  0xab   :  { %925 = vmatprep.mubr.bf16.mxu0 %v1911_v1  ;;  %1151 = vmatprep.mubr.bf16.mxu1 %v1911_v1 }
  0xb2   :  { %1566 = vmatmul.mubr.msk.bf16.gmra.mrb[24].mxu0 %vm695_vm0, %v1909_v48  ;;  %1574 = vmatmul.mubr.msk.bf16.gmra.mrb[24].mxu1 %vm695_vm0, %v1909_v48 }
  0xb3   :  { %935 = vmatprep.mubr.bf16.mxu0 %v1911_v1  ;;  %1161 = vmatprep.mubr.bf16.mxu1 %v1911_v1 }
  0xba   :  { %1567 = vmatmul.mubr.msk.bf16.gmra.mrb[28].mxu0 %vm695_vm0, %v1910_v49  ;;  %1575 = vmatmul.mubr.msk.bf16.gmra.mrb[28].mxu1 %vm695_vm0, %v1910_v49 }
 0x155   :  { %v867_v53 = vpop.f32.mrb[0].mxu0  ;;  %v1093_v54 = vpop.f32.mrb[0].mxu1 }
 0x156   :  { %v1640_v55 = vadd.f32 %v867_v53, %v138_v50  ;;  %v1672_v56 = vadd.f32 %v1093_v54, %v138_v50  ;;  %v869_v57 = vpop.f32.mrb[1].mxu0  ;;  %v1095_v58 = vpop.f32.mrb[1].mxu1 }
 0x157   :  { %v1641_v59 = vadd.f32 %v869_v57, %v138_v50  ;;  %v1673_v60 = vadd.f32 %v1095_v58, %v138_v50  ;;  %v871_v1 = vpop.f32.mrb[2].mxu0  ;;  %v1097_v61 = vpop.f32.mrb[2].mxu1 }
 0x158   :  { %v1172_v62 = vmax.f32 %v1640_v55, 0.0  ;;  %v1174_v63 = vmax.f32 %v1672_v56, 0.0  ;;  %v1642_v0 = vadd.f32 %v871_v1, %v143_v51  ;;  %v1674_v2 = vadd.f32 %v1097_v61, %v143_v51  ;;  %v873_v3 = vpop.f32.mrb[3].mxu0  ;;  %v1099_v4 = vpop.f32.mrb[3].mxu1 }
 0x159   :  { %v1173_v5 = vmax.f32 %v1641_v59, 0.0  ;;  %v1175_v6 = vmax.f32 %v1673_v60, 0.0  ;;  %v1643_v7 = vadd.f32 %v873_v3, %v143_v51  ;;  %v1675_v8 = vadd.f32 %v1099_v4, %v143_v51 }
 0x15a   :  { %v1176_v9 = vmax.f32 %v1642_v0, 0.0  ;;  %v1178_v10 = vmax.f32 %v1674_v2, 0.0 }
 0x15b   :  { %v1608_v11 = vpack.c.bf16 %v1173_v5, %v1172_v62  ;;  %v1609_v12 = vpack.c.bf16 %v1175_v6, %v1174_v63  ;;  %v1177_v13 = vmax.f32 %v1643_v7, 0.0  ;;  %v1179_v14 = vmax.f32 %v1675_v8, 0.0 }
 0x15d   :  { %1428 = vst [vmem:[%s2401_s3] sm:$0xff] %v1608_v11  ;;  %1429 = vst [vmem:[%s2401_s3 + $0x8] sm:$0xff] %v1609_v12  ;;  %v1610_v16 = vpack.c.bf16 %v1177_v13, %v1176_v9  ;;  %v1611_v17 = vpack.c.bf16 %v1179_v14, %v1178_v10  ;;  %v877_v18 = vpop.f32.mrb[4].mxu0  ;;  %v1103_v19 = vpop.f32.mrb[4].mxu1 }
 0x15e   :  { %v1644_v20 = vadd.f32 %v877_v18, %v148_v52  ;;  %v1676_v21 = vadd.f32 %v1103_v19, %v148_v52  ;;  %v879_v22 = vpop.f32.mrb[5].mxu0  ;;  %v1105_v23 = vpop.f32.mrb[5].mxu1 }
 0x15f   :  { %1430 = vst [vmem:[%s2401_s3 + $0x10] sm:$0xff] %v1610_v16  ;;  %1431 = vst [vmem:[%s2401_s3 + $0x18] sm:$0xff] %v1611_v17  ;;  %v1645_v24 = vadd.f32 %v879_v22, %v148_v52  ;;  %v1677_v25 = vadd.f32 %v1105_v23, %v148_v52  ;;  %v881_v26 = vpop.f32.mrb[6].mxu0  ;;  %v1107_v27 = vpop.f32.mrb[6].mxu1 }
 0x160   :  { %v1180_v28 = vmax.f32 %v1644_v20, 0.0  ;;  %v1182_v29 = vmax.f32 %v1676_v21, 0.0  ;;  %v1646_v30 = vadd.f32 %v881_v26, %v153_v15  ;;  %v1678_v31 = vadd.f32 %v1107_v27, %v153_v15  ;;  %v883_v32 = vpop.f32.mrb[7].mxu0  ;;  %v1109_v33 = vpop.f32.mrb[7].mxu1 }
 0x161   :  { %v1181_v34 = vmax.f32 %v1645_v24, 0.0  ;;  %v1183_v35 = vmax.f32 %v1677_v25, 0.0  ;;  %v1647_v36 = vadd.f32 %v883_v32, %v153_v15  ;;  %v1679_v37 = vadd.f32 %v1109_v33, %v153_v15  ;;  %v173_v10 = vpop.permute.xlu1 %172  ;;  %v168_v11 = vpop.permute.xlu0 %167 }
 0x162   :  { %v1184_v38 = vmax.f32 %v1646_v30, 0.0  ;;  %v1186_v39 = vmax.f32 %v1678_v31, 0.0 }
 0x163   :  { %v1612_v40 = vpack.c.bf16 %v1181_v34, %v1180_v28  ;;  %v1613_v41 = vpack.c.bf16 %v1183_v35, %v1182_v29  ;;  %v1185_v42 = vmax.f32 %v1647_v36, 0.0  ;;  %v1187_v43 = vmax.f32 %v1679_v37, 0.0 }
 0x165   :  { %1432 = vst [vmem:[%s2401_s3 + $0x20] sm:$0xff] %v1612_v40  ;;  %1433 = vst [vmem:[%s2401_s3 + $0x28] sm:$0xff] %v1613_v41  ;;  %v1614_v46 = vpack.c.bf16 %v1185_v42, %v1184_v38  ;;  %v1615_v47 = vpack.c.bf16 %v1187_v43, %v1186_v39  ;;  %v887_v48 = vpop.f32.mrb[8].mxu0  ;;  %v1113_v49 = vpop.f32.mrb[8].mxu1 }
 0x166   :  { %v1648_v50 = vadd.f32 %v887_v48, %v158_v45  ;;  %v1680_v51 = vadd.f32 %v1113_v49, %v158_v45  ;;  %v889_v52 = vpop.f32.mrb[9].mxu0  ;;  %v1115_v53 = vpop.f32.mrb[9].mxu1 }
 0x167   :  { %1434 = vst [vmem:[%s2401_s3 + $0x30] sm:$0xff] %v1614_v46  ;;  %1435 = vst [vmem:[%s2401_s3 + $0x38] sm:$0xff] %v1615_v47  ;;  %v1649_v54 = vadd.f32 %v889_v52, %v158_v45  ;;  %v1681_v55 = vadd.f32 %v1115_v53, %v158_v45  ;;  %v891_v56 = vpop.f32.mrb[10].mxu0  ;;  %v1117_v57 = vpop.f32.mrb[10].mxu1 }
 0x168   :  { %v1188_v58 = vmax.f32 %v1648_v50, 0.0  ;;  %v1190_v59 = vmax.f32 %v1680_v51, 0.0  ;;  %v1650_v60 = vadd.f32 %v891_v56, %v163_v44  ;;  %v1682_v1 = vadd.f32 %v1117_v57, %v163_v44  ;;  %v893_v61 = vpop.f32.mrb[11].mxu0  ;;  %v1119_v62 = vpop.f32.mrb[11].mxu1 }
 0x169   :  { %v1189_v63 = vmax.f32 %v1649_v54, 0.0  ;;  %v1191_v0 = vmax.f32 %v1681_v55, 0.0  ;;  %v1651_v2 = vadd.f32 %v893_v61, %v163_v44  ;;  %v1683_v3 = vadd.f32 %v1119_v62, %v163_v44  ;;  %v183_v40 = vpop.permute.xlu1 %182  ;;  %v178_v41 = vpop.permute.xlu0 %177 }
 0x16a   :  { %v1192_v4 = vmax.f32 %v1650_v60, 0.0  ;;  %v1194_v5 = vmax.f32 %v1682_v1, 0.0 }
 0x16b   :  { %v1616_v6 = vpack.c.bf16 %v1189_v63, %v1188_v58  ;;  %v1617_v7 = vpack.c.bf16 %v1191_v0, %v1190_v59  ;;  %v1193_v8 = vmax.f32 %v1651_v2, 0.0  ;;  %v1195_v9 = vmax.f32 %v1683_v3, 0.0 }
 0x16d   :  { %1436 = vst [vmem:[%s2401_s3 + $0x40] sm:$0xff] %v1616_v6  ;;  %1437 = vst [vmem:[%s2401_s3 + $0x48] sm:$0xff] %v1617_v7  ;;  %v1618_v12 = vpack.c.bf16 %v1193_v8, %v1192_v4  ;;  %v1619_v13 = vpack.c.bf16 %v1195_v9, %v1194_v5  ;;  %v897_v14 = vpop.f32.mrb[12].mxu0  ;;  %v1123_v15 = vpop.f32.mrb[12].mxu1 }
 0x16e   :  { %v1652_v16 = vadd.f32 %v897_v14, %v168_v11  ;;  %v1684_v17 = vadd.f32 %v1123_v15, %v168_v11  ;;  %v899_v18 = vpop.f32.mrb[13].mxu0  ;;  %v1125_v19 = vpop.f32.mrb[13].mxu1 }
 0x16f   :  { %1438 = vst [vmem:[%s2401_s3 + $0x50] sm:$0xff] %v1618_v12  ;;  %1439 = vst [vmem:[%s2401_s3 + $0x58] sm:$0xff] %v1619_v13  ;;  %v1653_v20 = vadd.f32 %v899_v18, %v168_v11  ;;  %v1685_v21 = vadd.f32 %v1125_v19, %v168_v11  ;;  %v901_v22 = vpop.f32.mrb[14].mxu0  ;;  %v1127_v23 = vpop.f32.mrb[14].mxu1 }
 0x170   :  { %v1196_v24 = vmax.f32 %v1652_v16, 0.0  ;;  %v1198_v25 = vmax.f32 %v1684_v17, 0.0  ;;  %v1654_v26 = vadd.f32 %v901_v22, %v173_v10  ;;  %v1686_v27 = vadd.f32 %v1127_v23, %v173_v10  ;;  %v903_v28 = vpop.f32.mrb[15].mxu0  ;;  %v1129_v29 = vpop.f32.mrb[15].mxu1 }
 0x171   :  { %v1197_v30 = vmax.f32 %v1653_v20, 0.0  ;;  %v1199_v31 = vmax.f32 %v1685_v21, 0.0  ;;  %v1655_v32 = vadd.f32 %v903_v28, %v173_v10  ;;  %v1687_v33 = vadd.f32 %v1129_v29, %v173_v10  ;;  %v193_v6 = vpop.permute.xlu1 %192  ;;  %v188_v7 = vpop.permute.xlu0 %187 }
 0x172   :  { %v1200_v34 = vmax.f32 %v1654_v26, 0.0  ;;  %v1202_v35 = vmax.f32 %v1686_v27, 0.0 }
 0x173   :  { %v1620_v36 = vpack.c.bf16 %v1197_v30, %v1196_v24  ;;  %v1621_v37 = vpack.c.bf16 %v1199_v31, %v1198_v25  ;;  %v1201_v38 = vmax.f32 %v1655_v32, 0.0  ;;  %v1203_v39 = vmax.f32 %v1687_v33, 0.0 }
 0x175   :  { %1440 = vst [vmem:[%s2401_s3 + $0x60] sm:$0xff] %v1620_v36  ;;  %1441 = vst [vmem:[%s2401_s3 + $0x68] sm:$0xff] %v1621_v37  ;;  %v1622_v42 = vpack.c.bf16 %v1201_v38, %v1200_v34  ;;  %v1623_v43 = vpack.c.bf16 %v1203_v39, %v1202_v35  ;;  %v907_v44 = vpop.f32.mrb[16].mxu0  ;;  %v1133_v45 = vpop.f32.mrb[16].mxu1 }
 0x176   :  { %v1656_v46 = vadd.f32 %v907_v44, %v178_v41  ;;  %v1688_v47 = vadd.f32 %v1133_v45, %v178_v41  ;;  %v909_v48 = vpop.f32.mrb[17].mxu0  ;;  %v1135_v49 = vpop.f32.mrb[17].mxu1 }
 0x177   :  { %1442 = vst [vmem:[%s2401_s3 + $0x70] sm:$0xff] %v1622_v42  ;;  %1443 = vst [vmem:[%s2401_s3 + $0x78] sm:$0xff] %v1623_v43  ;;  %v1657_v50 = vadd.f32 %v909_v48, %v178_v41  ;;  %v1689_v51 = vadd.f32 %v1135_v49, %v178_v41  ;;  %v911_v52 = vpop.f32.mrb[18].mxu0  ;;  %v1137_v53 = vpop.f32.mrb[18].mxu1 }
 0x178   :  { %v1204_v54 = vmax.f32 %v1656_v46, 0.0  ;;  %v1206_v55 = vmax.f32 %v1688_v47, 0.0  ;;  %v1658_v56 = vadd.f32 %v911_v52, %v183_v40  ;;  %v1690_v57 = vadd.f32 %v1137_v53, %v183_v40  ;;  %v913_v58 = vpop.f32.mrb[19].mxu0  ;;  %v1139_v59 = vpop.f32.mrb[19].mxu1 }
 0x179   :  { %v1205_v60 = vmax.f32 %v1657_v50, 0.0  ;;  %v1207_v1 = vmax.f32 %v1689_v51, 0.0  ;;  %v1659_v61 = vadd.f32 %v913_v58, %v183_v40  ;;  %v1691_v62 = vadd.f32 %v1139_v59, %v183_v40  ;;  %v203_v36 = vpop.permute.xlu1 %202  ;;  %v198_v37 = vpop.permute.xlu0 %197 }
 0x17a   :  { %v1208_v63 = vmax.f32 %v1658_v56, 0.0  ;;  %v1210_v0 = vmax.f32 %v1690_v57, 0.0 }
 0x17b   :  { %v1624_v2 = vpack.c.bf16 %v1205_v60, %v1204_v54  ;;  %v1625_v3 = vpack.c.bf16 %v1207_v1, %v1206_v55  ;;  %v1209_v4 = vmax.f32 %v1659_v61, 0.0  ;;  %v1211_v5 = vmax.f32 %v1691_v62, 0.0 }
 0x17d   :  { %1444 = vst [vmem:[%s2401_s3 + $0x80] sm:$0xff] %v1624_v2  ;;  %1445 = vst [vmem:[%s2401_s3 + $0x88] sm:$0xff] %v1625_v3  ;;  %v1626_v8 = vpack.c.bf16 %v1209_v4, %v1208_v63  ;;  %v1627_v9 = vpack.c.bf16 %v1211_v5, %v1210_v0  ;;  %v917_v10 = vpop.f32.mrb[20].mxu0  ;;  %v1143_v11 = vpop.f32.mrb[20].mxu1 }
 0x17e   :  { %v1660_v12 = vadd.f32 %v917_v10, %v188_v7  ;;  %v1692_v13 = vadd.f32 %v1143_v11, %v188_v7  ;;  %v919_v14 = vpop.f32.mrb[21].mxu0  ;;  %v1145_v15 = vpop.f32.mrb[21].mxu1 }
 0x17f   :  { %1446 = vst [vmem:[%s2401_s3 + $0x90] sm:$0xff] %v1626_v8  ;;  %1447 = vst [vmem:[%s2401_s3 + $0x98] sm:$0xff] %v1627_v9  ;;  %v1661_v16 = vadd.f32 %v919_v14, %v188_v7  ;;  %v1693_v17 = vadd.f32 %v1145_v15, %v188_v7  ;;  %v921_v18 = vpop.f32.mrb[22].mxu0  ;;  %v1147_v19 = vpop.f32.mrb[22].mxu1 }
 0x180   :  { %v1212_v20 = vmax.f32 %v1660_v12, 0.0  ;;  %v1214_v21 = vmax.f32 %v1692_v13, 0.0  ;;  %v1662_v22 = vadd.f32 %v921_v18, %v193_v6  ;;  %v1694_v23 = vadd.f32 %v1147_v19, %v193_v6  ;;  %v923_v24 = vpop.f32.mrb[23].mxu0  ;;  %v1149_v25 = vpop.f32.mrb[23].mxu1 }
 0x181   :  { %v1213_v26 = vmax.f32 %v1661_v16, 0.0  ;;  %v1215_v27 = vmax.f32 %v1693_v17, 0.0  ;;  %v1663_v28 = vadd.f32 %v923_v24, %v193_v6  ;;  %v1695_v29 = vadd.f32 %v1149_v25, %v193_v6  ;;  %v213_v2 = vpop.permute.xlu1 %212  ;;  %v208_v3 = vpop.permute.xlu0 %207 }
 0x182   :  { %v1216_v30 = vmax.f32 %v1662_v22, 0.0  ;;  %v1218_v31 = vmax.f32 %v1694_v23, 0.0 }
 0x183   :  { %v1628_v32 = vpack.c.bf16 %v1213_v26, %v1212_v20  ;;  %v1629_v33 = vpack.c.bf16 %v1215_v27, %v1214_v21  ;;  %v1217_v34 = vmax.f32 %v1663_v28, 0.0  ;;  %v1219_v35 = vmax.f32 %v1695_v29, 0.0 }
 0x185   :  { %1448 = vst [vmem:[%s2401_s3 + $0xa0] sm:$0xff] %v1628_v32  ;;  %1449 = vst [vmem:[%s2401_s3 + $0xa8] sm:$0xff] %v1629_v33  ;;  %v1630_v38 = vpack.c.bf16 %v1217_v34, %v1216_v30  ;;  %v1631_v39 = vpack.c.bf16 %v1219_v35, %v1218_v31  ;;  %v927_v40 = vpop.f32.mrb[24].mxu0  ;;  %v1153_v41 = vpop.f32.mrb[24].mxu1 }
 0x186   :  { %v1664_v42 = vadd.f32 %v927_v40, %v198_v37  ;;  %v1696_v43 = vadd.f32 %v1153_v41, %v198_v37  ;;  %v929_v44 = vpop.f32.mrb[25].mxu0  ;;  %v1155_v45 = vpop.f32.mrb[25].mxu1 }
 0x187   :  { %1450 = vst [vmem:[%s2401_s3 + $0xb0] sm:$0xff] %v1630_v38  ;;  %1451 = vst [vmem:[%s2401_s3 + $0xb8] sm:$0xff] %v1631_v39  ;;  %v1665_v46 = vadd.f32 %v929_v44, %v198_v37  ;;  %v1697_v47 = vadd.f32 %v1155_v45, %v198_v37  ;;  %v931_v48 = vpop.f32.mrb[26].mxu0  ;;  %v1157_v49 = vpop.f32.mrb[26].mxu1 }
 0x188   :  { %v1220_v50 = vmax.f32 %v1664_v42, 0.0  ;;  %v1222_v51 = vmax.f32 %v1696_v43, 0.0  ;;  %v1666_v52 = vadd.f32 %v931_v48, %v203_v36  ;;  %v1698_v53 = vadd.f32 %v1157_v49, %v203_v36  ;;  %v933_v54 = vpop.f32.mrb[27].mxu0  ;;  %v1159_v55 = vpop.f32.mrb[27].mxu1 }
 0x189   :  { %v1221_v56 = vmax.f32 %v1665_v46, 0.0  ;;  %v1223_v57 = vmax.f32 %v1697_v47, 0.0  ;;  %v1667_v58 = vadd.f32 %v933_v54, %v203_v36  ;;  %v1699_v59 = vadd.f32 %v1159_v55, %v203_v36 }
 0x18a   :  { %v1224_v60 = vmax.f32 %v1666_v52, 0.0  ;;  %v1226_v1 = vmax.f32 %v1698_v53, 0.0 }
 0x18b   :  { %v1632_v61 = vpack.c.bf16 %v1221_v56, %v1220_v50  ;;  %v1633_v62 = vpack.c.bf16 %v1223_v57, %v1222_v51  ;;  %v1225_v63 = vmax.f32 %v1667_v58, 0.0  ;;  %v1227_v0 = vmax.f32 %v1699_v59, 0.0 }
 0x18d   :  { %1452 = vst [vmem:[%s2401_s3 + $0xc0] sm:$0xff] %v1632_v61  ;;  %1453 = vst [vmem:[%s2401_s3 + $0xc8] sm:$0xff] %v1633_v62  ;;  %v1634_v4 = vpack.c.bf16 %v1225_v63, %v1224_v60  ;;  %v1635_v5 = vpack.c.bf16 %v1227_v0, %v1226_v1  ;;  %v937_v6 = vpop.f32.mrb[28].mxu0  ;;  %v1163_v7 = vpop.f32.mrb[28].mxu1 }
 0x18e   :  { %v1668_v8 = vadd.f32 %v937_v6, %v208_v3  ;;  %v1700_v9 = vadd.f32 %v1163_v7, %v208_v3  ;;  %v939_v10 = vpop.f32.mrb[29].mxu0  ;;  %v1165_v11 = vpop.f32.mrb[29].mxu1 }
 0x18f   :  { %1454 = vst [vmem:[%s2401_s3 + $0xd0] sm:$0xff] %v1634_v4  ;;  %1455 = vst [vmem:[%s2401_s3 + $0xd8] sm:$0xff] %v1635_v5  ;;  %v1669_v12 = vadd.f32 %v939_v10, %v208_v3  ;;  %v1701_v13 = vadd.f32 %v1165_v11, %v208_v3  ;;  %v941_v14 = vpop.f32.mrb[30].mxu0  ;;  %v1167_v15 = vpop.f32.mrb[30].mxu1 }
 0x190   :  { %v1228_v16 = vmax.f32 %v1668_v8, 0.0  ;;  %v1230_v17 = vmax.f32 %v1700_v9, 0.0  ;;  %v1670_v18 = vadd.f32 %v941_v14, %v213_v2  ;;  %v1702_v19 = vadd.f32 %v1167_v15, %v213_v2  ;;  %v943_v20 = vpop.f32.mrb[31].mxu0  ;;  %v1169_v21 = vpop.f32.mrb[31].mxu1 }
 0x191   :  { %v1229_v22 = vmax.f32 %v1669_v12, 0.0  ;;  %v1231_v23 = vmax.f32 %v1701_v13, 0.0  ;;  %v1671_v24 = vadd.f32 %v943_v20, %v213_v2  ;;  %v1703_v25 = vadd.f32 %v1169_v21, %v213_v2 }
 0x192   :  { %v1232_v26 = vmax.f32 %v1670_v18, 0.0  ;;  %v1234_v27 = vmax.f32 %v1702_v19, 0.0 }
 0x193   :  { %v1636_v28 = vpack.c.bf16 %v1229_v22, %v1228_v16  ;;  %v1637_v29 = vpack.c.bf16 %v1231_v23, %v1230_v17  ;;  %v1233_v30 = vmax.f32 %v1671_v24, 0.0  ;;  %v1235_v31 = vmax.f32 %v1703_v25, 0.0 }
 0x195   :  { %1456 = vst [vmem:[%s2401_s3 + $0xe0] sm:$0xff] %v1636_v28  ;;  %1457 = vst [vmem:[%s2401_s3 + $0xe8] sm:$0xff] %v1637_v29  ;;  %v1638_v32 = vpack.c.bf16 %v1233_v30, %v1232_v26  ;;  %v1639_v33 = vpack.c.bf16 %v1235_v31, %v1234_v27 }
 0x197   :  { %1458 = vst [vmem:[%s2401_s3 + $0xf0] sm:$0xff] %v1638_v32  ;;  %1459 = vst [vmem:[%s2401_s3 + $0xf8] sm:$0xff] %v1639_v33 }

// kernel: vaefc_forward.15
= control target key start
LH: loop header
LB: loop body
LE: loop exit
PB: predicated region body
PF: predicated region fallthrough
CT: control target
= control target key end

     0   :  { %v4597_v27 = vmov 0   ;;  %v471_v40 = vlaneseq  ;;  %v4598_v41 = vmov 1966171168   ;;  %s6079_s1 = inlined_call_operand.vmem [shape: bf16[512,1682], index: 1, kind: input, shape index: {}]   ;;  %s6080_s2 = inlined_call_operand.<no memory space> [shape: f32[1,1], index: 2, kind: input, shape index: {}]   ;;  %s6081_s0 = inlined_call_operand.vmem [shape: bf16[1,512], index: 0, kind: input, shape index: {}]   ;;  %s6082_s3 = inlined_call_operand.vmem [shape: f32[1,1682], index: 3, kind: output, shape index: {}]  }
   0x1   :  { %v3925_v0 = vld [vmem:[%s6079_s1 + $0x4] ss:$56 sps:$4 sm:$0xff]   ;;  %v3929_v2 = vld [vmem:[%s6079_s1] ss:$56 sps:$4 sm:$0xff]   ;;  %v3931_v4 = vld [vmem:[%s6079_s1 + $0x74] ss:$56 sps:$4 sm:$0xff]   ;;  %v8_v18 = vstv %s6080_s2  ;;  %3924 = vset.pattern.permute.xlu0 %v4597_v27  ;;  %v485_v42 = vunpack.c.l.s4 %v4598_v41 }
   0x2   :  { %v3927_v1 = vld [vmem:[%s6079_s1 + $0x704] ss:$56 sps:$4 sm:$0xff]   ;;  %2744 = vmatprep.subr.bf16.mxu1 %v3925_v0  ;;  %v3930_v3 = vld [vmem:[%s6079_s1 + $0x700] ss:$56 sps:$4 sm:$0xff]   ;;  %v3933_v5 = vld [vmem:[%s6079_s1 + $0x774] ss:$56 sps:$4 sm:$0xff]  }
   0x3   :  { %2785 = vmatprep.subr.bf16.mxu0 %v3927_v1  ;;  %2745 = vmatpush1.bf16.msra.mxu1 %v3929_v2  ;;  %v3935_v6 = vld [vmem:[%s6079_s1 + $0x70] ss:$56 sps:$4 sm:$0xff]   ;;  %v3937_v8 = vld [vmem:[%s6079_s1 + $0xe4] ss:$56 sps:$4 sm:$0xff]   ;;  %v3941_v10 = vld [vmem:[%s6079_s1 + $0xe0] ss:$56 sps:$4 sm:$0xff]   ;;  %v486_v48 = vunpack.c.0.s8 %v485_v42 }
   0x4   :  { %2786 = vmatpush1.bf16.msra.mxu0 %v3930_v3  ;;  %2746 = vmatprep.subr.bf16.mxu1 %v3931_v4  ;;  %v3936_v7 = vld [vmem:[%s6079_s1 + $0x770] ss:$56 sps:$4 sm:$0xff]   ;;  %v3939_v9 = vld [vmem:[%s6079_s1 + $0x7e4] ss:$56 sps:$4 sm:$0xff]   ;;  %v3942_v11 = vld [vmem:[%s6079_s1 + $0x7e0] ss:$56 sps:$4 sm:$0xff]  }
   0x5   :  { %2787 = vmatprep.subr.bf16.mxu0 %v3933_v5  ;;  %v3943_v12 = vld [vmem:[%s6079_s1 + $0x154] ss:$56 sps:$4 sm:$0xff]   ;;  %v3947_v14 = vld [vmem:[%s6079_s1 + $0x150] ss:$56 sps:$4 sm:$0xff]   ;;  %v3949_v16 = vld [vmem:[%s6079_s1 + $0x1c4] ss:$56 sps:$4 sm:$0xff]  }
   0x6   :  { %v3945_v13 = vld [vmem:[%s6079_s1 + $0x854] ss:$56 sps:$4 sm:$0xff]   ;;  %v3948_v15 = vld [vmem:[%s6079_s1 + $0x850] ss:$56 sps:$4 sm:$0xff]   ;;  %v3951_v17 = vld [vmem:[%s6079_s1 + $0x8c4] ss:$56 sps:$4 sm:$0xff]  }
   0x7   :  { %2747 = vmatpush1.bf16.msra.mxu1 %v3935_v6  ;;  %9 = vst [vmem:[#allocation2] sm:$0x1] %v8_v18  ;;  %v3953_v19 = vld [vmem:[%s6079_s1 + $0x1c0] ss:$56 sps:$4 sm:$0xff]   ;;  %v3955_v21 = vld [vmem:[%s6079_s1 + $0x234] ss:$56 sps:$4 sm:$0xff]  }
   0x8   :  { %2788 = vmatpush1.bf16.msra.mxu0 %v3936_v7  ;;  %2748 = vmatprep.subr.bf16.mxu1 %v3937_v8  ;;  %v3954_v20 = vld [vmem:[%s6079_s1 + $0x8c0] ss:$56 sps:$4 sm:$0xff]   ;;  %v3957_v22 = vld [vmem:[%s6079_s1 + $0x934] ss:$56 sps:$4 sm:$0xff]   ;;  %v3959_v23 = vld [vmem:[%s6079_s1 + $0x230] ss:$56 sps:$4 sm:$0xff]  }
   0x9   :  { %2789 = vmatprep.subr.bf16.mxu0 %v3939_v9  ;;  %v3960_v24 = vld [vmem:[%s6079_s1 + $0x930] ss:$56 sps:$4 sm:$0xff]   ;;  %v3961_v25 = vld [vmem:[%s6079_s1 + $0x2a4] ss:$56 sps:$4 sm:$0xff]   ;;  %v3965_v28 = vld [vmem:[%s6079_s1 + $0x2a0] ss:$56 sps:$4 sm:$0xff]  }
   0xa   :  { %v3963_v26 = vld [vmem:[%s6079_s1 + $0x9a4] ss:$56 sps:$4 sm:$0xff]   ;;  %v3966_v29 = vld [vmem:[%s6079_s1 + $0x9a0] ss:$56 sps:$4 sm:$0xff]   ;;  %v3967_v30 = vld [vmem:[%s6079_s1 + $0x314] ss:$56 sps:$4 sm:$0xff]  }
   0xb   :  { %2749 = vmatpush1.bf16.msra.mxu1 %v3941_v10  ;;  %v3969_v31 = vld [vmem:[%s6079_s1 + $0xa14] ss:$56 sps:$4 sm:$0xff]   ;;  %v3971_v32 = vld [vmem:[%s6079_s1 + $0x310] ss:$56 sps:$4 sm:$0xff]   ;;  %v3973_v34 = vld [vmem:[%s6079_s1 + $0x384] ss:$56 sps:$4 sm:$0xff]  }
   0xc   :  { %2790 = vmatpush1.bf16.msra.mxu0 %v3942_v11  ;;  %2750 = vmatprep.subr.bf16.mxu1 %v3943_v12  ;;  %v3972_v33 = vld [vmem:[%s6079_s1 + $0xa10] ss:$56 sps:$4 sm:$0xff]   ;;  %v3975_v35 = vld [vmem:[%s6079_s1 + $0xa84] ss:$56 sps:$4 sm:$0xff]   ;;  %v3977_v36 = vld [vmem:[%s6079_s1 + $0x380] ss:$56 sps:$4 sm:$0xff]  }
   0xd   :  { %2791 = vmatprep.subr.bf16.mxu0 %v3945_v13  ;;  %v3978_v37 = vld [vmem:[%s6079_s1 + $0xa80] ss:$56 sps:$4 sm:$0xff]   ;;  %v3979_v38 = vld [vmem:[%s6079_s1 + $0x3f4] ss:$56 sps:$4 sm:$0xff]   ;;  %v3983_v43 = vld [vmem:[%s6079_s1 + $0x3f0] ss:$56 sps:$4 sm:$0xff]  }
   0xe   :  { %v3981_v39 = vld [vmem:[%s6079_s1 + $0xaf4] ss:$56 sps:$4 sm:$0xff]   ;;  %v3984_v44 = vld [vmem:[%s6079_s1 + $0xaf0] ss:$56 sps:$4 sm:$0xff]   ;;  %v3985_v45 = vld [vmem:[%s6079_s1 + $0x464] ss:$56 sps:$4 sm:$0xff]  }
   0xf   :  { %2751 = vmatpush1.bf16.msra.mxu1 %v3947_v14  ;;  %v3987_v46 = vld [vmem:[%s6079_s1 + $0xb64] ss:$56 sps:$4 sm:$0xff]   ;;  %v4749_v47 = vshrl.u32 %v471_v40, 7  ;;  %v3989_v49 = vld [vmem:[%s6079_s1 + $0x460] ss:$56 sps:$4 sm:$0xff]   ;;  %vm3426_vm0 = vcmp.lt.s32.totalorder %v471_v40, 658 }
  0x10   :  { %2792 = vmatpush1.bf16.msra.mxu0 %v3948_v15  ;;  %2752 = vmatprep.subr.bf16.mxu1 %v3949_v16  ;;  %v3990_v50 = vld [vmem:[%s6079_s1 + $0xb60] ss:$56 sps:$4 sm:$0xff]   ;;  %v3991_v51 = vld [vmem:[%s6079_s1 + $0x4d4] ss:$56 sps:$4 sm:$0xff]   ;;  %v3995_v55 = vld [vmem:[%s6079_s1 + $0x4d0] ss:$56 sps:$4 sm:$0xff]  }
  0x11   :  { %2793 = vmatprep.subr.bf16.mxu0 %v3951_v17  ;;  %v3993_v52 = vld [vmem:[%s6079_s1 + $0xbd4] ss:$56 sps:$4 sm:$0xff]   ;;  %v4764_v53 = vsub.s32 %v486_v48, %v4749_v47  ;;  %v3433_v54 = vld.sshfl [vmem:[%s6081_s0] sm:$0x33 pattern:$0x75316420] }
  0x12   :  { %v3996_v56 = vld [vmem:[%s6079_s1 + $0xbd0] ss:$56 sps:$4 sm:$0xff]   ;;  %v483_v57 = vcombine.high %v3433_v54, %v3433_v54  ;;  %v3997_v58 = vld [vmem:[%s6079_s1 + $0x544] ss:$56 sps:$4 sm:$0xff]   ;;  %v4001_v61 = vld [vmem:[%s6079_s1 + $0x540] ss:$56 sps:$4 sm:$0xff]  }
  0x13   :  { %2753 = vmatpush1.bf16.msra.mxu1 %v3953_v19  ;;  %v3999_v59 = vld [vmem:[%s6079_s1 + $0xc44] ss:$56 sps:$4 sm:$0xff]   ;;  %v4002_v62 = vld [vmem:[%s6079_s1 + $0xc40] ss:$56 sps:$4 sm:$0xff]   ;;  %v4003_v0 = vld [vmem:[%s6079_s1 + $0x5b4] ss:$56 sps:$4 sm:$0xff]   ;;  %v4830_v11 = vrot.slane %v3433_v54, %v4764_v53 }
  0x14   :  { %2794 = vmatpush1.bf16.msra.mxu0 %v3954_v20  ;;  %2754 = vmatprep.subr.bf16.mxu1 %v3955_v21  ;;  %v4782_v60 = vrot.slane %v483_v57, %v4764_v53  ;;  %v4005_v1 = vld [vmem:[%s6079_s1 + $0xcb4] ss:$56 sps:$4 sm:$0xff]   ;;  %v4007_v2 = vld [vmem:[%s6079_s1 + $0x5b0] ss:$56 sps:$4 sm:$0xff]   ;;  %v4009_v4 = vld [vmem:[%s6079_s1 + $0x624] ss:$56 sps:$4 sm:$0xff]  }
  0x15   :  { %2795 = vmatprep.subr.bf16.mxu0 %v3957_v22  ;;  %v4008_v3 = vld [vmem:[%s6079_s1 + $0xcb0] ss:$56 sps:$4 sm:$0xff]   ;;  %v4011_v5 = vld [vmem:[%s6079_s1 + $0xd24] ss:$56 sps:$4 sm:$0xff]   ;;  %v4013_v6 = vld [vmem:[%s6079_s1 + $0x620] ss:$56 sps:$4 sm:$0xff]   ;;  %v4843_v15 = vcombine.high %v4830_v11, %v4830_v11 }
  0x16   :  { %v4792_v63 = vcombine.high %v4782_v60, %v4782_v60  ;;  %2776 = vmatprep.mubr.bf16.mxu1 %v4782_v60  ;;  %v4014_v7 = vld [vmem:[%s6079_s1 + $0xd20] ss:$56 sps:$4 sm:$0xff]   ;;  %v4015_v8 = vld [vmem:[%s6079_s1 + $0x694] ss:$56 sps:$4 sm:$0xff]   ;;  %v4019_v10 = vld [vmem:[%s6079_s1 + $0x690] ss:$56 sps:$4 sm:$0xff]  }
  0x17   :  { %2755 = vmatpush1.bf16.msra.mxu1 %v3959_v23  ;;  %v4017_v9 = vld [vmem:[%s6079_s1 + $0xd94] ss:$56 sps:$4 sm:$0xff]   ;;  %v4020_v12 = vld [vmem:[%s6079_s1 + $0xd90] ss:$56 sps:$4 sm:$0xff]   ;;  %v4032_v19 = vld [vmem:[%s6079_s1 + $0x84] ss:$56 sps:$4 sm:$0xff]  }
  0x18   :  { %2796 = vmatpush1.bf16.msra.mxu0 %v3960_v24  ;;  %2756 = vmatprep.subr.bf16.mxu1 %v3961_v25  ;;  %v4023_v13 = vld [vmem:[%s6079_s1 + $0xc] ss:$56 sps:$4 sm:$0xff]   ;;  %v4021_v16 = vld [vmem:[%s6079_s1 + $0x8] ss:$56 sps:$4 sm:$0xff]   ;;  %v4029_v18 = vld [vmem:[%s6079_s1 + $0x7c] ss:$56 sps:$4 sm:$0xff]  }
  0x19   :  { %2797 = vmatprep.subr.bf16.mxu0 %v3963_v26  ;;  %2817 = vmatprep.mubr.bf16.mxu0 %v4792_v63  ;;  %v4026_v14 = vld [vmem:[%s6079_s1 + $0x14] ss:$56 sps:$4 sm:$0xff]   ;;  %v4024_v17 = vld [vmem:[%s6079_s1 + $0x10] ss:$56 sps:$4 sm:$0xff]   ;;  %v4030_v21 = vld [vmem:[%s6079_s1 + $0x80] ss:$56 sps:$4 sm:$0xff]  }
  0x1a   :  { %v4027_v20 = vld [vmem:[%s6079_s1 + $0x78] ss:$56 sps:$4 sm:$0xff]   ;;  %v4035_v22 = vld [vmem:[%s6079_s1 + $0xec] ss:$56 sps:$4 sm:$0xff]   ;;  %v4033_v24 = vld [vmem:[%s6079_s1 + $0xe8] ss:$56 sps:$4 sm:$0xff]  }
  0x1b   :  { %2757 = vmatpush1.bf16.msra.mxu1 %v3965_v28  ;;  %v4038_v23 = vld [vmem:[%s6079_s1 + $0xf4] ss:$56 sps:$4 sm:$0xff]   ;;  %v4036_v25 = vld [vmem:[%s6079_s1 + $0xf0] ss:$56 sps:$4 sm:$0xff]   ;;  %v4044_v27 = vld [vmem:[%s6079_s1 + $0x164] ss:$56 sps:$4 sm:$0xff]  }
  0x1c   :  { %2798 = vmatpush1.bf16.msra.mxu0 %v3966_v29  ;;  %2758 = vmatprep.subr.bf16.mxu1 %v3967_v30  ;;  %v4041_v26 = vld [vmem:[%s6079_s1 + $0x15c] ss:$56 sps:$4 sm:$0xff]   ;;  %v4039_v28 = vld [vmem:[%s6079_s1 + $0x158] ss:$56 sps:$4 sm:$0xff]   ;;  %v4047_v30 = vld [vmem:[%s6079_s1 + $0x1cc] ss:$56 sps:$4 sm:$0xff]  }
  0x1d   :  { %2799 = vmatprep.subr.bf16.mxu0 %v3969_v31  ;;  %v4042_v29 = vld [vmem:[%s6079_s1 + $0x160] ss:$56 sps:$4 sm:$0xff]   ;;  %v4050_v31 = vld [vmem:[%s6079_s1 + $0x1d4] ss:$56 sps:$4 sm:$0xff]   ;;  %v4060_v42 = vld [vmem:[%s6079_s1 + $0x2b0] ss:$56 sps:$4 sm:$0xff]  }
  0x1e   :  { %v4057_v41 = vld [vmem:[%s6079_s1 + $0x2a8] ss:$56 sps:$4 sm:$0xff]   ;;  %v4071_v48 = vld [vmem:[%s6079_s1 + $0x38c] ss:$56 sps:$4 sm:$0xff]  }
  0x1f   :  { %2759 = vmatpush1.bf16.msra.mxu1 %v3971_v32  ;;  %v4045_v32 = vld [vmem:[%s6079_s1 + $0x1c8] ss:$56 sps:$4 sm:$0xff]   ;;  %v4080_v54 = vld [vmem:[%s6079_s1 + $0x404] ss:$56 sps:$4 sm:$0xff]  }
  0x20   :  { %2800 = vmatpush1.bf16.msra.mxu0 %v3972_v33  ;;  %2760 = vmatprep.subr.bf16.mxu1 %v3973_v34  ;;  %v4048_v33 = vld [vmem:[%s6079_s1 + $0x1d0] ss:$56 sps:$4 sm:$0xff]   ;;  %v4053_v34 = vld [vmem:[%s6079_s1 + $0x23c] ss:$56 sps:$4 sm:$0xff]   ;;  %v4078_v57 = vld [vmem:[%s6079_s1 + $0x400] ss:$56 sps:$4 sm:$0xff]  }
  0x21   :  { %2801 = vmatprep.subr.bf16.mxu0 %v3975_v35  ;;  %v4056_v35 = vld [vmem:[%s6079_s1 + $0x244] ss:$56 sps:$4 sm:$0xff]  }
  0x23   :  { %2761 = vmatpush1.bf16.msra.mxu1 %v3977_v36  ;;  %v4051_v36 = vld [vmem:[%s6079_s1 + $0x238] ss:$56 sps:$4 sm:$0xff]  }
  0x24   :  { %2802 = vmatpush1.bf16.msra.mxu0 %v3978_v37  ;;  %2762 = vmatprep.subr.bf16.mxu1 %v3979_v38  ;;  %v4054_v37 = vld [vmem:[%s6079_s1 + $0x240] ss:$56 sps:$4 sm:$0xff]   ;;  %v4059_v38 = vld [vmem:[%s6079_s1 + $0x2ac] ss:$56 sps:$4 sm:$0xff]  }
  0x25   :  { %2803 = vmatprep.subr.bf16.mxu0 %v3981_v39  ;;  %v4062_v39 = vld [vmem:[%s6079_s1 + $0x2b4] ss:$56 sps:$4 sm:$0xff]  }
  0x27   :  { %2763 = vmatpush1.bf16.msra.mxu1 %v3983_v43  ;;  %v4065_v43 = vld [vmem:[%s6079_s1 + $0x31c] ss:$56 sps:$4 sm:$0xff]  }
  0x28   :  { %2804 = vmatpush1.bf16.msra.mxu0 %v3984_v44  ;;  %2764 = vmatprep.subr.bf16.mxu1 %v3985_v45  ;;  %v4068_v44 = vld [vmem:[%s6079_s1 + $0x324] ss:$56 sps:$4 sm:$0xff]   ;;  %v4063_v45 = vld [vmem:[%s6079_s1 + $0x318] ss:$56 sps:$4 sm:$0xff]  }
  0x29   :  { %2805 = vmatprep.subr.bf16.mxu0 %v3987_v46  ;;  %v4066_v46 = vld [vmem:[%s6079_s1 + $0x320] ss:$56 sps:$4 sm:$0xff]  }
  0x2b   :  { %2765 = vmatpush1.bf16.msra.mxu1 %v3989_v49  ;;  %v4074_v49 = vld [vmem:[%s6079_s1 + $0x394] ss:$56 sps:$4 sm:$0xff]  }
  0x2c   :  { %2806 = vmatpush1.bf16.msra.mxu0 %v3990_v50  ;;  %2766 = vmatprep.subr.bf16.mxu1 %v3991_v51  ;;  %v4069_v50 = vld [vmem:[%s6079_s1 + $0x388] ss:$56 sps:$4 sm:$0xff]  }
  0x2d   :  { %2807 = vmatprep.subr.bf16.mxu0 %v3993_v52  ;;  %v4072_v51 = vld [vmem:[%s6079_s1 + $0x390] ss:$56 sps:$4 sm:$0xff]   ;;  %v4077_v52 = vld [vmem:[%s6079_s1 + $0x3fc] ss:$56 sps:$4 sm:$0xff]  }
  0x2f   :  { %2767 = vmatpush1.bf16.msra.mxu1 %v3995_v55  ;;  %v465_v55 = vld [vmem:[#allocation2] sm:$0x1] }
  0x30   :  { %2808 = vmatpush1.bf16.msra.mxu0 %v3996_v56  ;;  %2768 = vmatprep.subr.bf16.mxu1 %v3997_v58  ;;  %v4075_v56 = vld [vmem:[%s6079_s1 + $0x3f8] ss:$56 sps:$4 sm:$0xff]   ;;  %v4083_v58 = vld [vmem:[%s6079_s1 + $0x46c] ss:$56 sps:$4 sm:$0xff]  }
  0x31   :  { %2809 = vmatprep.subr.bf16.mxu0 %v3999_v59  ;;  %v4086_v59 = vld [vmem:[%s6079_s1 + $0x474] ss:$56 sps:$4 sm:$0xff]   ;;  %468 = vperm.xlu0 %3924, %v465_v55   ;;  %v4159_v55 = vld [vmem:[%s6079_s1 + $0xa18] ss:$56 sps:$4 sm:$0xff]  }
  0x33   :  { %2769 = vmatpush1.bf16.msra.mxu1 %v4001_v61  ;;  %v4081_v61 = vld [vmem:[%s6079_s1 + $0x468] ss:$56 sps:$4 sm:$0xff]  }
  0x34   :  { %2810 = vmatpush1.bf16.msra.mxu0 %v4002_v62  ;;  %2770 = vmatprep.subr.bf16.mxu1 %v4003_v0  ;;  %v4084_v62 = vld [vmem:[%s6079_s1 + $0x470] ss:$56 sps:$4 sm:$0xff]   ;;  %v4089_v0 = vld [vmem:[%s6079_s1 + $0x4dc] ss:$56 sps:$4 sm:$0xff]  }
  0x35   :  { %2811 = vmatprep.subr.bf16.mxu0 %v4005_v1  ;;  %v4092_v1 = vld [vmem:[%s6079_s1 + $0x4e4] ss:$56 sps:$4 sm:$0xff]  }
  0x37   :  { %2771 = vmatpush1.bf16.msra.mxu1 %v4007_v2  ;;  %v4087_v2 = vld [vmem:[%s6079_s1 + $0x4d8] ss:$56 sps:$4 sm:$0xff]  }
  0x38   :  { %2812 = vmatpush1.bf16.msra.mxu0 %v4008_v3  ;;  %2772 = vmatprep.subr.bf16.mxu1 %v4009_v4  ;;  %v4090_v3 = vld [vmem:[%s6079_s1 + $0x4e0] ss:$56 sps:$4 sm:$0xff]   ;;  %v4095_v4 = vld [vmem:[%s6079_s1 + $0x54c] ss:$56 sps:$4 sm:$0xff]  }
  0x39   :  { %2813 = vmatprep.subr.bf16.mxu0 %v4011_v5  ;;  %v4098_v5 = vld [vmem:[%s6079_s1 + $0x554] ss:$56 sps:$4 sm:$0xff]  }
  0x3b   :  { %2773 = vmatpush1.bf16.msra.mxu1 %v4013_v6  ;;  %v4093_v6 = vld [vmem:[%s6079_s1 + $0x548] ss:$56 sps:$4 sm:$0xff]  }
  0x3c   :  { %2814 = vmatpush1.bf16.msra.mxu0 %v4014_v7  ;;  %2774 = vmatprep.subr.bf16.mxu1 %v4015_v8  ;;  %v4096_v7 = vld [vmem:[%s6079_s1 + $0x550] ss:$56 sps:$4 sm:$0xff]   ;;  %v4101_v8 = vld [vmem:[%s6079_s1 + $0x5bc] ss:$56 sps:$4 sm:$0xff]  }
  0x3d   :  { %2815 = vmatprep.subr.bf16.mxu0 %v4017_v9  ;;  %v4104_v9 = vld [vmem:[%s6079_s1 + $0x5c4] ss:$56 sps:$4 sm:$0xff]  }
  0x3f   :  { %2775 = vmatpush1.bf16.msra.mxu1 %v4019_v10  ;;  %v4099_v10 = vld [vmem:[%s6079_s1 + $0x5b8] ss:$56 sps:$4 sm:$0xff]  }
  0x40   :  { %2816 = vmatpush1.bf16.msra.mxu0 %v4020_v12  ;;  %2826 = vmatprep.subr.bf16.mxu1 %v4023_v13  ;;  %v4102_v12 = vld [vmem:[%s6079_s1 + $0x5c0] ss:$56 sps:$4 sm:$0xff]   ;;  %v4107_v13 = vld [vmem:[%s6079_s1 + $0x62c] ss:$56 sps:$4 sm:$0xff]  }
  0x41   :  { %2908 = vmatprep.subr.bf16.mxu0 %v4026_v14  ;;  %v4110_v14 = vld [vmem:[%s6079_s1 + $0x634] ss:$56 sps:$4 sm:$0xff]  }
  0x42   :  { %2777 = vmatmul.mubr.bf16.vlgmr.msra.gmra.mrb[0].mxu1 %v4830_v11 }
  0x43   :  { %2818 = vmatmul.mubr.bf16.vlgmr.msra.gmra.mrb[0].mxu0 %v4843_v15  ;;  %2827 = vmatpush1.bf16.msra.mxu1 %v4021_v16  ;;  %v4105_v16 = vld [vmem:[%s6079_s1 + $0x628] ss:$56 sps:$4 sm:$0xff]  }
  0x44   :  { %2909 = vmatpush1.bf16.msra.mxu0 %v4024_v17  ;;  %2828 = vmatprep.subr.bf16.mxu1 %v4029_v18  ;;  %v4108_v17 = vld [vmem:[%s6079_s1 + $0x630] ss:$56 sps:$4 sm:$0xff]   ;;  %v4113_v18 = vld [vmem:[%s6079_s1 + $0x69c] ss:$56 sps:$4 sm:$0xff]  }
  0x45   :  { %2910 = vmatprep.subr.bf16.mxu0 %v4032_v19  ;;  %2858 = vmatprep.mubr.bf16.mxu1 %v4782_v60  ;;  %v4116_v19 = vld [vmem:[%s6079_s1 + $0x6a4] ss:$56 sps:$4 sm:$0xff]  }
  0x46   :  { %2940 = vmatprep.mubr.bf16.mxu0 %v4782_v60 }
  0x47   :  { %2829 = vmatpush1.bf16.msra.mxu1 %v4027_v20  ;;  %v4111_v20 = vld [vmem:[%s6079_s1 + $0x698] ss:$56 sps:$4 sm:$0xff]  }
  0x48   :  { %2911 = vmatpush1.bf16.msra.mxu0 %v4030_v21  ;;  %2830 = vmatprep.subr.bf16.mxu1 %v4035_v22  ;;  %v4114_v21 = vld [vmem:[%s6079_s1 + $0x6a0] ss:$56 sps:$4 sm:$0xff]   ;;  %v4119_v22 = vld [vmem:[%s6079_s1 + $0x70c] ss:$56 sps:$4 sm:$0xff]  }
  0x49   :  { %2912 = vmatprep.subr.bf16.mxu0 %v4038_v23  ;;  %v4122_v23 = vld [vmem:[%s6079_s1 + $0x714] ss:$56 sps:$4 sm:$0xff]  }
  0x4b   :  { %2831 = vmatpush1.bf16.msra.mxu1 %v4033_v24  ;;  %v4117_v24 = vld [vmem:[%s6079_s1 + $0x708] ss:$56 sps:$4 sm:$0xff]  }
  0x4c   :  { %2913 = vmatpush1.bf16.msra.mxu0 %v4036_v25  ;;  %2832 = vmatprep.subr.bf16.mxu1 %v4041_v26  ;;  %v4120_v25 = vld [vmem:[%s6079_s1 + $0x710] ss:$56 sps:$4 sm:$0xff]   ;;  %v4125_v26 = vld [vmem:[%s6079_s1 + $0x77c] ss:$56 sps:$4 sm:$0xff]  }
  0x4d   :  { %2914 = vmatprep.subr.bf16.mxu0 %v4044_v27  ;;  %v4128_v27 = vld [vmem:[%s6079_s1 + $0x784] ss:$56 sps:$4 sm:$0xff]  }
  0x4f   :  { %2833 = vmatpush1.bf16.msra.mxu1 %v4039_v28  ;;  %v4123_v28 = vld [vmem:[%s6079_s1 + $0x778] ss:$56 sps:$4 sm:$0xff]  }
  0x50   :  { %2915 = vmatpush1.bf16.msra.mxu0 %v4042_v29  ;;  %2834 = vmatprep.subr.bf16.mxu1 %v4047_v30  ;;  %v4126_v29 = vld [vmem:[%s6079_s1 + $0x780] ss:$56 sps:$4 sm:$0xff]   ;;  %v4131_v30 = vld [vmem:[%s6079_s1 + $0x7ec] ss:$56 sps:$4 sm:$0xff]  }
  0x51   :  { %2916 = vmatprep.subr.bf16.mxu0 %v4050_v31  ;;  %v4134_v31 = vld [vmem:[%s6079_s1 + $0x7f4] ss:$56 sps:$4 sm:$0xff]  }
  0x53   :  { %2835 = vmatpush1.bf16.msra.mxu1 %v4045_v32  ;;  %v4129_v32 = vld [vmem:[%s6079_s1 + $0x7e8] ss:$56 sps:$4 sm:$0xff]  }
  0x54   :  { %2917 = vmatpush1.bf16.msra.mxu0 %v4048_v33  ;;  %2836 = vmatprep.subr.bf16.mxu1 %v4053_v34  ;;  %v4132_v33 = vld [vmem:[%s6079_s1 + $0x7f0] ss:$56 sps:$4 sm:$0xff]   ;;  %v4137_v34 = vld [vmem:[%s6079_s1 + $0x85c] ss:$56 sps:$4 sm:$0xff]  }
  0x55   :  { %2918 = vmatprep.subr.bf16.mxu0 %v4056_v35  ;;  %v4140_v35 = vld [vmem:[%s6079_s1 + $0x864] ss:$56 sps:$4 sm:$0xff]  }
  0x57   :  { %2837 = vmatpush1.bf16.msra.mxu1 %v4051_v36  ;;  %v4135_v36 = vld [vmem:[%s6079_s1 + $0x858] ss:$56 sps:$4 sm:$0xff]  }
  0x58   :  { %2919 = vmatpush1.bf16.msra.mxu0 %v4054_v37  ;;  %2838 = vmatprep.subr.bf16.mxu1 %v4059_v38  ;;  %v4138_v37 = vld [vmem:[%s6079_s1 + $0x860] ss:$56 sps:$4 sm:$0xff]   ;;  %v4143_v38 = vld [vmem:[%s6079_s1 + $0x8cc] ss:$56 sps:$4 sm:$0xff]  }
  0x59   :  { %2920 = vmatprep.subr.bf16.mxu0 %v4062_v39  ;;  %v4146_v39 = vld [vmem:[%s6079_s1 + $0x8d4] ss:$56 sps:$4 sm:$0xff]  }
  0x5b   :  { %2839 = vmatpush1.bf16.msra.mxu1 %v4057_v41  ;;  %v4141_v41 = vld [vmem:[%s6079_s1 + $0x8c8] ss:$56 sps:$4 sm:$0xff]  }
  0x5c   :  { %2921 = vmatpush1.bf16.msra.mxu0 %v4060_v42  ;;  %2840 = vmatprep.subr.bf16.mxu1 %v4065_v43  ;;  %v4144_v42 = vld [vmem:[%s6079_s1 + $0x8d0] ss:$56 sps:$4 sm:$0xff]   ;;  %v4149_v43 = vld [vmem:[%s6079_s1 + $0x93c] ss:$56 sps:$4 sm:$0xff]  }
  0x5d   :  { %2922 = vmatprep.subr.bf16.mxu0 %v4068_v44  ;;  %v4152_v44 = vld [vmem:[%s6079_s1 + $0x944] ss:$56 sps:$4 sm:$0xff]  }
  0x5f   :  { %2841 = vmatpush1.bf16.msra.mxu1 %v4063_v45  ;;  %v4147_v45 = vld [vmem:[%s6079_s1 + $0x938] ss:$56 sps:$4 sm:$0xff]  }
  0x60   :  { %2923 = vmatpush1.bf16.msra.mxu0 %v4066_v46  ;;  %2842 = vmatprep.subr.bf16.mxu1 %v4071_v48  ;;  %v4150_v46 = vld [vmem:[%s6079_s1 + $0x940] ss:$56 sps:$4 sm:$0xff]   ;;  %v4155_v48 = vld [vmem:[%s6079_s1 + $0x9ac] ss:$56 sps:$4 sm:$0xff]  }
  0x61   :  { %2924 = vmatprep.subr.bf16.mxu0 %v4074_v49  ;;  %v4158_v49 = vld [vmem:[%s6079_s1 + $0x9b4] ss:$56 sps:$4 sm:$0xff]  }
  0x63   :  { %2843 = vmatpush1.bf16.msra.mxu1 %v4069_v50  ;;  %v4153_v50 = vld [vmem:[%s6079_s1 + $0x9a8] ss:$56 sps:$4 sm:$0xff]  }
  0x64   :  { %2925 = vmatpush1.bf16.msra.mxu0 %v4072_v51  ;;  %2844 = vmatprep.subr.bf16.mxu1 %v4077_v52  ;;  %v4156_v51 = vld [vmem:[%s6079_s1 + $0x9b0] ss:$56 sps:$4 sm:$0xff]   ;;  %v4161_v52 = vld [vmem:[%s6079_s1 + $0xa1c] ss:$56 sps:$4 sm:$0xff]  }
  0x65   :  { %2926 = vmatprep.subr.bf16.mxu0 %v4080_v54  ;;  %v4164_v54 = vld [vmem:[%s6079_s1 + $0xa24] ss:$56 sps:$4 sm:$0xff]  }
  0x67   :  { %2845 = vmatpush1.bf16.msra.mxu1 %v4075_v56  ;;  %v4162_v56 = vld [vmem:[%s6079_s1 + $0xa20] ss:$56 sps:$4 sm:$0xff]  }
  0x68   :  { %2927 = vmatpush1.bf16.msra.mxu0 %v4078_v57  ;;  %2846 = vmatprep.subr.bf16.mxu1 %v4083_v58  ;;  %v4167_v57 = vld [vmem:[%s6079_s1 + $0xa8c] ss:$56 sps:$4 sm:$0xff]  }
  0x69   :  { %2928 = vmatprep.subr.bf16.mxu0 %v4086_v59  ;;  %v4170_v58 = vld [vmem:[%s6079_s1 + $0xa94] ss:$56 sps:$4 sm:$0xff]   ;;  %v4165_v59 = vld [vmem:[%s6079_s1 + $0xa88] ss:$56 sps:$4 sm:$0xff]  }
  0x6b   :  { %2847 = vmatpush1.bf16.msra.mxu1 %v4081_v61  ;;  %v4168_v61 = vld [vmem:[%s6079_s1 + $0xa90] ss:$56 sps:$4 sm:$0xff]  }
  0x6c   :  { %2929 = vmatpush1.bf16.msra.mxu0 %v4084_v62  ;;  %2848 = vmatprep.subr.bf16.mxu1 %v4089_v0  ;;  %v4173_v62 = vld [vmem:[%s6079_s1 + $0xafc] ss:$56 sps:$4 sm:$0xff]  }
  0x6d   :  { %2930 = vmatprep.subr.bf16.mxu0 %v4092_v1  ;;  %v4176_v0 = vld [vmem:[%s6079_s1 + $0xb04] ss:$56 sps:$4 sm:$0xff]   ;;  %v4171_v1 = vld [vmem:[%s6079_s1 + $0xaf8] ss:$56 sps:$4 sm:$0xff]  }
  0x6f   :  { %2849 = vmatpush1.bf16.msra.mxu1 %v4087_v2  ;;  %v4174_v2 = vld [vmem:[%s6079_s1 + $0xb00] ss:$56 sps:$4 sm:$0xff]  }
  0x70   :  { %2931 = vmatpush1.bf16.msra.mxu0 %v4090_v3  ;;  %2850 = vmatprep.subr.bf16.mxu1 %v4095_v4  ;;  %v4179_v3 = vld [vmem:[%s6079_s1 + $0xb6c] ss:$56 sps:$4 sm:$0xff]  }
  0x71   :  { %2932 = vmatprep.subr.bf16.mxu0 %v4098_v5  ;;  %v4182_v4 = vld [vmem:[%s6079_s1 + $0xb74] ss:$56 sps:$4 sm:$0xff]   ;;  %v4177_v5 = vld [vmem:[%s6079_s1 + $0xb68] ss:$56 sps:$4 sm:$0xff]  }
  0x73   :  { %2851 = vmatpush1.bf16.msra.mxu1 %v4093_v6  ;;  %v4180_v6 = vld [vmem:[%s6079_s1 + $0xb70] ss:$56 sps:$4 sm:$0xff]  }
  0x74   :  { %2933 = vmatpush1.bf16.msra.mxu0 %v4096_v7  ;;  %2852 = vmatprep.subr.bf16.mxu1 %v4101_v8  ;;  %v4185_v7 = vld [vmem:[%s6079_s1 + $0xbdc] ss:$56 sps:$4 sm:$0xff]  }
  0x75   :  { %2934 = vmatprep.subr.bf16.mxu0 %v4104_v9  ;;  %v4188_v8 = vld [vmem:[%s6079_s1 + $0xbe4] ss:$56 sps:$4 sm:$0xff]   ;;  %v4183_v9 = vld [vmem:[%s6079_s1 + $0xbd8] ss:$56 sps:$4 sm:$0xff]  }
  0x77   :  { %2853 = vmatpush1.bf16.msra.mxu1 %v4099_v10  ;;  %v4186_v10 = vld [vmem:[%s6079_s1 + $0xbe0] ss:$56 sps:$4 sm:$0xff]  }
  0x78   :  { %2935 = vmatpush1.bf16.msra.mxu0 %v4102_v12  ;;  %2854 = vmatprep.subr.bf16.mxu1 %v4107_v13  ;;  %v4191_v12 = vld [vmem:[%s6079_s1 + $0xc4c] ss:$56 sps:$4 sm:$0xff]  }
  0x79   :  { %2936 = vmatprep.subr.bf16.mxu0 %v4110_v14  ;;  %v4194_v13 = vld [vmem:[%s6079_s1 + $0xc54] ss:$56 sps:$4 sm:$0xff]   ;;  %v4189_v14 = vld [vmem:[%s6079_s1 + $0xc48] ss:$56 sps:$4 sm:$0xff]  }
  0x7b   :  { %2855 = vmatpush1.bf16.msra.mxu1 %v4105_v16  ;;  %v4192_v16 = vld [vmem:[%s6079_s1 + $0xc50] ss:$56 sps:$4 sm:$0xff]  }
  0x7c   :  { %2937 = vmatpush1.bf16.msra.mxu0 %v4108_v17  ;;  %2856 = vmatprep.subr.bf16.mxu1 %v4113_v18  ;;  %v4197_v17 = vld [vmem:[%s6079_s1 + $0xcbc] ss:$56 sps:$4 sm:$0xff]  }
  0x7d   :  { %2938 = vmatprep.subr.bf16.mxu0 %v4116_v19  ;;  %v4200_v18 = vld [vmem:[%s6079_s1 + $0xcc4] ss:$56 sps:$4 sm:$0xff]   ;;  %v4195_v19 = vld [vmem:[%s6079_s1 + $0xcb8] ss:$56 sps:$4 sm:$0xff]  }
  0x7f   :  { %2857 = vmatpush1.bf16.msra.mxu1 %v4111_v20  ;;  %v4198_v20 = vld [vmem:[%s6079_s1 + $0xcc0] ss:$56 sps:$4 sm:$0xff]  }
  0x80   :  { %2939 = vmatpush1.bf16.msra.mxu0 %v4114_v21  ;;  %2867 = vmatprep.subr.bf16.mxu1 %v4119_v22  ;;  %v4203_v21 = vld [vmem:[%s6079_s1 + $0xd2c] ss:$56 sps:$4 sm:$0xff]  }
  0x81   :  { %2949 = vmatprep.subr.bf16.mxu0 %v4122_v23  ;;  %v4206_v22 = vld [vmem:[%s6079_s1 + $0xd34] ss:$56 sps:$4 sm:$0xff]   ;;  %v4201_v23 = vld [vmem:[%s6079_s1 + $0xd28] ss:$56 sps:$4 sm:$0xff]  }
  0x82   :  { %2859 = vmatmul.mubr.bf16.vlgmr.msra.gmra.mrb[4].mxu1 %v4830_v11 }
  0x83   :  { %2941 = vmatmul.mubr.bf16.vlgmr.msra.gmra.mrb[4].mxu0 %v4830_v11  ;;  %2868 = vmatpush1.bf16.msra.mxu1 %v4117_v24  ;;  %v4204_v24 = vld [vmem:[%s6079_s1 + $0xd30] ss:$56 sps:$4 sm:$0xff]  }
  0x84   :  { %2950 = vmatpush1.bf16.msra.mxu0 %v4120_v25  ;;  %2869 = vmatprep.subr.bf16.mxu1 %v4125_v26  ;;  %v4209_v25 = vld [vmem:[%s6079_s1 + $0xd9c] ss:$56 sps:$4 sm:$0xff]  }
  0x85   :  { %2951 = vmatprep.subr.bf16.mxu0 %v4128_v27  ;;  %2899 = vmatprep.mubr.bf16.mxu1 %v4792_v63  ;;  %v4212_v26 = vld [vmem:[%s6079_s1 + $0xda4] ss:$56 sps:$4 sm:$0xff]   ;;  %v4207_v27 = vld [vmem:[%s6079_s1 + $0xd98] ss:$56 sps:$4 sm:$0xff]  }
  0x86   :  { %2981 = vmatprep.mubr.bf16.mxu0 %v4792_v63 }
  0x87   :  { %2870 = vmatpush1.bf16.msra.mxu1 %v4123_v28  ;;  %v4210_v28 = vld [vmem:[%s6079_s1 + $0xda0] ss:$56 sps:$4 sm:$0xff]  }
  0x88   :  { %2952 = vmatpush1.bf16.msra.mxu0 %v4126_v29  ;;  %2871 = vmatprep.subr.bf16.mxu1 %v4131_v30  ;;  %v4215_v29 = vld [vmem:[%s6079_s1 + $0x1c] ss:$56 sps:$4 sm:$0xff]  }
  0x89   :  { %2953 = vmatprep.subr.bf16.mxu0 %v4134_v31  ;;  %v4218_v30 = vld [vmem:[%s6079_s1 + $0x24] ss:$56 sps:$4 sm:$0xff]   ;;  %v4213_v31 = vld [vmem:[%s6079_s1 + $0x18] ss:$56 sps:$4 sm:$0xff]  }
  0x8b   :  { %2872 = vmatpush1.bf16.msra.mxu1 %v4129_v32  ;;  %v4216_v32 = vld [vmem:[%s6079_s1 + $0x20] ss:$56 sps:$4 sm:$0xff]  }
  0x8c   :  { %2954 = vmatpush1.bf16.msra.mxu0 %v4132_v33  ;;  %2873 = vmatprep.subr.bf16.mxu1 %v4137_v34  ;;  %v4221_v33 = vld [vmem:[%s6079_s1 + $0x8c] ss:$56 sps:$4 sm:$0xff]  }
  0x8d   :  { %2955 = vmatprep.subr.bf16.mxu0 %v4140_v35  ;;  %v4224_v34 = vld [vmem:[%s6079_s1 + $0x94] ss:$56 sps:$4 sm:$0xff]   ;;  %v4219_v35 = vld [vmem:[%s6079_s1 + $0x88] ss:$56 sps:$4 sm:$0xff]  }
  0x8f   :  { %2874 = vmatpush1.bf16.msra.mxu1 %v4135_v36  ;;  %v4222_v36 = vld [vmem:[%s6079_s1 + $0x90] ss:$56 sps:$4 sm:$0xff]  }
  0x90   :  { %2956 = vmatpush1.bf16.msra.mxu0 %v4138_v37  ;;  %2875 = vmatprep.subr.bf16.mxu1 %v4143_v38  ;;  %v4227_v37 = vld [vmem:[%s6079_s1 + $0xfc] ss:$56 sps:$4 sm:$0xff]  }
  0x91   :  { %2957 = vmatprep.subr.bf16.mxu0 %v4146_v39  ;;  %v4230_v38 = vld [vmem:[%s6079_s1 + $0x104] ss:$56 sps:$4 sm:$0xff]   ;;  %v4225_v39 = vld [vmem:[%s6079_s1 + $0xf8] ss:$56 sps:$4 sm:$0xff]  }
  0x93   :  { %2876 = vmatpush1.bf16.msra.mxu1 %v4141_v41  ;;  %v4228_v41 = vld [vmem:[%s6079_s1 + $0x100] ss:$56 sps:$4 sm:$0xff]  }
  0x94   :  { %2958 = vmatpush1.bf16.msra.mxu0 %v4144_v42  ;;  %2877 = vmatprep.subr.bf16.mxu1 %v4149_v43  ;;  %v4233_v42 = vld [vmem:[%s6079_s1 + $0x16c] ss:$56 sps:$4 sm:$0xff]  }
  0x95   :  { %2959 = vmatprep.subr.bf16.mxu0 %v4152_v44  ;;  %v4236_v43 = vld [vmem:[%s6079_s1 + $0x174] ss:$56 sps:$4 sm:$0xff]   ;;  %v4231_v44 = vld [vmem:[%s6079_s1 + $0x168] ss:$56 sps:$4 sm:$0xff]  }
  0x97   :  { %2878 = vmatpush1.bf16.msra.mxu1 %v4147_v45  ;;  %v4234_v45 = vld [vmem:[%s6079_s1 + $0x170] ss:$56 sps:$4 sm:$0xff]  }
  0x98   :  { %2960 = vmatpush1.bf16.msra.mxu0 %v4150_v46  ;;  %2879 = vmatprep.subr.bf16.mxu1 %v4155_v48  ;;  %v4239_v46 = vld [vmem:[%s6079_s1 + $0x1dc] ss:$56 sps:$4 sm:$0xff]  }
  0x99   :  { %2961 = vmatprep.subr.bf16.mxu0 %v4158_v49  ;;  %v4242_v48 = vld [vmem:[%s6079_s1 + $0x1e4] ss:$56 sps:$4 sm:$0xff]   ;;  %v4237_v49 = vld [vmem:[%s6079_s1 + $0x1d8] ss:$56 sps:$4 sm:$0xff]  }
  0x9b   :  { %2880 = vmatpush1.bf16.msra.mxu1 %v4153_v50  ;;  %v4240_v50 = vld [vmem:[%s6079_s1 + $0x1e0] ss:$56 sps:$4 sm:$0xff]  }
  0x9c   :  { %2962 = vmatpush1.bf16.msra.mxu0 %v4156_v51  ;;  %2881 = vmatprep.subr.bf16.mxu1 %v4161_v52  ;;  %v4245_v51 = vld [vmem:[%s6079_s1 + $0x24c] ss:$56 sps:$4 sm:$0xff]  }
  0x9d   :  { %2963 = vmatprep.subr.bf16.mxu0 %v4164_v54  ;;  %v4248_v52 = vld [vmem:[%s6079_s1 + $0x254] ss:$56 sps:$4 sm:$0xff]   ;;  %v4243_v54 = vld [vmem:[%s6079_s1 + $0x248] ss:$56 sps:$4 sm:$0xff]  }
  0x9f   :  { %2882 = vmatpush1.bf16.msra.mxu1 %v4159_v55  ;;  %v4246_v55 = vld [vmem:[%s6079_s1 + $0x250] ss:$56 sps:$4 sm:$0xff]  }
  0xa0   :  { %2964 = vmatpush1.bf16.msra.mxu0 %v4162_v56  ;;  %2883 = vmatprep.subr.bf16.mxu1 %v4167_v57  ;;  %v4251_v56 = vld [vmem:[%s6079_s1 + $0x2bc] ss:$56 sps:$4 sm:$0xff]  }
  0xa1   :  { %2965 = vmatprep.subr.bf16.mxu0 %v4170_v58  ;;  %v4254_v57 = vld [vmem:[%s6079_s1 + $0x2c4] ss:$56 sps:$4 sm:$0xff]   ;;  %v4249_v58 = vld [vmem:[%s6079_s1 + $0x2b8] ss:$56 sps:$4 sm:$0xff]  }
  0xa3   :  { %2884 = vmatpush1.bf16.msra.mxu1 %v4165_v59  ;;  %v4252_v59 = vld [vmem:[%s6079_s1 + $0x2c0] ss:$56 sps:$4 sm:$0xff]  }
  0xa4   :  { %2966 = vmatpush1.bf16.msra.mxu0 %v4168_v61  ;;  %2885 = vmatprep.subr.bf16.mxu1 %v4173_v62  ;;  %v4257_v61 = vld [vmem:[%s6079_s1 + $0x32c] ss:$56 sps:$4 sm:$0xff]  }
  0xa5   :  { %2967 = vmatprep.subr.bf16.mxu0 %v4176_v0  ;;  %v4260_v62 = vld [vmem:[%s6079_s1 + $0x334] ss:$56 sps:$4 sm:$0xff]   ;;  %v4255_v0 = vld [vmem:[%s6079_s1 + $0x328] ss:$56 sps:$4 sm:$0xff]  }
  0xa7   :  { %2886 = vmatpush1.bf16.msra.mxu1 %v4171_v1  ;;  %v4258_v1 = vld [vmem:[%s6079_s1 + $0x330] ss:$56 sps:$4 sm:$0xff]  }
  0xa8   :  { %2968 = vmatpush1.bf16.msra.mxu0 %v4174_v2  ;;  %2887 = vmatprep.subr.bf16.mxu1 %v4179_v3  ;;  %v4263_v2 = vld [vmem:[%s6079_s1 + $0x39c] ss:$56 sps:$4 sm:$0xff]  }
  0xa9   :  { %2969 = vmatprep.subr.bf16.mxu0 %v4182_v4  ;;  %v4266_v3 = vld [vmem:[%s6079_s1 + $0x3a4] ss:$56 sps:$4 sm:$0xff]   ;;  %v4261_v4 = vld [vmem:[%s6079_s1 + $0x398] ss:$56 sps:$4 sm:$0xff]  }
  0xab   :  { %2888 = vmatpush1.bf16.msra.mxu1 %v4177_v5  ;;  %v4264_v5 = vld [vmem:[%s6079_s1 + $0x3a0] ss:$56 sps:$4 sm:$0xff]  }
  0xac   :  { %2970 = vmatpush1.bf16.msra.mxu0 %v4180_v6  ;;  %2889 = vmatprep.subr.bf16.mxu1 %v4185_v7  ;;  %v4269_v6 = vld [vmem:[%s6079_s1 + $0x40c] ss:$56 sps:$4 sm:$0xff]  }
  0xad   :  { %2971 = vmatprep.subr.bf16.mxu0 %v4188_v8  ;;  %v4272_v7 = vld [vmem:[%s6079_s1 + $0x414] ss:$56 sps:$4 sm:$0xff]   ;;  %v4267_v8 = vld [vmem:[%s6079_s1 + $0x408] ss:$56 sps:$4 sm:$0xff]  }
  0xaf   :  { %2890 = vmatpush1.bf16.msra.mxu1 %v4183_v9  ;;  %v4270_v9 = vld [vmem:[%s6079_s1 + $0x410] ss:$56 sps:$4 sm:$0xff]  }
  0xb0   :  { %2972 = vmatpush1.bf16.msra.mxu0 %v4186_v10  ;;  %2891 = vmatprep.subr.bf16.mxu1 %v4191_v12  ;;  %v4275_v10 = vld [vmem:[%s6079_s1 + $0x47c] ss:$56 sps:$4 sm:$0xff]  }
  0xb1   :  { %2973 = vmatprep.subr.bf16.mxu0 %v4194_v13  ;;  %v4278_v12 = vld [vmem:[%s6079_s1 + $0x484] ss:$56 sps:$4 sm:$0xff]   ;;  %v4273_v13 = vld [vmem:[%s6079_s1 + $0x478] ss:$56 sps:$4 sm:$0xff]  }
  0xb3   :  { %2892 = vmatpush1.bf16.msra.mxu1 %v4189_v14  ;;  %v4276_v14 = vld [vmem:[%s6079_s1 + $0x480] ss:$56 sps:$4 sm:$0xff]  }
  0xb4   :  { %2974 = vmatpush1.bf16.msra.mxu0 %v4192_v16  ;;  %2893 = vmatprep.subr.bf16.mxu1 %v4197_v17  ;;  %v4281_v16 = vld [vmem:[%s6079_s1 + $0x4ec] ss:$56 sps:$4 sm:$0xff]  }
  0xb5   :  { %2975 = vmatprep.subr.bf16.mxu0 %v4200_v18  ;;  %v4284_v17 = vld [vmem:[%s6079_s1 + $0x4f4] ss:$56 sps:$4 sm:$0xff]   ;;  %v4279_v18 = vld [vmem:[%s6079_s1 + $0x4e8] ss:$56 sps:$4 sm:$0xff]  }
  0xb7   :  { %2894 = vmatpush1.bf16.msra.mxu1 %v4195_v19  ;;  %v4282_v19 = vld [vmem:[%s6079_s1 + $0x4f0] ss:$56 sps:$4 sm:$0xff]  }
  0xb8   :  { %2976 = vmatpush1.bf16.msra.mxu0 %v4198_v20  ;;  %2895 = vmatprep.subr.bf16.mxu1 %v4203_v21  ;;  %v4287_v20 = vld [vmem:[%s6079_s1 + $0x55c] ss:$56 sps:$4 sm:$0xff]  }
  0xb9   :  { %2977 = vmatprep.subr.bf16.mxu0 %v4206_v22  ;;  %v4290_v21 = vld [vmem:[%s6079_s1 + $0x564] ss:$56 sps:$4 sm:$0xff]   ;;  %v4285_v22 = vld [vmem:[%s6079_s1 + $0x558] ss:$56 sps:$4 sm:$0xff]  }
  0xbb   :  { %2896 = vmatpush1.bf16.msra.mxu1 %v4201_v23  ;;  %v4288_v23 = vld [vmem:[%s6079_s1 + $0x560] ss:$56 sps:$4 sm:$0xff]  }
  0xbc   :  { %2978 = vmatpush1.bf16.msra.mxu0 %v4204_v24  ;;  %2897 = vmatprep.subr.bf16.mxu1 %v4209_v25  ;;  %v4293_v24 = vld [vmem:[%s6079_s1 + $0x5cc] ss:$56 sps:$4 sm:$0xff]  }
  0xbd   :  { %2979 = vmatprep.subr.bf16.mxu0 %v4212_v26  ;;  %v4296_v25 = vld [vmem:[%s6079_s1 + $0x5d4] ss:$56 sps:$4 sm:$0xff]   ;;  %v4291_v26 = vld [vmem:[%s6079_s1 + $0x5c8] ss:$56 sps:$4 sm:$0xff]  }
  0xbf   :  { %2898 = vmatpush1.bf16.msra.mxu1 %v4207_v27  ;;  %v4294_v27 = vld [vmem:[%s6079_s1 + $0x5d0] ss:$56 sps:$4 sm:$0xff]  }
  0xc0   :  { %2980 = vmatpush1.bf16.msra.mxu0 %v4210_v28  ;;  %2990 = vmatprep.subr.bf16.mxu1 %v4215_v29  ;;  %v4299_v28 = vld [vmem:[%s6079_s1 + $0x63c] ss:$56 sps:$4 sm:$0xff]  }
  0xc1   :  { %3072 = vmatprep.subr.bf16.mxu0 %v4218_v30  ;;  %v4302_v29 = vld [vmem:[%s6079_s1 + $0x644] ss:$56 sps:$4 sm:$0xff]   ;;  %v4297_v30 = vld [vmem:[%s6079_s1 + $0x638] ss:$56 sps:$4 sm:$0xff]  }
  0xc2   :  { %2900 = vmatmul.mubr.bf16.vlgmr.msra.gmra.mrb[4].mxu1 %v4843_v15 }
  0xc3   :  { %2982 = vmatmul.mubr.bf16.vlgmr.msra.gmra.mrb[4].mxu0 %v4843_v15  ;;  %2991 = vmatpush1.bf16.msra.mxu1 %v4213_v31  ;;  %v4300_v31 = vld [vmem:[%s6079_s1 + $0x640] ss:$56 sps:$4 sm:$0xff]  }
  0xc4   :  { %3073 = vmatpush1.bf16.msra.mxu0 %v4216_v32  ;;  %2992 = vmatprep.subr.bf16.mxu1 %v4221_v33  ;;  %v4305_v32 = vld [vmem:[%s6079_s1 + $0x6ac] ss:$56 sps:$4 sm:$0xff]  }
  0xc5   :  { %3074 = vmatprep.subr.bf16.mxu0 %v4224_v34  ;;  %3022 = vmatprep.mubr.bf16.mxu1 %v4782_v60  ;;  %v4308_v33 = vld [vmem:[%s6079_s1 + $0x6b4] ss:$56 sps:$4 sm:$0xff]   ;;  %v4303_v34 = vld [vmem:[%s6079_s1 + $0x6a8] ss:$56 sps:$4 sm:$0xff]  }
  0xc6   :  { %3104 = vmatprep.mubr.bf16.mxu0 %v4782_v60 }
  0xc7   :  { %2993 = vmatpush1.bf16.msra.mxu1 %v4219_v35  ;;  %v4306_v35 = vld [vmem:[%s6079_s1 + $0x6b0] ss:$56 sps:$4 sm:$0xff]  }
  0xc8   :  { %3075 = vmatpush1.bf16.msra.mxu0 %v4222_v36  ;;  %2994 = vmatprep.subr.bf16.mxu1 %v4227_v37  ;;  %v4311_v36 = vld [vmem:[%s6079_s1 + $0x71c] ss:$56 sps:$4 sm:$0xff]  }
  0xc9   :  { %3076 = vmatprep.subr.bf16.mxu0 %v4230_v38  ;;  %v4314_v37 = vld [vmem:[%s6079_s1 + $0x724] ss:$56 sps:$4 sm:$0xff]   ;;  %v4309_v38 = vld [vmem:[%s6079_s1 + $0x718] ss:$56 sps:$4 sm:$0xff]  }
  0xcb   :  { %2995 = vmatpush1.bf16.msra.mxu1 %v4225_v39  ;;  %v4312_v39 = vld [vmem:[%s6079_s1 + $0x720] ss:$56 sps:$4 sm:$0xff]  }
  0xcc   :  { %3077 = vmatpush1.bf16.msra.mxu0 %v4228_v41  ;;  %2996 = vmatprep.subr.bf16.mxu1 %v4233_v42  ;;  %v4317_v41 = vld [vmem:[%s6079_s1 + $0x78c] ss:$56 sps:$4 sm:$0xff]  }
  0xcd   :  { %3078 = vmatprep.subr.bf16.mxu0 %v4236_v43  ;;  %v4320_v42 = vld [vmem:[%s6079_s1 + $0x794] ss:$56 sps:$4 sm:$0xff]   ;;  %v4315_v43 = vld [vmem:[%s6079_s1 + $0x788] ss:$56 sps:$4 sm:$0xff]  }
  0xcf   :  { %2997 = vmatpush1.bf16.msra.mxu1 %v4231_v44  ;;  %v4318_v44 = vld [vmem:[%s6079_s1 + $0x790] ss:$56 sps:$4 sm:$0xff]  }
  0xd0   :  { %3079 = vmatpush1.bf16.msra.mxu0 %v4234_v45  ;;  %2998 = vmatprep.subr.bf16.mxu1 %v4239_v46  ;;  %v4323_v45 = vld [vmem:[%s6079_s1 + $0x7fc] ss:$56 sps:$4 sm:$0xff]  }
  0xd1   :  { %3080 = vmatprep.subr.bf16.mxu0 %v4242_v48  ;;  %v4326_v46 = vld [vmem:[%s6079_s1 + $0x804] ss:$56 sps:$4 sm:$0xff]   ;;  %v4321_v48 = vld [vmem:[%s6079_s1 + $0x7f8] ss:$56 sps:$4 sm:$0xff]  }
  0xd3   :  { %2999 = vmatpush1.bf16.msra.mxu1 %v4237_v49  ;;  %v4324_v49 = vld [vmem:[%s6079_s1 + $0x800] ss:$56 sps:$4 sm:$0xff]  }
  0xd4   :  { %3081 = vmatpush1.bf16.msra.mxu0 %v4240_v50  ;;  %3000 = vmatprep.subr.bf16.mxu1 %v4245_v51  ;;  %v4329_v50 = vld [vmem:[%s6079_s1 + $0x86c] ss:$56 sps:$4 sm:$0xff]  }
  0xd5   :  { %3082 = vmatprep.subr.bf16.mxu0 %v4248_v52  ;;  %v4332_v51 = vld [vmem:[%s6079_s1 + $0x874] ss:$56 sps:$4 sm:$0xff]   ;;  %v4327_v52 = vld [vmem:[%s6079_s1 + $0x868] ss:$56 sps:$4 sm:$0xff]  }
  0xd7   :  { %3001 = vmatpush1.bf16.msra.mxu1 %v4243_v54  ;;  %v4330_v54 = vld [vmem:[%s6079_s1 + $0x870] ss:$56 sps:$4 sm:$0xff]  }
  0xd8   :  { %3083 = vmatpush1.bf16.msra.mxu0 %v4246_v55  ;;  %3002 = vmatprep.subr.bf16.mxu1 %v4251_v56  ;;  %v4335_v55 = vld [vmem:[%s6079_s1 + $0x8dc] ss:$56 sps:$4 sm:$0xff]  }
  0xd9   :  { %3084 = vmatprep.subr.bf16.mxu0 %v4254_v57  ;;  %v4338_v56 = vld [vmem:[%s6079_s1 + $0x8e4] ss:$56 sps:$4 sm:$0xff]   ;;  %v473_v57 = vsub.s32 0, %v4749_v47  ;;  %v4344_v47 = vld [vmem:[%s6079_s1 + $0x954] ss:$56 sps:$4 sm:$0xff]  }
  0xdb   :  { %3003 = vmatpush1.bf16.msra.mxu1 %v4249_v58  ;;  %v4333_v58 = vld [vmem:[%s6079_s1 + $0x8d8] ss:$56 sps:$4 sm:$0xff]  }
  0xdc   :  { %3085 = vmatpush1.bf16.msra.mxu0 %v4252_v59  ;;  %3004 = vmatprep.subr.bf16.mxu1 %v4257_v61  ;;  %v4336_v59 = vld [vmem:[%s6079_s1 + $0x8e0] ss:$56 sps:$4 sm:$0xff]   ;;  %v469_v61 = vpop.permute.xlu0 %468 }
  0xdd   :  { %3086 = vmatprep.subr.bf16.mxu0 %v4260_v62  ;;  %v4341_v62 = vld [vmem:[%s6079_s1 + $0x94c] ss:$56 sps:$4 sm:$0xff]  }
  0xdf   :  { %3005 = vmatpush1.bf16.msra.mxu1 %v4255_v0  ;;  %v4339_v0 = vld [vmem:[%s6079_s1 + $0x948] ss:$56 sps:$4 sm:$0xff]  }
  0xe0   :  { %3087 = vmatpush1.bf16.msra.mxu0 %v4258_v1  ;;  %3006 = vmatprep.subr.bf16.mxu1 %v4263_v2  ;;  %v4342_v1 = vld [vmem:[%s6079_s1 + $0x950] ss:$56 sps:$4 sm:$0xff]   ;;  %v5504_v2 = vrot.slane %v469_v61, %v473_v57  ;;  %v4401_v57 = vld [vmem:[%s6079_s1 + $0xdac] ss:$56 sps:$4 sm:$0xff]  }
  0xe1   :  { %3088 = vmatprep.subr.bf16.mxu0 %v4266_v3  ;;  %v4347_v3 = vld [vmem:[%s6079_s1 + $0x9bc] ss:$56 sps:$4 sm:$0xff]   ;;  %v4402_v61 = vld [vmem:[%s6079_s1 + $0xdb0] ss:$56 sps:$4 sm:$0xff]  }
  0xe3   :  { %3007 = vmatpush1.bf16.msra.mxu1 %v4261_v4  ;;  %v4350_v4 = vld [vmem:[%s6079_s1 + $0x9c4] ss:$56 sps:$4 sm:$0xff]  }
  0xe4   :  { %3089 = vmatpush1.bf16.msra.mxu0 %v4264_v5  ;;  %3008 = vmatprep.subr.bf16.mxu1 %v4269_v6 }
  0xe5   :  { %3090 = vmatprep.subr.bf16.mxu0 %v4272_v7  ;;  %v4345_v7 = vld [vmem:[%s6079_s1 + $0x9b8] ss:$56 sps:$4 sm:$0xff]  }
  0xe7   :  { %3009 = vmatpush1.bf16.msra.mxu1 %v4267_v8  ;;  %v4348_v8 = vld [vmem:[%s6079_s1 + $0x9c0] ss:$56 sps:$4 sm:$0xff]  }
  0xe8   :  { %3091 = vmatpush1.bf16.msra.mxu0 %v4270_v9  ;;  %3010 = vmatprep.subr.bf16.mxu1 %v4275_v10 }
  0xe9   :  { %3092 = vmatprep.subr.bf16.mxu0 %v4278_v12 }
  0xeb   :  { %3011 = vmatpush1.bf16.msra.mxu1 %v4273_v13 }
  0xec   :  { %3093 = vmatpush1.bf16.msra.mxu0 %v4276_v14  ;;  %3012 = vmatprep.subr.bf16.mxu1 %v4281_v16 }
  0xed   :  { %3094 = vmatprep.subr.bf16.mxu0 %v4284_v17 }
  0xef   :  { %3013 = vmatpush1.bf16.msra.mxu1 %v4279_v18 }
  0xf0   :  { %3095 = vmatpush1.bf16.msra.mxu0 %v4282_v19  ;;  %3014 = vmatprep.subr.bf16.mxu1 %v4287_v20  ;;  %v4353_v20 = vld [vmem:[%s6079_s1 + $0xa2c] ss:$56 sps:$4 sm:$0xff]  }
  0xf1   :  { %3096 = vmatprep.subr.bf16.mxu0 %v4290_v21  ;;  %v4356_v21 = vld [vmem:[%s6079_s1 + $0xa34] ss:$56 sps:$4 sm:$0xff]  }
  0xf3   :  { %3015 = vmatpush1.bf16.msra.mxu1 %v4285_v22 }
  0xf4   :  { %3097 = vmatpush1.bf16.msra.mxu0 %v4288_v23  ;;  %3016 = vmatprep.subr.bf16.mxu1 %v4293_v24  ;;  %v4351_v23 = vld [vmem:[%s6079_s1 + $0xa28] ss:$56 sps:$4 sm:$0xff]  }
  0xf5   :  { %3098 = vmatprep.subr.bf16.mxu0 %v4296_v25  ;;  %v4354_v24 = vld [vmem:[%s6079_s1 + $0xa30] ss:$56 sps:$4 sm:$0xff]  }
  0xf7   :  { %3017 = vmatpush1.bf16.msra.mxu1 %v4291_v26  ;;  %v4359_v26 = vld [vmem:[%s6079_s1 + $0xa9c] ss:$56 sps:$4 sm:$0xff]  }
  0xf8   :  { %3099 = vmatpush1.bf16.msra.mxu0 %v4294_v27  ;;  %3018 = vmatprep.subr.bf16.mxu1 %v4299_v28  ;;  %v4362_v27 = vld [vmem:[%s6079_s1 + $0xaa4] ss:$56 sps:$4 sm:$0xff]   ;;  %v4357_v28 = vld [vmem:[%s6079_s1 + $0xa98] ss:$56 sps:$4 sm:$0xff]  }
  0xf9   :  { %3100 = vmatprep.subr.bf16.mxu0 %v4302_v29  ;;  %v4360_v29 = vld [vmem:[%s6079_s1 + $0xaa0] ss:$56 sps:$4 sm:$0xff]  }
  0xfb   :  { %3019 = vmatpush1.bf16.msra.mxu1 %v4297_v30  ;;  %v4365_v30 = vld [vmem:[%s6079_s1 + $0xb0c] ss:$56 sps:$4 sm:$0xff]  }
  0xfc   :  { %3101 = vmatpush1.bf16.msra.mxu0 %v4300_v31  ;;  %3020 = vmatprep.subr.bf16.mxu1 %v4305_v32  ;;  %v4368_v31 = vld [vmem:[%s6079_s1 + $0xb14] ss:$56 sps:$4 sm:$0xff]   ;;  %v4363_v32 = vld [vmem:[%s6079_s1 + $0xb08] ss:$56 sps:$4 sm:$0xff]  }
  0xfd   :  { %3102 = vmatprep.subr.bf16.mxu0 %v4308_v33  ;;  %v4366_v33 = vld [vmem:[%s6079_s1 + $0xb10] ss:$56 sps:$4 sm:$0xff]  }
  0xff   :  { %3021 = vmatpush1.bf16.msra.mxu1 %v4303_v34  ;;  %v4371_v34 = vld [vmem:[%s6079_s1 + $0xb7c] ss:$56 sps:$4 sm:$0xff]  }
 0x100   :  { %3103 = vmatpush1.bf16.msra.mxu0 %v4306_v35  ;;  %3031 = vmatprep.subr.bf16.mxu1 %v4311_v36  ;;  %v4374_v35 = vld [vmem:[%s6079_s1 + $0xb84] ss:$56 sps:$4 sm:$0xff]   ;;  %v4369_v36 = vld [vmem:[%s6079_s1 + $0xb78] ss:$56 sps:$4 sm:$0xff]  }
 0x101   :  { %3113 = vmatprep.subr.bf16.mxu0 %v4314_v37  ;;  %v4372_v37 = vld [vmem:[%s6079_s1 + $0xb80] ss:$56 sps:$4 sm:$0xff]  }
 0x102   :  { %3023 = vmatmul.mubr.bf16.vlgmr.msra.gmra.mrb[8].mxu1 %v4830_v11 }
 0x103   :  { %3105 = vmatmul.mubr.bf16.vlgmr.msra.gmra.mrb[8].mxu0 %v4830_v11  ;;  %3032 = vmatpush1.bf16.msra.mxu1 %v4309_v38  ;;  %v4377_v38 = vld [vmem:[%s6079_s1 + $0xbec] ss:$56 sps:$4 sm:$0xff]  }
 0x104   :  { %3114 = vmatpush1.bf16.msra.mxu0 %v4312_v39  ;;  %3033 = vmatprep.subr.bf16.mxu1 %v4317_v41  ;;  %v4380_v39 = vld [vmem:[%s6079_s1 + $0xbf4] ss:$56 sps:$4 sm:$0xff]   ;;  %v4375_v41 = vld [vmem:[%s6079_s1 + $0xbe8] ss:$56 sps:$4 sm:$0xff]  }
 0x105   :  { %3115 = vmatprep.subr.bf16.mxu0 %v4320_v42  ;;  %3063 = vmatprep.mubr.bf16.mxu1 %v4792_v63  ;;  %v4378_v42 = vld [vmem:[%s6079_s1 + $0xbf0] ss:$56 sps:$4 sm:$0xff]  }
 0x106   :  { %3145 = vmatprep.mubr.bf16.mxu0 %v4792_v63 }
 0x107   :  { %3034 = vmatpush1.bf16.msra.mxu1 %v4315_v43  ;;  %v4383_v43 = vld [vmem:[%s6079_s1 + $0xc5c] ss:$56 sps:$4 sm:$0xff]  }
 0x108   :  { %3116 = vmatpush1.bf16.msra.mxu0 %v4318_v44  ;;  %3035 = vmatprep.subr.bf16.mxu1 %v4323_v45  ;;  %v4386_v44 = vld [vmem:[%s6079_s1 + $0xc64] ss:$56 sps:$4 sm:$0xff]   ;;  %v4381_v45 = vld [vmem:[%s6079_s1 + $0xc58] ss:$56 sps:$4 sm:$0xff]  }
 0x109   :  { %3117 = vmatprep.subr.bf16.mxu0 %v4326_v46  ;;  %v4384_v46 = vld [vmem:[%s6079_s1 + $0xc60] ss:$56 sps:$4 sm:$0xff]  }
 0x10b   :  { %3036 = vmatpush1.bf16.msra.mxu1 %v4321_v48  ;;  %v4389_v48 = vld [vmem:[%s6079_s1 + $0xccc] ss:$56 sps:$4 sm:$0xff]  }
 0x10c   :  { %3118 = vmatpush1.bf16.msra.mxu0 %v4324_v49  ;;  %3037 = vmatprep.subr.bf16.mxu1 %v4329_v50  ;;  %v4392_v49 = vld [vmem:[%s6079_s1 + $0xcd4] ss:$56 sps:$4 sm:$0xff]   ;;  %v4387_v50 = vld [vmem:[%s6079_s1 + $0xcc8] ss:$56 sps:$4 sm:$0xff]  }
 0x10d   :  { %3119 = vmatprep.subr.bf16.mxu0 %v4332_v51  ;;  %v4390_v51 = vld [vmem:[%s6079_s1 + $0xcd0] ss:$56 sps:$4 sm:$0xff]  }
 0x10f   :  { %3038 = vmatpush1.bf16.msra.mxu1 %v4327_v52  ;;  %v4395_v52 = vld [vmem:[%s6079_s1 + $0xd3c] ss:$56 sps:$4 sm:$0xff]  }
 0x110   :  { %3120 = vmatpush1.bf16.msra.mxu0 %v4330_v54  ;;  %3039 = vmatprep.subr.bf16.mxu1 %v4335_v55  ;;  %v4398_v54 = vld [vmem:[%s6079_s1 + $0xd44] ss:$56 sps:$4 sm:$0xff]   ;;  %v4393_v55 = vld [vmem:[%s6079_s1 + $0xd38] ss:$56 sps:$4 sm:$0xff]  }
 0x111   :  { %3121 = vmatprep.subr.bf16.mxu0 %v4338_v56  ;;  %v4396_v56 = vld [vmem:[%s6079_s1 + $0xd40] ss:$56 sps:$4 sm:$0xff]  }
 0x113   :  { %3040 = vmatpush1.bf16.msra.mxu1 %v4333_v58  ;;  %v4404_v58 = vld [vmem:[%s6079_s1 + $0xdb4] ss:$56 sps:$4 sm:$0xff]  }
 0x114   :  { %3122 = vmatpush1.bf16.msra.mxu0 %v4336_v59  ;;  %3041 = vmatprep.subr.bf16.mxu1 %v4341_v62  ;;  %v4399_v59 = vld [vmem:[%s6079_s1 + $0xda8] ss:$56 sps:$4 sm:$0xff]   ;;  %v4407_v62 = vld [vmem:[%s6079_s1 + $0x2c] ss:$56 sps:$4 sm:$0xff]  }
 0x115   :  { %3123 = vmatprep.subr.bf16.mxu0 %v4344_v47  ;;  %v2778_v5 = vpop.f32.mrb[0].mxu1  ;;  %v4410_v47 = vld [vmem:[%s6079_s1 + $0x34] ss:$56 sps:$4 sm:$0xff]  }
 0x116   :  { %v2819_v6 = vpop.f32.mrb[0].mxu0  ;;  %v2779_v9 = vadd.f32 %v2778_v5, %v5504_v2  ;;  %v2780_v10 = vpop.f32.mrb[1].mxu1  ;;  %v4411_v5 = vld [vmem:[%s6079_s1 + $0x98] ss:$56 sps:$4 sm:$0xff]  }
 0x117   :  { %v2821_v12 = vpop.f32.mrb[1].mxu0  ;;  %v2781_v13 = vadd.f32 %v2780_v10, %v5504_v2  ;;  %v2782_v14 = vpop.f32.mrb[2].mxu1  ;;  %3042 = vmatpush1.bf16.msra.mxu1 %v4339_v0  ;;  %v4405_v0 = vld [vmem:[%s6079_s1 + $0x28] ss:$56 sps:$4 sm:$0xff]  }
 0x118   :  { %v2823_v16 = vpop.f32.mrb[2].mxu0  ;;  %3124 = vmatpush1.bf16.msra.mxu0 %v4342_v1  ;;  %v5520_v17 = vadd.f32 %v2819_v6, %v2779_v9  ;;  %v2783_v18 = vpop.f32.mrb[3].mxu1  ;;  %3043 = vmatprep.subr.bf16.mxu1 %v4347_v3  ;;  %v4408_v1 = vld [vmem:[%s6079_s1 + $0x30] ss:$56 sps:$4 sm:$0xff]   ;;  %v4413_v3 = vld [vmem:[%s6079_s1 + $0x9c] ss:$56 sps:$4 sm:$0xff]  }
 0x119   :  { %v2824_v19 = vpop.f32.mrb[3].mxu0  ;;  %3125 = vmatprep.subr.bf16.mxu0 %v4350_v4  ;;  %v5528_v22 = vadd.f32 %v2821_v12, %v2781_v13  ;;  %v4416_v4 = vld [vmem:[%s6079_s1 + $0xa4] ss:$56 sps:$4 sm:$0xff]   ;;  %v4414_v6 = vld [vmem:[%s6079_s1 + $0xa0] ss:$56 sps:$4 sm:$0xff]  }
 0x11a   :  { %v4417_v9 = vld [vmem:[%s6079_s1 + $0x108] ss:$56 sps:$4 sm:$0xff]   ;;  %v4425_v12 = vld [vmem:[%s6079_s1 + $0x17c] ss:$56 sps:$4 sm:$0xff]   ;;  %v4423_v13 = vld [vmem:[%s6079_s1 + $0x178] ss:$56 sps:$4 sm:$0xff]  }
 0x11b   :  { %v3332_v25 = vcombine.low %v5520_v17, %v5528_v22  ;;  %3044 = vmatpush1.bf16.msra.mxu1 %v4345_v7  ;;  %v4419_v7 = vld [vmem:[%s6079_s1 + $0x10c] ss:$56 sps:$4 sm:$0xff]   ;;  %v4420_v10 = vld [vmem:[%s6079_s1 + $0x110] ss:$56 sps:$4 sm:$0xff]   ;;  %v4426_v14 = vld [vmem:[%s6079_s1 + $0x180] ss:$56 sps:$4 sm:$0xff]  }
 0x11c   :  { %3126 = vmatpush1.bf16.msra.mxu0 %v4348_v8  ;;  %3045 = vmatprep.subr.bf16.mxu1 %v4353_v20  ;;  %v4422_v8 = vld [vmem:[%s6079_s1 + $0x114] ss:$56 sps:$4 sm:$0xff]   ;;  %v4429_v19 = vld [vmem:[%s6079_s1 + $0x1e8] ss:$56 sps:$4 sm:$0xff]  }
 0x11d   :  { %3127 = vmatprep.subr.bf16.mxu0 %v4356_v21  ;;  %v4431_v16 = vld [vmem:[%s6079_s1 + $0x1ec] ss:$56 sps:$4 sm:$0xff]   ;;  %v4432_v20 = vld [vmem:[%s6079_s1 + $0x1f0] ss:$56 sps:$4 sm:$0xff]   ;;  %v4437_v21 = vld [vmem:[%s6079_s1 + $0x25c] ss:$56 sps:$4 sm:$0xff]  }
 0x11e   :  { %v4434_v18 = vld [vmem:[%s6079_s1 + $0x1f4] ss:$56 sps:$4 sm:$0xff]  }
 0x11f   :  { %3046 = vmatpush1.bf16.msra.mxu1 %v4351_v23  ;;  %v4440_v23 = vld [vmem:[%s6079_s1 + $0x264] ss:$56 sps:$4 sm:$0xff]   ;;  %v4554_v22 = vld [vmem:[%s6079_s1 + $0xab4] ss:$56 sps:$4 sm:$0xff]  }
 0x120   :  { %3128 = vmatpush1.bf16.msra.mxu0 %v4354_v24  ;;  %3047 = vmatprep.subr.bf16.mxu1 %v4359_v26  ;;  %v4435_v24 = vld [vmem:[%s6079_s1 + $0x258] ss:$56 sps:$4 sm:$0xff]   ;;  %v4551_v17 = vld [vmem:[%s6079_s1 + $0xaac] ss:$56 sps:$4 sm:$0xff]  }
 0x121   :  { %3129 = vmatprep.subr.bf16.mxu0 %v4362_v27  ;;  %v4438_v26 = vld [vmem:[%s6079_s1 + $0x260] ss:$56 sps:$4 sm:$0xff]   ;;  %v4443_v27 = vld [vmem:[%s6079_s1 + $0x2cc] ss:$56 sps:$4 sm:$0xff]  }
 0x123   :  { %3048 = vmatpush1.bf16.msra.mxu1 %v4357_v28  ;;  %v4446_v28 = vld [vmem:[%s6079_s1 + $0x2d4] ss:$56 sps:$4 sm:$0xff]  }
 0x124   :  { %3130 = vmatpush1.bf16.msra.mxu0 %v4360_v29  ;;  %3049 = vmatprep.subr.bf16.mxu1 %v4365_v30  ;;  %v4441_v29 = vld [vmem:[%s6079_s1 + $0x2c8] ss:$56 sps:$4 sm:$0xff]  }
 0x125   :  { %3131 = vmatprep.subr.bf16.mxu0 %v4368_v31  ;;  %v4444_v30 = vld [vmem:[%s6079_s1 + $0x2d0] ss:$56 sps:$4 sm:$0xff]   ;;  %v4449_v31 = vld [vmem:[%s6079_s1 + $0x33c] ss:$56 sps:$4 sm:$0xff]  }
 0x127   :  { %3050 = vmatpush1.bf16.msra.mxu1 %v4363_v32  ;;  %v4452_v32 = vld [vmem:[%s6079_s1 + $0x344] ss:$56 sps:$4 sm:$0xff]  }
 0x128   :  { %3132 = vmatpush1.bf16.msra.mxu0 %v4366_v33  ;;  %3051 = vmatprep.subr.bf16.mxu1 %v4371_v34  ;;  %v4447_v33 = vld [vmem:[%s6079_s1 + $0x338] ss:$56 sps:$4 sm:$0xff]  }
 0x129   :  { %3133 = vmatprep.subr.bf16.mxu0 %v4374_v35  ;;  %v4450_v34 = vld [vmem:[%s6079_s1 + $0x340] ss:$56 sps:$4 sm:$0xff]   ;;  %v4455_v35 = vld [vmem:[%s6079_s1 + $0x3ac] ss:$56 sps:$4 sm:$0xff]  }
 0x12b   :  { %3052 = vmatpush1.bf16.msra.mxu1 %v4369_v36  ;;  %v4458_v36 = vld [vmem:[%s6079_s1 + $0x3b4] ss:$56 sps:$4 sm:$0xff]  }
 0x12c   :  { %3134 = vmatpush1.bf16.msra.mxu0 %v4372_v37  ;;  %3053 = vmatprep.subr.bf16.mxu1 %v4377_v38  ;;  %v4453_v37 = vld [vmem:[%s6079_s1 + $0x3a8] ss:$56 sps:$4 sm:$0xff]  }
 0x12d   :  { %3135 = vmatprep.subr.bf16.mxu0 %v4380_v39  ;;  %v4456_v38 = vld [vmem:[%s6079_s1 + $0x3b0] ss:$56 sps:$4 sm:$0xff]   ;;  %v4461_v39 = vld [vmem:[%s6079_s1 + $0x41c] ss:$56 sps:$4 sm:$0xff]  }
 0x12f   :  { %3054 = vmatpush1.bf16.msra.mxu1 %v4375_v41  ;;  %v4464_v41 = vld [vmem:[%s6079_s1 + $0x424] ss:$56 sps:$4 sm:$0xff]  }
 0x130   :  { %3136 = vmatpush1.bf16.msra.mxu0 %v4378_v42  ;;  %3055 = vmatprep.subr.bf16.mxu1 %v4383_v43  ;;  %v4459_v42 = vld [vmem:[%s6079_s1 + $0x418] ss:$56 sps:$4 sm:$0xff]  }
 0x131   :  { %3137 = vmatprep.subr.bf16.mxu0 %v4386_v44  ;;  %v4462_v43 = vld [vmem:[%s6079_s1 + $0x420] ss:$56 sps:$4 sm:$0xff]   ;;  %v4467_v44 = vld [vmem:[%s6079_s1 + $0x48c] ss:$56 sps:$4 sm:$0xff]  }
 0x133   :  { %3056 = vmatpush1.bf16.msra.mxu1 %v4381_v45  ;;  %v4470_v45 = vld [vmem:[%s6079_s1 + $0x494] ss:$56 sps:$4 sm:$0xff]  }
 0x134   :  { %3138 = vmatpush1.bf16.msra.mxu0 %v4384_v46  ;;  %3057 = vmatprep.subr.bf16.mxu1 %v4389_v48  ;;  %v4465_v46 = vld [vmem:[%s6079_s1 + $0x488] ss:$56 sps:$4 sm:$0xff]  }
 0x135   :  { %3139 = vmatprep.subr.bf16.mxu0 %v4392_v49  ;;  %v4468_v48 = vld [vmem:[%s6079_s1 + $0x490] ss:$56 sps:$4 sm:$0xff]   ;;  %v4473_v49 = vld [vmem:[%s6079_s1 + $0x4fc] ss:$56 sps:$4 sm:$0xff]  }
 0x137   :  { %3058 = vmatpush1.bf16.msra.mxu1 %v4387_v50  ;;  %v4476_v50 = vld [vmem:[%s6079_s1 + $0x504] ss:$56 sps:$4 sm:$0xff]  }
 0x138   :  { %3140 = vmatpush1.bf16.msra.mxu0 %v4390_v51  ;;  %3059 = vmatprep.subr.bf16.mxu1 %v4395_v52  ;;  %v4471_v51 = vld [vmem:[%s6079_s1 + $0x4f8] ss:$56 sps:$4 sm:$0xff]  }
 0x139   :  { %3141 = vmatprep.subr.bf16.mxu0 %v4398_v54  ;;  %v4474_v52 = vld [vmem:[%s6079_s1 + $0x500] ss:$56 sps:$4 sm:$0xff]   ;;  %v4479_v54 = vld [vmem:[%s6079_s1 + $0x56c] ss:$56 sps:$4 sm:$0xff]  }
 0x13b   :  { %3060 = vmatpush1.bf16.msra.mxu1 %v4393_v55  ;;  %v4482_v55 = vld [vmem:[%s6079_s1 + $0x574] ss:$56 sps:$4 sm:$0xff]  }
 0x13c   :  { %3142 = vmatpush1.bf16.msra.mxu0 %v4396_v56  ;;  %3061 = vmatprep.subr.bf16.mxu1 %v4401_v57  ;;  %v4477_v56 = vld [vmem:[%s6079_s1 + $0x568] ss:$56 sps:$4 sm:$0xff]  }
 0x13d   :  { %3143 = vmatprep.subr.bf16.mxu0 %v4404_v58  ;;  %v4480_v57 = vld [vmem:[%s6079_s1 + $0x570] ss:$56 sps:$4 sm:$0xff]   ;;  %v4485_v58 = vld [vmem:[%s6079_s1 + $0x5dc] ss:$56 sps:$4 sm:$0xff]  }
 0x13f   :  { %3062 = vmatpush1.bf16.msra.mxu1 %v4399_v59  ;;  %v4488_v59 = vld [vmem:[%s6079_s1 + $0x5e4] ss:$56 sps:$4 sm:$0xff]  }
 0x140   :  { %3144 = vmatpush1.bf16.msra.mxu0 %v4402_v61  ;;  %3154 = vmatprep.subr.bf16.mxu1 %v4407_v62  ;;  %v4483_v61 = vld [vmem:[%s6079_s1 + $0x5d8] ss:$56 sps:$4 sm:$0xff]  }
 0x141   :  { %3236 = vmatprep.subr.bf16.mxu0 %v4410_v47  ;;  %v4486_v62 = vld [vmem:[%s6079_s1 + $0x5e0] ss:$56 sps:$4 sm:$0xff]   ;;  %v4491_v47 = vld [vmem:[%s6079_s1 + $0x64c] ss:$56 sps:$4 sm:$0xff]  }
 0x142   :  { %3064 = vmatmul.mubr.bf16.vlgmr.msra.gmra.mrb[8].mxu1 %v4843_v15 }
 0x143   :  { %3146 = vmatmul.mubr.bf16.vlgmr.msra.gmra.mrb[8].mxu0 %v4843_v15  ;;  %3155 = vmatpush1.bf16.msra.mxu1 %v4405_v0  ;;  %v4494_v0 = vld [vmem:[%s6079_s1 + $0x654] ss:$56 sps:$4 sm:$0xff]  }
 0x144   :  { %3237 = vmatpush1.bf16.msra.mxu0 %v4408_v1  ;;  %3156 = vmatprep.subr.bf16.mxu1 %v4413_v3  ;;  %v4489_v1 = vld [vmem:[%s6079_s1 + $0x648] ss:$56 sps:$4 sm:$0xff]  }
 0x145   :  { %3238 = vmatprep.subr.bf16.mxu0 %v4416_v4  ;;  %3186 = vmatprep.mubr.bf16.mxu1 %v4782_v60  ;;  %v4492_v3 = vld [vmem:[%s6079_s1 + $0x650] ss:$56 sps:$4 sm:$0xff]   ;;  %v4497_v4 = vld [vmem:[%s6079_s1 + $0x6bc] ss:$56 sps:$4 sm:$0xff]  }
 0x146   :  { %3268 = vmatprep.mubr.bf16.mxu0 %v4782_v60  ;;  %v4428_v60 = vld [vmem:[%s6079_s1 + $0x184] ss:$56 sps:$4 sm:$0xff]  }
 0x147   :  { %3157 = vmatpush1.bf16.msra.mxu1 %v4411_v5  ;;  %v4500_v5 = vld [vmem:[%s6079_s1 + $0x6c4] ss:$56 sps:$4 sm:$0xff]  }
 0x148   :  { %3239 = vmatpush1.bf16.msra.mxu0 %v4414_v6  ;;  %3158 = vmatprep.subr.bf16.mxu1 %v4419_v7  ;;  %v4495_v6 = vld [vmem:[%s6079_s1 + $0x6b8] ss:$56 sps:$4 sm:$0xff]  }
 0x149   :  { %3240 = vmatprep.subr.bf16.mxu0 %v4422_v8  ;;  %v4498_v7 = vld [vmem:[%s6079_s1 + $0x6c0] ss:$56 sps:$4 sm:$0xff]   ;;  %v4503_v8 = vld [vmem:[%s6079_s1 + $0x72c] ss:$56 sps:$4 sm:$0xff]  }
 0x14b   :  { %3159 = vmatpush1.bf16.msra.mxu1 %v4417_v9  ;;  %v4506_v9 = vld [vmem:[%s6079_s1 + $0x734] ss:$56 sps:$4 sm:$0xff]  }
 0x14c   :  { %3241 = vmatpush1.bf16.msra.mxu0 %v4420_v10  ;;  %3160 = vmatprep.subr.bf16.mxu1 %v4425_v12  ;;  %v4501_v10 = vld [vmem:[%s6079_s1 + $0x728] ss:$56 sps:$4 sm:$0xff]  }
 0x14d   :  { %3242 = vmatprep.subr.bf16.mxu0 %v4428_v60  ;;  %v4504_v12 = vld [vmem:[%s6079_s1 + $0x730] ss:$56 sps:$4 sm:$0xff]   ;;  %v4509_v60 = vld [vmem:[%s6079_s1 + $0x79c] ss:$56 sps:$4 sm:$0xff]  }
 0x14f   :  { %3161 = vmatpush1.bf16.msra.mxu1 %v4423_v13  ;;  %v4512_v13 = vld [vmem:[%s6079_s1 + $0x7a4] ss:$56 sps:$4 sm:$0xff]  }
 0x150   :  { %3243 = vmatpush1.bf16.msra.mxu0 %v4426_v14  ;;  %3162 = vmatprep.subr.bf16.mxu1 %v4431_v16  ;;  %v4507_v14 = vld [vmem:[%s6079_s1 + $0x798] ss:$56 sps:$4 sm:$0xff]  }
 0x151   :  { %3244 = vmatprep.subr.bf16.mxu0 %v4434_v18  ;;  %v4510_v16 = vld [vmem:[%s6079_s1 + $0x7a0] ss:$56 sps:$4 sm:$0xff]   ;;  %v4515_v18 = vld [vmem:[%s6079_s1 + $0x80c] ss:$56 sps:$4 sm:$0xff]  }
 0x153   :  { %3163 = vmatpush1.bf16.msra.mxu1 %v4429_v19  ;;  %v4513_v19 = vld [vmem:[%s6079_s1 + $0x808] ss:$56 sps:$4 sm:$0xff]  }
 0x154   :  { %3245 = vmatpush1.bf16.msra.mxu0 %v4432_v20  ;;  %3164 = vmatprep.subr.bf16.mxu1 %v4437_v21  ;;  %v4516_v20 = vld [vmem:[%s6079_s1 + $0x810] ss:$56 sps:$4 sm:$0xff]   ;;  %v4521_v21 = vld [vmem:[%s6079_s1 + $0x87c] ss:$56 sps:$4 sm:$0xff]  }
 0x155   :  { %3246 = vmatprep.subr.bf16.mxu0 %v4440_v23  ;;  %v4519_v23 = vld [vmem:[%s6079_s1 + $0x878] ss:$56 sps:$4 sm:$0xff]  }
 0x157   :  { %3165 = vmatpush1.bf16.msra.mxu1 %v4435_v24  ;;  %v4522_v24 = vld [vmem:[%s6079_s1 + $0x880] ss:$56 sps:$4 sm:$0xff]  }
 0x158   :  { %3247 = vmatpush1.bf16.msra.mxu0 %v4438_v26  ;;  %3166 = vmatprep.subr.bf16.mxu1 %v4443_v27  ;;  %v4527_v26 = vld [vmem:[%s6079_s1 + $0x8ec] ss:$56 sps:$4 sm:$0xff]  }
 0x159   :  { %3248 = vmatprep.subr.bf16.mxu0 %v4446_v28  ;;  %v4530_v27 = vld [vmem:[%s6079_s1 + $0x8f4] ss:$56 sps:$4 sm:$0xff]   ;;  %v4525_v28 = vld [vmem:[%s6079_s1 + $0x8e8] ss:$56 sps:$4 sm:$0xff]  }
 0x15b   :  { %3167 = vmatpush1.bf16.msra.mxu1 %v4441_v29  ;;  %v4528_v29 = vld [vmem:[%s6079_s1 + $0x8f0] ss:$56 sps:$4 sm:$0xff]  }
 0x15c   :  { %3249 = vmatpush1.bf16.msra.mxu0 %v4444_v30  ;;  %3168 = vmatprep.subr.bf16.mxu1 %v4449_v31  ;;  %v4533_v30 = vld [vmem:[%s6079_s1 + $0x95c] ss:$56 sps:$4 sm:$0xff]  }
 0x15d   :  { %3250 = vmatprep.subr.bf16.mxu0 %v4452_v32  ;;  %v4536_v31 = vld [vmem:[%s6079_s1 + $0x964] ss:$56 sps:$4 sm:$0xff]   ;;  %v4531_v32 = vld [vmem:[%s6079_s1 + $0x958] ss:$56 sps:$4 sm:$0xff]  }
 0x15f   :  { %3169 = vmatpush1.bf16.msra.mxu1 %v4447_v33  ;;  %v4534_v33 = vld [vmem:[%s6079_s1 + $0x960] ss:$56 sps:$4 sm:$0xff]  }
 0x160   :  { %3251 = vmatpush1.bf16.msra.mxu0 %v4450_v34  ;;  %3170 = vmatprep.subr.bf16.mxu1 %v4455_v35  ;;  %v4539_v34 = vld [vmem:[%s6079_s1 + $0x9cc] ss:$56 sps:$4 sm:$0xff]  }
 0x161   :  { %3252 = vmatprep.subr.bf16.mxu0 %v4458_v36  ;;  %v4542_v35 = vld [vmem:[%s6079_s1 + $0x9d4] ss:$56 sps:$4 sm:$0xff]  }
 0x163   :  { %3171 = vmatpush1.bf16.msra.mxu1 %v4453_v37 }
 0x164   :  { %3253 = vmatpush1.bf16.msra.mxu0 %v4456_v38  ;;  %3172 = vmatprep.subr.bf16.mxu1 %v4461_v39 }
 0x165   :  { %3254 = vmatprep.subr.bf16.mxu0 %v4464_v41 }
 0x167   :  { %3173 = vmatpush1.bf16.msra.mxu1 %v4459_v42 }
 0x168   :  { %3255 = vmatpush1.bf16.msra.mxu0 %v4462_v43  ;;  %3174 = vmatprep.subr.bf16.mxu1 %v4467_v44 }
 0x169   :  { %3256 = vmatprep.subr.bf16.mxu0 %v4470_v45 }
 0x16b   :  { %3175 = vmatpush1.bf16.msra.mxu1 %v4465_v46 }
 0x16c   :  { %3257 = vmatpush1.bf16.msra.mxu0 %v4468_v48  ;;  %3176 = vmatprep.subr.bf16.mxu1 %v4473_v49  ;;  %v4537_v48 = vld [vmem:[%s6079_s1 + $0x9c8] ss:$56 sps:$4 sm:$0xff]  }
 0x16d   :  { %3258 = vmatprep.subr.bf16.mxu0 %v4476_v50  ;;  %v4540_v49 = vld [vmem:[%s6079_s1 + $0x9d0] ss:$56 sps:$4 sm:$0xff]  }
 0x16f   :  { %3177 = vmatpush1.bf16.msra.mxu1 %v4471_v51 }
 0x170   :  { %3259 = vmatpush1.bf16.msra.mxu0 %v4474_v52  ;;  %3178 = vmatprep.subr.bf16.mxu1 %v4479_v54  ;;  %v4545_v52 = vld [vmem:[%s6079_s1 + $0xa3c] ss:$56 sps:$4 sm:$0xff]  }
 0x171   :  { %3260 = vmatprep.subr.bf16.mxu0 %v4482_v55  ;;  %v4548_v54 = vld [vmem:[%s6079_s1 + $0xa44] ss:$56 sps:$4 sm:$0xff]  }
 0x173   :  { %3179 = vmatpush1.bf16.msra.mxu1 %v4477_v56 }
 0x174   :  { %3261 = vmatpush1.bf16.msra.mxu0 %v4480_v57  ;;  %3180 = vmatprep.subr.bf16.mxu1 %v4485_v58  ;;  %v5938_v57 = vrot.slane %v3332_v25, %v4764_v53 }
 0x175   :  { %3262 = vmatprep.subr.bf16.mxu0 %v4488_v59  ;;  %v4543_v59 = vld [vmem:[%s6079_s1 + $0xa38] ss:$56 sps:$4 sm:$0xff]  }
 0x177   :  { %3181 = vmatpush1.bf16.msra.mxu1 %v4483_v61  ;;  %v4546_v61 = vld [vmem:[%s6079_s1 + $0xa40] ss:$56 sps:$4 sm:$0xff]  }
 0x178   :  { %3263 = vmatpush1.bf16.msra.mxu0 %v4486_v62  ;;  %3182 = vmatprep.subr.bf16.mxu1 %v4491_v47  ;;  %v4549_v62 = vld [vmem:[%s6079_s1 + $0xaa8] ss:$56 sps:$4 sm:$0xff]  }
 0x179   :  { %3264 = vmatprep.subr.bf16.mxu0 %v4494_v0  ;;  %v4552_v47 = vld [vmem:[%s6079_s1 + $0xab0] ss:$56 sps:$4 sm:$0xff]   ;;  %v4557_v0 = vld [vmem:[%s6079_s1 + $0xb1c] ss:$56 sps:$4 sm:$0xff]  }
 0x17b   :  { %3183 = vmatpush1.bf16.msra.mxu1 %v4489_v1  ;;  %v4560_v1 = vld [vmem:[%s6079_s1 + $0xb24] ss:$56 sps:$4 sm:$0xff]  }
 0x17c   :  { %3265 = vmatpush1.bf16.msra.mxu0 %v4492_v3  ;;  %3184 = vmatprep.subr.bf16.mxu1 %v4497_v4  ;;  %v4555_v3 = vld [vmem:[%s6079_s1 + $0xb18] ss:$56 sps:$4 sm:$0xff]  }
 0x17d   :  { %3266 = vmatprep.subr.bf16.mxu0 %v4500_v5  ;;  %v4558_v4 = vld [vmem:[%s6079_s1 + $0xb20] ss:$56 sps:$4 sm:$0xff]   ;;  %v4563_v5 = vld [vmem:[%s6079_s1 + $0xb8c] ss:$56 sps:$4 sm:$0xff]  }
 0x17f   :  { %3185 = vmatpush1.bf16.msra.mxu1 %v4495_v6  ;;  %v4566_v6 = vld [vmem:[%s6079_s1 + $0xb94] ss:$56 sps:$4 sm:$0xff]  }
 0x180   :  { %3267 = vmatpush1.bf16.msra.mxu0 %v4498_v7  ;;  %3195 = vmatprep.subr.bf16.mxu1 %v4503_v8  ;;  %v4561_v7 = vld [vmem:[%s6079_s1 + $0xb88] ss:$56 sps:$4 sm:$0xff]  }
 0x181   :  { %3277 = vmatprep.subr.bf16.mxu0 %v4506_v9  ;;  %v4564_v8 = vld [vmem:[%s6079_s1 + $0xb90] ss:$56 sps:$4 sm:$0xff]   ;;  %v4569_v9 = vld [vmem:[%s6079_s1 + $0xbfc] ss:$56 sps:$4 sm:$0xff]  }
 0x182   :  { %3187 = vmatmul.mubr.bf16.vlgmr.msra.gmra.mrb[12].mxu1 %v4830_v11 }
 0x183   :  { %3269 = vmatmul.mubr.bf16.vlgmr.msra.gmra.mrb[12].mxu0 %v4830_v11  ;;  %3196 = vmatpush1.bf16.msra.mxu1 %v4501_v10  ;;  %v4518_v11 = vld [vmem:[%s6079_s1 + $0x814] ss:$56 sps:$4 sm:$0xff]   ;;  %v4572_v10 = vld [vmem:[%s6079_s1 + $0xc04] ss:$56 sps:$4 sm:$0xff]  }
 0x184   :  { %3278 = vmatpush1.bf16.msra.mxu0 %v4504_v12  ;;  %3197 = vmatprep.subr.bf16.mxu1 %v4509_v60  ;;  %v4567_v12 = vld [vmem:[%s6079_s1 + $0xbf8] ss:$56 sps:$4 sm:$0xff]  }
 0x185   :  { %3279 = vmatprep.subr.bf16.mxu0 %v4512_v13  ;;  %3227 = vmatprep.mubr.bf16.mxu1 %v4792_v63  ;;  %v4570_v60 = vld [vmem:[%s6079_s1 + $0xc00] ss:$56 sps:$4 sm:$0xff]   ;;  %v4575_v13 = vld [vmem:[%s6079_s1 + $0xc6c] ss:$56 sps:$4 sm:$0xff]  }
 0x186   :  { %3309 = vmatprep.mubr.bf16.mxu0 %v4792_v63  ;;  %v4524_v63 = vld [vmem:[%s6079_s1 + $0x884] ss:$56 sps:$4 sm:$0xff]  }
 0x187   :  { %3198 = vmatpush1.bf16.msra.mxu1 %v4507_v14  ;;  %v4578_v14 = vld [vmem:[%s6079_s1 + $0xc74] ss:$56 sps:$4 sm:$0xff]  }
 0x188   :  { %3280 = vmatpush1.bf16.msra.mxu0 %v4510_v16  ;;  %3199 = vmatprep.subr.bf16.mxu1 %v4515_v18  ;;  %v4573_v16 = vld [vmem:[%s6079_s1 + $0xc68] ss:$56 sps:$4 sm:$0xff]  }
 0x189   :  { %3281 = vmatprep.subr.bf16.mxu0 %v4518_v11  ;;  %v4576_v18 = vld [vmem:[%s6079_s1 + $0xc70] ss:$56 sps:$4 sm:$0xff]   ;;  %v4581_v11 = vld [vmem:[%s6079_s1 + $0xcdc] ss:$56 sps:$4 sm:$0xff]  }
 0x18b   :  { %3200 = vmatpush1.bf16.msra.mxu1 %v4513_v19  ;;  %v4584_v19 = vld [vmem:[%s6079_s1 + $0xce4] ss:$56 sps:$4 sm:$0xff]  }
 0x18c   :  { %3282 = vmatpush1.bf16.msra.mxu0 %v4516_v20  ;;  %3201 = vmatprep.subr.bf16.mxu1 %v4521_v21  ;;  %v4579_v20 = vld [vmem:[%s6079_s1 + $0xcd8] ss:$56 sps:$4 sm:$0xff]  }
 0x18d   :  { %3283 = vmatprep.subr.bf16.mxu0 %v4524_v63  ;;  %v4582_v21 = vld [vmem:[%s6079_s1 + $0xce0] ss:$56 sps:$4 sm:$0xff]   ;;  %v4587_v63 = vld [vmem:[%s6079_s1 + $0xd4c] ss:$56 sps:$4 sm:$0xff]  }
 0x18f   :  { %3202 = vmatpush1.bf16.msra.mxu1 %v4519_v23  ;;  %v4590_v23 = vld [vmem:[%s6079_s1 + $0xd54] ss:$56 sps:$4 sm:$0xff]  }
 0x190   :  { %3284 = vmatpush1.bf16.msra.mxu0 %v4522_v24  ;;  %3203 = vmatprep.subr.bf16.mxu1 %v4527_v26  ;;  %v4585_v24 = vld [vmem:[%s6079_s1 + $0xd48] ss:$56 sps:$4 sm:$0xff]  }
 0x191   :  { %3285 = vmatprep.subr.bf16.mxu0 %v4530_v27  ;;  %v4588_v26 = vld [vmem:[%s6079_s1 + $0xd50] ss:$56 sps:$4 sm:$0xff]   ;;  %v4593_v27 = vld [vmem:[%s6079_s1 + $0xdbc] ss:$56 sps:$4 sm:$0xff]  }
 0x193   :  { %3204 = vmatpush1.bf16.msra.mxu1 %v4525_v28  ;;  %v4596_v28 = vld [vmem:[%s6079_s1 + $0xdc4] ss:$56 sps:$4 sm:$0xff]  }
 0x194   :  { %3286 = vmatpush1.bf16.msra.mxu0 %v4528_v29  ;;  %3205 = vmatprep.subr.bf16.mxu1 %v4533_v30  ;;  %v4591_v29 = vld [vmem:[%s6079_s1 + $0xdb8] ss:$56 sps:$4 sm:$0xff]  }
 0x195   :  { %3287 = vmatprep.subr.bf16.mxu0 %v4536_v31  ;;  %v2901_v36 = vpop.f32.mrb[4].mxu1  ;;  %v4594_v30 = vld [vmem:[%s6079_s1 + $0xdc0] ss:$56 sps:$4 sm:$0xff]  }
 0x196   :  { %v2983_v37 = vpop.f32.mrb[4].mxu0  ;;  %v3886_v38 = vadd.f32 %v2901_v36, %v5504_v2  ;;  %v2903_v41 = vpop.f32.mrb[5].mxu1 }
 0x197   :  { %v5914_v39 = vadd.f32 %v2983_v37, %v5504_v2  ;;  %v2985_v42 = vpop.f32.mrb[5].mxu0  ;;  %v3887_v43 = vadd.f32 %v2903_v41, %v5504_v2  ;;  %v2905_v45 = vpop.f32.mrb[6].mxu1  ;;  %3206 = vmatpush1.bf16.msra.mxu1 %v4531_v32 }
 0x198   :  { %v5918_v44 = vadd.f32 %v2985_v42, %v5504_v2  ;;  %v2987_v46 = vpop.f32.mrb[6].mxu0  ;;  %3288 = vmatpush1.bf16.msra.mxu0 %v4534_v33  ;;  %v2906_v50 = vpop.f32.mrb[7].mxu1  ;;  %3207 = vmatprep.subr.bf16.mxu1 %v4539_v34 }
 0x199   :  { %v2988_v51 = vpop.f32.mrb[7].mxu0  ;;  %3289 = vmatprep.subr.bf16.mxu0 %v4542_v35  ;;  %v3333_v55 = vcombine.low %v3886_v38, %v3887_v43 }
 0x19a   :  { %v3334_v56 = vcombine.low %v5914_v39, %v5918_v44 }
 0x19b   :  { %v5941_v58 = vrot.slane %v3333_v55, %v4764_v53  ;;  %3208 = vmatpush1.bf16.msra.mxu1 %v4537_v48 }
 0x19c   :  { %3290 = vmatpush1.bf16.msra.mxu0 %v4540_v49  ;;  %3209 = vmatprep.subr.bf16.mxu1 %v4545_v52 }
 0x19d   :  { %3291 = vmatprep.subr.bf16.mxu0 %v4548_v54  ;;  %v3364_v25 = vcombine.low %v5938_v57, %v5941_v58 }
 0x19f   :  { %3210 = vmatpush1.bf16.msra.mxu1 %v4543_v59  ;;  %v3372_v51 = vrot.slane %v3364_v25, %v4764_v53 }
 0x1a0   :  { %3292 = vmatpush1.bf16.msra.mxu0 %v4546_v61  ;;  %3211 = vmatprep.subr.bf16.mxu1 %v4551_v17 }
 0x1a1   :  { %3293 = vmatprep.subr.bf16.mxu0 %v4554_v22 }
 0x1a3   :  { %3212 = vmatpush1.bf16.msra.mxu1 %v4549_v62 }
 0x1a4   :  { %3294 = vmatpush1.bf16.msra.mxu0 %v4552_v47  ;;  %3213 = vmatprep.subr.bf16.mxu1 %v4557_v0 }
 0x1a5   :  { %3295 = vmatprep.subr.bf16.mxu0 %v4560_v1 }
 0x1a7   :  { %3214 = vmatpush1.bf16.msra.mxu1 %v4555_v3 }
 0x1a8   :  { %3296 = vmatpush1.bf16.msra.mxu0 %v4558_v4  ;;  %3215 = vmatprep.subr.bf16.mxu1 %v4563_v5 }
 0x1a9   :  { %3297 = vmatprep.subr.bf16.mxu0 %v4566_v6 }
 0x1ab   :  { %3216 = vmatpush1.bf16.msra.mxu1 %v4561_v7 }
 0x1ac   :  { %3298 = vmatpush1.bf16.msra.mxu0 %v4564_v8  ;;  %3217 = vmatprep.subr.bf16.mxu1 %v4569_v9 }
 0x1ad   :  { %3299 = vmatprep.subr.bf16.mxu0 %v4572_v10 }
 0x1af   :  { %3218 = vmatpush1.bf16.msra.mxu1 %v4567_v12 }
 0x1b0   :  { %3300 = vmatpush1.bf16.msra.mxu0 %v4570_v60  ;;  %3219 = vmatprep.subr.bf16.mxu1 %v4575_v13 }
 0x1b1   :  { %3301 = vmatprep.subr.bf16.mxu0 %v4578_v14 }
 0x1b3   :  { %3220 = vmatpush1.bf16.msra.mxu1 %v4573_v16 }
 0x1b4   :  { %3302 = vmatpush1.bf16.msra.mxu0 %v4576_v18  ;;  %3221 = vmatprep.subr.bf16.mxu1 %v4581_v11 }
 0x1b5   :  { %3303 = vmatprep.subr.bf16.mxu0 %v4584_v19 }
 0x1b7   :  { %3222 = vmatpush1.bf16.msra.mxu1 %v4579_v20 }
 0x1b8   :  { %3304 = vmatpush1.bf16.msra.mxu0 %v4582_v21  ;;  %3223 = vmatprep.subr.bf16.mxu1 %v4587_v63 }
 0x1b9   :  { %3305 = vmatprep.subr.bf16.mxu0 %v4590_v23 }
 0x1bb   :  { %3224 = vmatpush1.bf16.msra.mxu1 %v4585_v24 }
 0x1bc   :  { %3306 = vmatpush1.bf16.msra.mxu0 %v4588_v26  ;;  %3225 = vmatprep.subr.bf16.mxu1 %v4593_v27 }
 0x1bd   :  { %3307 = vmatprep.subr.bf16.mxu0 %v4596_v28 }
 0x1bf   :  { %3226 = vmatpush1.bf16.msra.mxu1 %v4591_v29 }
 0x1c0   :  { %3308 = vmatpush1.bf16.msra.mxu0 %v4594_v30 }
 0x1c2   :  { %3228 = vmatmul.mubr.bf16.vlgmr.msra.gmra.mrb[12].mxu1 %v4843_v15 }
 0x1c3   :  { %3310 = vmatmul.mubr.bf16.vlgmr.msra.gmra.mrb[12].mxu0 %v4843_v15  ;;  %v3356_v15 = vrot.slane %v3334_v56, %v4764_v53 }
 0x215   :  { %v3065_v31 = vpop.f32.mrb[8].mxu1 }
 0x216   :  { %v3147_v32 = vpop.f32.mrb[8].mxu0  ;;  %v3890_v33 = vadd.f32 %v3065_v31, %v5504_v2  ;;  %v3067_v35 = vpop.f32.mrb[9].mxu1 }
 0x217   :  { %v3892_v34 = vadd.f32 %v3147_v32, %v5504_v2  ;;  %v3149_v36 = vpop.f32.mrb[9].mxu0  ;;  %v3891_v37 = vadd.f32 %v3067_v35, %v5504_v2  ;;  %v3069_v41 = vpop.f32.mrb[10].mxu1 }
 0x218   :  { %v3893_v38 = vadd.f32 %v3149_v36, %v5504_v2  ;;  %v3151_v42 = vpop.f32.mrb[10].mxu0  ;;  %v3070_v43 = vpop.f32.mrb[11].mxu1 }
 0x219   :  { %v3152_v45 = vpop.f32.mrb[11].mxu0  ;;  %v3335_v46 = vcombine.low %v3890_v33, %v3891_v37 }
 0x21a   :  { %v3381_v48 = vcombine.low %v3892_v34, %v3893_v38 }
 0x21b   :  { %v3363_v49 = vrot.slane %v3335_v46, %v4764_v53 }
 0x21c   :  { %v3390_v1 = vrot.slane %v3381_v48, %v4764_v53 }
 0x21d   :  { %v3365_v50 = vcombine.low %v3356_v15, %v3363_v49 }
 0x21f   :  { %v3379_v52 = vrot.slane %v3365_v50, %v4764_v53 }
 0x221   :  { %v3380_v54 = vcombine.low %v3372_v51, %v3379_v52 }
 0x223   :  { %3423 = vst [vmem:[%s6082_s3] sm:$0xff] %v3380_v54 }
 0x295   :  { %v3229_v55 = vpop.f32.mrb[12].mxu1 }
 0x296   :  { %v3311_v59 = vpop.f32.mrb[12].mxu0  ;;  %v3894_v39 = vadd.f32 %v3229_v55, %v5504_v2  ;;  %v3231_v56 = vpop.f32.mrb[13].mxu1 }
 0x297   :  { %v3896_v44 = vadd.f32 %v3311_v59, %v5504_v2  ;;  %v3313_v61 = vpop.f32.mrb[13].mxu0  ;;  %v3895_v17 = vadd.f32 %v3231_v56, %v5504_v2  ;;  %v3233_v58 = vpop.f32.mrb[14].mxu1 }
 0x298   :  { %v3897_v57 = vadd.f32 %v3313_v61, %v5504_v2  ;;  %v3315_v22 = vpop.f32.mrb[14].mxu0  ;;  %v3234_v25 = vpop.f32.mrb[15].mxu1 }
 0x299   :  { %v3316_v62 = vpop.f32.mrb[15].mxu0  ;;  %v3382_v47 = vcombine.low %v3894_v39, %v3895_v17 }
 0x29a   :  { %v3383_v0 = vcombine.low %v3896_v44, %v3897_v57 }
 0x29b   :  { %v3397_v3 = vrot.slane %v3382_v47, %v4764_v53 }
 0x29c   :  { %v3404_v4 = vrot.slane %v3383_v0, %v4764_v53 }
 0x29d   :  { %v3405_v5 = vcombine.low %v3390_v1, %v3397_v3 }
 0x29e   :  { %v3419_v7 = vrot.slane %v3404_v4, %v4764_v53 }
 0x29f   :  { %v3412_v6 = vrot.slane %v3405_v5, %v4764_v53 }
 0x2a1   :  { %v3420_v2 = vcombine.low %v3412_v6, %v3419_v7 }
 0x2a3   :  { %3428 = vst.msk [vmem:[%s6082_s3 + $0x8] sm:$0x3f] %vm3426_vm0, %v3420_v2 }

</bundles_post_ra>
